<compile_context>
chip_gen: v7x
topology: tpu7x:2x2x1
jax: 0.10.0
libtpu: 0.0.40
codegen_flags: <defaults>
</compile_context>

<pallas_src>
import math
from functools import partial

import jax
import jax.numpy as jnp
from jax.experimental import pallas as pl
from jax.experimental.pallas import tpu as pltpu

d_k = d_v = 64
d_model = 512
n_heads = 8
d_ff = 2048

_LN_EPS = 1e-5


def _row_tile(n, target):
    """Largest row tile <= target that divides n (multiple of 8 when possible)."""
    if n <= target:
        return n
    t = target
    while t >= 8:
        if n % t == 0:
            return t
        t -= 8
    return n


def _layernorm(y):
    mu = jnp.mean(y, axis=-1, keepdims=True)
    var = jnp.mean(jnp.square(y - mu), axis=-1, keepdims=True)
    return (y - mu) * jax.lax.rsqrt(var + jnp.float32(_LN_EPS))


# ---------------------------------------------------------------------------
# Kernel 1: fused Q/K/V projection  x @ [Wq | Wk | Wv]  (row-tiled, bf16 MXU)
# ---------------------------------------------------------------------------
def _qkv_kernel(x_ref, w_ref, q_ref, k_ref, v_ref):
    y = jnp.dot(x_ref[...].astype(jnp.bfloat16), w_ref[...],
                preferred_element_type=jnp.float32)        # (tm, 3*d_model) f32
    q_ref[...] = y[:, 0:d_model]
    k_ref[...] = y[:, d_model:2 * d_model]
    v_ref[...] = y[:, 2 * d_model:3 * d_model]


def _qkv_project(x2d, wqkv_bf16):
    N = x2d.shape[0]
    tm = _row_tile(N, 512)
    out_sds = jax.ShapeDtypeStruct((N, d_model), jnp.float32)
    return pl.pallas_call(
        _qkv_kernel,
        grid=(N // tm,),
        in_specs=[
            pl.BlockSpec((tm, d_model), lambda i: (i, 0)),
            pl.BlockSpec((d_model, 3 * d_model), lambda i: (0, 0)),  # resident
        ],
        out_specs=[
            pl.BlockSpec((tm, d_model), lambda i: (i, 0)),
            pl.BlockSpec((tm, d_model), lambda i: (i, 0)),
            pl.BlockSpec((tm, d_model), lambda i: (i, 0)),
        ],
        out_shape=(out_sds, out_sds, out_sds),
        compiler_params=pltpu.CompilerParams(
            dimension_semantics=("parallel",)),
    )(x2d, wqkv_bf16)


# ---------------------------------------------------------------------------
# Kernel 2: per-batch attention (all heads) + output fc + residual + LayerNorm
# ---------------------------------------------------------------------------
# TODO(synk): for long sequences (L >~ 1024) switch to flash-style K/V tiling
# with an online-softmax accumulator instead of full (L, L) scores per head.
def _attn_fc_ln_kernel(q_ref, k_ref, v_ref, m_ref, res_ref, fc_ref,
                       out_ref, attn_ref, ctx_sc):
    scale = jnp.float32(1.0 / math.sqrt(d_k))
    qb = (q_ref[0] * scale).astype(jnp.bfloat16)   # (L, H*d_k) scale q, not scores
    kb = k_ref[0].astype(jnp.bfloat16)             # (L, H*d_k)
    vb = v_ref[0].astype(jnp.bfloat16)             # (L, H*d_v)
    mask = m_ref[0]                                # (L, L) f32, >0 means masked
    neg = jnp.float32(-1e9)

    for h in range(n_heads):                       # static unrolled head loop
        qs = qb[:, h * d_k:(h + 1) * d_k]          # (L, d_k)
        ks = kb[:, h * d_k:(h + 1) * d_k]          # (L, d_k)
        vs = vb[:, h * d_v:(h + 1) * d_v]          # (L, d_v)

        # QK^T without transposing K: contract last axes of both operands.
        s = jax.lax.dot_general(
            qs, ks, (((1,), (1,)), ((), ())),
            preferred_element_type=jnp.float32)    # (L, L) f32
        s = jnp.where(mask > 0, neg, s)            # exact masked_fill_ semantics

        mx = jnp.max(s, axis=-1, keepdims=True)
        p = jnp.exp(s - mx)
        denom = jnp.sum(p, axis=-1, keepdims=True)
        attn_h = p * pl.reciprocal(denom, approx=True)   # divide on the EUP
        attn_ref[0, h] = attn_h

        ctx_sc[:, h * d_v:(h + 1) * d_v] = jnp.dot(
            attn_h.astype(jnp.bfloat16), vs,
            preferred_element_type=jnp.float32)    # (L, d_v)

    # Output projection + residual + LayerNorm, fused (context never hits HBM).
    y = jnp.dot(ctx_sc[...].astype(jnp.bfloat16), fc_ref[...],
                preferred_element_type=jnp.float32) + res_ref[0]
    out_ref[0] = _layernorm(y)


def _attention_block(Q, K, V, mask_f, residual, fc_bf16):
    # Q/K/V/residual: (B, L, H*d)=(B,L,512), mask_f: (B, L, L) float32
    B, L, _ = Q.shape
    return pl.pallas_call(
        _attn_fc_ln_kernel,
        grid=(B,),
        in_specs=[
            pl.BlockSpec((1, L, n_heads * d_k), lambda b: (b, 0, 0)),
            pl.BlockSpec((1, L, n_heads * d_k), lambda b: (b, 0, 0)),
            pl.BlockSpec((1, L, n_heads * d_v), lambda b: (b, 0, 0)),
            pl.BlockSpec((1, L, L), lambda b: (b, 0, 0)),
            pl.BlockSpec((1, L, d_model), lambda b: (b, 0, 0)),
            pl.BlockSpec((n_heads * d_v, d_model), lambda b: (0, 0)),  # resident
        ],
        out_specs=[
            pl.BlockSpec((1, L, d_model), lambda b: (b, 0, 0)),
            pl.BlockSpec((1, n_heads, L, L), lambda b: (b, 0, 0, 0)),
        ],
        out_shape=(
            jax.ShapeDtypeStruct((B, L, d_model), jnp.float32),
            jax.ShapeDtypeStruct((B, n_heads, L, L), jnp.float32),
        ),
        scratch_shapes=[pltpu.VMEM((L, n_heads * d_v), jnp.float32)],
        compiler_params=pltpu.CompilerParams(
            dimension_semantics=("parallel",)),
    )(Q, K, V, mask_f, residual, fc_bf16)


# ---------------------------------------------------------------------------
# Kernel 3: position-wise FFN (512->2048, ReLU, 2048->512) + residual + LN
# ---------------------------------------------------------------------------
def _ffn_ln_kernel(x_ref, w1_ref, w2_ref, o_ref):
    x = x_ref[...]                                            # (tm, 512) f32
    h = jnp.dot(x.astype(jnp.bfloat16), w1_ref[...],
                preferred_element_type=jnp.float32)           # (tm, 2048)
    h = jnp.maximum(h, jnp.float32(0.0))                      # ReLU in f32
    y = jnp.dot(h.astype(jnp.bfloat16), w2_ref[...],
                preferred_element_type=jnp.float32) + x       # residual
    o_ref[...] = _layernorm(y)


def _ffn_residual_layernorm(x_flat, w1_bf16, w2_bf16):
    N = x_flat.shape[0]
    tm = _row_tile(N, 256)   # smaller tile: (tm, d_ff) intermediate lives in VMEM
    return pl.pallas_call(
        _ffn_ln_kernel,
        grid=(N // tm,),
        in_specs=[
            pl.BlockSpec((tm, d_model), lambda i: (i, 0)),
            pl.BlockSpec((d_model, d_ff), lambda i: (0, 0)),      # resident
            pl.BlockSpec((d_ff, d_model), lambda i: (0, 0)),      # resident
        ],
        out_specs=pl.BlockSpec((tm, d_model), lambda i: (i, 0)),
        out_shape=jax.ShapeDtypeStruct((N, d_model), jnp.float32),
        compiler_params=pltpu.CompilerParams(
            dimension_semantics=("parallel",)),
    )(x_flat, w1_bf16, w2_bf16)


# ---------------------------------------------------------------------------
# Full EncoderLayer forward
# ---------------------------------------------------------------------------
def encoder_layer(enc_inputs, attn_mask, params):
    """enc_inputs: (B, L, d_model) f32, attn_mask: (B, L, L) bool/0-1."""
    B, L, _ = enc_inputs.shape
    N = B * L
    x_flat = enc_inputs.reshape(N, d_model)

    # --- MultiHeadAttention (QKV proj -> attention -> fc + residual + LN) ---
    q_flat, k_flat, v_flat = _qkv_project(x_flat, params["wqkv_bf16"])
    Q = q_flat.reshape(B, L, n_heads * d_k)   # free reshapes, no transposes
    K = k_flat.reshape(B, L, n_heads * d_k)
    V = v_flat.reshape(B, L, n_heads * d_v)

    mask_f = attn_mask.astype(jnp.float32)    # (B, L, L); >0 means "masked"
    attn_out, attn = _attention_block(Q, K, V, mask_f, enc_inputs,
                                      params["fc_bf16"])

    # --- Position-wise FFN + AddNorm ---
    enc_out = _ffn_residual_layernorm(
        attn_out.reshape(N, d_model), params["w1_bf16"], params["w2_bf16"])

    return enc_out.reshape(B, L, d_model), attn


# ---------------------------------------------------------------------------
# Deterministic parameter init (same shapes as the nn.Linear layers, bias=False)
# ---------------------------------------------------------------------------
def init_params(key):
    k1, k2, k3, k4, k5, k6 = jax.random.split(key, 6)
    bound = 1.0 / math.sqrt(d_model)
    wq = jax.random.uniform(k1, (d_k * n_heads, d_model), jnp.float32, -bound, bound)
    wk = jax.random.uniform(k2, (d_k * n_heads, d_model), jnp.float32, -bound, bound)
    wv = jax.random.uniform(k3, (d_v * n_heads, d_model), jnp.float32, -bound, bound)
    bound_fc = 1.0 / math.sqrt(n_heads * d_v)
    fc = jax.random.uniform(k4, (d_model, n_heads * d_v), jnp.float32, -bound_fc, bound_fc)
    w1 = jax.random.uniform(k5, (d_ff, d_model), jnp.float32, -bound, bound)
    bound_ff = 1.0 / math.sqrt(d_ff)
    w2 = jax.random.uniform(k6, (d_model, d_ff), jnp.float32, -bound_ff, bound_ff)

    # Store (in_features, out_features) transposed weights, pre-cast to bf16
    # (MXU operand dtype); accumulation stays f32 inside the kernels.
    wqkv = jnp.concatenate([wq.T, wk.T, wv.T], axis=1)        # (512, 1536)
    return {
        "wqkv_bf16": wqkv.astype(jnp.bfloat16),
        "fc_bf16": fc.T.astype(jnp.bfloat16),                 # (512, 512)
        "w1_bf16": w1.T.astype(jnp.bfloat16),                 # (512, 2048)
        "w2_bf16": w2.T.astype(jnp.bfloat16),                 # (2048, 512)
    }


if __name__ == "__main__":
    key = jax.random.PRNGKey(0)
    kp, kx = jax.random.split(key, 2)

    B, L = 2, 8
    params = init_params(kp)
    enc_inputs = jax.random.normal(kx, (B, L, d_model), jnp.float32)

    # Padding-style mask: last 2 key positions masked for every query.
    key_pad = (jnp.arange(L) >= L - 2)                              # (L,)
    attn_mask = jnp.broadcast_to(key_pad[None, None, :], (B, L, L)) # bool (B,L,L)

    fwd = jax.jit(encoder_layer)
    out, attn = fwd(enc_inputs, attn_mask, params)
    jax.block_until_ready((out, attn))

    assert out.shape == (B, L, d_model)
    assert attn.shape == (B, n_heads, L, L)
    assert bool(jnp.all(jnp.isfinite(out)))
    assert bool(jnp.all(jnp.isfinite(attn)))
    print("KERNEL_OK")
</pallas_src>

<mosaic_0001>
module attributes {stable_mosaic.version = 11 : i64} {
  func.func @_qkv_kernel(%arg0: i32, %arg1: memref<16x512xf32, #tpu.memory_space<vmem>>, %arg2: memref<512x1536xbf16, #tpu.memory_space<vmem>>, %arg3: memref<16x512xf32, #tpu.memory_space<vmem>>, %arg4: memref<16x512xf32, #tpu.memory_space<vmem>>, %arg5: memref<16x512xf32, #tpu.memory_space<vmem>>) attributes {dimension_semantics = [#tpu.dimension_semantics<parallel>], iteration_bounds = array<i64: 1>, scalar_prefetch = 0 : i64, scratch_operands = 0 : i64, tpu.core_type = #tpu.core_type<tc>, window_params = [{transform_indices = @transform_0, window_bounds = array<i64: 16, 512>}, {pipeline_mode = #tpu.pipeline_mode<synchronous>, transform_indices = @transform_1, window_bounds = array<i64: 512, 1536>}, {transform_indices = @transform_2, window_bounds = array<i64: 16, 512>}, {transform_indices = @transform_3, window_bounds = array<i64: 16, 512>}, {transform_indices = @transform_4, window_bounds = array<i64: 16, 512>}]} {
    %c0 = arith.constant 0 : index
    %c0_0 = arith.constant 0 : index
    %0 = vector.load %arg1[%c0, %c0_0] : memref<16x512xf32, #tpu.memory_space<vmem>>, vector<16x512xf32>
    %1 = arith.truncf %0 : vector<16x512xf32> to vector<16x512xbf16>
    %c0_1 = arith.constant 0 : index
    %c0_2 = arith.constant 0 : index
    %2 = vector.load %arg2[%c0_1, %c0_2] : memref<512x1536xbf16, #tpu.memory_space<vmem>>, vector<512x1536xbf16>
    %cst = arith.constant dense<0.000000e+00> : vector<16x1536xf32>
    %3 = tpu.matmul %1, %2, %cst {dimension_numbers = #tpu.dot_dimension_numbers<[1], [0], [0], [1], [0, 0, 1, 1], [], []>} : vector<16x512xbf16>, vector<512x1536xbf16>, vector<16x1536xf32> -> vector<16x1536xf32>
    %4 = vector.extract_strided_slice %3 {offsets = [0, 0], sizes = [16, 512], strides = [1, 1]} : vector<16x1536xf32> to vector<16x512xf32>
    %c0_3 = arith.constant 0 : index
    %c0_4 = arith.constant 0 : index
    %5 = vector.load %arg3[%c0_3, %c0_4] : memref<16x512xf32, #tpu.memory_space<vmem>>, vector<16x512xf32>
    tpu.vector_store %arg3[%c0_3, %c0_4], %4 {strides = array<i32>} : memref<16x512xf32, #tpu.memory_space<vmem>>, vector<16x512xf32>,
    %6 = vector.extract_strided_slice %3 {offsets = [0, 512], sizes = [16, 512], strides = [1, 1]} : vector<16x1536xf32> to vector<16x512xf32>
    %c0_5 = arith.constant 0 : index
    %c0_6 = arith.constant 0 : index
    %7 = vector.load %arg4[%c0_5, %c0_6] : memref<16x512xf32, #tpu.memory_space<vmem>>, vector<16x512xf32>
    tpu.vector_store %arg4[%c0_5, %c0_6], %6 {strides = array<i32>} : memref<16x512xf32, #tpu.memory_space<vmem>>, vector<16x512xf32>,
    %8 = vector.extract_strided_slice %3 {offsets = [0, 1024], sizes = [16, 512], strides = [1, 1]} : vector<16x1536xf32> to vector<16x512xf32>
    %c0_7 = arith.constant 0 : index
    %c0_8 = arith.constant 0 : index
    %9 = vector.load %arg5[%c0_7, %c0_8] : memref<16x512xf32, #tpu.memory_space<vmem>>, vector<16x512xf32>
    tpu.vector_store %arg5[%c0_7, %c0_8], %8 {strides = array<i32>} : memref<16x512xf32, #tpu.memory_space<vmem>>, vector<16x512xf32>,
    return
  }
  func.func @transform_0(%arg0: i32) -> (i32, i32) {
    %c0_i32 = arith.constant 0 : i32
    %c0_i32_0 = arith.constant 0 : i32
    return %arg0, %c0_i32 : i32, i32
  }
  func.func @transform_1(%arg0: i32) -> (i32, i32) {
    %c0_i32 = arith.constant 0 : i32
    %c0_i32_0 = arith.constant 0 : i32
    %c0_i32_1 = arith.constant 0 : i32
    return %c0_i32, %c0_i32_0 : i32, i32
  }
  func.func @transform_2(%arg0: i32) -> (i32, i32) {
    %c0_i32 = arith.constant 0 : i32
    %c0_i32_0 = arith.constant 0 : i32
    return %arg0, %c0_i32 : i32, i32
  }
  func.func @transform_3(%arg0: i32) -> (i32, i32) {
    %c0_i32 = arith.constant 0 : i32
    %c0_i32_0 = arith.constant 0 : i32
    return %arg0, %c0_i32 : i32, i32
  }
  func.func @transform_4(%arg0: i32) -> (i32, i32) {
    %c0_i32 = arith.constant 0 : i32
    %c0_i32_0 = arith.constant 0 : i32
    return %arg0, %c0_i32 : i32, i32
  }
}

module attributes {stable_mosaic.version = 11 : i64} {
  func.func @_ffn_ln_kernel(%arg0: i32, %arg1: memref<16x512xf32, #tpu.memory_space<vmem>>, %arg2: memref<512x2048xbf16, #tpu.memory_space<vmem>>, %arg3: memref<2048x512xbf16, #tpu.memory_space<vmem>>, %arg4: memref<16x512xf32, #tpu.memory_space<vmem>>) attributes {dimension_semantics = [#tpu.dimension_semantics<parallel>], iteration_bounds = array<i64: 1>, scalar_prefetch = 0 : i64, scratch_operands = 0 : i64, tpu.core_type = #tpu.core_type<tc>, window_params = [{transform_indices = @transform_0, window_bounds = array<i64: 16, 512>}, {pipeline_mode = #tpu.pipeline_mode<synchronous>, transform_indices = @transform_1, window_bounds = array<i64: 512, 2048>}, {pipeline_mode = #tpu.pipeline_mode<synchronous>, transform_indices = @transform_2, window_bounds = array<i64: 2048, 512>}, {transform_indices = @transform_3, window_bounds = array<i64: 16, 512>}]} {
    %c0 = arith.constant 0 : index
    %c0_0 = arith.constant 0 : index
    %0 = vector.load %arg1[%c0, %c0_0] : memref<16x512xf32, #tpu.memory_space<vmem>>, vector<16x512xf32>
    %1 = arith.truncf %0 : vector<16x512xf32> to vector<16x512xbf16>
    %c0_1 = arith.constant 0 : index
    %c0_2 = arith.constant 0 : index
    %2 = vector.load %arg2[%c0_1, %c0_2] : memref<512x2048xbf16, #tpu.memory_space<vmem>>, vector<512x2048xbf16>
    %cst = arith.constant dense<0.000000e+00> : vector<16x2048xf32>
    %3 = tpu.matmul %1, %2, %cst {dimension_numbers = #tpu.dot_dimension_numbers<[1], [0], [0], [1], [0, 0, 1, 1], [], []>} : vector<16x512xbf16>, vector<512x2048xbf16>, vector<16x2048xf32> -> vector<16x2048xf32>
    %cst_3 = arith.constant 0.000000e+00 : f32
    %4 = vector.broadcast %cst_3 : f32 to vector<16x2048xf32>
    %5 = arith.maximumf %3, %4 : vector<16x2048xf32>
    %6 = arith.truncf %5 : vector<16x2048xf32> to vector<16x2048xbf16>
    %c0_4 = arith.constant 0 : index
    %c0_5 = arith.constant 0 : index
    %7 = vector.load %arg3[%c0_4, %c0_5] : memref<2048x512xbf16, #tpu.memory_space<vmem>>, vector<2048x512xbf16>
    %cst_6 = arith.constant dense<0.000000e+00> : vector<16x512xf32>
    %8 = tpu.matmul %6, %7, %cst_6 {dimension_numbers = #tpu.dot_dimension_numbers<[1], [0], [0], [1], [0, 0, 1, 1], [], []>} : vector<16x2048xbf16>, vector<2048x512xbf16>, vector<16x512xf32> -> vector<16x512xf32>
    %9 = arith.addf %8, %0 : vector<16x512xf32>
    %cst_7 = arith.constant dense<0.000000e+00> : vector<16xf32>
    %10 = vector.multi_reduction <add>, %9, %cst_7 [1] : vector<16x512xf32> to vector<16xf32>
    %11 = vector.shape_cast %10 : vector<16xf32> to vector<16x1xf32>
    %cst_8 = arith.constant 5.120000e+02 : f32
    %12 = vector.broadcast %cst_8 : f32 to vector<16x1xf32>
    %13 = arith.divf %11, %12 : vector<16x1xf32>
    %14 = vector.broadcast %13 : vector<16x1xf32> to vector<16x512xf32>
    %15 = arith.subf %9, %14 : vector<16x512xf32>
    %16 = arith.mulf %15, %15 : vector<16x512xf32>
    %cst_9 = arith.constant dense<0.000000e+00> : vector<16xf32>
    %17 = vector.multi_reduction <add>, %16, %cst_9 [1] : vector<16x512xf32> to vector<16xf32>
    %18 = vector.shape_cast %17 : vector<16xf32> to vector<16x1xf32>
    %cst_10 = arith.constant 5.120000e+02 : f32
    %19 = vector.broadcast %cst_10 : f32 to vector<16x1xf32>
    %20 = arith.divf %18, %19 : vector<16x1xf32>
    %21 = vector.broadcast %13 : vector<16x1xf32> to vector<16x512xf32>
    %22 = arith.subf %9, %21 : vector<16x512xf32>
    %cst_11 = arith.constant 9.99999974E-6 : f32
    %23 = vector.broadcast %cst_11 : f32 to vector<16x1xf32>
    %24 = arith.addf %20, %23 : vector<16x1xf32>
    %25 = math.rsqrt %24 : vector<16x1xf32>
    %26 = vector.broadcast %25 : vector<16x1xf32> to vector<16x512xf32>
    %27 = arith.mulf %22, %26 : vector<16x512xf32>
    %c0_12 = arith.constant 0 : index
    %c0_13 = arith.constant 0 : index
    %28 = vector.load %arg4[%c0_12, %c0_13] : memref<16x512xf32, #tpu.memory_space<vmem>>, vector<16x512xf32>
    tpu.vector_store %arg4[%c0_12, %c0_13], %27 {strides = array<i32>} : memref<16x512xf32, #tpu.memory_space<vmem>>, vector<16x512xf32>,
    return
  }
  func.func @transform_0(%arg0: i32) -> (i32, i32) {
    %c0_i32 = arith.constant 0 : i32
    %c0_i32_0 = arith.constant 0 : i32
    return %arg0, %c0_i32 : i32, i32
  }
  func.func @transform_1(%arg0: i32) -> (i32, i32) {
    %c0_i32 = arith.constant 0 : i32
    %c0_i32_0 = arith.constant 0 : i32
    %c0_i32_1 = arith.constant 0 : i32
    return %c0_i32, %c0_i32_0 : i32, i32
  }
  func.func @transform_2(%arg0: i32) -> (i32, i32) {
    %c0_i32 = arith.constant 0 : i32
    %c0_i32_0 = arith.constant 0 : i32
    %c0_i32_1 = arith.constant 0 : i32
    return %c0_i32, %c0_i32_0 : i32, i32
  }
  func.func @transform_3(%arg0: i32) -> (i32, i32) {
    %c0_i32 = arith.constant 0 : i32
    %c0_i32_0 = arith.constant 0 : i32
    return %arg0, %c0_i32 : i32, i32
  }
}

module attributes {stable_mosaic.version = 11 : i64} {
  func.func @_attn_fc_ln_kernel(%arg0: i32, %arg1: memref<1x8x512xf32, #tpu.memory_space<vmem>>, %arg2: memref<1x8x512xf32, #tpu.memory_space<vmem>>, %arg3: memref<1x8x512xf32, #tpu.memory_space<vmem>>, %arg4: memref<1x8x8xf32, #tpu.memory_space<vmem>>, %arg5: memref<1x8x512xf32, #tpu.memory_space<vmem>>, %arg6: memref<512x512xbf16, #tpu.memory_space<vmem>>, %arg7: memref<1x8x512xf32, #tpu.memory_space<vmem>>, %arg8: memref<1x8x8x8xf32, #tpu.memory_space<vmem>>, %arg9: memref<8x512xf32, #tpu.memory_space<vmem>>) attributes {dimension_semantics = [#tpu.dimension_semantics<parallel>], iteration_bounds = array<i64: 2>, scalar_prefetch = 0 : i64, scratch_operands = 1 : i64, tpu.core_type = #tpu.core_type<tc>, window_params = [{transform_indices = @transform_0, window_bounds = array<i64: 1, 8, 512>}, {transform_indices = @transform_1, window_bounds = array<i64: 1, 8, 512>}, {transform_indices = @transform_2, window_bounds = array<i64: 1, 8, 512>}, {transform_indices = @transform_3, window_bounds = array<i64: 1, 8, 8>}, {transform_indices = @transform_4, window_bounds = array<i64: 1, 8, 512>}, {pipeline_mode = #tpu.pipeline_mode<synchronous>, transform_indices = @transform_5, window_bounds = array<i64: 512, 512>}, {transform_indices = @transform_6, window_bounds = array<i64: 1, 8, 512>}, {transform_indices = @transform_7, window_bounds = array<i64: 1, 8, 8, 8>}]} {
    %c0 = arith.constant 0 : index
    %c0_0 = arith.constant 0 : index
    %c0_1 = arith.constant 0 : index
    %0 = vector.load %arg1[%c0, %c0_0, %c0_1] : memref<1x8x512xf32, #tpu.memory_space<vmem>>, vector<1x8x512xf32>
    %1 = vector.shape_cast %0 : vector<1x8x512xf32> to vector<8x512xf32>
    %cst = arith.constant 1.250000e-01 : f32
    %2 = vector.broadcast %cst : f32 to vector<8x512xf32>
    %3 = arith.mulf %1, %2 : vector<8x512xf32>
    %4 = arith.truncf %3 : vector<8x512xf32> to vector<8x512xbf16>
    %c0_2 = arith.constant 0 : index
    %c0_3 = arith.constant 0 : index
    %c0_4 = arith.constant 0 : index
    %5 = vector.load %arg2[%c0_2, %c0_3, %c0_4] : memref<1x8x512xf32, #tpu.memory_space<vmem>>, vector<1x8x512xf32>
    %6 = vector.shape_cast %5 : vector<1x8x512xf32> to vector<8x512xf32>
    %7 = arith.truncf %6 : vector<8x512xf32> to vector<8x512xbf16>
    %c0_5 = arith.constant 0 : index
    %c0_6 = arith.constant 0 : index
    %c0_7 = arith.constant 0 : index
    %8 = vector.load %arg3[%c0_5, %c0_6, %c0_7] : memref<1x8x512xf32, #tpu.memory_space<vmem>>, vector<1x8x512xf32>
    %9 = vector.shape_cast %8 : vector<1x8x512xf32> to vector<8x512xf32>
    %10 = arith.truncf %9 : vector<8x512xf32> to vector<8x512xbf16>
    %c0_8 = arith.constant 0 : index
    %c0_9 = arith.constant 0 : index
    %c0_10 = arith.constant 0 : index
    %11 = vector.load %arg4[%c0_8, %c0_9, %c0_10] : memref<1x8x8xf32, #tpu.memory_space<vmem>>, vector<1x8x8xf32>
    %12 = vector.shape_cast %11 : vector<1x8x8xf32> to vector<8x8xf32>
    %13 = vector.extract_strided_slice %4 {offsets = [0, 0], sizes = [8, 64], strides = [1, 1]} : vector<8x512xbf16> to vector<8x64xbf16>
    %14 = vector.extract_strided_slice %7 {offsets = [0, 0], sizes = [8, 64], strides = [1, 1]} : vector<8x512xbf16> to vector<8x64xbf16>
    %15 = vector.extract_strided_slice %10 {offsets = [0, 0], sizes = [8, 64], strides = [1, 1]} : vector<8x512xbf16> to vector<8x64xbf16>
    %cst_11 = arith.constant dense<0.000000e+00> : vector<8x8xf32>
    %16 = tpu.matmul %13, %14, %cst_11 {dimension_numbers = #tpu.dot_dimension_numbers<[1], [1], [0], [0], [0, 0, 1, 0], [], []>} : vector<8x64xbf16>, vector<8x64xbf16>, vector<8x8xf32> -> vector<8x8xf32>
    %cst_12 = arith.constant 0.000000e+00 : f32
    %17 = vector.broadcast %cst_12 : f32 to vector<8x8xf32>
    %18 = arith.cmpf ogt, %12, %17 : vector<8x8xf32>
    %cst_13 = arith.constant -1.000000e+09 : f32
    %19 = vector.broadcast %cst_13 : f32 to vector<8x8xf32>
    %20 = arith.select %18, %19, %16 : vector<8x8xi1>, vector<8x8xf32>
    %cst_14 = arith.constant dense<0xFF800000> : vector<8xf32>
    %21 = vector.multi_reduction <maximumf>, %20, %cst_14 [1] : vector<8x8xf32> to vector<8xf32>
    %22 = vector.shape_cast %21 : vector<8xf32> to vector<8x1xf32>
    %23 = vector.broadcast %22 : vector<8x1xf32> to vector<8x8xf32>
    %24 = arith.subf %20, %23 : vector<8x8xf32>
    %25 = math.exp %24 : vector<8x8xf32>
    %cst_15 = arith.constant dense<0.000000e+00> : vector<8xf32>
    %26 = vector.multi_reduction <add>, %25, %cst_15 [1] : vector<8x8xf32> to vector<8xf32>
    %27 = vector.shape_cast %26 : vector<8xf32> to vector<8x1xf32>
    %28 = tpu.reciprocal %27 {approx = true} : vector<8x1xf32> -> vector<8x1xf32>
    %29 = vector.broadcast %28 : vector<8x1xf32> to vector<8x8xf32>
    %30 = arith.mulf %25, %29 : vector<8x8xf32>
    %c0_16 = arith.constant 0 : index
    %c0_17 = arith.constant 0 : index
    %c0_18 = arith.constant 0 : index
    %c0_19 = arith.constant 0 : index
    %31 = vector.load %arg8[%c0_16, %c0_17, %c0_18, %c0_19] : memref<1x8x8x8xf32, #tpu.memory_space<vmem>>, vector<1x1x8x8xf32>
    %32 = vector.shape_cast %31 : vector<1x1x8x8xf32> to vector<8x8xf32>
    %33 = vector.shape_cast %30 : vector<8x8xf32> to vector<1x1x8x8xf32>
    tpu.vector_store %arg8[%c0_16, %c0_17, %c0_18, %c0_19], %33 {strides = array<i32>} : memref<1x8x8x8xf32, #tpu.memory_space<vmem>>, vector<1x1x8x8xf32>,
    %34 = arith.truncf %30 : vector<8x8xf32> to vector<8x8xbf16>
    %cst_20 = arith.constant dense<0.000000e+00> : vector<8x64xf32>
    %35 = tpu.matmul %34, %15, %cst_20 {dimension_numbers = #tpu.dot_dimension_numbers<[1], [0], [0], [1], [0, 0, 1, 1], [], []>} : vector<8x8xbf16>, vector<8x64xbf16>, vector<8x64xf32> -> vector<8x64xf32>
    %c0_21 = arith.constant 0 : index
    %c0_22 = arith.constant 0 : index
    %36 = vector.load %arg9[%c0_21, %c0_22] : memref<8x512xf32, #tpu.memory_space<vmem>>, vector<8x64xf32>
    tpu.vector_store %arg9[%c0_21, %c0_22], %35 {strides = array<i32>} : memref<8x512xf32, #tpu.memory_space<vmem>>, vector<8x64xf32>,
    %37 = vector.extract_strided_slice %4 {offsets = [0, 64], sizes = [8, 64], strides = [1, 1]} : vector<8x512xbf16> to vector<8x64xbf16>
    %38 = vector.extract_strided_slice %7 {offsets = [0, 64], sizes = [8, 64], strides = [1, 1]} : vector<8x512xbf16> to vector<8x64xbf16>
    %39 = vector.extract_strided_slice %10 {offsets = [0, 64], sizes = [8, 64], strides = [1, 1]} : vector<8x512xbf16> to vector<8x64xbf16>
    %cst_23 = arith.constant dense<0.000000e+00> : vector<8x8xf32>
    %40 = tpu.matmul %37, %38, %cst_23 {dimension_numbers = #tpu.dot_dimension_numbers<[1], [1], [0], [0], [0, 0, 1, 0], [], []>} : vector<8x64xbf16>, vector<8x64xbf16>, vector<8x8xf32> -> vector<8x8xf32>
    %cst_24 = arith.constant 0.000000e+00 : f32
    %41 = vector.broadcast %cst_24 : f32 to vector<8x8xf32>
    %42 = arith.cmpf ogt, %12, %41 : vector<8x8xf32>
    %cst_25 = arith.constant -1.000000e+09 : f32
    %43 = vector.broadcast %cst_25 : f32 to vector<8x8xf32>
    %44 = arith.select %42, %43, %40 : vector<8x8xi1>, vector<8x8xf32>
    %cst_26 = arith.constant dense<0xFF800000> : vector<8xf32>
    %45 = vector.multi_reduction <maximumf>, %44, %cst_26 [1] : vector<8x8xf32> to vector<8xf32>
    %46 = vector.shape_cast %45 : vector<8xf32> to vector<8x1xf32>
    %47 = vector.broadcast %46 : vector<8x1xf32> to vector<8x8xf32>
    %48 = arith.subf %44, %47 : vector<8x8xf32>
    %49 = math.exp %48 : vector<8x8xf32>
    %cst_27 = arith.constant dense<0.000000e+00> : vector<8xf32>
    %50 = vector.multi_reduction <add>, %49, %cst_27 [1] : vector<8x8xf32> to vector<8xf32>
    %51 = vector.shape_cast %50 : vector<8xf32> to vector<8x1xf32>
    %52 = tpu.reciprocal %51 {approx = true} : vector<8x1xf32> -> vector<8x1xf32>
    %53 = vector.broadcast %52 : vector<8x1xf32> to vector<8x8xf32>
    %54 = arith.mulf %49, %53 : vector<8x8xf32>
    %c0_28 = arith.constant 0 : index
    %c1 = arith.constant 1 : index
    %c0_29 = arith.constant 0 : index
    %c0_30 = arith.constant 0 : index
    %55 = vector.load %arg8[%c0_28, %c1, %c0_29, %c0_30] : memref<1x8x8x8xf32, #tpu.memory_space<vmem>>, vector<1x1x8x8xf32>
    %56 = vector.shape_cast %55 : vector<1x1x8x8xf32> to vector<8x8xf32>
    %57 = vector.shape_cast %54 : vector<8x8xf32> to vector<1x1x8x8xf32>
    tpu.vector_store %arg8[%c0_28, %c1, %c0_29, %c0_30], %57 {strides = array<i32>} : memref<1x8x8x8xf32, #tpu.memory_space<vmem>>, vector<1x1x8x8xf32>,
    %58 = arith.truncf %54 : vector<8x8xf32> to vector<8x8xbf16>
    %cst_31 = arith.constant dense<0.000000e+00> : vector<8x64xf32>
    %59 = tpu.matmul %58, %39, %cst_31 {dimension_numbers = #tpu.dot_dimension_numbers<[1], [0], [0], [1], [0, 0, 1, 1], [], []>} : vector<8x8xbf16>, vector<8x64xbf16>, vector<8x64xf32> -> vector<8x64xf32>
    %c0_32 = arith.constant 0 : index
    %c64 = arith.constant 64 : index
    %60 = vector.load %arg9[%c0_32, %c64] : memref<8x512xf32, #tpu.memory_space<vmem>>, vector<8x64xf32>
    tpu.vector_store %arg9[%c0_32, %c64], %59 {strides = array<i32>} : memref<8x512xf32, #tpu.memory_space<vmem>>, vector<8x64xf32>,
    %61 = vector.extract_strided_slice %4 {offsets = [0, 128], sizes = [8, 64], strides = [1, 1]} : vector<8x512xbf16> to vector<8x64xbf16>
    %62 = vector.extract_strided_slice %7 {offsets = [0, 128], sizes = [8, 64], strides = [1, 1]} : vector<8x512xbf16> to vector<8x64xbf16>
    %63 = vector.extract_strided_slice %10 {offsets = [0, 128], sizes = [8, 64], strides = [1, 1]} : vector<8x512xbf16> to vector<8x64xbf16>
    %cst_33 = arith.constant dense<0.000000e+00> : vector<8x8xf32>
    %64 = tpu.matmul %61, %62, %cst_33 {dimension_numbers = #tpu.dot_dimension_numbers<[1], [1], [0], [0], [0, 0, 1, 0], [], []>} : vector<8x64xbf16>, vector<8x64xbf16>, vector<8x8xf32> -> vector<8x8xf32>
    %cst_34 = arith.constant 0.000000e+00 : f32
    %65 = vector.broadcast %cst_34 : f32 to vector<8x8xf32>
    %66 = arith.cmpf ogt, %12, %65 : vector<8x8xf32>
    %cst_35 = arith.constant -1.000000e+09 : f32
    %67 = vector.broadcast %cst_35 : f32 to vector<8x8xf32>
    %68 = arith.select %66, %67, %64 : vector<8x8xi1>, vector<8x8xf32>
    %cst_36 = arith.constant dense<0xFF800000> : vector<8xf32>
    %69 = vector.multi_reduction <maximumf>, %68, %cst_36 [1] : vector<8x8xf32> to vector<8xf32>
    %70 = vector.shape_cast %69 : vector<8xf32> to vector<8x1xf32>
    %71 = vector.broadcast %70 : vector<8x1xf32> to vector<8x8xf32>
    %72 = arith.subf %68, %71 : vector<8x8xf32>
    %73 = math.exp %72 : vector<8x8xf32>
    %cst_37 = arith.constant dense<0.000000e+00> : vector<8xf32>
    %74 = vector.multi_reduction <add>, %73, %cst_37 [1] : vector<8x8xf32> to vector<8xf32>
    %75 = vector.shape_cast %74 : vector<8xf32> to vector<8x1xf32>
    %76 = tpu.reciprocal %75 {approx = true} : vector<8x1xf32> -> vector<8x1xf32>
    %77 = vector.broadcast %76 : vector<8x1xf32> to vector<8x8xf32>
    %78 = arith.mulf %73, %77 : vector<8x8xf32>
    %c0_38 = arith.constant 0 : index
    %c2 = arith.constant 2 : index
    %c0_39 = arith.constant 0 : index
    %c0_40 = arith.constant 0 : index
    %79 = vector.load %arg8[%c0_38, %c2, %c0_39, %c0_40] : memref<1x8x8x8xf32, #tpu.memory_space<vmem>>, vector<1x1x8x8xf32>
    %80 = vector.shape_cast %79 : vector<1x1x8x8xf32> to vector<8x8xf32>
    %81 = vector.shape_cast %78 : vector<8x8xf32> to vector<1x1x8x8xf32>
    tpu.vector_store %arg8[%c0_38, %c2, %c0_39, %c0_40], %81 {strides = array<i32>} : memref<1x8x8x8xf32, #tpu.memory_space<vmem>>, vector<1x1x8x8xf32>,
    %82 = arith.truncf %78 : vector<8x8xf32> to vector<8x8xbf16>
    %cst_41 = arith.constant dense<0.000000e+00> : vector<8x64xf32>
    %83 = tpu.matmul %82, %63, %cst_41 {dimension_numbers = #tpu.dot_dimension_numbers<[1], [0], [0], [1], [0, 0, 1, 1], [], []>} : vector<8x8xbf16>, vector<8x64xbf16>, vector<8x64xf32> -> vector<8x64xf32>
    %c0_42 = arith.constant 0 : index
    %c128 = arith.constant 128 : index
    %84 = vector.load %arg9[%c0_42, %c128] : memref<8x512xf32, #tpu.memory_space<vmem>>, vector<8x64xf32>
    tpu.vector_store %arg9[%c0_42, %c128], %83 {strides = array<i32>} : memref<8x512xf32, #tpu.memory_space<vmem>>, vector<8x64xf32>,
    %85 = vector.extract_strided_slice %4 {offsets = [0, 192], sizes = [8, 64], strides = [1, 1]} : vector<8x512xbf16> to vector<8x64xbf16>
    %86 = vector.extract_strided_slice %7 {offsets = [0, 192], sizes = [8, 64], strides = [1, 1]} : vector<8x512xbf16> to vector<8x64xbf16>
    %87 = vector.extract_strided_slice %10 {offsets = [0, 192], sizes = [8, 64], strides = [1, 1]} : vector<8x512xbf16> to vector<8x64xbf16>
    %cst_43 = arith.constant dense<0.000000e+00> : vector<8x8xf32>
    %88 = tpu.matmul %85, %86, %cst_43 {dimension_numbers = #tpu.dot_dimension_numbers<[1], [1], [0], [0], [0, 0, 1, 0], [], []>} : vector<8x64xbf16>, vector<8x64xbf16>, vector<8x8xf32> -> vector<8x8xf32>
    %cst_44 = arith.constant 0.000000e+00 : f32
    %89 = vector.broadcast %cst_44 : f32 to vector<8x8xf32>
    %90 = arith.cmpf ogt, %12, %89 : vector<8x8xf32>
    %cst_45 = arith.constant -1.000000e+09 : f32
    %91 = vector.broadcast %cst_45 : f32 to vector<8x8xf32>
    %92 = arith.select %90, %91, %88 : vector<8x8xi1>, vector<8x8xf32>
    %cst_46 = arith.constant dense<0xFF800000> : vector<8xf32>
    %93 = vector.multi_reduction <maximumf>, %92, %cst_46 [1] : vector<8x8xf32> to vector<8xf32>
    %94 = vector.shape_cast %93 : vector<8xf32> to vector<8x1xf32>
    %95 = vector.broadcast %94 : vector<8x1xf32> to vector<8x8xf32>
    %96 = arith.subf %92, %95 : vector<8x8xf32>
    %97 = math.exp %96 : vector<8x8xf32>
    %cst_47 = arith.constant dense<0.000000e+00> : vector<8xf32>
    %98 = vector.multi_reduction <add>, %97, %cst_47 [1] : vector<8x8xf32> to vector<8xf32>
    %99 = vector.shape_cast %98 : vector<8xf32> to vector<8x1xf32>
    %100 = tpu.reciprocal %99 {approx = true} : vector<8x1xf32> -> vector<8x1xf32>
    %101 = vector.broadcast %100 : vector<8x1xf32> to vector<8x8xf32>
    %102 = arith.mulf %97, %101 : vector<8x8xf32>
    %c0_48 = arith.constant 0 : index
    %c3 = arith.constant 3 : index
    %c0_49 = arith.constant 0 : index
    %c0_50 = arith.constant 0 : index
    %103 = vector.load %arg8[%c0_48, %c3, %c0_49, %c0_50] : memref<1x8x8x8xf32, #tpu.memory_space<vmem>>, vector<1x1x8x8xf32>
    %104 = vector.shape_cast %103 : vector<1x1x8x8xf32> to vector<8x8xf32>
    %105 = vector.shape_cast %102 : vector<8x8xf32> to vector<1x1x8x8xf32>
    tpu.vector_store %arg8[%c0_48, %c3, %c0_49, %c0_50], %105 {strides = array<i32>} : memref<1x8x8x8xf32, #tpu.memory_space<vmem>>, vector<1x1x8x8xf32>,
    %106 = arith.truncf %102 : vector<8x8xf32> to vector<8x8xbf16>
    %cst_51 = arith.constant dense<0.000000e+00> : vector<8x64xf32>
    %107 = tpu.matmul %106, %87, %cst_51 {dimension_numbers = #tpu.dot_dimension_numbers<[1], [0], [0], [1], [0, 0, 1, 1], [], []>} : vector<8x8xbf16>, vector<8x64xbf16>, vector<8x64xf32> -> vector<8x64xf32>
    %c0_52 = arith.constant 0 : index
    %c192 = arith.constant 192 : index
    %108 = vector.load %arg9[%c0_52, %c192] : memref<8x512xf32, #tpu.memory_space<vmem>>, vector<8x64xf32>
    tpu.vector_store %arg9[%c0_52, %c192], %107 {strides = array<i32>} : memref<8x512xf32, #tpu.memory_space<vmem>>, vector<8x64xf32>,
    %109 = vector.extract_strided_slice %4 {offsets = [0, 256], sizes = [8, 64], strides = [1, 1]} : vector<8x512xbf16> to vector<8x64xbf16>
    %110 = vector.extract_strided_slice %7 {offsets = [0, 256], sizes = [8, 64], strides = [1, 1]} : vector<8x512xbf16> to vector<8x64xbf16>
    %111 = vector.extract_strided_slice %10 {offsets = [0, 256], sizes = [8, 64], strides = [1, 1]} : vector<8x512xbf16> to vector<8x64xbf16>
    %cst_53 = arith.constant dense<0.000000e+00> : vector<8x8xf32>
    %112 = tpu.matmul %109, %110, %cst_53 {dimension_numbers = #tpu.dot_dimension_numbers<[1], [1], [0], [0], [0, 0, 1, 0], [], []>} : vector<8x64xbf16>, vector<8x64xbf16>, vector<8x8xf32> -> vector<8x8xf32>
    %cst_54 = arith.constant 0.000000e+00 : f32
    %113 = vector.broadcast %cst_54 : f32 to vector<8x8xf32>
    %114 = arith.cmpf ogt, %12, %113 : vector<8x8xf32>
    %cst_55 = arith.constant -1.000000e+09 : f32
    %115 = vector.broadcast %cst_55 : f32 to vector<8x8xf32>
    %116 = arith.select %114, %115, %112 : vector<8x8xi1>, vector<8x8xf32>
    %cst_56 = arith.constant dense<0xFF800000> : vector<8xf32>
    %117 = vector.multi_reduction <maximumf>, %116, %cst_56 [1] : vector<8x8xf32> to vector<8xf32>
    %118 = vector.shape_cast %117 : vector<8xf32> to vector<8x1xf32>
    %119 = vector.broadcast %118 : vector<8x1xf32> to vector<8x8xf32>
    %120 = arith.subf %116, %119 : vector<8x8xf32>
    %121 = math.exp %120 : vector<8x8xf32>
    %cst_57 = arith.constant dense<0.000000e+00> : vector<8xf32>
    %122 = vector.multi_reduction <add>, %121, %cst_57 [1] : vector<8x8xf32> to vector<8xf32>
    %123 = vector.shape_cast %122 : vector<8xf32> to vector<8x1xf32>
    %124 = tpu.reciprocal %123 {approx = true} : vector<8x1xf32> -> vector<8x1xf32>
    %125 = vector.broadcast %124 : vector<8x1xf32> to vector<8x8xf32>
    %126 = arith.mulf %121, %125 : vector<8x8xf32>
    %c0_58 = arith.constant 0 : index
    %c4 = arith.constant 4 : index
    %c0_59 = arith.constant 0 : index
    %c0_60 = arith.constant 0 : index
    %127 = vector.load %arg8[%c0_58, %c4, %c0_59, %c0_60] : memref<1x8x8x8xf32, #tpu.memory_space<vmem>>, vector<1x1x8x8xf32>
    %128 = vector.shape_cast %127 : vector<1x1x8x8xf32> to vector<8x8xf32>
    %129 = vector.shape_cast %126 : vector<8x8xf32> to vector<1x1x8x8xf32>
    tpu.vector_store %arg8[%c0_58, %c4, %c0_59, %c0_60], %129 {strides = array<i32>} : memref<1x8x8x8xf32, #tpu.memory_space<vmem>>, vector<1x1x8x8xf32>,
    %130 = arith.truncf %126 : vector<8x8xf32> to vector<8x8xbf16>
    %cst_61 = arith.constant dense<0.000000e+00> : vector<8x64xf32>
    %131 = tpu.matmul %130, %111, %cst_61 {dimension_numbers = #tpu.dot_dimension_numbers<[1], [0], [0], [1], [0, 0, 1, 1], [], []>} : vector<8x8xbf16>, vector<8x64xbf16>, vector<8x64xf32> -> vector<8x64xf32>
    %c0_62 = arith.constant 0 : index
    %c256 = arith.constant 256 : index
    %132 = vector.load %arg9[%c0_62, %c256] : memref<8x512xf32, #tpu.memory_space<vmem>>, vector<8x64xf32>
    tpu.vector_store %arg9[%c0_62, %c256], %131 {strides = array<i32>} : memref<8x512xf32, #tpu.memory_space<vmem>>, vector<8x64xf32>,
    %133 = vector.extract_strided_slice %4 {offsets = [0, 320], sizes = [8, 64], strides = [1, 1]} : vector<8x512xbf16> to vector<8x64xbf16>
    %134 = vector.extract_strided_slice %7 {offsets = [0, 320], sizes = [8, 64], strides = [1, 1]} : vector<8x512xbf16> to vector<8x64xbf16>
    %135 = vector.extract_strided_slice %10 {offsets = [0, 320], sizes = [8, 64], strides = [1, 1]} : vector<8x512xbf16> to vector<8x64xbf16>
    %cst_63 = arith.constant dense<0.000000e+00> : vector<8x8xf32>
    %136 = tpu.matmul %133, %134, %cst_63 {dimension_numbers = #tpu.dot_dimension_numbers<[1], [1], [0], [0], [0, 0, 1, 0], [], []>} : vector<8x64xbf16>, vector<8x64xbf16>, vector<8x8xf32> -> vector<8x8xf32>
    %cst_64 = arith.constant 0.000000e+00 : f32
    %137 = vector.broadcast %cst_64 : f32 to vector<8x8xf32>
    %138 = arith.cmpf ogt, %12, %137 : vector<8x8xf32>
    %cst_65 = arith.constant -1.000000e+09 : f32
    %139 = vector.broadcast %cst_65 : f32 to vector<8x8xf32>
    %140 = arith.select %138, %139, %136 : vector<8x8xi1>, vector<8x8xf32>
    %cst_66 = arith.constant dense<0xFF800000> : vector<8xf32>
    %141 = vector.multi_reduction <maximumf>, %140, %cst_66 [1] : vector<8x8xf32> to vector<8xf32>
    %142 = vector.shape_cast %141 : vector<8xf32> to vector<8x1xf32>
    %143 = vector.broadcast %142 : vector<8x1xf32> to vector<8x8xf32>
    %144 = arith.subf %140, %143 : vector<8x8xf32>
    %145 = math.exp %144 : vector<8x8xf32>
    %cst_67 = arith.constant dense<0.000000e+00> : vector<8xf32>
    %146 = vector.multi_reduction <add>, %145, %cst_67 [1] : vector<8x8xf32> to vector<8xf32>
    %147 = vector.shape_cast %146 : vector<8xf32> to vector<8x1xf32>
    %148 = tpu.reciprocal %147 {approx = true} : vector<8x1xf32> -> vector<8x1xf32>
    %149 = vector.broadcast %148 : vector<8x1xf32> to vector<8x8xf32>
    %150 = arith.mulf %145, %149 : vector<8x8xf32>
    %c0_68 = arith.constant 0 : index
    %c5 = arith.constant 5 : index
    %c0_69 = arith.constant 0 : index
    %c0_70 = arith.constant 0 : index
    %151 = vector.load %arg8[%c0_68, %c5, %c0_69, %c0_70] : memref<1x8x8x8xf32, #tpu.memory_space<vmem>>, vector<1x1x8x8xf32>
    %152 = vector.shape_cast %151 : vector<1x1x8x8xf32> to vector<8x8xf32>
    %153 = vector.shape_cast %150 : vector<8x8xf32> to vector<1x1x8x8xf32>
    tpu.vector_store %arg8[%c0_68, %c5, %c0_69, %c0_70], %153 {strides = array<i32>} : memref<1x8x8x8xf32, #tpu.memory_space<vmem>>, vector<1x1x8x8xf32>,
    %154 = arith.truncf %150 : vector<8x8xf32> to vector<8x8xbf16>
    %cst_71 = arith.constant dense<0.000000e+00> : vector<8x64xf32>
    %155 = tpu.matmul %154, %135, %cst_71 {dimension_numbers = #tpu.dot_dimension_numbers<[1], [0], [0], [1], [0, 0, 1, 1], [], []>} : vector<8x8xbf16>, vector<8x64xbf16>, vector<8x64xf32> -> vector<8x64xf32>
    %c0_72 = arith.constant 0 : index
    %c320 = arith.constant 320 : index
    %156 = vector.load %arg9[%c0_72, %c320] : memref<8x512xf32, #tpu.memory_space<vmem>>, vector<8x64xf32>
    tpu.vector_store %arg9[%c0_72, %c320], %155 {strides = array<i32>} : memref<8x512xf32, #tpu.memory_space<vmem>>, vector<8x64xf32>,
    %157 = vector.extract_strided_slice %4 {offsets = [0, 384], sizes = [8, 64], strides = [1, 1]} : vector<8x512xbf16> to vector<8x64xbf16>
    %158 = vector.extract_strided_slice %7 {offsets = [0, 384], sizes = [8, 64], strides = [1, 1]} : vector<8x512xbf16> to vector<8x64xbf16>
    %159 = vector.extract_strided_slice %10 {offsets = [0, 384], sizes = [8, 64], strides = [1, 1]} : vector<8x512xbf16> to vector<8x64xbf16>
    %cst_73 = arith.constant dense<0.000000e+00> : vector<8x8xf32>
    %160 = tpu.matmul %157, %158, %cst_73 {dimension_numbers = #tpu.dot_dimension_numbers<[1], [1], [0], [0], [0, 0, 1, 0], [], []>} : vector<8x64xbf16>, vector<8x64xbf16>, vector<8x8xf32> -> vector<8x8xf32>
    %cst_74 = arith.constant 0.000000e+00 : f32
    %161 = vector.broadcast %cst_74 : f32 to vector<8x8xf32>
    %162 = arith.cmpf ogt, %12, %161 : vector<8x8xf32>
    %cst_75 = arith.constant -1.000000e+09 : f32
    %163 = vector.broadcast %cst_75 : f32 to vector<8x8xf32>
    %164 = arith.select %162, %163, %160 : vector<8x8xi1>, vector<8x8xf32>
    %cst_76 = arith.constant dense<0xFF800000> : vector<8xf32>
    %165 = vector.multi_reduction <maximumf>, %164, %cst_76 [1] : vector<8x8xf32> to vector<8xf32>
    %166 = vector.shape_cast %165 : vector<8xf32> to vector<8x1xf32>
    %167 = vector.broadcast %166 : vector<8x1xf32> to vector<8x8xf32>
    %168 = arith.subf %164, %167 : vector<8x8xf32>
    %169 = math.exp %168 : vector<8x8xf32>
    %cst_77 = arith.constant dense<0.000000e+00> : vector<8xf32>
    %170 = vector.multi_reduction <add>, %169, %cst_77 [1] : vector<8x8xf32> to vector<8xf32>
    %171 = vector.shape_cast %170 : vector<8xf32> to vector<8x1xf32>
    %172 = tpu.reciprocal %171 {approx = true} : vector<8x1xf32> -> vector<8x1xf32>
    %173 = vector.broadcast %172 : vector<8x1xf32> to vector<8x8xf32>
    %174 = arith.mulf %169, %173 : vector<8x8xf32>
    %c0_78 = arith.constant 0 : index
    %c6 = arith.constant 6 : index
    %c0_79 = arith.constant 0 : index
    %c0_80 = arith.constant 0 : index
    %175 = vector.load %arg8[%c0_78, %c6, %c0_79, %c0_80] : memref<1x8x8x8xf32, #tpu.memory_space<vmem>>, vector<1x1x8x8xf32>
    %176 = vector.shape_cast %175 : vector<1x1x8x8xf32> to vector<8x8xf32>
    %177 = vector.shape_cast %174 : vector<8x8xf32> to vector<1x1x8x8xf32>
    tpu.vector_store %arg8[%c0_78, %c6, %c0_79, %c0_80], %177 {strides = array<i32>} : memref<1x8x8x8xf32, #tpu.memory_space<vmem>>, vector<1x1x8x8xf32>,
    %178 = arith.truncf %174 : vector<8x8xf32> to vector<8x8xbf16>
    %cst_81 = arith.constant dense<0.000000e+00> : vector<8x64xf32>
    %179 = tpu.matmul %178, %159, %cst_81 {dimension_numbers = #tpu.dot_dimension_numbers<[1], [0], [0], [1], [0, 0, 1, 1], [], []>} : vector<8x8xbf16>, vector<8x64xbf16>, vector<8x64xf32> -> vector<8x64xf32>
    %c0_82 = arith.constant 0 : index
    %c384 = arith.constant 384 : index
    %180 = vector.load %arg9[%c0_82, %c384] : memref<8x512xf32, #tpu.memory_space<vmem>>, vector<8x64xf32>
    tpu.vector_store %arg9[%c0_82, %c384], %179 {strides = array<i32>} : memref<8x512xf32, #tpu.memory_space<vmem>>, vector<8x64xf32>,
    %181 = vector.extract_strided_slice %4 {offsets = [0, 448], sizes = [8, 64], strides = [1, 1]} : vector<8x512xbf16> to vector<8x64xbf16>
    %182 = vector.extract_strided_slice %7 {offsets = [0, 448], sizes = [8, 64], strides = [1, 1]} : vector<8x512xbf16> to vector<8x64xbf16>
    %183 = vector.extract_strided_slice %10 {offsets = [0, 448], sizes = [8, 64], strides = [1, 1]} : vector<8x512xbf16> to vector<8x64xbf16>
    %cst_83 = arith.constant dense<0.000000e+00> : vector<8x8xf32>
    %184 = tpu.matmul %181, %182, %cst_83 {dimension_numbers = #tpu.dot_dimension_numbers<[1], [1], [0], [0], [0, 0, 1, 0], [], []>} : vector<8x64xbf16>, vector<8x64xbf16>, vector<8x8xf32> -> vector<8x8xf32>
    %cst_84 = arith.constant 0.000000e+00 : f32
    %185 = vector.broadcast %cst_84 : f32 to vector<8x8xf32>
    %186 = arith.cmpf ogt, %12, %185 : vector<8x8xf32>
    %cst_85 = arith.constant -1.000000e+09 : f32
    %187 = vector.broadcast %cst_85 : f32 to vector<8x8xf32>
    %188 = arith.select %186, %187, %184 : vector<8x8xi1>, vector<8x8xf32>
    %cst_86 = arith.constant dense<0xFF800000> : vector<8xf32>
    %189 = vector.multi_reduction <maximumf>, %188, %cst_86 [1] : vector<8x8xf32> to vector<8xf32>
    %190 = vector.shape_cast %189 : vector<8xf32> to vector<8x1xf32>
    %191 = vector.broadcast %190 : vector<8x1xf32> to vector<8x8xf32>
    %192 = arith.subf %188, %191 : vector<8x8xf32>
    %193 = math.exp %192 : vector<8x8xf32>
    %cst_87 = arith.constant dense<0.000000e+00> : vector<8xf32>
    %194 = vector.multi_reduction <add>, %193, %cst_87 [1] : vector<8x8xf32> to vector<8xf32>
    %195 = vector.shape_cast %194 : vector<8xf32> to vector<8x1xf32>
    %196 = tpu.reciprocal %195 {approx = true} : vector<8x1xf32> -> vector<8x1xf32>
    %197 = vector.broadcast %196 : vector<8x1xf32> to vector<8x8xf32>
    %198 = arith.mulf %193, %197 : vector<8x8xf32>
    %c0_88 = arith.constant 0 : index
    %c7 = arith.constant 7 : index
    %c0_89 = arith.constant 0 : index
    %c0_90 = arith.constant 0 : index
    %199 = vector.load %arg8[%c0_88, %c7, %c0_89, %c0_90] : memref<1x8x8x8xf32, #tpu.memory_space<vmem>>, vector<1x1x8x8xf32>
    %200 = vector.shape_cast %199 : vector<1x1x8x8xf32> to vector<8x8xf32>
    %201 = vector.shape_cast %198 : vector<8x8xf32> to vector<1x1x8x8xf32>
    tpu.vector_store %arg8[%c0_88, %c7, %c0_89, %c0_90], %201 {strides = array<i32>} : memref<1x8x8x8xf32, #tpu.memory_space<vmem>>, vector<1x1x8x8xf32>,
    %202 = arith.truncf %198 : vector<8x8xf32> to vector<8x8xbf16>
    %cst_91 = arith.constant dense<0.000000e+00> : vector<8x64xf32>
    %203 = tpu.matmul %202, %183, %cst_91 {dimension_numbers = #tpu.dot_dimension_numbers<[1], [0], [0], [1], [0, 0, 1, 1], [], []>} : vector<8x8xbf16>, vector<8x64xbf16>, vector<8x64xf32> -> vector<8x64xf32>
    %c0_92 = arith.constant 0 : index
    %c448 = arith.constant 448 : index
    %204 = vector.load %arg9[%c0_92, %c448] : memref<8x512xf32, #tpu.memory_space<vmem>>, vector<8x64xf32>
    tpu.vector_store %arg9[%c0_92, %c448], %203 {strides = array<i32>} : memref<8x512xf32, #tpu.memory_space<vmem>>, vector<8x64xf32>,
    %c0_93 = arith.constant 0 : index
    %c0_94 = arith.constant 0 : index
    %205 = vector.load %arg9[%c0_93, %c0_94] : memref<8x512xf32, #tpu.memory_space<vmem>>, vector<8x512xf32>
    %206 = arith.truncf %205 : vector<8x512xf32> to vector<8x512xbf16>
    %c0_95 = arith.constant 0 : index
    %c0_96 = arith.constant 0 : index
    %207 = vector.load %arg6[%c0_95, %c0_96] : memref<512x512xbf16, #tpu.memory_space<vmem>>, vector<512x512xbf16>
    %cst_97 = arith.constant dense<0.000000e+00> : vector<8x512xf32>
    %208 = tpu.matmul %206, %207, %cst_97 {dimension_numbers = #tpu.dot_dimension_numbers<[1], [0], [0], [1], [0, 0, 1, 1], [], []>} : vector<8x512xbf16>, vector<512x512xbf16>, vector<8x512xf32> -> vector<8x512xf32>
    %c0_98 = arith.constant 0 : index
    %c0_99 = arith.constant 0 : index
    %c0_100 = arith.constant 0 : index
    %209 = vector.load %arg5[%c0_98, %c0_99, %c0_100] : memref<1x8x512xf32, #tpu.memory_space<vmem>>, vector<1x8x512xf32>
    %210 = vector.shape_cast %209 : vector<1x8x512xf32> to vector<8x512xf32>
    %211 = arith.addf %208, %210 : vector<8x512xf32>
    %cst_101 = arith.constant dense<0.000000e+00> : vector<8xf32>
    %212 = vector.multi_reduction <add>, %211, %cst_101 [1] : vector<8x512xf32> to vector<8xf32>
    %213 = vector.shape_cast %212 : vector<8xf32> to vector<8x1xf32>
    %cst_102 = arith.constant 5.120000e+02 : f32
    %214 = vector.broadcast %cst_102 : f32 to vector<8x1xf32>
    %215 = arith.divf %213, %214 : vector<8x1xf32>
    %216 = vector.broadcast %215 : vector<8x1xf32> to vector<8x512xf32>
    %217 = arith.subf %211, %216 : vector<8x512xf32>
    %218 = arith.mulf %217, %217 : vector<8x512xf32>
    %cst_103 = arith.constant dense<0.000000e+00> : vector<8xf32>
    %219 = vector.multi_reduction <add>, %218, %cst_103 [1] : vector<8x512xf32> to vector<8xf32>
    %220 = vector.shape_cast %219 : vector<8xf32> to vector<8x1xf32>
    %cst_104 = arith.constant 5.120000e+02 : f32
    %221 = vector.broadcast %cst_104 : f32 to vector<8x1xf32>
    %222 = arith.divf %220, %221 : vector<8x1xf32>
    %223 = vector.broadcast %215 : vector<8x1xf32> to vector<8x512xf32>
    %224 = arith.subf %211, %223 : vector<8x512xf32>
    %cst_105 = arith.constant 9.99999974E-6 : f32
    %225 = vector.broadcast %cst_105 : f32 to vector<8x1xf32>
    %226 = arith.addf %222, %225 : vector<8x1xf32>
    %227 = math.rsqrt %226 : vector<8x1xf32>
    %228 = vector.broadcast %227 : vector<8x1xf32> to vector<8x512xf32>
    %229 = arith.mulf %224, %228 : vector<8x512xf32>
    %c0_106 = arith.constant 0 : index
    %c0_107 = arith.constant 0 : index
    %c0_108 = arith.constant 0 : index
    %230 = vector.load %arg7[%c0_106, %c0_107, %c0_108] : memref<1x8x512xf32, #tpu.memory_space<vmem>>, vector<1x8x512xf32>
    %231 = vector.shape_cast %230 : vector<1x8x512xf32> to vector<8x512xf32>
    %232 = vector.shape_cast %229 : vector<8x512xf32> to vector<1x8x512xf32>
    tpu.vector_store %arg7[%c0_106, %c0_107, %c0_108], %232 {strides = array<i32>} : memref<1x8x512xf32, #tpu.memory_space<vmem>>, vector<1x8x512xf32>,
    return
  }
  func.func @transform_0(%arg0: i32) -> (i32, i32, i32) {
    %c0_i32 = arith.constant 0 : i32
    %c0_i32_0 = arith.constant 0 : i32
    %c0_i32_1 = arith.constant 0 : i32
    return %arg0, %c0_i32, %c0_i32_0 : i32, i32, i32
  }
  func.func @transform_1(%arg0: i32) -> (i32, i32, i32) {
    %c0_i32 = arith.constant 0 : i32
    %c0_i32_0 = arith.constant 0 : i32
    %c0_i32_1 = arith.constant 0 : i32
    return %arg0, %c0_i32, %c0_i32_0 : i32, i32, i32
  }
  func.func @transform_2(%arg0: i32) -> (i32, i32, i32) {
    %c0_i32 = arith.constant 0 : i32
    %c0_i32_0 = arith.constant 0 : i32
    %c0_i32_1 = arith.constant 0 : i32
    return %arg0, %c0_i32, %c0_i32_0 : i32, i32, i32
  }
  func.func @transform_3(%arg0: i32) -> (i32, i32, i32) {
    %c0_i32 = arith.constant 0 : i32
    %c0_i32_0 = arith.constant 0 : i32
    %c0_i32_1 = arith.constant 0 : i32
    return %arg0, %c0_i32, %c0_i32_0 : i32, i32, i32
  }
  func.func @transform_4(%arg0: i32) -> (i32, i32, i32) {
    %c0_i32 = arith.constant 0 : i32
    %c0_i32_0 = arith.constant 0 : i32
    %c0_i32_1 = arith.constant 0 : i32
    return %arg0, %c0_i32, %c0_i32_0 : i32, i32, i32
  }
  func.func @transform_5(%arg0: i32) -> (i32, i32) {
    %c0_i32 = arith.constant 0 : i32
    %c0_i32_0 = arith.constant 0 : i32
    %c0_i32_1 = arith.constant 0 : i32
    return %c0_i32, %c0_i32_0 : i32, i32
  }
  func.func @transform_6(%arg0: i32) -> (i32, i32, i32) {
    %c0_i32 = arith.constant 0 : i32
    %c0_i32_0 = arith.constant 0 : i32
    %c0_i32_1 = arith.constant 0 : i32
    return %arg0, %c0_i32, %c0_i32_0 : i32, i32, i32
  }
  func.func @transform_7(%arg0: i32) -> (i32, i32, i32, i32) {
    %c0_i32 = arith.constant 0 : i32
    %c0_i32_0 = arith.constant 0 : i32
    %c0_i32_1 = arith.constant 0 : i32
    %c0_i32_2 = arith.constant 0 : i32
    return %arg0, %c0_i32, %c0_i32_0, %c0_i32_1 : i32, i32, i32, i32
  }
}

</mosaic_0001>

<bundles_post_ra>
// kernel: encoder_layer.4
= control target key start
LH: loop header
LB: loop body
LE: loop exit
PB: predicated region body
PF: predicated region fallthrough
CT: control target
= control target key end

     0   :  { %13 = vsyncpa [#allocation4], 0  ;;  %s3735_s0 = inlined_call_operand.vmem [shape: f32[2,8,512], index: 0, kind: input, shape index: {}]   ;;  %s3736_s1 = inlined_call_operand.vmem [shape: f32[2,8,512], index: 1, kind: input, shape index: {}]   ;;  %s3737_s2 = inlined_call_operand.vmem [shape: f32[2,8,512], index: 2, kind: input, shape index: {}]   ;;  %s3738_s3 = inlined_call_operand.vmem [shape: f32[2,8,8], index: 3, kind: input, shape index: {}]   ;;  %s3739_s4 = inlined_call_operand.hbm [shape: f32[2,8,512], index: 4, kind: input, shape index: {}]   ;;  %s3740_s5 = inlined_call_operand.hbm [shape: bf16[512,512], index: 5, kind: input, shape index: {}]   ;;  %s3741_s6 = inlined_call_operand.vmem [shape: f32[2,8,512], index: 6, kind: output, shape index: {0}]   ;;  %s3742_s7 = inlined_call_operand.hbm [shape: f32[2,8,8,8], index: 7, kind: output, shape index: {1}]  }
   0x1   :  { %15 = vsyncpa [#allocation4 + $0x1], 0 }
   0x2   :  { %16 = vsyncpa [#allocation7], 0 }
   0x3   :  { %17 = vsyncpa [#allocation5], 0 }
   0x4   :  { %19 = vsyncpa [#allocation5 + $0x1], 0  ;;  %s3295_s24 = smov 0   ;;  %s3297_s25 = smov 0  }
   0x5   :  { %s3299_s26 = smov 0   ;;  %s3301_s27 = smov 0  }
   0x6 LB: > { %s3316_s28 = sadd.s32 4294967295, %s3243_s27   ;;  %s2503_s29 = sadd.s32 4294967294, %s3243_s27   ;;  %s3243_s27 = sphi %s3301_s27, %s3762_s27   ;;  %s3239_s26 = sphi %s3299_s26, %s3761_s26   ;;  %s3235_s25 = sphi %s3297_s25, %s3760_s25   ;;  %s3231_s24 = sphi %s3295_s24, %s3759_s24  }
   0x7   : > { %p149_p0 = scmp.ne.s32.totalorder %s3235_s25, %s3231_s24  ;;  %p3743_p1 = scmp.eq.s32.totalorder %s3316_s28, 0 }
   0x8   : > { %p226_p3 = scmp.eq.s32.totalorder %s2503_s29, 1  ;;  %p2504_p5 = scmp.ge.s32.totalorder %s3243_s27, 1 }
   0x9   : > { %p3325_p4 = por %p3743_p1, %p149_p0  ;;  %p233_p7 = scmp.lt.s32.totalorder %s3243_s27, 3 }
   0xa   : > { %p3330_p6 = por %p226_p3, %p149_p0  ;;  %s3245_s10 = smov [#allocation6]  }
   0xb   : > { %s3746_s30 = scalar_select %p3325_p4, 1, 0 }
   0xc   : > { %s3747_s8 = scalar_select %p3330_p6, 1, 0 }
   0xd   : > { %p3335_p8 = pnand %p2504_p5, %p233_p7  ;;  %s245_s11 = sshll.u32 %s3245_s10, 4  ;;  %s3339_s11 = int_to_ptr.vmem [resolvable:$true] %s245_s11 }
   0xe   : > { %s3351_s13 = sadd.s32 1, %s3243_s27   ;;  %s136_s14 = sadd.s32 1, %s3239_s26 }
   0xf   : > { %s3748_s9 = scalar_select %p3335_p8, 1, 0 }
  0x10   : > { %p2833_p9 = pneg %p3335_p8  ;;  %s133_s15 = ssub.s32 %s3243_s27, %s3351_s13 }
  0x11   : > { %s3115_s18 = scalar_lea.hbm %s3740_s5, 16384 }
  0x12   : > { %p3346_p11 = pnand %p2833_p9, %p3743_p1  ;;  %p3116_p12 = scmp.ne.s32.totalorder %s3740_s5, %s3115_s18 }
  0x13   : > { %p3122_p5 = scmp.lt.u32.totalorder %s3115_s18, %s3740_s5 }
  0x14   : > { %p3117_p13 = pneg %p3346_p11 }
  0x16   : > { %p3118_p0 = pnand %p3117_p13, %p3116_p12 }
  0x18   : > { %p3119_p3 = pneg %p3118_p0 }
  0x1a   : > { %p3124_p7 = pnand %p3122_p5, %p3119_p3 }
  0x1c   : > { %3127 = shalt.err (!%p3124_p7)
}
  0x1d   : > { %s3128_s23 = scalar_lea.vmem %s3339_s11, 16384  ;;  %p3136_p2 = scmp.lt.s32.totalorder %s3339_s11, %s3339_s11 }
  0x1e   : > { %p3129_p9 = scmp.ne.s32.totalorder %s3339_s11, %s3128_s23  ;;  %p3137_p6 = scmp.lt.s32.totalorder %s3128_s23, %s3128_s23 }
  0x20   : > { %p3131_p10 = pnand %p3129_p9, %p3117_p13  ;;  %p3138_p4 = por %p3137_p6, %p3136_p2 }
  0x22   : > { %p3132_p1 = pneg %p3131_p10 }
  0x24   : > { %p3139_p8 = pnand %p3138_p4, %p3132_p1 }
  0x26   : > { %3142 = shalt.err (!%p3139_p8)
}
  0x27   : > { %s3246_s29 = smov 256   ;;  %s3247_s10 = smov 16  }
  0x28   : > { %2836 = dma.hbm_to_vmem [thread:$0]  (!%p3346_p11), %s3740_s5, 16384, %s3339_s11, [#allocation7], %s3246_s29, %s3246_s29, %s3247_s10  }
  0x29   : > { %p134_p2 = scmp.eq.s32.totalorder %s133_s15, 0  ;;  %p143_p1 = scmp.ne.s32.totalorder %s3239_s26, %s3235_s25 }
  0x2a   : > { %p144_p4 = scmp.eq.s32.totalorder %s3243_s27, 0  ;;  %p2846_p6 = scmp.lt.s32.totalorder %s3243_s27, 2 }
  0x2b   : > { %s3382_s18 = scalar_select %p134_p2, %s3239_s26, %s136_s14  }
  0x2c   : > { %p145_p8 = por %p144_p4, %p143_p1  ;;  %p3750_p10 = scmp.eq.s32.totalorder %s3316_s28, 1 }
  0x2d   : > { %s290_s20 = sand.u32 1, %s3239_s26   ;;  %s2679_s21 = sshll.u32 %s3243_s27, 9 }
  0x2e   : > { %p3386_p12 = por %p3750_p10, %p143_p1  ;;  %s2507_s22 = sshll.u32 %s290_s20, 5 }
  0x2f   : > { %s3395_s16 = scalar_lea.hbm %s3739_s4, %s2679_s21  ;;  %s294_s11 = scalar_lea.vmem [#allocation3], %s2507_s22 }
  0x30   : > { %s302_s14 = sshll.u32 %s294_s11, 4  ;;  %p3397_p11 = pnand %p2846_p6, %p145_p8  ;;  %s3401_s14 = int_to_ptr.vmem [resolvable:$true] %s302_s14 }
  0x31   : > { %s291_s29 = scalar_lea.sflag [#allocation4], %s290_s20  ;;  %s3143_s10 = scalar_lea.hbm %s3395_s16, 512 }
  0x32   : > { %p3144_p13 = scmp.ne.s32.totalorder %s3395_s16, %s3143_s10  ;;  %p3145_p0 = pneg %p3397_p11 }
  0x33   : > { %s3148_s22 = scalar_lea.hbm %s3739_s4, 1024  ;;  %p3149_p7 = scmp.lt.u32.totalorder %s3395_s16, %s3739_s4 }
  0x34   : > { %p3146_p3 = pnand %p3145_p0, %p3144_p13  ;;  %p3150_p9 = scmp.lt.u32.totalorder %s3148_s22, %s3143_s10 }
  0x35   : > { %p3152_p1 = scmp.lt.u32.totalorder %s3143_s10, %s3395_s16 }
  0x36   : > { %p3147_p5 = pneg %p3146_p3  ;;  %p3151_p2 = por %p3150_p9, %p3149_p7 }
  0x38   : > { %p3153_p4 = por %p3152_p1, %p3151_p2 }
  0x3a   : > { %p3154_p6 = pnand %p3153_p4, %p3147_p5 }
  0x3c   : > { %3157 = shalt.err (!%p3154_p6)
}
  0x3d   : > { %s3158_s20 = scalar_lea.vmem %s3401_s14, 512  ;;  %s3248_s11 = smov [#allocation3]  }
  0x3e   : > { %p3159_p8 = scmp.ne.s32.totalorder %s3401_s14, %s3158_s20  ;;  %s3163_s17 = sshll.u32 %s3248_s11, 4  ;;  %s3164_s17 = int_to_ptr.vmem [resolvable:$false] %s3163_s17 }
  0x3f   : > { %s3165_s21 = scalar_lea.vmem %s3164_s17, 1024  ;;  %p3166_p3 = scmp.lt.s32.totalorder %s3401_s14, %s3164_s17 }
  0x40   : > { %p3161_p10 = pnand %p3159_p8, %p3145_p0  ;;  %p3167_p7 = scmp.lt.s32.totalorder %s3165_s21, %s3158_s20 }
  0x42   : > { %p3162_p13 = pneg %p3161_p10  ;;  %p3168_p9 = por %p3167_p7, %p3166_p3 }
  0x44   : > { %p3169_p2 = pnand %p3168_p9, %p3162_p13 }
  0x46   : > { %3172 = shalt.err (!%p3169_p2)
}
  0x47   : > { %2840 = dma.hbm_to_vmem [thread:$0]  (!%p3397_p11), %s3395_s16, 512, %s3401_s14, %s291_s29  }
  0x48   : > { %p3753_p5 = scmp.ne.s32.totalorder %s3748_s9, 0 }
  0x49   : > { %s3431_s10 = sand.u32 (!%p3753_p5), 1, %s3235_s25   ;;  %p3754_p0 = scmp.ne.s32.totalorder (!%p3753_p5), %s3746_s30, 0 }
  0x4a   : > { %311 = sbr.rel (%p3753_p5) target bundleno = 2135 (0x857), region = 44  ;;  %s2511_s22 = sshll.u32 (!%p3753_p5), %s3431_s10, 5 }
  0x4b   : > { %s314_s12 = scalar_lea.sflag (!%p3753_p5), [#allocation4], %s3431_s10  ;;  %s3435_s23 = scalar_lea.vmem (!%p3753_p5), [#allocation3], %s2511_s22 }
  0x51   : > { %3218 = dma.done.wait (%p3754_p0), %s314_s12, 512  }
  0x52   : > { %3220 = vsyncadd (%p3754_p0), %s314_s12, 4294966784  ;;  %p3755_p11 = scmp.eq.s32.totalorder %s3316_s28, 0 }
  0x54   : > { %3222 = dma.done.wait (%p3755_p11), [#allocation7], 16384   ;;  %p3756_p1 = pmov %p3755_p11 }
  0x55   : > { %p376_p4 = scmp.lt.s32.totalorder %s3316_s28, 1  ;;  %v3249_v0 = vmov 0.0   ;;  %vm3250_vm0 = vmmov 0   ;;  %vm430_vm1 = vcmask 523264   ;;  %vm479_vm3 = vcmask 64512   ;;  %s2513_s20 = sshll.u32 %s3431_s10, 6 }
  0x56   : > { %3224 = vsyncadd (%p3756_p1), [#allocation7], 4294950912  ;;  %2717 = vmatprep.subr.bf16.mxu0 %v3249_v0  ;;  %2719 = vmatprep.mubr.msk.bf16.mxu0 %vm3250_vm0, %v3249_v0  ;;  %vm496_vm4 = vcmask 1043456   ;;  %vm661_vm5 = vcmask 1048064   ;;  %s3252_s16 = smov [#allocation8]  }
  0x57   : > { %s377_s9 = scalar_select %p376_p4, %s3316_s28, 1  ;;  %2723 = vmatprep.subr.bf16.mxu1 %v3249_v0  ;;  %2725 = vmatprep.mubr.msk.bf16.mxu1 %vm3250_vm0, %v3249_v0 }
  0x58   : > { %s3177_s14 = sshll.u32 %s3252_s16, 4  ;;  %s3178_s14 = int_to_ptr.vmem [resolvable:$false] %s3177_s14 }
  0x59   : > { %s3453_s30 = sshll.u32 %s377_s9, 5  ;;  %s2520_s17 = sshll.u32 %s377_s9, 3 }
  0x5a   : > { %s3459_s15 = scalar_lea.vmem %s3736_s1, %s3453_s30  ;;  %s3465_s11 = scalar_lea.vmem %s3735_s0, %s3453_s30 }
  0x5b   : > { %v413_v1 = vld [vmem:[%s3459_s15] sm:$0xff]  ;;  %s394_s12 = scalar_lea.vmem %s3738_s3, %s2520_s17  ;;  %s3251_s9 = smov 64   ;;  %v402_v14 = vld [vmem:[%s3465_s11 + $0x8] sm:$0xff]  ;;  %v415_v16 = vld [vmem:[%s3459_s15 + $0x10] sm:$0xff] }
  0x5c   : > { %v401_v2 = vld [vmem:[%s3465_s11] sm:$0xff]  ;;  %v417_v3 = vpack.c.bf16 %v413_v1, %v413_v1  ;;  %v406_v15 = vmul.f32 0.125, %v402_v14  ;;  %v403_v17 = vld [vmem:[%s3465_s11 + $0x10] sm:$0xff]  ;;  %v419_v19 = vpack.c.bf16 %v415_v16, %v415_v16  ;;  %v416_v22 = vld [vmem:[%s3459_s15 + $0x18] sm:$0xff]  ;;  %s3503_s29 = scalar_lea.vmem %s3737_s2, %s3453_s30 }
  0x5d   : > { %v405_v5 = vmul.f32 0.125, %v401_v2  ;;  %v3477_v7 = vld [vmem:[%s394_s12] sm:$0xff]  ;;  %v407_v20 = vmul.f32 0.125, %v403_v17  ;;  %v404_v23 = vld [vmem:[%s3465_s11 + $0x18] sm:$0xff]  ;;  %v420_v24 = vpack.c.bf16 %v416_v22, %v416_v22  ;;  %v414_v32 = vld [vmem:[%s3459_s15 + $0x8] sm:$0xff]  ;;  %s3515_s15 = scalar_lea.vmem [#allocation8], %s2513_s20 }
  0x5e   : > { %v435_v4 = vsel %vm430_vm1, %v417_v3, 0  ;;  %vm477_vm2 = vcmp.gt.f32.partialorder %v3477_v7, 0.0  ;;  %545 = vrot.lane.b32.xlu1 %v417_v3, %s3251_s9  ;;  %v410_v18 = vpack.c.bf16 %v406_v15, %v406_v15  ;;  %v408_v25 = vmul.f32 0.125, %v404_v23  ;;  %v421_v33 = vld [vmem:[%s3503_s29] sm:$0xff]  ;;  %s2347_s11 = sshll.u32 %s3515_s15, 4  ;;  %s2331_s12 = scalar_lea.sflag [#allocation5], %s3431_s10  ;;  %s3687_s11 = int_to_ptr.vmem [resolvable:$true] %s2347_s11 }
  0x5f   : > { %2718 = vmatpush3.bf16.xpose.msra.mxu0 %v435_v4  ;;  %v409_v6 = vpack.c.bf16 %v405_v5, %v405_v5  ;;  %v411_v21 = vpack.c.bf16 %v407_v20, %v407_v20  ;;  %v3507_v34 = vpack.c.bf16 %v421_v33, %v421_v33  ;;  %v418_v35 = vpack.c.bf16 %v414_v32, %v414_v32  ;;  %p3180_p13 = scmp.lt.s32.totalorder %s3687_s11, %s3178_s14 }
  0x60   : > { %2735 = vmatprep.subr.bf16.mxu0 %v3249_v0  ;;  %v3494_v26 = vpack.c.bf16 %v408_v25, %v408_v25  ;;  %v896_v48 = vsel %vm430_vm1, %v419_v19, 0  ;;  %v1125_v52 = vsel %vm430_vm1, %v420_v24, 0 }
  0x61   : > { %v498_v36 = vsel %vm496_vm4, %v3507_v34, 0  ;;  %v667_v44 = vsel %vm430_vm1, %v418_v35, 0 }
  0x62   : > { %542 = vrot.lane.b32.xlu1 %v409_v6, %s3251_s9  ;;  %2724 = vmatpush3.bf16.msra.mxu1 %v498_v36 }
  0x63   : > { %2729 = vmatprep.subr.bf16.mxu1 %v3249_v0 }
  0x66   : > { %2720 = vmatmul.mubr.msk.bf16.vlgmr.msra.gmra.mrb[0].mxu0 %vm430_vm1, %v409_v6  ;;  %772 = vrot.lane.b32.xlu1 %v410_v18, %s3251_s9 }
  0x67   : > { %2737 = vmatprep.mubr.msk.bf16.mxu0 %vm3250_vm0, %v3249_v0 }
  0x6a   : > { %1004 = vrot.lane.b32.xlu1 %v419_v19, %s3251_s9 }
  0x6e   : > { %1001 = vrot.lane.b32.xlu1 %v411_v21, %s3251_s9 }
  0x72   : > { %1233 = vrot.lane.b32.xlu1 %v420_v24, %s3251_s9 }
  0x76   : > { %1230 = vrot.lane.b32.xlu1 %v3494_v26, %s3251_s9 }
  0xd0   : > { %v546_v39 = vpop.permute.xlu1 %545 }
  0xd1   : > { %v551_v41 = vsel %vm430_vm1, %v546_v39, 0 }
  0xd4   : > { %v543_v43 = vpop.permute.xlu1 %542 }
  0xd8   : > { %v773_v47 = vpop.permute.xlu1 %772 }
  0xdc   : > { %v1005_v49 = vpop.permute.xlu1 %1004 }
  0xdd   : > { %v1010_v50 = vsel %vm430_vm1, %v1005_v49, 0 }
  0xe0   : > { %v1002_v51 = vpop.permute.xlu1 %1001 }
  0xe4   : > { %v1234_v53 = vpop.permute.xlu1 %1233 }
  0xe5   : > { %v1239_v54 = vsel %vm430_vm1, %v1234_v53, 0 }
  0xe8   : > { %v1231_v55 = vpop.permute.xlu1 %1230 }
 0x139   : > { %v471_v8 = vpop.f32.mrb[0].mxu0 }
 0x13a   : > { %v478_v9 = vsel %vm477_vm2, -1e+09, %v471_v8  ;;  %v2721_v10 = vpop.f32.mrb[1].mxu0 }
 0x13b   : > { %v474_v11 = vpop.f32.mrb[2].mxu0  ;;  %v480_v12 = vsel %vm479_vm3, %v478_v9, -inf }
 0x13c   : > { %481 = vmax.xlane.f32.xlu0 %v480_v12  ;;  %v2722_v13 = vpop.f32.mrb[3].mxu0 }
 0x1c9   : > { %v482_v27 = vpop.xlane.xlu0 %481 }
 0x1ca   : > { %v483_v28 = vsub.f32 %v478_v9, %v482_v27 }
 0x1cc   : > { %v484_v29 = vmul.f32 1.442695, %v483_v28 }
 0x1ce   : > { %3081 = vpow2.f32 %v484_v29 }
 0x1d8   : > { %v3082_v30 = vpop.eup %3081 }
 0x1d9   : > { %v486_v31 = vsel %vm479_vm3, %v3082_v30, 0.0 }
 0x1da   : > { %487 = vadd.xlane.f32.xlu0 %v486_v31 }
 0x1f0   : > { %775 = vrot.lane.b32.xlu0 %v418_v35, %s3251_s9 }
 0x267   : > { %v488_v37 = vpop.xlane.xlu0 %487 }
 0x268   : > { %3083 = vrcp.f32 %v488_v37 }
 0x26b   : > { %v776_v45 = vpop.permute.xlu0 %775 }
 0x26c   : > { %v781_v46 = vsel %vm430_vm1, %v776_v45, 0 }
 0x272   : > { %v3084_v38 = vpop.eup %3083 }
 0x273   : > { %v490_v40 = vmul.f32 %v3084_v38, %v3082_v30 }
 0x275   : > { %491 = vst.msk [vmem:[%s3515_s15] sm:$0xff] %vm479_vm3, %v490_v40  ;;  %v492_v42 = vpack.c.bf16 %v490_v40, %v490_v40 }
 0x277   : > { %2726 = vmatmul.mubr.msk.bf16.vlgmr.msra.gmra.mrb[0].mxu1 %vm479_vm3, %v492_v42 }
 0x278   : > { %2730 = vmatpush3.bf16.xpose.msra.mxu1 %v551_v41  ;;  %2731 = vmatprep.mubr.msk.bf16.mxu1 %vm3250_vm0, %v3249_v0 }
 0x279   : > { %2741 = vmatprep.subr.bf16.mxu1 %v3249_v0 }
 0x27f   : > { %2732 = vmatmul.mubr.msk.bf16.vlgmr.msra.gmra.mrb[4].mxu1 %vm430_vm1, %v543_v43 }
 0x280   : > { %2742 = vmatpush3.bf16.xpose.msra.mxu1 %v667_v44  ;;  %2743 = vmatprep.mubr.msk.bf16.mxu1 %vm3250_vm0, %v3249_v0 }
 0x281   : > { %2753 = vmatprep.subr.bf16.mxu1 %v3249_v0 }
 0x287   : > { %2744 = vmatmul.mubr.msk.bf16.vlgmr.msra.gmra.mrb[8].mxu1 %vm430_vm1, %v410_v18 }
 0x288   : > { %2754 = vmatpush3.bf16.xpose.msra.mxu1 %v781_v46  ;;  %2755 = vmatprep.mubr.msk.bf16.mxu1 %vm3250_vm0, %v3249_v0 }
 0x289   : > { %2765 = vmatprep.subr.bf16.mxu1 %v3249_v0 }
 0x28f   : > { %2756 = vmatmul.mubr.msk.bf16.vlgmr.msra.gmra.mrb[12].mxu1 %vm430_vm1, %v773_v47 }
 0x290   : > { %2766 = vmatpush3.bf16.xpose.msra.mxu1 %v896_v48  ;;  %2767 = vmatprep.mubr.msk.bf16.mxu1 %vm3250_vm0, %v3249_v0 }
 0x291   : > { %2777 = vmatprep.subr.bf16.mxu1 %v3249_v0 }
 0x297   : > { %2768 = vmatmul.mubr.msk.bf16.vlgmr.msra.gmra.mrb[16].mxu1 %vm430_vm1, %v411_v21 }
 0x298   : > { %2778 = vmatpush3.bf16.xpose.msra.mxu1 %v1010_v50  ;;  %2779 = vmatprep.mubr.msk.bf16.mxu1 %vm3250_vm0, %v3249_v0 }
 0x299   : > { %2789 = vmatprep.subr.bf16.mxu1 %v3249_v0 }
 0x29f   : > { %2780 = vmatmul.mubr.msk.bf16.vlgmr.msra.gmra.mrb[20].mxu1 %vm430_vm1, %v1002_v51 }
 0x2a0   : > { %2790 = vmatpush3.bf16.xpose.msra.mxu1 %v1125_v52  ;;  %2791 = vmatprep.mubr.msk.bf16.mxu1 %vm3250_vm0, %v3249_v0 }
 0x2a1   : > { %2801 = vmatprep.subr.bf16.mxu1 %v3249_v0 }
 0x2a7   : > { %2792 = vmatmul.mubr.msk.bf16.vlgmr.msra.gmra.mrb[24].mxu1 %vm430_vm1, %v3494_v26 }
 0x2a8   : > { %2802 = vmatpush3.bf16.xpose.msra.mxu1 %v1239_v54  ;;  %2803 = vmatprep.mubr.msk.bf16.mxu1 %vm3250_vm0, %v3249_v0 }
 0x2af   : > { %2804 = vmatmul.mubr.msk.bf16.vlgmr.msra.gmra.mrb[28].mxu1 %vm430_vm1, %v1231_v55  ;;  %v422_v55 = vld [vmem:[%s3503_s29 + $0x8] sm:$0xff] }
 0x34a   : > { %v534_v56 = vpop.f32.mrb[0].mxu1 }
 0x34b   : > { %540 = vst.msk [vmem:[#allocation2] sm:$0xff] %vm430_vm1, %v534_v56  ;;  %v2727_v57 = vpop.f32.mrb[1].mxu1  ;;  %v426_v56 = vpack.c.bf16 %v422_v55, %v422_v55 }
 0x34c   : > { %v537_v58 = vpop.f32.mrb[2].mxu1 }
 0x34d   : > { %v2728_v59 = vpop.f32.mrb[3].mxu1 }
 0x352   : > { %v587_v60 = vpop.f32.mrb[4].mxu1 }
 0x353   : > { %v593_v61 = vsel %vm477_vm2, -1e+09, %v587_v60  ;;  %v2733_v62 = vpop.f32.mrb[5].mxu1 }
 0x354   : > { %v590_v63 = vpop.f32.mrb[6].mxu1  ;;  %v594_v1 = vsel %vm479_vm3, %v593_v61, -inf }
 0x355   : > { %595 = vmax.xlane.f32.xlu1 %v594_v1  ;;  %v2734_v2 = vpop.f32.mrb[7].mxu1 }
 0x35a   : > { %v703_v3 = vpop.f32.mrb[8].mxu1 }
 0x35b   : > { %v709_v4 = vsel %vm477_vm2, -1e+09, %v703_v3  ;;  %v2745_v5 = vpop.f32.mrb[9].mxu1 }
 0x35c   : > { %v706_v6 = vpop.f32.mrb[10].mxu1  ;;  %v710_v8 = vsel %vm479_vm3, %v709_v4, -inf }
 0x35d   : > { %711 = vmax.xlane.f32.xlu0 %v710_v8  ;;  %v2746_v9 = vpop.f32.mrb[11].mxu1 }
 0x362   : > { %v817_v10 = vpop.f32.mrb[12].mxu1 }
 0x363   : > { %v823_v11 = vsel %vm477_vm2, -1e+09, %v817_v10  ;;  %v2757_v12 = vpop.f32.mrb[13].mxu1 }
 0x364   : > { %v820_v13 = vpop.f32.mrb[14].mxu1  ;;  %v824_v14 = vsel %vm479_vm3, %v823_v11, -inf }
 0x365   : > { %825 = vmax.xlane.f32.xlu0 %v824_v14  ;;  %v2758_v15 = vpop.f32.mrb[15].mxu1  ;;  %v423_v14 = vld [vmem:[%s3503_s29 + $0x10] sm:$0xff] }
 0x366   : > { %v427_v15 = vpack.c.bf16 %v423_v14, %v423_v14  ;;  %v2924_v14 = vld [vmem:[#allocation6 + $0xac] ss:$16 sps:$4 sm:$0xff]  }
 0x36a   : > { %v932_v16 = vpop.f32.mrb[16].mxu1 }
 0x36b   : > { %v938_v17 = vsel %vm477_vm2, -1e+09, %v932_v16  ;;  %v2769_v18 = vpop.f32.mrb[17].mxu1  ;;  %v424_v16 = vld [vmem:[%s3503_s29 + $0x18] sm:$0xff] }
 0x36c   : > { %v939_v19 = vsel %vm479_vm3, %v938_v17, -inf  ;;  %v935_v20 = vpop.f32.mrb[18].mxu1 }
 0x36d   : > { %940 = vmax.xlane.f32.xlu1 %v939_v19  ;;  %v2770_v21 = vpop.f32.mrb[19].mxu1 }
 0x372   : > { %v1046_v22 = vpop.f32.mrb[20].mxu1 }
 0x373   : > { %v1052_v23 = vsel %vm477_vm2, -1e+09, %v1046_v22  ;;  %v2781_v24 = vpop.f32.mrb[21].mxu1 }
 0x374   : > { %v1053_v25 = vsel %vm479_vm3, %v1052_v23, -inf  ;;  %v1049_v26 = vpop.f32.mrb[22].mxu1 }
 0x375   : > { %1054 = vmax.xlane.f32.xlu0 %v1053_v25  ;;  %v2782_v27 = vpop.f32.mrb[23].mxu1  ;;  %v728_v25 = vsel %vm496_vm4, %v426_v56, 0 }
 0x37a   : > { %v1161_v28 = vpop.f32.mrb[24].mxu1 }
 0x37b   : > { %v1167_v29 = vsel %vm477_vm2, -1e+09, %v1161_v28  ;;  %v2793_v30 = vpop.f32.mrb[25].mxu1 }
 0x37c   : > { %v1168_v31 = vsel %vm479_vm3, %v1167_v29, -inf  ;;  %v1164_v32 = vpop.f32.mrb[26].mxu1 }
 0x37d   : > { %1169 = vmax.xlane.f32.xlu1 %v1168_v31  ;;  %v2794_v33 = vpop.f32.mrb[27].mxu1 }
 0x382   : > { %v1275_v35 = vpop.f32.mrb[28].mxu1 }
 0x383   : > { %v1281_v36 = vsel %vm477_vm2, -1e+09, %v1275_v35  ;;  %v2805_v37 = vpop.f32.mrb[29].mxu1 }
 0x384   : > { %v1282_v38 = vsel %vm479_vm3, %v1281_v36, -inf  ;;  %v1278_v39 = vpop.f32.mrb[30].mxu1 }
 0x385   : > { %1283 = vmax.xlane.f32.xlu0 %v1282_v38  ;;  %v2806_v40 = vpop.f32.mrb[31].mxu1 }
 0x3e2   : > { %v596_v41 = vpop.xlane.xlu1 %595 }
 0x3e3   : > { %v597_v42 = vsub.f32 %v593_v61, %v596_v41 }
 0x3e5   : > { %v598_v43 = vmul.f32 1.442695, %v597_v42 }
 0x3e7   : > { %3085 = vpow2.f32 %v598_v43 }
 0x3ea   : > { %v712_v44 = vpop.xlane.xlu0 %711 }
 0x3eb   : > { %v713_v45 = vsub.f32 %v709_v4, %v712_v44 }
 0x3ed   : > { %v714_v46 = vmul.f32 1.442695, %v713_v45 }
 0x3ef   : > { %3087 = vpow2.f32 %v714_v46 }
 0x3f1   : > { %v3086_v47 = vpop.eup %3085 }
 0x3f2   : > { %v826_v48 = vpop.xlane.xlu0 %825  ;;  %v600_v7 = vsel %vm479_vm3, %v3086_v47, 0.0 }
 0x3f3   : > { %v827_v49 = vsub.f32 %v823_v11, %v826_v48  ;;  %601 = vadd.xlane.f32.xlu1 %v600_v7 }
 0x3f5   : > { %v828_v50 = vmul.f32 1.442695, %v827_v49 }
 0x3f7   : > { %3089 = vpow2.f32 %v828_v50 }
 0x3f9   : > { %v3577_v51 = vpop.eup %3087 }
 0x3fa   : > { %v716_v52 = vsel %vm479_vm3, %v3577_v51, 0.0  ;;  %v941_v57 = vpop.xlane.xlu1 %940 }
 0x3fb   : > { %717 = vadd.xlane.f32.xlu0 %v716_v52  ;;  %v942_v63 = vsub.f32 %v938_v17, %v941_v57  ;;  %v3607_v17 = vpack.c.bf16 %v424_v16, %v424_v16  ;;  %v2891_v57 = vld [vmem:[#allocation6 + $0x4] ss:$16 sps:$4 sm:$0xff]   ;;  %v2922_v16 = vld [vmem:[#allocation6 + $0xa8] ss:$16 sps:$4 sm:$0xff]  }
 0x3fc   : > { %2130 = vmatprep.subr.bf16.mxu1 %v2891_v57  ;;  %v2981_v57 = vld [vmem:[#allocation6 + $0x1e4] ss:$16 sps:$4 sm:$0xff]  }
 0x3fd   : > { %v943_v3 = vmul.f32 1.442695, %v942_v63  ;;  %v1186_v52 = vsel %vm496_vm4, %v3607_v17, 0  ;;  %v2895_v63 = vld [vmem:[#allocation6 + $0x20] ss:$16 sps:$4 sm:$0xff]  }
 0x401   : > { %v3581_v53 = vpop.eup %3089 }
 0x402   : > { %v830_v54 = vsel %vm479_vm3, %v3581_v53, 0.0  ;;  %v1055_v58 = vpop.xlane.xlu0 %1054 }
 0x403   : > { %831 = vadd.xlane.f32.xlu1 %v830_v54  ;;  %v1056_v59 = vsub.f32 %v1052_v23, %v1055_v58  ;;  %v2894_v58 = vld [vmem:[#allocation6 + $0xc] ss:$16 sps:$4 sm:$0xff]  }
 0x405   : > { %v1057_v61 = vmul.f32 1.442695, %v1056_v59  ;;  %v2889_v59 = vld [vmem:[#allocation6] ss:$16 sps:$4 sm:$0xff]  }
 0x406   : > { %2131 = vmatpush1.bf16.msra.mxu1 %v2889_v59 }
 0x407   : > { %3091 = vpow2.f32 %v1057_v61  ;;  %v2897_v61 = vld [vmem:[#allocation6 + $0x24] ss:$16 sps:$4 sm:$0xff]  }
 0x408   : > { %2132 = vmatprep.subr.bf16.mxu1 %v2897_v61  ;;  %v2979_v61 = vld [vmem:[#allocation6 + $0x1e0] ss:$16 sps:$4 sm:$0xff]  }
 0x40a   : > { %v1170_v60 = vpop.xlane.xlu1 %1169  ;;  %2133 = vmatpush1.bf16.msra.mxu1 %v2895_v63  ;;  %v2982_v63 = vld [vmem:[#allocation6 + $0x1e8] ss:$16 sps:$4 sm:$0xff]  }
 0x40b   : > { %v1171_v62 = vsub.f32 %v1167_v29, %v1170_v60  ;;  %v2892_v60 = vld [vmem:[#allocation6 + $0x8] ss:$16 sps:$4 sm:$0xff]  }
 0x40d   : > { %v1172_v1 = vmul.f32 1.442695, %v1171_v62  ;;  %v2900_v62 = vld [vmem:[#allocation6 + $0x2c] ss:$16 sps:$4 sm:$0xff]  }
 0x40f   : > { %3093 = vpow2.f32 %v1172_v1  ;;  %v2898_v1 = vld [vmem:[#allocation6 + $0x28] ss:$16 sps:$4 sm:$0xff]  }
 0x410   : > { %3095 = vpow2.f32 %v943_v3  ;;  %v2901_v3 = vld [vmem:[#allocation6 + $0x40] ss:$16 sps:$4 sm:$0xff]  }
 0x411   : > { %609 = vrot.lane.b32.xlu0 %v3507_v34, %s3251_s9  ;;  %v3589_v34 = vpop.eup %3091 }
 0x412   : > { %v1284_v2 = vpop.xlane.xlu0 %1283  ;;  %v1059_v6 = vsel %vm479_vm3, %v3589_v34, 0.0 }
 0x413   : > { %v1285_v4 = vsub.f32 %v1281_v36, %v1284_v2  ;;  %v957_v36 = vsel %vm496_vm4, %v427_v15, 0  ;;  %v2906_v2 = vld [vmem:[#allocation6 + $0x4c] ss:$16 sps:$4 sm:$0xff]  }
 0x414   : > { %839 = vrot.lane.b32.xlu1 %v426_v56, %s3251_s9 }
 0x415   : > { %v1286_v5 = vmul.f32 1.442695, %v1285_v4  ;;  %v2904_v4 = vld [vmem:[#allocation6 + $0x48] ss:$16 sps:$4 sm:$0xff]  }
 0x417   : > { %3097 = vpow2.f32 %v1286_v5  ;;  %v2909_v5 = vld [vmem:[#allocation6 + $0x64] ss:$16 sps:$4 sm:$0xff]  }
 0x419   : > { %v3593_v8 = vpop.eup %3093 }
 0x41a   : > { %v1174_v9 = vsel %vm479_vm3, %v3593_v8, 0.0  ;;  %v3597_v10 = vpop.eup %3095 }
 0x41b   : > { %v945_v11 = vsel %vm479_vm3, %v3597_v10, 0.0 }
 0x421   : > { %v3601_v12 = vpop.eup %3097 }
 0x422   : > { %v1288_v13 = vsel %vm479_vm3, %v3601_v12, 0.0 }
 0x430   : > { %1060 = vadd.xlane.f32.xlu0 %v1059_v6  ;;  %v2907_v6 = vld [vmem:[#allocation6 + $0x60] ss:$16 sps:$4 sm:$0xff]  }
 0x434   : > { %1175 = vadd.xlane.f32.xlu0 %v1174_v9  ;;  %v2915_v9 = vld [vmem:[#allocation6 + $0x84] ss:$16 sps:$4 sm:$0xff]  }
 0x438   : > { %946 = vadd.xlane.f32.xlu1 %v945_v11  ;;  %v2913_v11 = vld [vmem:[#allocation6 + $0x80] ss:$16 sps:$4 sm:$0xff]  }
 0x43c   : > { %1289 = vadd.xlane.f32.xlu1 %v1288_v13  ;;  %v2921_v13 = vld [vmem:[#allocation6 + $0xa4] ss:$16 sps:$4 sm:$0xff]  }
 0x44a   : > { %1068 = vrot.lane.b32.xlu0 %v427_v15, %s3251_s9  ;;  %v2919_v15 = vld [vmem:[#allocation6 + $0xa0] ss:$16 sps:$4 sm:$0xff]  }
 0x44d   : > { %1297 = vrot.lane.b32.xlu1 %v3607_v17, %s3251_s9  ;;  %v2927_v17 = vld [vmem:[#allocation6 + $0xc4] ss:$16 sps:$4 sm:$0xff]  }
 0x480   : > { %v602_v18 = vpop.xlane.xlu1 %601 }
 0x481   : > { %3099 = vrcp.f32 %v602_v18  ;;  %v2930_v18 = vld [vmem:[#allocation6 + $0xcc] ss:$16 sps:$4 sm:$0xff]  }
 0x488   : > { %v718_v19 = vpop.xlane.xlu0 %717 }
 0x489   : > { %3101 = vrcp.f32 %v718_v19  ;;  %v2925_v19 = vld [vmem:[#allocation6 + $0xc0] ss:$16 sps:$4 sm:$0xff]  }
 0x48b   : > { %v3100_v20 = vpop.eup %3099 }
 0x48c   : > { %v604_v21 = vmul.f32 %v3100_v20, %v3086_v47  ;;  %v610_v22 = vpop.permute.xlu0 %609  ;;  %v2928_v20 = vld [vmem:[#allocation6 + $0xc8] ss:$16 sps:$4 sm:$0xff]  }
 0x48d   : > { %v615_v23 = vsel %vm496_vm4, %v610_v22, 0  ;;  %v2936_v22 = vld [vmem:[#allocation6 + $0xec] ss:$16 sps:$4 sm:$0xff]  }
 0x48e   : > { %2526 = vst.msk [vmem:[%s3515_s15 + $0x8] sm:$0xff] %vm479_vm3, %v604_v21  ;;  %2736 = vmatpush3.bf16.msra.mxu0 %v615_v23  ;;  %v607_v24 = vpack.c.bf16 %v604_v21, %v604_v21  ;;  %v2933_v21 = vld [vmem:[#allocation6 + $0xe4] ss:$16 sps:$4 sm:$0xff]   ;;  %v2931_v23 = vld [vmem:[#allocation6 + $0xe0] ss:$16 sps:$4 sm:$0xff]  }
 0x48f   : > { %2747 = vmatprep.subr.bf16.mxu0 %v3249_v0 }
 0x490   : > { %v832_v26 = vpop.xlane.xlu1 %831 }
 0x491   : > { %3103 = vrcp.f32 %v832_v26  ;;  %2738 = vmatmul.mubr.msk.bf16.vlgmr.msra.gmra.mrb[4].mxu0 %vm479_vm3, %v607_v24  ;;  %v2934_v24 = vld [vmem:[#allocation6 + $0xe8] ss:$16 sps:$4 sm:$0xff]   ;;  %v2942_v26 = vld [vmem:[#allocation6 + $0x10c] ss:$16 sps:$4 sm:$0xff]  }
 0x492   : > { %2748 = vmatpush3.bf16.msra.mxu0 %v728_v25  ;;  %2749 = vmatprep.mubr.msk.bf16.mxu0 %vm3250_vm0, %v3249_v0  ;;  %v2939_v25 = vld [vmem:[#allocation6 + $0x104] ss:$16 sps:$4 sm:$0xff]  }
 0x493   : > { %v3102_v27 = vpop.eup %3101  ;;  %2759 = vmatprep.subr.bf16.mxu0 %v3249_v0 }
 0x494   : > { %v720_v28 = vmul.f32 %v3102_v27, %v3577_v51  ;;  %v840_v29 = vpop.permute.xlu1 %839  ;;  %v2937_v27 = vld [vmem:[#allocation6 + $0x100] ss:$16 sps:$4 sm:$0xff]  }
 0x495   : > { %v845_v31 = vsel %vm496_vm4, %v840_v29, 0  ;;  %v2945_v29 = vld [vmem:[#allocation6 + $0x124] ss:$16 sps:$4 sm:$0xff]  }
 0x496   : > { %2529 = vst.msk [vmem:[%s3515_s15 + $0x10] sm:$0xff] %vm479_vm3, %v720_v28  ;;  %v723_v30 = vpack.c.bf16 %v720_v28, %v720_v28  ;;  %v2940_v28 = vld [vmem:[#allocation6 + $0x108] ss:$16 sps:$4 sm:$0xff]  }
 0x499   : > { %2750 = vmatmul.mubr.msk.bf16.vlgmr.msra.gmra.mrb[8].mxu0 %vm479_vm3, %v723_v30  ;;  %v2948_v30 = vld [vmem:[#allocation6 + $0x12c] ss:$16 sps:$4 sm:$0xff]  }
 0x49a   : > { %2760 = vmatpush3.bf16.msra.mxu0 %v845_v31  ;;  %2761 = vmatprep.mubr.msk.bf16.mxu0 %vm3250_vm0, %v3249_v0  ;;  %v2943_v31 = vld [vmem:[#allocation6 + $0x120] ss:$16 sps:$4 sm:$0xff]  }
 0x49b   : > { %v3104_v32 = vpop.eup %3103  ;;  %2771 = vmatprep.subr.bf16.mxu0 %v3249_v0 }
 0x49c   : > { %v834_v33 = vmul.f32 %v3104_v32, %v3581_v53  ;;  %v2946_v32 = vld [vmem:[#allocation6 + $0x128] ss:$16 sps:$4 sm:$0xff]  }
 0x49e   : > { %2532 = vst.msk [vmem:[%s3515_s15 + $0x18] sm:$0xff] %vm479_vm3, %v834_v33  ;;  %v837_v35 = vpack.c.bf16 %v834_v33, %v834_v33  ;;  %v2951_v33 = vld [vmem:[#allocation6 + $0x144] ss:$16 sps:$4 sm:$0xff]  }
 0x4a1   : > { %2762 = vmatmul.mubr.msk.bf16.vlgmr.msra.gmra.mrb[12].mxu0 %vm479_vm3, %v837_v35  ;;  %v2949_v35 = vld [vmem:[#allocation6 + $0x140] ss:$16 sps:$4 sm:$0xff]  }
 0x4a2   : > { %2772 = vmatpush3.bf16.msra.mxu0 %v957_v36  ;;  %2773 = vmatprep.mubr.msk.bf16.mxu0 %vm3250_vm0, %v3249_v0  ;;  %v2952_v36 = vld [vmem:[#allocation6 + $0x148] ss:$16 sps:$4 sm:$0xff]  }
 0x4a3   : > { %2783 = vmatprep.subr.bf16.mxu0 %v3249_v0 }
 0x4bd   : > { %v1061_v37 = vpop.xlane.xlu0 %1060 }
 0x4be   : > { %3105 = vrcp.f32 %v1061_v37  ;;  %v2954_v37 = vld [vmem:[#allocation6 + $0x14c] ss:$16 sps:$4 sm:$0xff]  }
 0x4c1   : > { %v1176_v38 = vpop.xlane.xlu0 %1175 }
 0x4c2   : > { %3107 = vrcp.f32 %v1176_v38  ;;  %v2957_v38 = vld [vmem:[#allocation6 + $0x164] ss:$16 sps:$4 sm:$0xff]  }
 0x4c5   : > { %v947_v39 = vpop.xlane.xlu1 %946  ;;  %v1069_v46 = vpop.permute.xlu0 %1068 }
 0x4c6   : > { %3109 = vrcp.f32 %v947_v39  ;;  %v1074_v48 = vsel %vm496_vm4, %v1069_v46, 0  ;;  %v2960_v39 = vld [vmem:[#allocation6 + $0x16c] ss:$16 sps:$4 sm:$0xff]   ;;  %v2969_v46 = vld [vmem:[#allocation6 + $0x1a4] ss:$16 sps:$4 sm:$0xff]  }
 0x4c8   : > { %v3106_v40 = vpop.eup %3105 }
 0x4c9   : > { %v1063_v41 = vmul.f32 %v3106_v40, %v3589_v34  ;;  %v1290_v42 = vpop.xlane.xlu1 %1289  ;;  %v2912_v34 = vld [vmem:[#allocation6 + $0x6c] ss:$16 sps:$4 sm:$0xff]   ;;  %v2955_v40 = vld [vmem:[#allocation6 + $0x160] ss:$16 sps:$4 sm:$0xff]  }
 0x4ca   : > { %3111 = vrcp.f32 %v1290_v42  ;;  %v2963_v42 = vld [vmem:[#allocation6 + $0x184] ss:$16 sps:$4 sm:$0xff]  }
 0x4cb   : > { %2538 = vst.msk [vmem:[%s3515_s15 + $0x28] sm:$0xff] %vm479_vm3, %v1063_v41  ;;  %v1066_v51 = vpack.c.bf16 %v1063_v41, %v1063_v41  ;;  %v2958_v41 = vld [vmem:[#allocation6 + $0x168] ss:$16 sps:$4 sm:$0xff]  }
 0x4cc   : > { %v3108_v43 = vpop.eup %3107 }
 0x4cd   : > { %v1178_v44 = vmul.f32 %v3108_v43, %v3593_v8  ;;  %v1298_v53 = vpop.permute.xlu1 %1297  ;;  %v2910_v8 = vld [vmem:[#allocation6 + $0x68] ss:$16 sps:$4 sm:$0xff]   ;;  %v2966_v43 = vld [vmem:[#allocation6 + $0x18c] ss:$16 sps:$4 sm:$0xff]  }
 0x4ce   : > { %v1303_v54 = vsel %vm496_vm4, %v1298_v53, 0  ;;  %v2975_v53 = vld [vmem:[#allocation6 + $0x1c4] ss:$16 sps:$4 sm:$0xff]  }
 0x4cf   : > { %2541 = vst.msk [vmem:[%s3515_s15 + $0x30] sm:$0xff] %vm479_vm3, %v1178_v44  ;;  %v1181_v55 = vpack.c.bf16 %v1178_v44, %v1178_v44  ;;  %v2961_v44 = vld [vmem:[#allocation6 + $0x180] ss:$16 sps:$4 sm:$0xff]  }
 0x4d0   : > { %v3110_v45 = vpop.eup %3109 }
 0x4d1   : > { %v949_v47 = vmul.f32 %v3110_v45, %v3597_v10  ;;  %v2918_v10 = vld [vmem:[#allocation6 + $0x8c] ss:$16 sps:$4 sm:$0xff]   ;;  %v2964_v45 = vld [vmem:[#allocation6 + $0x188] ss:$16 sps:$4 sm:$0xff]  }
 0x4d3   : > { %2535 = vst.msk [vmem:[%s3515_s15 + $0x20] sm:$0xff] %vm479_vm3, %v949_v47  ;;  %v952_v7 = vpack.c.bf16 %v949_v47, %v949_v47  ;;  %v2972_v47 = vld [vmem:[#allocation6 + $0x1ac] ss:$16 sps:$4 sm:$0xff]  }
 0x4d4   : > { %v3112_v49 = vpop.eup %3111 }
 0x4d5   : > { %v1292_v50 = vmul.f32 %v3112_v49, %v3601_v12  ;;  %2774 = vmatmul.mubr.msk.bf16.vlgmr.msra.gmra.mrb[16].mxu0 %vm479_vm3, %v952_v7  ;;  %v2916_v12 = vld [vmem:[#allocation6 + $0x88] ss:$16 sps:$4 sm:$0xff]   ;;  %v2967_v49 = vld [vmem:[#allocation6 + $0x1a0] ss:$16 sps:$4 sm:$0xff]  }
 0x4d6   : > { %2784 = vmatpush3.bf16.msra.mxu0 %v1074_v48  ;;  %2785 = vmatprep.mubr.msk.bf16.mxu0 %vm3250_vm0, %v3249_v0 }
 0x4d7   : > { %2544 = vst.msk [vmem:[%s3515_s15 + $0x38] sm:$0xff] %vm479_vm3, %v1292_v50  ;;  %2795 = vmatprep.subr.bf16.mxu0 %v3249_v0  ;;  %v1295_v56 = vpack.c.bf16 %v1292_v50, %v1292_v50 }
 0x4dd   : > { %2786 = vmatmul.mubr.msk.bf16.vlgmr.msra.gmra.mrb[20].mxu0 %vm479_vm3, %v1066_v51  ;;  %v2970_v51 = vld [vmem:[#allocation6 + $0x1a8] ss:$16 sps:$4 sm:$0xff]  }
 0x4de   : > { %2796 = vmatpush3.bf16.msra.mxu0 %v1186_v52  ;;  %2797 = vmatprep.mubr.msk.bf16.mxu0 %vm3250_vm0, %v3249_v0 }
 0x4df   : > { %2807 = vmatprep.subr.bf16.mxu0 %v3249_v0 }
 0x4e5   : > { %2798 = vmatmul.mubr.msk.bf16.vlgmr.msra.gmra.mrb[24].mxu0 %vm479_vm3, %v1181_v55  ;;  %v2978_v55 = vld [vmem:[#allocation6 + $0x1cc] ss:$16 sps:$4 sm:$0xff]  }
 0x4e6   : > { %2808 = vmatpush3.bf16.msra.mxu0 %v1303_v54  ;;  %2809 = vmatprep.mubr.msk.bf16.mxu0 %vm3250_vm0, %v3249_v0  ;;  %v2903_v0 = vld [vmem:[#allocation6 + $0x44] ss:$16 sps:$4 sm:$0xff]   ;;  %v2973_v54 = vld [vmem:[#allocation6 + $0x1c0] ss:$16 sps:$4 sm:$0xff]  }
 0x4e7   : > { %2212 = vmatprep.subr.bf16.mxu0 %v2894_v58  ;;  %2134 = vmatprep.subr.bf16.mxu1 %v2903_v0  ;;  %v2984_v58 = vld [vmem:[#allocation6 + $0x1ec] ss:$16 sps:$4 sm:$0xff]   ;;  %v2987_v0 = vld [vmem:[#allocation6 + $0x204] ss:$16 sps:$4 sm:$0xff]  }
 0x4e8   : > { %2135 = vmatpush1.bf16.msra.mxu1 %v2901_v3  ;;  %v2990_v3 = vld [vmem:[#allocation6 + $0x20c] ss:$16 sps:$4 sm:$0xff]  }
 0x4e9   : > { %2136 = vmatprep.subr.bf16.mxu1 %v2909_v5 }
 0x4ec   : > { %2137 = vmatpush1.bf16.msra.mxu1 %v2907_v6 }
 0x4ed   : > { %2810 = vmatmul.mubr.msk.bf16.vlgmr.msra.gmra.mrb[28].mxu0 %vm479_vm3, %v1295_v56  ;;  %2138 = vmatprep.subr.bf16.mxu1 %v2915_v9  ;;  %v2976_v56 = vld [vmem:[#allocation6 + $0x1c8] ss:$16 sps:$4 sm:$0xff]  }
 0x4ee   : > { %2213 = vmatpush1.bf16.msra.mxu0 %v2892_v60 }
 0x4ef   : > { %2214 = vmatprep.subr.bf16.mxu0 %v2900_v62 }
 0x4f0   : > { %2139 = vmatpush1.bf16.msra.mxu1 %v2913_v11 }
 0x4f1   : > { %2140 = vmatprep.subr.bf16.mxu1 %v2921_v13 }
 0x4f2   : > { %2215 = vmatpush1.bf16.msra.mxu0 %v2898_v1 }
 0x4f3   : > { %2216 = vmatprep.subr.bf16.mxu0 %v2906_v2 }
 0x4f4   : > { %2141 = vmatpush1.bf16.msra.mxu1 %v2919_v15 }
 0x4f5   : > { %2142 = vmatprep.subr.bf16.mxu1 %v2927_v17 }
 0x4f6   : > { %2217 = vmatpush1.bf16.msra.mxu0 %v2904_v4 }
 0x4f7   : > { %2218 = vmatprep.subr.bf16.mxu0 %v2912_v34 }
 0x4f8   : > { %2143 = vmatpush1.bf16.msra.mxu1 %v2925_v19 }
 0x4f9   : > { %2144 = vmatprep.subr.bf16.mxu1 %v2933_v21 }
 0x4fa   : > { %2219 = vmatpush1.bf16.msra.mxu0 %v2910_v8 }
 0x4fb   : > { %2220 = vmatprep.subr.bf16.mxu0 %v2918_v10 }
 0x4fc   : > { %2145 = vmatpush1.bf16.msra.mxu1 %v2931_v23 }
 0x4fd   : > { %2146 = vmatprep.subr.bf16.mxu1 %v2939_v25 }
 0x4fe   : > { %2221 = vmatpush1.bf16.msra.mxu0 %v2916_v12 }
 0x4ff   : > { %2222 = vmatprep.subr.bf16.mxu0 %v2924_v14 }
 0x500   : > { %2147 = vmatpush1.bf16.msra.mxu1 %v2937_v27 }
 0x501   : > { %2148 = vmatprep.subr.bf16.mxu1 %v2945_v29  ;;  %v2988_v29 = vld [vmem:[#allocation6 + $0x208] ss:$16 sps:$4 sm:$0xff]  }
 0x502   : > { %2223 = vmatpush1.bf16.msra.mxu0 %v2922_v16 }
 0x503   : > { %2224 = vmatprep.subr.bf16.mxu0 %v2930_v18 }
 0x504   : > { %2149 = vmatpush1.bf16.msra.mxu1 %v2943_v31  ;;  %v2993_v31 = vld [vmem:[#allocation6 + $0x224] ss:$16 sps:$4 sm:$0xff]  }
 0x505   : > { %2150 = vmatprep.subr.bf16.mxu1 %v2951_v33  ;;  %v2991_v33 = vld [vmem:[#allocation6 + $0x220] ss:$16 sps:$4 sm:$0xff]  }
 0x506   : > { %2225 = vmatpush1.bf16.msra.mxu0 %v2928_v20 }
 0x507   : > { %2226 = vmatprep.subr.bf16.mxu0 %v2936_v22 }
 0x508   : > { %2151 = vmatpush1.bf16.msra.mxu1 %v2949_v35  ;;  %v2994_v35 = vld [vmem:[#allocation6 + $0x228] ss:$16 sps:$4 sm:$0xff]  }
 0x509   : > { %2152 = vmatprep.subr.bf16.mxu1 %v2957_v38  ;;  %v2997_v38 = vld [vmem:[#allocation6 + $0x240] ss:$16 sps:$4 sm:$0xff]  }
 0x50a   : > { %2227 = vmatpush1.bf16.msra.mxu0 %v2934_v24 }
 0x50b   : > { %2228 = vmatprep.subr.bf16.mxu0 %v2942_v26 }
 0x50c   : > { %2153 = vmatpush1.bf16.msra.mxu1 %v2955_v40  ;;  %v3005_v40 = vld [vmem:[#allocation6 + $0x264] ss:$16 sps:$4 sm:$0xff]  }
 0x50d   : > { %2154 = vmatprep.subr.bf16.mxu1 %v2963_v42  ;;  %v3003_v42 = vld [vmem:[#allocation6 + $0x260] ss:$16 sps:$4 sm:$0xff]  }
 0x50e   : > { %2229 = vmatpush1.bf16.msra.mxu0 %v2940_v28  ;;  %v2985_v28 = vld [vmem:[#allocation6 + $0x200] ss:$16 sps:$4 sm:$0xff]  }
 0x50f   : > { %2230 = vmatprep.subr.bf16.mxu0 %v2948_v30 }
 0x510   : > { %2155 = vmatpush1.bf16.msra.mxu1 %v2961_v44  ;;  %v3011_v44 = vld [vmem:[#allocation6 + $0x284] ss:$16 sps:$4 sm:$0xff]  }
 0x511   : > { %2156 = vmatprep.subr.bf16.mxu1 %v2969_v46  ;;  %v3009_v46 = vld [vmem:[#allocation6 + $0x280] ss:$16 sps:$4 sm:$0xff]  }
 0x512   : > { %2231 = vmatpush1.bf16.msra.mxu0 %v2946_v32  ;;  %v2996_v32 = vld [vmem:[#allocation6 + $0x22c] ss:$16 sps:$4 sm:$0xff]  }
 0x513   : > { %2232 = vmatprep.subr.bf16.mxu0 %v2954_v37  ;;  %v3002_v37 = vld [vmem:[#allocation6 + $0x24c] ss:$16 sps:$4 sm:$0xff]  }
 0x514   : > { %2157 = vmatpush1.bf16.msra.mxu1 %v2967_v49  ;;  %v3015_v49 = vld [vmem:[#allocation6 + $0x2a0] ss:$16 sps:$4 sm:$0xff]  }
 0x515   : > { %2158 = vmatprep.subr.bf16.mxu1 %v2975_v53  ;;  %v3021_v53 = vld [vmem:[#allocation6 + $0x2c0] ss:$16 sps:$4 sm:$0xff]  }
 0x516   : > { %2233 = vmatpush1.bf16.msra.mxu0 %v2952_v36  ;;  %v2999_v36 = vld [vmem:[#allocation6 + $0x244] ss:$16 sps:$4 sm:$0xff]  }
 0x517   : > { %2234 = vmatprep.subr.bf16.mxu0 %v2960_v39  ;;  %v3000_v39 = vld [vmem:[#allocation6 + $0x248] ss:$16 sps:$4 sm:$0xff]  }
 0x518   : > { %2159 = vmatpush1.bf16.msra.mxu1 %v2973_v54  ;;  %v3024_v54 = vld [vmem:[#allocation6 + $0x2c8] ss:$16 sps:$4 sm:$0xff]  }
 0x519   : > { %2160 = vmatprep.subr.bf16.mxu1 %v2981_v57  ;;  %v3027_v57 = vld [vmem:[#allocation6 + $0x2e0] ss:$16 sps:$4 sm:$0xff]  }
 0x51a   : > { %2235 = vmatpush1.bf16.msra.mxu0 %v2958_v41  ;;  %v3008_v41 = vld [vmem:[#allocation6 + $0x26c] ss:$16 sps:$4 sm:$0xff]  }
 0x51b   : > { %2236 = vmatprep.subr.bf16.mxu0 %v2966_v43  ;;  %v3006_v43 = vld [vmem:[#allocation6 + $0x268] ss:$16 sps:$4 sm:$0xff]  }
 0x51c   : > { %2161 = vmatpush1.bf16.msra.mxu1 %v2979_v61  ;;  %v3033_v61 = vld [vmem:[#allocation6 + $0x300] ss:$16 sps:$4 sm:$0xff]  }
 0x51d   : > { %2171 = vmatprep.subr.bf16.mxu1 %v2987_v0  ;;  %v3039_v0 = vld [vmem:[#allocation6 + $0x320] ss:$16 sps:$4 sm:$0xff]  }
 0x51e   : > { %2237 = vmatpush1.bf16.msra.mxu0 %v2964_v45  ;;  %v3014_v45 = vld [vmem:[#allocation6 + $0x28c] ss:$16 sps:$4 sm:$0xff]  }
 0x51f   : > { %2238 = vmatprep.subr.bf16.mxu0 %v2972_v47  ;;  %v3012_v47 = vld [vmem:[#allocation6 + $0x288] ss:$16 sps:$4 sm:$0xff]  }
 0x522   : > { %2239 = vmatpush1.bf16.msra.mxu0 %v2970_v51  ;;  %v3023_v51 = vld [vmem:[#allocation6 + $0x2c4] ss:$16 sps:$4 sm:$0xff]  }
 0x523   : > { %2240 = vmatprep.subr.bf16.mxu0 %v2978_v55  ;;  %v3029_v55 = vld [vmem:[#allocation6 + $0x2e4] ss:$16 sps:$4 sm:$0xff]  }
 0x526   : > { %2241 = vmatpush1.bf16.msra.mxu0 %v2976_v56  ;;  %v3032_v56 = vld [vmem:[#allocation6 + $0x2ec] ss:$16 sps:$4 sm:$0xff]  }
 0x527   : > { %2242 = vmatprep.subr.bf16.mxu0 %v2984_v58  ;;  %v3030_v58 = vld [vmem:[#allocation6 + $0x2e8] ss:$16 sps:$4 sm:$0xff]  }
 0x52a   : > { %2243 = vmatpush1.bf16.msra.mxu0 %v2982_v63  ;;  %v3041_v63 = vld [vmem:[#allocation6 + $0x324] ss:$16 sps:$4 sm:$0xff]  }
 0x52b   : > { %2253 = vmatprep.subr.bf16.mxu0 %v2990_v3  ;;  %v3047_v3 = vld [vmem:[#allocation6 + $0x344] ss:$16 sps:$4 sm:$0xff]  }
 0x564   : > { %v651_v48 = vpop.f32.mrb[4].mxu0 }
 0x565   : > { %658 = vrot.lane.b32.xlu0 %v651_v48, %s3251_s9  ;;  %v2739_v7 = vpop.f32.mrb[5].mxu0  ;;  %v3017_v48 = vld [vmem:[#allocation6 + $0x2a4] ss:$16 sps:$4 sm:$0xff]  }
 0x566   : > { %v654_v50 = vpop.f32.mrb[6].mxu0  ;;  %v3020_v7 = vld [vmem:[#allocation6 + $0x2ac] ss:$16 sps:$4 sm:$0xff]  }
 0x567   : > { %v2740_v52 = vpop.f32.mrb[7].mxu0  ;;  %v3018_v50 = vld [vmem:[#allocation6 + $0x2a8] ss:$16 sps:$4 sm:$0xff]  }
 0x568   : > { %v3026_v52 = vld [vmem:[#allocation6 + $0x2cc] ss:$16 sps:$4 sm:$0xff]  }
 0x56c   : > { %v764_v59 = vpop.f32.mrb[8].mxu0 }
 0x56d   : > { %770 = vst.msk [vmem:[#allocation2 + $0x8] sm:$0xff] %vm430_vm1, %v764_v59  ;;  %v2751_v60 = vpop.f32.mrb[9].mxu0  ;;  %v3035_v59 = vld [vmem:[#allocation6 + $0x304] ss:$16 sps:$4 sm:$0xff]  }
 0x56e   : > { %v767_v62 = vpop.f32.mrb[10].mxu0  ;;  %v3038_v60 = vld [vmem:[#allocation6 + $0x30c] ss:$16 sps:$4 sm:$0xff]  }
 0x56f   : > { %v2752_v1 = vpop.f32.mrb[11].mxu0  ;;  %v3036_v62 = vld [vmem:[#allocation6 + $0x308] ss:$16 sps:$4 sm:$0xff]  }
 0x570   : > { %v3044_v1 = vld [vmem:[#allocation6 + $0x32c] ss:$16 sps:$4 sm:$0xff]  }
 0x574   : > { %v881_v2 = vpop.f32.mrb[12].mxu0 }
 0x575   : > { %888 = vrot.lane.b32.xlu1 %v881_v2, %s3251_s9  ;;  %v2763_v4 = vpop.f32.mrb[13].mxu0  ;;  %v3042_v2 = vld [vmem:[#allocation6 + $0x328] ss:$16 sps:$4 sm:$0xff]  }
 0x576   : > { %v884_v5 = vpop.f32.mrb[14].mxu0  ;;  %v3050_v4 = vld [vmem:[#allocation6 + $0x34c] ss:$16 sps:$4 sm:$0xff]  }
 0x577   : > { %v2764_v34 = vpop.f32.mrb[15].mxu0  ;;  %v3045_v5 = vld [vmem:[#allocation6 + $0x340] ss:$16 sps:$4 sm:$0xff]  }
 0x578   : > { %v3048_v34 = vld [vmem:[#allocation6 + $0x348] ss:$16 sps:$4 sm:$0xff]  }
 0x5a8   : > { %v993_v6 = vpop.f32.mrb[16].mxu0 }
 0x5a9   : > { %999 = vst.msk [vmem:[#allocation2 + $0x10] sm:$0xff] %vm430_vm1, %v993_v6  ;;  %v2775_v8 = vpop.f32.mrb[17].mxu0  ;;  %v3053_v6 = vld [vmem:[#allocation6 + $0x364] ss:$16 sps:$4 sm:$0xff]  }
 0x5aa   : > { %v996_v9 = vpop.f32.mrb[18].mxu0  ;;  %v3056_v8 = vld [vmem:[#allocation6 + $0x36c] ss:$16 sps:$4 sm:$0xff]  }
 0x5ab   : > { %v2776_v10 = vpop.f32.mrb[19].mxu0  ;;  %v3051_v9 = vld [vmem:[#allocation6 + $0x360] ss:$16 sps:$4 sm:$0xff]  }
 0x5ac   : > { %v3054_v10 = vld [vmem:[#allocation6 + $0x368] ss:$16 sps:$4 sm:$0xff]  }
 0x5b0   : > { %v1110_v11 = vpop.f32.mrb[20].mxu0 }
 0x5b1   : > { %1117 = vrot.lane.b32.xlu0 %v1110_v11, %s3251_s9  ;;  %v2787_v12 = vpop.f32.mrb[21].mxu0  ;;  %v3059_v11 = vld [vmem:[#allocation6 + $0x384] ss:$16 sps:$4 sm:$0xff]  }
 0x5b2   : > { %v1113_v13 = vpop.f32.mrb[22].mxu0  ;;  %v3062_v12 = vld [vmem:[#allocation6 + $0x38c] ss:$16 sps:$4 sm:$0xff]  }
 0x5b3   : > { %v2788_v14 = vpop.f32.mrb[23].mxu0  ;;  %v3057_v13 = vld [vmem:[#allocation6 + $0x380] ss:$16 sps:$4 sm:$0xff]  }
 0x5b4   : > { %v3060_v14 = vld [vmem:[#allocation6 + $0x388] ss:$16 sps:$4 sm:$0xff]  }
 0x5b8   : > { %v1222_v15 = vpop.f32.mrb[24].mxu0 }
 0x5b9   : > { %1228 = vst.msk [vmem:[#allocation2 + $0x18] sm:$0xff] %vm430_vm1, %v1222_v15  ;;  %v2799_v16 = vpop.f32.mrb[25].mxu0  ;;  %v3065_v15 = vld [vmem:[#allocation6 + $0x3a4] ss:$16 sps:$4 sm:$0xff]  }
 0x5ba   : > { %v1225_v17 = vpop.f32.mrb[26].mxu0  ;;  %v3068_v16 = vld [vmem:[#allocation6 + $0x3ac] ss:$16 sps:$4 sm:$0xff]  }
 0x5bb   : > { %v2800_v18 = vpop.f32.mrb[27].mxu0 }
 0x5bc   : > { %v3063_v18 = vld [vmem:[#allocation6 + $0x3a0] ss:$16 sps:$4 sm:$0xff]  }
 0x5c0   : > { %v1339_v19 = vpop.f32.mrb[28].mxu0 }
 0x5c1   : > { %1346 = vrot.lane.b32.xlu1 %v1339_v19, %s3251_s9  ;;  %v2811_v20 = vpop.f32.mrb[29].mxu0  ;;  %v3066_v19 = vld [vmem:[#allocation6 + $0x3a8] ss:$16 sps:$4 sm:$0xff]   ;;  %s3173_s9 = scalar_lea.vmem %s3687_s11, 1024 }
 0x5c2   : > { %v1342_v21 = vpop.f32.mrb[30].mxu0  ;;  %v3071_v20 = vld [vmem:[#allocation6 + $0x3c4] ss:$16 sps:$4 sm:$0xff]   ;;  %p3174_p6 = scmp.ne.s32.totalorder %s3687_s11, %s3173_s9 }
 0x5c3   : > { %v2812_v22 = vpop.f32.mrb[31].mxu0  ;;  %v3074_v21 = vld [vmem:[#allocation6 + $0x3cc] ss:$16 sps:$4 sm:$0xff]  }
 0x5c4   : > { %v3069_v22 = vld [vmem:[#allocation6 + $0x3c0] ss:$16 sps:$4 sm:$0xff]   ;;  %p3175_p8 = pnand %p3174_p6, %p3386_p12 }
 0x5c6   : > { %p3176_p10 = pneg %p3175_p8 }
 0x5d7   : > { %v659_v23 = vpop.permute.xlu0 %658 }
 0x5d8   : > { %662 = vst.msk [vmem:[#allocation2] sm:$0xff] %vm661_vm5, %v659_v23  ;;  %v3072_v23 = vld [vmem:[#allocation6 + $0x3c8] ss:$16 sps:$4 sm:$0xff]  }
 0x5df   : > { %v1350_v25 = vld [vmem:[#allocation2] sm:$0xff] }
 0x5e0   : > { %v1354_v30 = vpack.c.bf16 %v1350_v25, %v1350_v25  ;;  %v3080_v25 = vld [vmem:[#allocation6 + $0x3ec] ss:$16 sps:$4 sm:$0xff]  }
 0x5e7   : > { %v889_v24 = vpop.permute.xlu1 %888 }
 0x5e8   : > { %891 = vst.msk [vmem:[#allocation2 + $0x8] sm:$0xff] %vm661_vm5, %v889_v24  ;;  %v3077_v24 = vld [vmem:[#allocation6 + $0x3e4] ss:$16 sps:$4 sm:$0xff]  }
 0x5ef   : > { %v1351_v26 = vld [vmem:[#allocation2 + $0x8] sm:$0xff] }
 0x5f0   : > { %v1355_v27 = vpack.c.bf16 %v1351_v26, %v1351_v26  ;;  %v3075_v26 = vld [vmem:[#allocation6 + $0x3e0] ss:$16 sps:$4 sm:$0xff]  }
 0x5f2   : > { %2162 = vmatprep.mubr.bf16.mxu1 %v1355_v27  ;;  %2244 = vmatprep.mubr.bf16.mxu0 %v1355_v27  ;;  %v3078_v27 = vld [vmem:[#allocation6 + $0x3e8] ss:$16 sps:$4 sm:$0xff]  }
 0x5f3   : > { %2163 = vmatmul.mubr.bf16.vlgmr.msra.gmra.mrb[32].mxu1 %v1354_v30  ;;  %2245 = vmatmul.mubr.bf16.vlgmr.msra.gmra.mrb[32].mxu0 %v1354_v30 }
 0x5f4   : > { %2172 = vmatpush1.bf16.msra.mxu1 %v2985_v28  ;;  %2254 = vmatpush1.bf16.msra.mxu0 %v2988_v29 }
 0x5f5   : > { %2173 = vmatprep.subr.bf16.mxu1 %v2993_v31  ;;  %2255 = vmatprep.subr.bf16.mxu0 %v2996_v32 }
 0x5f8   : > { %2174 = vmatpush1.bf16.msra.mxu1 %v2991_v33  ;;  %2256 = vmatpush1.bf16.msra.mxu0 %v2994_v35  ;;  %v1486_v33 = vld [vmem:[%s3435_s23] sm:$0xff]  ;;  %v1487_v35 = vld [vmem:[%s3435_s23 + $0x8] sm:$0xff] }
 0x5f9   : > { %2175 = vmatprep.subr.bf16.mxu1 %v2999_v36  ;;  %2257 = vmatprep.subr.bf16.mxu0 %v3002_v37 }
 0x5fc   : > { %2176 = vmatpush1.bf16.msra.mxu1 %v2997_v38  ;;  %2258 = vmatpush1.bf16.msra.mxu0 %v3000_v39  ;;  %v1488_v39 = vld [vmem:[%s3435_s23 + $0x10] sm:$0xff] }
 0x5fd   : > { %2177 = vmatprep.subr.bf16.mxu1 %v3005_v40  ;;  %2259 = vmatprep.subr.bf16.mxu0 %v3008_v41 }
 0x600   : > { %2178 = vmatpush1.bf16.msra.mxu1 %v3003_v42  ;;  %2260 = vmatpush1.bf16.msra.mxu0 %v3006_v43 }
 0x601   : > { %2179 = vmatprep.subr.bf16.mxu1 %v3011_v44  ;;  %2261 = vmatprep.subr.bf16.mxu0 %v3014_v45  ;;  %v1489_v45 = vld [vmem:[%s3435_s23 + $0x18] sm:$0xff]  ;;  %s2684_s23 = sshll.u32 %s3316_s28, 10  ;;  %s3179_s28 = scalar_lea.vmem %s3178_s14, 2048 }
 0x602   : > { %s3685_s22 = scalar_lea.hbm %s3742_s7, %s2684_s23  ;;  %p3181_p3 = scmp.lt.s32.totalorder %s3179_s28, %s3173_s9 }
 0x604   : > { %2180 = vmatpush1.bf16.msra.mxu1 %v3009_v46  ;;  %2262 = vmatpush1.bf16.msra.mxu0 %v3012_v47  ;;  %p3182_p7 = por %p3181_p3, %p3180_p13 }
 0x605   : > { %2181 = vmatprep.subr.bf16.mxu1 %v3017_v48  ;;  %2263 = vmatprep.subr.bf16.mxu0 %v3020_v7 }
 0x606   : > { %p3183_p9 = pnand %p3182_p7, %p3176_p10 }
 0x608   : > { %2182 = vmatpush1.bf16.msra.mxu1 %v3015_v49  ;;  %2264 = vmatpush1.bf16.msra.mxu0 %v3018_v50 }
 0x609   : > { %2183 = vmatprep.subr.bf16.mxu1 %v3023_v51  ;;  %2265 = vmatprep.subr.bf16.mxu0 %v3026_v52 }
 0x60c   : > { %2184 = vmatpush1.bf16.msra.mxu1 %v3021_v53  ;;  %2266 = vmatpush1.bf16.msra.mxu0 %v3024_v54 }
 0x60d   : > { %2185 = vmatprep.subr.bf16.mxu1 %v3029_v55  ;;  %2267 = vmatprep.subr.bf16.mxu0 %v3032_v56 }
 0x610   : > { %2186 = vmatpush1.bf16.msra.mxu1 %v3027_v57  ;;  %2268 = vmatpush1.bf16.msra.mxu0 %v3030_v58 }
 0x611   : > { %2187 = vmatprep.subr.bf16.mxu1 %v3035_v59  ;;  %2269 = vmatprep.subr.bf16.mxu0 %v3038_v60 }
 0x614   : > { %2188 = vmatpush1.bf16.msra.mxu1 %v3033_v61  ;;  %2270 = vmatpush1.bf16.msra.mxu0 %v3036_v62 }
 0x615   : > { %2189 = vmatprep.subr.bf16.mxu1 %v3041_v63  ;;  %2271 = vmatprep.subr.bf16.mxu0 %v3044_v1 }
 0x618   : > { %2190 = vmatpush1.bf16.msra.mxu1 %v3039_v0  ;;  %2272 = vmatpush1.bf16.msra.mxu0 %v3042_v2 }
 0x619   : > { %2191 = vmatprep.subr.bf16.mxu1 %v3047_v3  ;;  %2273 = vmatprep.subr.bf16.mxu0 %v3050_v4 }
 0x61c   : > { %2192 = vmatpush1.bf16.msra.mxu1 %v3045_v5  ;;  %2274 = vmatpush1.bf16.msra.mxu0 %v3048_v34 }
 0x61d   : > { %2193 = vmatprep.subr.bf16.mxu1 %v3053_v6  ;;  %2275 = vmatprep.subr.bf16.mxu0 %v3056_v8 }
 0x620   : > { %2194 = vmatpush1.bf16.msra.mxu1 %v3051_v9  ;;  %2276 = vmatpush1.bf16.msra.mxu0 %v3054_v10 }
 0x621   : > { %2195 = vmatprep.subr.bf16.mxu1 %v3059_v11  ;;  %2277 = vmatprep.subr.bf16.mxu0 %v3062_v12 }
 0x623   : > { %v1118_v17 = vpop.permute.xlu0 %1117 }
 0x624   : > { %1120 = vst.msk [vmem:[#allocation2 + $0x10] sm:$0xff] %vm661_vm5, %v1118_v17  ;;  %2196 = vmatpush1.bf16.msra.mxu1 %v3057_v13  ;;  %2278 = vmatpush1.bf16.msra.mxu0 %v3060_v14 }
 0x625   : > { %2197 = vmatprep.subr.bf16.mxu1 %v3065_v15  ;;  %2279 = vmatprep.subr.bf16.mxu0 %v3068_v16 }
 0x628   : > { %2198 = vmatpush1.bf16.msra.mxu1 %v3063_v18  ;;  %2280 = vmatpush1.bf16.msra.mxu0 %v3066_v19 }
 0x629   : > { %2199 = vmatprep.subr.bf16.mxu1 %v3071_v20  ;;  %2281 = vmatprep.subr.bf16.mxu0 %v3074_v21 }
 0x62b   : > { %v1352_v29 = vld [vmem:[#allocation2 + $0x10] sm:$0xff] }
 0x62c   : > { %2200 = vmatpush1.bf16.msra.mxu1 %v3069_v22  ;;  %2282 = vmatpush1.bf16.msra.mxu0 %v3072_v23  ;;  %v1356_v32 = vpack.c.bf16 %v1352_v29, %v1352_v29 }
 0x62d   : > { %2201 = vmatprep.subr.bf16.mxu1 %v3077_v24  ;;  %2283 = vmatprep.subr.bf16.mxu0 %v3080_v25 }
 0x630   : > { %2202 = vmatpush1.bf16.msra.mxu1 %v3075_v26  ;;  %2284 = vmatpush1.bf16.msra.mxu0 %v3078_v27 }
 0x633   : > { %v1347_v28 = vpop.permute.xlu1 %1346 }
 0x634   : > { %1349 = vst.msk [vmem:[#allocation2 + $0x18] sm:$0xff] %vm661_vm5, %v1347_v28 }
 0x63b   : > { %v1353_v30 = vld [vmem:[#allocation2 + $0x18] sm:$0xff] }
 0x63c   : > { %v1357_v31 = vpack.c.bf16 %v1353_v30, %v1353_v30 }
 0x63e   : > { %2203 = vmatprep.mubr.bf16.mxu1 %v1357_v31  ;;  %2285 = vmatprep.mubr.bf16.mxu0 %v1357_v31 }
 0x63f   : > { %2204 = vmatmul.mubr.bf16.vlgmr.msra.gmra.mrb[32].mxu1 %v1356_v32  ;;  %2286 = vmatmul.mubr.bf16.vlgmr.msra.gmra.mrb[32].mxu0 %v1356_v32 }
 0x712   : > { %v2205_v36 = vpop.f32.mrb[32].mxu1  ;;  %v2287_v37 = vpop.f32.mrb[32].mxu0 }
 0x713   : > { %v2813_v38 = vadd.f32 %v2205_v36, %v1486_v33  ;;  %v2207_v40 = vpop.f32.mrb[33].mxu1  ;;  %v2289_v41 = vpop.f32.mrb[33].mxu0  ;;  %v2815_v48 = vadd.f32 %v2287_v37, %v1488_v39 }
 0x714   : > { %v2814_v42 = vadd.f32 %v2207_v40, %v1487_v35  ;;  %v2209_v43 = vpop.f32.mrb[34].mxu1  ;;  %v2291_v44 = vpop.f32.mrb[34].mxu0  ;;  %v2816_v49 = vadd.f32 %v2289_v41, %v1489_v45 }
 0x715   : > { %v2210_v46 = vpop.f32.mrb[35].mxu1  ;;  %v2292_v47 = vpop.f32.mrb[35].mxu0 }
 0x716   : > { %v2294_v7 = vadd.f32 %v2814_v42, %v2813_v38 }
 0x718   : > { %v2295_v50 = vadd.f32 %v2815_v48, %v2294_v7 }
 0x71a   : > { %v2296_v51 = vadd.f32 %v2816_v49, %v2295_v50 }
 0x71c   : > { %2297 = vadd.xlane.f32.xlu1 %v2296_v51 }
 0x7a9   : > { %v2298_v52 = vpop.xlane.xlu1 %2297 }
 0x7aa   : > { %v2300_v53 = vmul.f32 0.001953125, %v2298_v52 }
 0x7ac   : > { %v2301_v54 = vsub.f32 %v2813_v38, %v2300_v53  ;;  %v2302_v55 = vsub.f32 %v2814_v42, %v2300_v53  ;;  %v2303_v56 = vsub.f32 %v2815_v48, %v2300_v53  ;;  %v2304_v57 = vsub.f32 %v2816_v49, %v2300_v53 }
 0x7ae   : > { %v2305_v58 = vmul.f32 %v2301_v54, %v2301_v54  ;;  %v2306_v59 = vmul.f32 %v2302_v55, %v2302_v55  ;;  %v2307_v60 = vmul.f32 %v2303_v56, %v2303_v56  ;;  %v2308_v62 = vmul.f32 %v2304_v57, %v2304_v57 }
 0x7b0   : > { %v2309_v61 = vadd.f32 %v2306_v59, %v2305_v58 }
 0x7b2   : > { %v2310_v63 = vadd.f32 %v2309_v61, %v2307_v60 }
 0x7b4   : > { %v2311_v1 = vadd.f32 %v2310_v63, %v2308_v62 }
 0x7b6   : > { %2312 = vadd.xlane.f32.xlu0 %v2311_v1 }
 0x7b7   : > { %3186 = shalt.err (!%p3183_p9)
}
 0x7b8   : > { %s3187_s29 = scalar_lea.hbm %s3685_s22, 1024  ;;  %s3191_s23 = scalar_lea.hbm %s3742_s7, 2048 }
 0x7b9   : > { %p3188_p2 = scmp.ne.s32.totalorder %s3685_s22, %s3187_s29  ;;  %p3192_p11 = scmp.lt.u32.totalorder %s3685_s22, %s3742_s7 }
 0x7ba   : > { %p3193_p1 = scmp.lt.u32.totalorder %s3191_s23, %s3187_s29  ;;  %p3195_p6 = scmp.lt.u32.totalorder %s3187_s29, %s3685_s22 }
 0x7bb   : > { %p3189_p5 = pnand %p3188_p2, %p3386_p12 }
 0x7bc   : > { %p3194_p4 = por %p3193_p1, %p3192_p11 }
 0x7bd   : > { %p3190_p0 = pneg %p3189_p5 }
 0x7be   : > { %p3196_p8 = por %p3195_p6, %p3194_p4 }
 0x7c0   : > { %p3197_p10 = pnand %p3196_p8, %p3190_p0 }
 0x7c2   : > { %3200 = shalt.err (!%p3197_p10)
}
 0x7c3   : > { %s3253_s9 = smov 128   ;;  %s3254_s16 = smov 8  }
 0x7c4   : > { %2831 = dma.vmem_to_hbm [thread:$0]  (%p3386_p12), %s3687_s11, 1024, %s3685_s22, %s2331_s12, %s3253_s9, %s3253_s9, %s3254_s16  }
 0x7c5   : > { %s399_s29 = scalar_lea.vmem %s3741_s6, %s3453_s30 }
 0x843   : > { %v2313_v0 = vpop.xlane.xlu0 %2312 }
 0x844   : > { %v2314_v2 = vmul.f32 0.001953125, %v2313_v0 }
 0x846   : > { %v2315_v3 = vadd.f32 1e-05, %v2314_v2 }
 0x848   : > { %3113 = vrsqrt.f32 %v2315_v3 }
 0x852   : > { %v3114_v4 = vpop.eup %3113 }
 0x853   : > { %v2317_v5 = vmul.f32 %v3114_v4, %v2301_v54  ;;  %v2318_v34 = vmul.f32 %v3114_v4, %v2302_v55  ;;  %v2319_v6 = vmul.f32 %v3114_v4, %v2303_v56  ;;  %v2320_v8 = vmul.f32 %v3114_v4, %v2304_v57 }
 0x855   : > { %2321 = vst [vmem:[%s399_s29] sm:$0xff] %v2317_v5  ;;  %2322 = vst [vmem:[%s399_s29 + $0x8] sm:$0xff] %v2318_v34 }
 0x856   : > { %2323 = vst [vmem:[%s399_s29 + $0x10] sm:$0xff] %v2319_v6  ;;  %2324 = vst [vmem:[%s399_s29 + $0x18] sm:$0xff] %v2320_v8 }
 0x857 PF: > { %s2370_s19 = sand.u32 1, %s3231_s24   ;;  %p3757_p12 = scmp.ne.s32.totalorder %s3747_s8, 0 }
 0x858   : > { %p3758_p13 = scmp.ge.s32.totalorder %s3243_s27, 2  ;;  %s2371_s10 = scalar_lea.sflag [#allocation5], %s2370_s19 }
 0x85a   : > { %p2842_p3 = pnand %p3758_p13, %p3757_p12 }
 0x85c   : > { %3226 = dma.done.wait (!%p2842_p3), %s2371_s10, 1024  }
 0x85d   : > { %3228 = vsyncadd (!%p2842_p3), %s2371_s10, 4294966272  ;;  %p22_p7 = scmp.ge.s32.totalorder %s3351_s13, 4   ;;  %s3759_s24 = smov %s3235_s25 }
 0x85e   : > { %s3760_s25 = smov %s3239_s26  ;;  %s3761_s26 = smov %s3382_s18 }
 0x85f   : > { %s3762_s27 = smov %s3351_s13  ;;  %24 = sbr.rel (!%p22_p7) target bundleno = 6 (0x6), region = 124 }
 0x866   :  { %2376 = vsyncpa [#allocation4], 1 }
 0x867   :  { %2378 = vsyncpa [#allocation4 + $0x1], 1 }
 0x868   :  { %2379 = vsyncpa [#allocation7], 1 }
 0x869   :  { %2380 = vsyncpa [#allocation5], 1 }
 0x86a   :  { %2382 = vsyncpa [#allocation5 + $0x1], 1 }

// kernel: encoder_layer.3
= control target key start
LH: loop header
LB: loop body
LE: loop exit
PB: predicated region body
PF: predicated region fallthrough
CT: control target
= control target key end

     0   :  { %10 = vsyncpa [#allocation3], 0  ;;  %s4109_s0 = inlined_call_operand.hbm [shape: f32[16,512], index: 0, kind: input, shape index: {}]   ;;  %s4110_s1 = inlined_call_operand.hbm [shape: bf16[512,1536], index: 1, kind: input, shape index: {}]   ;;  %s4111_s2 = inlined_call_operand.vmem [shape: f32[16,512], index: 2, kind: output, shape index: {0}]   ;;  %s4112_s3 = inlined_call_operand.vmem [shape: f32[16,512], index: 3, kind: output, shape index: {1}]   ;;  %s4113_s4 = inlined_call_operand.vmem [shape: f32[16,512], index: 4, kind: output, shape index: {2}]  }
   0x1   :  { %11 = vsyncpa [#allocation5], 0  ;;  %s3950_s15 = smov [#allocation2]   ;;  %s3902_s19 = scalar_lea.hbm %s4109_s0, 1024 }
   0x2   :  { %s17_s16 = sshll.u32 %s3950_s15, 4  ;;  %p3903_p0 = scmp.ne.s32.totalorder %s4109_s0, %s3902_s19  ;;  %s18_s16 = int_to_ptr.vmem [resolvable:$true] %s17_s16 }
   0x3   :  { %p3906_p1 = scmp.lt.u32.totalorder %s3902_s19, %s4109_s0 }
   0x5   :  { %p3908_p2 = pnand %p3906_p1, %p3903_p0 }
   0x7   :  { %3911 = shalt.err (!%p3908_p2)
}
   0x8   :  { %s3912_s24 = scalar_lea.vmem %s18_s16, 1024  ;;  %p3917_p4 = scmp.lt.s32.totalorder %s18_s16, %s18_s16 }
   0x9   :  { %p3913_p3 = scmp.ne.s32.totalorder %s18_s16, %s3912_s24  ;;  %p3918_p5 = scmp.lt.s32.totalorder %s3912_s24, %s3912_s24 }
   0xb   :  { %p3919_p6 = por %p3918_p5, %p3917_p4 }
   0xd   :  { %p3920_p7 = pnand %p3919_p6, %p3913_p3 }
   0xf   :  { %3923 = shalt.err (!%p3920_p7)
}
  0x10   :  { %s3951_s25 = smov 512   ;;  %s3952_s26 = smov 32  }
  0x11   :  { %23 = dma.hbm_to_vmem [thread:$0]  %s4109_s0, 1024, %s18_s16, [#allocation3], %s3951_s25, %s3951_s25, %s3952_s26  }
  0x12   :  { %s3953_s29 = smov [#allocation4]   ;;  %s3924_s7 = scalar_lea.hbm %s4110_s1, 49152 }
  0x13   :  { %s29_s30 = sshll.u32 %s3953_s29, 4  ;;  %p3925_p8 = scmp.ne.s32.totalorder %s4110_s1, %s3924_s7  ;;  %s30_s30 = int_to_ptr.vmem [resolvable:$true] %s29_s30 }
  0x14   :  { %p3928_p9 = scmp.lt.u32.totalorder %s3924_s7, %s4110_s1 }
  0x16   :  { %p3930_p10 = pnand %p3928_p9, %p3925_p8 }
  0x18   :  { %3933 = shalt.err (!%p3930_p10)
}
  0x19   :  { %s3934_s12 = scalar_lea.vmem %s30_s30, 49152  ;;  %p3939_p12 = scmp.lt.s32.totalorder %s30_s30, %s30_s30 }
  0x1a   :  { %p3935_p11 = scmp.ne.s32.totalorder %s30_s30, %s3934_s12  ;;  %p3940_p13 = scmp.lt.s32.totalorder %s3934_s12, %s3934_s12 }
  0x1c   :  { %p3941_p0 = por %p3940_p13, %p3939_p12 }
  0x1e   :  { %p3942_p1 = pnand %p3941_p0, %p3935_p11 }
  0x20   :  { %3945 = shalt.err (!%p3942_p1)
}
  0x21   :  { %s3954_s0 = smov 768   ;;  %s3955_s13 = smov 48  }
  0x22   :  { %35 = dma.hbm_to_vmem [thread:$0]  %s4110_s1, 49152, %s30_s30, [#allocation5], %s3954_s0, %s3954_s0, %s3955_s13  }
  0x23   :  { %3946 = dma.done.wait [#allocation3], 1024  }
  0x24   :  { %3947 = vsyncadd [#allocation3], 4294966272 }
  0x25   :  { %3948 = dma.done.wait [#allocation5], 49152  }
  0x26   :  { %3949 = vsyncadd [#allocation5], 4294918144  ;;  %v3326_v0 = vld [vmem:[#allocation4 + $0x4] ss:$48 sps:$4 sm:$0xff]   ;;  %v3328_v1 = vld [vmem:[#allocation4 + $0xc] ss:$48 sps:$4 sm:$0xff]  }
  0x27   :  { %2358 = vmatprep.subr.bf16.mxu0 %v3326_v0  ;;  %v3330_v2 = vld [vmem:[#allocation4] ss:$48 sps:$4 sm:$0xff]   ;;  %v3331_v3 = vld [vmem:[#allocation4 + $0x8] ss:$48 sps:$4 sm:$0xff]   ;;  %2444 = vmatprep.subr.bf16.mxu1 %v3328_v1  ;;  %v3332_v4 = vld [vmem:[#allocation4 + $0x64] ss:$48 sps:$4 sm:$0xff]  }
  0x28   :  { %2359 = vmatpush1.bf16.msra.mxu0 %v3330_v2  ;;  %2445 = vmatpush1.bf16.msra.mxu1 %v3331_v3  ;;  %v3334_v5 = vld [vmem:[#allocation4 + $0x6c] ss:$48 sps:$4 sm:$0xff]   ;;  %v3336_v6 = vld [vmem:[#allocation4 + $0x60] ss:$48 sps:$4 sm:$0xff]   ;;  %v3337_v7 = vld [vmem:[#allocation4 + $0x68] ss:$48 sps:$4 sm:$0xff]  }
  0x29   :  { %2360 = vmatprep.subr.bf16.mxu0 %v3332_v4  ;;  %2446 = vmatprep.subr.bf16.mxu1 %v3334_v5  ;;  %v3338_v8 = vld [vmem:[#allocation4 + $0xc4] ss:$48 sps:$4 sm:$0xff]   ;;  %v3340_v9 = vld [vmem:[#allocation4 + $0xcc] ss:$48 sps:$4 sm:$0xff]   ;;  %v3342_v10 = vld [vmem:[#allocation4 + $0xc0] ss:$48 sps:$4 sm:$0xff]  }
  0x2a   :  { %v3343_v11 = vld [vmem:[#allocation4 + $0xc8] ss:$48 sps:$4 sm:$0xff]   ;;  %v3344_v12 = vld [vmem:[#allocation4 + $0x124] ss:$48 sps:$4 sm:$0xff]   ;;  %v3346_v13 = vld [vmem:[#allocation4 + $0x12c] ss:$48 sps:$4 sm:$0xff]  }
  0x2b   :  { %v3348_v14 = vld [vmem:[#allocation4 + $0x120] ss:$48 sps:$4 sm:$0xff]   ;;  %v3349_v15 = vld [vmem:[#allocation4 + $0x128] ss:$48 sps:$4 sm:$0xff]   ;;  %v3350_v16 = vld [vmem:[#allocation4 + $0x184] ss:$48 sps:$4 sm:$0xff]  }
  0x2c   :  { %2361 = vmatpush1.bf16.msra.mxu0 %v3336_v6  ;;  %2447 = vmatpush1.bf16.msra.mxu1 %v3337_v7  ;;  %v3352_v17 = vld [vmem:[#allocation4 + $0x18c] ss:$48 sps:$4 sm:$0xff]   ;;  %v3354_v18 = vld [vmem:[#allocation4 + $0x180] ss:$48 sps:$4 sm:$0xff]   ;;  %v3355_v19 = vld [vmem:[#allocation4 + $0x188] ss:$48 sps:$4 sm:$0xff]  }
  0x2d   :  { %2362 = vmatprep.subr.bf16.mxu0 %v3338_v8  ;;  %2448 = vmatprep.subr.bf16.mxu1 %v3340_v9  ;;  %v3356_v20 = vld [vmem:[#allocation4 + $0x1e4] ss:$48 sps:$4 sm:$0xff]   ;;  %v3358_v21 = vld [vmem:[#allocation4 + $0x1ec] ss:$48 sps:$4 sm:$0xff]   ;;  %v3360_v22 = vld [vmem:[#allocation4 + $0x1e0] ss:$48 sps:$4 sm:$0xff]  }
  0x2e   :  { %v3361_v23 = vld [vmem:[#allocation4 + $0x1e8] ss:$48 sps:$4 sm:$0xff]   ;;  %v3362_v24 = vld [vmem:[#allocation4 + $0x244] ss:$48 sps:$4 sm:$0xff]   ;;  %v3364_v25 = vld [vmem:[#allocation4 + $0x24c] ss:$48 sps:$4 sm:$0xff]  }
  0x2f   :  { %v3366_v26 = vld [vmem:[#allocation4 + $0x240] ss:$48 sps:$4 sm:$0xff]   ;;  %v3367_v27 = vld [vmem:[#allocation4 + $0x248] ss:$48 sps:$4 sm:$0xff]   ;;  %v3368_v28 = vld [vmem:[#allocation4 + $0x2a4] ss:$48 sps:$4 sm:$0xff]  }
  0x30   :  { %2363 = vmatpush1.bf16.msra.mxu0 %v3342_v10  ;;  %2449 = vmatpush1.bf16.msra.mxu1 %v3343_v11  ;;  %v3370_v29 = vld [vmem:[#allocation4 + $0x2ac] ss:$48 sps:$4 sm:$0xff]   ;;  %v3372_v30 = vld [vmem:[#allocation4 + $0x2a0] ss:$48 sps:$4 sm:$0xff]   ;;  %v3373_v31 = vld [vmem:[#allocation4 + $0x2a8] ss:$48 sps:$4 sm:$0xff]  }
  0x31   :  { %2364 = vmatprep.subr.bf16.mxu0 %v3344_v12  ;;  %2450 = vmatprep.subr.bf16.mxu1 %v3346_v13  ;;  %v3374_v32 = vld [vmem:[#allocation4 + $0x304] ss:$48 sps:$4 sm:$0xff]   ;;  %v3376_v33 = vld [vmem:[#allocation4 + $0x30c] ss:$48 sps:$4 sm:$0xff]   ;;  %v3378_v34 = vld [vmem:[#allocation4 + $0x300] ss:$48 sps:$4 sm:$0xff]  }
  0x32   :  { %v3379_v35 = vld [vmem:[#allocation4 + $0x308] ss:$48 sps:$4 sm:$0xff]   ;;  %v3380_v36 = vld [vmem:[#allocation4 + $0x364] ss:$48 sps:$4 sm:$0xff]   ;;  %v3382_v37 = vld [vmem:[#allocation4 + $0x36c] ss:$48 sps:$4 sm:$0xff]  }
  0x33   :  { %v3384_v38 = vld [vmem:[#allocation4 + $0x360] ss:$48 sps:$4 sm:$0xff]   ;;  %v3385_v39 = vld [vmem:[#allocation4 + $0x368] ss:$48 sps:$4 sm:$0xff]   ;;  %v3386_v40 = vld [vmem:[#allocation4 + $0x3c4] ss:$48 sps:$4 sm:$0xff]  }
  0x34   :  { %2365 = vmatpush1.bf16.msra.mxu0 %v3348_v14  ;;  %2451 = vmatpush1.bf16.msra.mxu1 %v3349_v15  ;;  %v3388_v41 = vld [vmem:[#allocation4 + $0x3cc] ss:$48 sps:$4 sm:$0xff]   ;;  %v3390_v42 = vld [vmem:[#allocation4 + $0x3c0] ss:$48 sps:$4 sm:$0xff]   ;;  %v3391_v43 = vld [vmem:[#allocation4 + $0x3c8] ss:$48 sps:$4 sm:$0xff]  }
  0x35   :  { %2366 = vmatprep.subr.bf16.mxu0 %v3350_v16  ;;  %2452 = vmatprep.subr.bf16.mxu1 %v3352_v17  ;;  %v3392_v44 = vld [vmem:[#allocation4 + $0x424] ss:$48 sps:$4 sm:$0xff]   ;;  %v3394_v45 = vld [vmem:[#allocation4 + $0x42c] ss:$48 sps:$4 sm:$0xff]   ;;  %v3396_v48 = vld [vmem:[#allocation4 + $0x420] ss:$48 sps:$4 sm:$0xff]  }
  0x36   :  { %v43_v46 = vld [vmem:[#allocation2 + $0x8] sm:$0xff]  ;;  %v3398_v51 = vld [vmem:[#allocation4 + $0x484] ss:$48 sps:$4 sm:$0xff]   ;;  %v3402_v53 = vld [vmem:[#allocation4 + $0x480] ss:$48 sps:$4 sm:$0xff]  }
  0x37   :  { %v47_v47 = vld [vmem:[#allocation2 + $0x28] sm:$0xff]  ;;  %v3404_v55 = vld [vmem:[#allocation4 + $0x4e4] ss:$48 sps:$4 sm:$0xff]   ;;  %v3408_v57 = vld [vmem:[#allocation4 + $0x4e0] ss:$48 sps:$4 sm:$0xff]  }
  0x38   :  { %2367 = vmatpush1.bf16.msra.mxu0 %v3354_v18  ;;  %2453 = vmatpush1.bf16.msra.mxu1 %v3355_v19  ;;  %v3397_v49 = vld [vmem:[#allocation4 + $0x428] ss:$48 sps:$4 sm:$0xff]   ;;  %v4005_v50 = vpack.c.bf16 %v47_v47, %v43_v46  ;;  %v3400_v52 = vld [vmem:[#allocation4 + $0x48c] ss:$48 sps:$4 sm:$0xff]   ;;  %v3410_v59 = vld [vmem:[#allocation4 + $0x544] ss:$48 sps:$4 sm:$0xff]  }
  0x39   :  { %2368 = vmatprep.subr.bf16.mxu0 %v3356_v20  ;;  %2454 = vmatprep.subr.bf16.mxu1 %v3358_v21  ;;  %v3403_v54 = vld [vmem:[#allocation4 + $0x488] ss:$48 sps:$4 sm:$0xff]   ;;  %v3406_v56 = vld [vmem:[#allocation4 + $0x4ec] ss:$48 sps:$4 sm:$0xff]   ;;  %v3414_v61 = vld [vmem:[#allocation4 + $0x540] ss:$48 sps:$4 sm:$0xff]  }
  0x3a   :  { %2390 = vmatprep.mubr.bf16.mxu0 %v4005_v50  ;;  %2476 = vmatprep.mubr.bf16.mxu1 %v4005_v50  ;;  %v3409_v58 = vld [vmem:[#allocation4 + $0x4e8] ss:$48 sps:$4 sm:$0xff]   ;;  %v3412_v60 = vld [vmem:[#allocation4 + $0x54c] ss:$48 sps:$4 sm:$0xff]   ;;  %v3416_v63 = vld [vmem:[#allocation4 + $0x5a4] ss:$48 sps:$4 sm:$0xff]  }
  0x3b   :  { %v3415_v62 = vld [vmem:[#allocation4 + $0x548] ss:$48 sps:$4 sm:$0xff]   ;;  %v3418_v0 = vld [vmem:[#allocation4 + $0x5ac] ss:$48 sps:$4 sm:$0xff]   ;;  %v3420_v1 = vld [vmem:[#allocation4 + $0x5a0] ss:$48 sps:$4 sm:$0xff]  }
  0x3c   :  { %2369 = vmatpush1.bf16.msra.mxu0 %v3360_v22  ;;  %2455 = vmatpush1.bf16.msra.mxu1 %v3361_v23  ;;  %v3421_v2 = vld [vmem:[#allocation4 + $0x5a8] ss:$48 sps:$4 sm:$0xff]   ;;  %v3424_v3 = vld [vmem:[#allocation4 + $0x604] ss:$48 sps:$4 sm:$0xff]   ;;  %v3427_v6 = vld [vmem:[#allocation4 + $0x60c] ss:$48 sps:$4 sm:$0xff]  }
  0x3d   :  { %2370 = vmatprep.subr.bf16.mxu0 %v3362_v24  ;;  %2456 = vmatprep.subr.bf16.mxu1 %v3364_v25  ;;  %v42_v4 = vld [vmem:[#allocation2] sm:$0xff]  ;;  %v3425_v8 = vld [vmem:[#allocation4 + $0x608] ss:$48 sps:$4 sm:$0xff]   ;;  %v3433_v11 = vld [vmem:[#allocation4 + $0x66c] ss:$48 sps:$4 sm:$0xff]  }
  0x3e   :  { %v46_v5 = vld [vmem:[#allocation2 + $0x20] sm:$0xff]  ;;  %v3431_v13 = vld [vmem:[#allocation4 + $0x668] ss:$48 sps:$4 sm:$0xff]   ;;  %v3439_v15 = vld [vmem:[#allocation4 + $0x6cc] ss:$48 sps:$4 sm:$0xff]  }
  0x3f   :  { %v3422_v7 = vld [vmem:[#allocation4 + $0x600] ss:$48 sps:$4 sm:$0xff]   ;;  %v4009_v9 = vpack.c.bf16 %v46_v5, %v42_v4  ;;  %v3430_v10 = vld [vmem:[#allocation4 + $0x664] ss:$48 sps:$4 sm:$0xff]   ;;  %v3437_v17 = vld [vmem:[#allocation4 + $0x6c8] ss:$48 sps:$4 sm:$0xff]  }
  0x40   :  { %2371 = vmatpush1.bf16.msra.mxu0 %v3366_v26  ;;  %2457 = vmatpush1.bf16.msra.mxu1 %v3367_v27  ;;  %v3428_v12 = vld [vmem:[#allocation4 + $0x660] ss:$48 sps:$4 sm:$0xff]   ;;  %v3436_v14 = vld [vmem:[#allocation4 + $0x6c4] ss:$48 sps:$4 sm:$0xff]   ;;  %v3445_v19 = vld [vmem:[#allocation4 + $0x72c] ss:$48 sps:$4 sm:$0xff]  }
  0x41   :  { %2372 = vmatprep.subr.bf16.mxu0 %v3368_v28  ;;  %2458 = vmatprep.subr.bf16.mxu1 %v3370_v29  ;;  %v3434_v16 = vld [vmem:[#allocation4 + $0x6c0] ss:$48 sps:$4 sm:$0xff]   ;;  %v3442_v18 = vld [vmem:[#allocation4 + $0x724] ss:$48 sps:$4 sm:$0xff]   ;;  %v3443_v21 = vld [vmem:[#allocation4 + $0x728] ss:$48 sps:$4 sm:$0xff]  }
  0x42   :  { %v3440_v20 = vld [vmem:[#allocation4 + $0x720] ss:$48 sps:$4 sm:$0xff]   ;;  %v3448_v22 = vld [vmem:[#allocation4 + $0x784] ss:$48 sps:$4 sm:$0xff]   ;;  %v3451_v23 = vld [vmem:[#allocation4 + $0x78c] ss:$48 sps:$4 sm:$0xff]  }
  0x43   :  { %v3446_v24 = vld [vmem:[#allocation4 + $0x780] ss:$48 sps:$4 sm:$0xff]   ;;  %v3449_v25 = vld [vmem:[#allocation4 + $0x788] ss:$48 sps:$4 sm:$0xff]   ;;  %v3454_v26 = vld [vmem:[#allocation4 + $0x7e4] ss:$48 sps:$4 sm:$0xff]  }
  0x44   :  { %2373 = vmatpush1.bf16.msra.mxu0 %v3372_v30  ;;  %2459 = vmatpush1.bf16.msra.mxu1 %v3373_v31  ;;  %v3457_v27 = vld [vmem:[#allocation4 + $0x7ec] ss:$48 sps:$4 sm:$0xff]   ;;  %v3452_v28 = vld [vmem:[#allocation4 + $0x7e0] ss:$48 sps:$4 sm:$0xff]   ;;  %v3455_v29 = vld [vmem:[#allocation4 + $0x7e8] ss:$48 sps:$4 sm:$0xff]  }
  0x45   :  { %2374 = vmatprep.subr.bf16.mxu0 %v3374_v32  ;;  %2460 = vmatprep.subr.bf16.mxu1 %v3376_v33  ;;  %v3460_v30 = vld [vmem:[#allocation4 + $0x844] ss:$48 sps:$4 sm:$0xff]   ;;  %v3463_v31 = vld [vmem:[#allocation4 + $0x84c] ss:$48 sps:$4 sm:$0xff]   ;;  %v3458_v33 = vld [vmem:[#allocation4 + $0x840] ss:$48 sps:$4 sm:$0xff]  }
  0x46   :  { %v45_v32 = vld [vmem:[#allocation2 + $0x18] sm:$0xff]  ;;  %v3476_v47 = vld [vmem:[#allocation4 + $0x960] ss:$48 sps:$4 sm:$0xff]  }
  0x47   :  { %v3481_v46 = vld [vmem:[#allocation4 + $0x96c] ss:$48 sps:$4 sm:$0xff]   ;;  %v3506_v4 = vld [vmem:[#allocation4 + $0xb40] ss:$48 sps:$4 sm:$0xff]   ;;  %v3509_v5 = vld [vmem:[#allocation4 + $0xb48] ss:$48 sps:$4 sm:$0xff]  }
  0x48   :  { %2375 = vmatpush1.bf16.msra.mxu0 %v3378_v34  ;;  %2461 = vmatpush1.bf16.msra.mxu1 %v3379_v35  ;;  %v3461_v34 = vld [vmem:[#allocation4 + $0x848] ss:$48 sps:$4 sm:$0xff]  }
  0x49   :  { %2376 = vmatprep.subr.bf16.mxu0 %v3380_v36  ;;  %2462 = vmatprep.subr.bf16.mxu1 %v3382_v37  ;;  %v49_v35 = vld [vmem:[#allocation2 + $0x38] sm:$0xff]  ;;  %v3466_v36 = vld [vmem:[#allocation4 + $0x8a4] ss:$48 sps:$4 sm:$0xff]  }
  0x4a   :  { %v4013_v37 = vpack.c.bf16 %v49_v35, %v45_v32  ;;  %v3542_v32 = vld [vmem:[#allocation4 + $0x190] ss:$48 sps:$4 sm:$0xff]   ;;  %v3553_v35 = vld [vmem:[#allocation4 + $0x1fc] ss:$48 sps:$4 sm:$0xff]  }
  0x4c   :  { %2377 = vmatpush1.bf16.msra.mxu0 %v3384_v38  ;;  %2463 = vmatpush1.bf16.msra.mxu1 %v3385_v39  ;;  %v3469_v38 = vld [vmem:[#allocation4 + $0x8ac] ss:$48 sps:$4 sm:$0xff]   ;;  %v3464_v39 = vld [vmem:[#allocation4 + $0x8a0] ss:$48 sps:$4 sm:$0xff]  }
  0x4d   :  { %2378 = vmatprep.subr.bf16.mxu0 %v3386_v40  ;;  %2464 = vmatprep.subr.bf16.mxu1 %v3388_v41  ;;  %v3467_v40 = vld [vmem:[#allocation4 + $0x8a8] ss:$48 sps:$4 sm:$0xff]   ;;  %v3472_v41 = vld [vmem:[#allocation4 + $0x904] ss:$48 sps:$4 sm:$0xff]  }
  0x50   :  { %2379 = vmatpush1.bf16.msra.mxu0 %v3390_v42  ;;  %2465 = vmatpush1.bf16.msra.mxu1 %v3391_v43  ;;  %v3475_v42 = vld [vmem:[#allocation4 + $0x90c] ss:$48 sps:$4 sm:$0xff]   ;;  %v3470_v43 = vld [vmem:[#allocation4 + $0x900] ss:$48 sps:$4 sm:$0xff]  }
  0x51   :  { %2380 = vmatprep.subr.bf16.mxu0 %v3392_v44  ;;  %2466 = vmatprep.subr.bf16.mxu1 %v3394_v45  ;;  %v3473_v44 = vld [vmem:[#allocation4 + $0x908] ss:$48 sps:$4 sm:$0xff]   ;;  %v3478_v45 = vld [vmem:[#allocation4 + $0x964] ss:$48 sps:$4 sm:$0xff]  }
  0x54   :  { %2381 = vmatpush1.bf16.msra.mxu0 %v3396_v48  ;;  %2467 = vmatpush1.bf16.msra.mxu1 %v3397_v49  ;;  %v3479_v48 = vld [vmem:[#allocation4 + $0x968] ss:$48 sps:$4 sm:$0xff]   ;;  %v3484_v49 = vld [vmem:[#allocation4 + $0x9c4] ss:$48 sps:$4 sm:$0xff]  }
  0x55   :  { %2382 = vmatprep.subr.bf16.mxu0 %v3398_v51  ;;  %2468 = vmatprep.subr.bf16.mxu1 %v3400_v52  ;;  %v3487_v51 = vld [vmem:[#allocation4 + $0x9cc] ss:$48 sps:$4 sm:$0xff]   ;;  %v3482_v52 = vld [vmem:[#allocation4 + $0x9c0] ss:$48 sps:$4 sm:$0xff]  }
  0x58   :  { %2383 = vmatpush1.bf16.msra.mxu0 %v3402_v53  ;;  %2469 = vmatpush1.bf16.msra.mxu1 %v3403_v54  ;;  %v3485_v53 = vld [vmem:[#allocation4 + $0x9c8] ss:$48 sps:$4 sm:$0xff]   ;;  %v3490_v54 = vld [vmem:[#allocation4 + $0xa24] ss:$48 sps:$4 sm:$0xff]  }
  0x59   :  { %2384 = vmatprep.subr.bf16.mxu0 %v3404_v55  ;;  %2470 = vmatprep.subr.bf16.mxu1 %v3406_v56  ;;  %v3493_v55 = vld [vmem:[#allocation4 + $0xa2c] ss:$48 sps:$4 sm:$0xff]   ;;  %v3488_v56 = vld [vmem:[#allocation4 + $0xa20] ss:$48 sps:$4 sm:$0xff]  }
  0x5c   :  { %2385 = vmatpush1.bf16.msra.mxu0 %v3408_v57  ;;  %2471 = vmatpush1.bf16.msra.mxu1 %v3409_v58  ;;  %v3491_v57 = vld [vmem:[#allocation4 + $0xa28] ss:$48 sps:$4 sm:$0xff]   ;;  %v3496_v58 = vld [vmem:[#allocation4 + $0xa84] ss:$48 sps:$4 sm:$0xff]  }
  0x5d   :  { %2386 = vmatprep.subr.bf16.mxu0 %v3410_v59  ;;  %2472 = vmatprep.subr.bf16.mxu1 %v3412_v60  ;;  %v3499_v59 = vld [vmem:[#allocation4 + $0xa8c] ss:$48 sps:$4 sm:$0xff]   ;;  %v3494_v60 = vld [vmem:[#allocation4 + $0xa80] ss:$48 sps:$4 sm:$0xff]  }
  0x60   :  { %2387 = vmatpush1.bf16.msra.mxu0 %v3414_v61  ;;  %2473 = vmatpush1.bf16.msra.mxu1 %v3415_v62  ;;  %v3497_v61 = vld [vmem:[#allocation4 + $0xa88] ss:$48 sps:$4 sm:$0xff]   ;;  %v3502_v62 = vld [vmem:[#allocation4 + $0xae4] ss:$48 sps:$4 sm:$0xff]  }
  0x61   :  { %2388 = vmatprep.subr.bf16.mxu0 %v3416_v63  ;;  %2474 = vmatprep.subr.bf16.mxu1 %v3418_v0  ;;  %v3505_v63 = vld [vmem:[#allocation4 + $0xaec] ss:$48 sps:$4 sm:$0xff]   ;;  %v3500_v0 = vld [vmem:[#allocation4 + $0xae0] ss:$48 sps:$4 sm:$0xff]  }
  0x64   :  { %2389 = vmatpush1.bf16.msra.mxu0 %v3420_v1  ;;  %2475 = vmatpush1.bf16.msra.mxu1 %v3421_v2  ;;  %v3503_v1 = vld [vmem:[#allocation4 + $0xae8] ss:$48 sps:$4 sm:$0xff]   ;;  %v3508_v2 = vld [vmem:[#allocation4 + $0xb44] ss:$48 sps:$4 sm:$0xff]  }
  0x65   :  { %2401 = vmatprep.subr.bf16.mxu0 %v3424_v3  ;;  %2487 = vmatprep.subr.bf16.mxu1 %v3427_v6  ;;  %v3511_v3 = vld [vmem:[#allocation4 + $0xb4c] ss:$48 sps:$4 sm:$0xff]   ;;  %v3514_v6 = vld [vmem:[#allocation4 + $0xba4] ss:$48 sps:$4 sm:$0xff]  }
  0x67   :  { %2391 = vmatmul.mubr.bf16.vlgmr.msra.gmra.mrb[0].mxu0 %v4009_v9  ;;  %2477 = vmatmul.mubr.bf16.vlgmr.msra.gmra.mrb[0].mxu1 %v4009_v9 }
  0x68   :  { %2402 = vmatpush1.bf16.msra.mxu0 %v3422_v7  ;;  %2488 = vmatpush1.bf16.msra.mxu1 %v3425_v8  ;;  %v3517_v7 = vld [vmem:[#allocation4 + $0xbac] ss:$48 sps:$4 sm:$0xff]   ;;  %v3512_v8 = vld [vmem:[#allocation4 + $0xba0] ss:$48 sps:$4 sm:$0xff]  }
  0x69   :  { %2403 = vmatprep.subr.bf16.mxu0 %v3430_v10  ;;  %2489 = vmatprep.subr.bf16.mxu1 %v3433_v11  ;;  %v3515_v10 = vld [vmem:[#allocation4 + $0xba8] ss:$48 sps:$4 sm:$0xff]   ;;  %v44_v11 = vld [vmem:[#allocation2 + $0x10] sm:$0xff] }
  0x6a   :  { %2433 = vmatprep.mubr.bf16.mxu0 %v4013_v37  ;;  %2519 = vmatprep.mubr.bf16.mxu1 %v4013_v37 }
  0x6c   :  { %2404 = vmatpush1.bf16.msra.mxu0 %v3428_v12  ;;  %2490 = vmatpush1.bf16.msra.mxu1 %v3431_v13  ;;  %v48_v12 = vld [vmem:[#allocation2 + $0x30] sm:$0xff] }
  0x6d   :  { %2405 = vmatprep.subr.bf16.mxu0 %v3436_v14  ;;  %2491 = vmatprep.subr.bf16.mxu1 %v3439_v15  ;;  %v3520_v13 = vld [vmem:[#allocation4 + $0x14] ss:$48 sps:$4 sm:$0xff]   ;;  %v3523_v14 = vld [vmem:[#allocation4 + $0x1c] ss:$48 sps:$4 sm:$0xff]   ;;  %v4017_v15 = vpack.c.bf16 %v48_v12, %v44_v11  ;;  %v3602_v11 = vld [vmem:[#allocation4 + $0x550] ss:$48 sps:$4 sm:$0xff]  }
  0x6e   :  { %v3605_v12 = vld [vmem:[#allocation4 + $0x558] ss:$48 sps:$4 sm:$0xff]  }
  0x70   :  { %2406 = vmatpush1.bf16.msra.mxu0 %v3434_v16  ;;  %2492 = vmatpush1.bf16.msra.mxu1 %v3437_v17  ;;  %v3518_v16 = vld [vmem:[#allocation4 + $0x10] ss:$48 sps:$4 sm:$0xff]   ;;  %v3521_v17 = vld [vmem:[#allocation4 + $0x18] ss:$48 sps:$4 sm:$0xff]  }
  0x71   :  { %2407 = vmatprep.subr.bf16.mxu0 %v3442_v18  ;;  %2493 = vmatprep.subr.bf16.mxu1 %v3445_v19  ;;  %v3526_v18 = vld [vmem:[#allocation4 + $0x74] ss:$48 sps:$4 sm:$0xff]   ;;  %v3529_v19 = vld [vmem:[#allocation4 + $0x7c] ss:$48 sps:$4 sm:$0xff]  }
  0x74   :  { %2408 = vmatpush1.bf16.msra.mxu0 %v3440_v20  ;;  %2494 = vmatpush1.bf16.msra.mxu1 %v3443_v21  ;;  %v3524_v20 = vld [vmem:[#allocation4 + $0x70] ss:$48 sps:$4 sm:$0xff]   ;;  %v3527_v21 = vld [vmem:[#allocation4 + $0x78] ss:$48 sps:$4 sm:$0xff]  }
  0x75   :  { %2409 = vmatprep.subr.bf16.mxu0 %v3448_v22  ;;  %2495 = vmatprep.subr.bf16.mxu1 %v3451_v23  ;;  %v3532_v22 = vld [vmem:[#allocation4 + $0xd4] ss:$48 sps:$4 sm:$0xff]   ;;  %v3535_v23 = vld [vmem:[#allocation4 + $0xdc] ss:$48 sps:$4 sm:$0xff]  }
  0x78   :  { %2410 = vmatpush1.bf16.msra.mxu0 %v3446_v24  ;;  %2496 = vmatpush1.bf16.msra.mxu1 %v3449_v25  ;;  %v3530_v24 = vld [vmem:[#allocation4 + $0xd0] ss:$48 sps:$4 sm:$0xff]   ;;  %v3533_v25 = vld [vmem:[#allocation4 + $0xd8] ss:$48 sps:$4 sm:$0xff]  }
  0x79   :  { %2411 = vmatprep.subr.bf16.mxu0 %v3454_v26  ;;  %2497 = vmatprep.subr.bf16.mxu1 %v3457_v27  ;;  %v3538_v26 = vld [vmem:[#allocation4 + $0x134] ss:$48 sps:$4 sm:$0xff]   ;;  %v3541_v27 = vld [vmem:[#allocation4 + $0x13c] ss:$48 sps:$4 sm:$0xff]  }
  0x7c   :  { %2412 = vmatpush1.bf16.msra.mxu0 %v3452_v28  ;;  %2498 = vmatpush1.bf16.msra.mxu1 %v3455_v29  ;;  %v3536_v28 = vld [vmem:[#allocation4 + $0x130] ss:$48 sps:$4 sm:$0xff]   ;;  %v3539_v29 = vld [vmem:[#allocation4 + $0x138] ss:$48 sps:$4 sm:$0xff]  }
  0x7d   :  { %2413 = vmatprep.subr.bf16.mxu0 %v3460_v30  ;;  %2499 = vmatprep.subr.bf16.mxu1 %v3463_v31  ;;  %v3544_v30 = vld [vmem:[#allocation4 + $0x194] ss:$48 sps:$4 sm:$0xff]   ;;  %v3547_v31 = vld [vmem:[#allocation4 + $0x19c] ss:$48 sps:$4 sm:$0xff]  }
  0x80   :  { %2414 = vmatpush1.bf16.msra.mxu0 %v3458_v33  ;;  %2500 = vmatpush1.bf16.msra.mxu1 %v3461_v34  ;;  %v3545_v33 = vld [vmem:[#allocation4 + $0x198] ss:$48 sps:$4 sm:$0xff]   ;;  %v3550_v34 = vld [vmem:[#allocation4 + $0x1f4] ss:$48 sps:$4 sm:$0xff]  }
  0x81   :  { %2415 = vmatprep.subr.bf16.mxu0 %v3466_v36  ;;  %2501 = vmatprep.subr.bf16.mxu1 %v3469_v38  ;;  %v3548_v36 = vld [vmem:[#allocation4 + $0x1f0] ss:$48 sps:$4 sm:$0xff]   ;;  %v3551_v38 = vld [vmem:[#allocation4 + $0x1f8] ss:$48 sps:$4 sm:$0xff]  }
  0x84   :  { %2416 = vmatpush1.bf16.msra.mxu0 %v3464_v39  ;;  %2502 = vmatpush1.bf16.msra.mxu1 %v3467_v40  ;;  %v3556_v39 = vld [vmem:[#allocation4 + $0x254] ss:$48 sps:$4 sm:$0xff]   ;;  %v3559_v40 = vld [vmem:[#allocation4 + $0x25c] ss:$48 sps:$4 sm:$0xff]  }
  0x85   :  { %2417 = vmatprep.subr.bf16.mxu0 %v3472_v41  ;;  %2503 = vmatprep.subr.bf16.mxu1 %v3475_v42  ;;  %v3554_v41 = vld [vmem:[#allocation4 + $0x250] ss:$48 sps:$4 sm:$0xff]   ;;  %v3557_v42 = vld [vmem:[#allocation4 + $0x258] ss:$48 sps:$4 sm:$0xff]  }
  0x88   :  { %2418 = vmatpush1.bf16.msra.mxu0 %v3470_v43  ;;  %2504 = vmatpush1.bf16.msra.mxu1 %v3473_v44  ;;  %v3562_v43 = vld [vmem:[#allocation4 + $0x2b4] ss:$48 sps:$4 sm:$0xff]   ;;  %v3565_v44 = vld [vmem:[#allocation4 + $0x2bc] ss:$48 sps:$4 sm:$0xff]  }
  0x89   :  { %2419 = vmatprep.subr.bf16.mxu0 %v3478_v45  ;;  %2505 = vmatprep.subr.bf16.mxu1 %v3481_v46  ;;  %v3560_v45 = vld [vmem:[#allocation4 + $0x2b0] ss:$48 sps:$4 sm:$0xff]   ;;  %v3563_v46 = vld [vmem:[#allocation4 + $0x2b8] ss:$48 sps:$4 sm:$0xff]  }
  0x8c   :  { %2420 = vmatpush1.bf16.msra.mxu0 %v3476_v47  ;;  %2506 = vmatpush1.bf16.msra.mxu1 %v3479_v48  ;;  %v3568_v47 = vld [vmem:[#allocation4 + $0x314] ss:$48 sps:$4 sm:$0xff]   ;;  %v3571_v48 = vld [vmem:[#allocation4 + $0x31c] ss:$48 sps:$4 sm:$0xff]  }
  0x8d   :  { %2421 = vmatprep.subr.bf16.mxu0 %v3484_v49  ;;  %2507 = vmatprep.subr.bf16.mxu1 %v3487_v51  ;;  %v3566_v49 = vld [vmem:[#allocation4 + $0x310] ss:$48 sps:$4 sm:$0xff]   ;;  %v3569_v51 = vld [vmem:[#allocation4 + $0x318] ss:$48 sps:$4 sm:$0xff]  }
  0x90   :  { %2422 = vmatpush1.bf16.msra.mxu0 %v3482_v52  ;;  %2508 = vmatpush1.bf16.msra.mxu1 %v3485_v53  ;;  %v3574_v52 = vld [vmem:[#allocation4 + $0x374] ss:$48 sps:$4 sm:$0xff]   ;;  %v3577_v53 = vld [vmem:[#allocation4 + $0x37c] ss:$48 sps:$4 sm:$0xff]  }
  0x91   :  { %2423 = vmatprep.subr.bf16.mxu0 %v3490_v54  ;;  %2509 = vmatprep.subr.bf16.mxu1 %v3493_v55  ;;  %v3572_v54 = vld [vmem:[#allocation4 + $0x370] ss:$48 sps:$4 sm:$0xff]   ;;  %v3575_v55 = vld [vmem:[#allocation4 + $0x378] ss:$48 sps:$4 sm:$0xff]  }
  0x94   :  { %2424 = vmatpush1.bf16.msra.mxu0 %v3488_v56  ;;  %2510 = vmatpush1.bf16.msra.mxu1 %v3491_v57  ;;  %v3580_v56 = vld [vmem:[#allocation4 + $0x3d4] ss:$48 sps:$4 sm:$0xff]   ;;  %v3583_v57 = vld [vmem:[#allocation4 + $0x3dc] ss:$48 sps:$4 sm:$0xff]  }
  0x95   :  { %2425 = vmatprep.subr.bf16.mxu0 %v3496_v58  ;;  %2511 = vmatprep.subr.bf16.mxu1 %v3499_v59  ;;  %v3578_v58 = vld [vmem:[#allocation4 + $0x3d0] ss:$48 sps:$4 sm:$0xff]   ;;  %v3581_v59 = vld [vmem:[#allocation4 + $0x3d8] ss:$48 sps:$4 sm:$0xff]  }
  0x98   :  { %2426 = vmatpush1.bf16.msra.mxu0 %v3494_v60  ;;  %2512 = vmatpush1.bf16.msra.mxu1 %v3497_v61  ;;  %v3586_v60 = vld [vmem:[#allocation4 + $0x434] ss:$48 sps:$4 sm:$0xff]   ;;  %v3589_v61 = vld [vmem:[#allocation4 + $0x43c] ss:$48 sps:$4 sm:$0xff]  }
  0x99   :  { %2427 = vmatprep.subr.bf16.mxu0 %v3502_v62  ;;  %2513 = vmatprep.subr.bf16.mxu1 %v3505_v63  ;;  %v3584_v62 = vld [vmem:[#allocation4 + $0x430] ss:$48 sps:$4 sm:$0xff]   ;;  %v3587_v63 = vld [vmem:[#allocation4 + $0x438] ss:$48 sps:$4 sm:$0xff]  }
  0x9c   :  { %2428 = vmatpush1.bf16.msra.mxu0 %v3500_v0  ;;  %2514 = vmatpush1.bf16.msra.mxu1 %v3503_v1  ;;  %v3592_v0 = vld [vmem:[#allocation4 + $0x494] ss:$48 sps:$4 sm:$0xff]   ;;  %v3595_v1 = vld [vmem:[#allocation4 + $0x49c] ss:$48 sps:$4 sm:$0xff]  }
  0x9d   :  { %2429 = vmatprep.subr.bf16.mxu0 %v3508_v2  ;;  %2515 = vmatprep.subr.bf16.mxu1 %v3511_v3  ;;  %v3590_v2 = vld [vmem:[#allocation4 + $0x490] ss:$48 sps:$4 sm:$0xff]   ;;  %v3593_v3 = vld [vmem:[#allocation4 + $0x498] ss:$48 sps:$4 sm:$0xff]  }
  0xa0   :  { %2430 = vmatpush1.bf16.msra.mxu0 %v3506_v4  ;;  %2516 = vmatpush1.bf16.msra.mxu1 %v3509_v5  ;;  %v3598_v4 = vld [vmem:[#allocation4 + $0x4f4] ss:$48 sps:$4 sm:$0xff]   ;;  %v3601_v5 = vld [vmem:[#allocation4 + $0x4fc] ss:$48 sps:$4 sm:$0xff]  }
  0xa1   :  { %2431 = vmatprep.subr.bf16.mxu0 %v3514_v6  ;;  %2517 = vmatprep.subr.bf16.mxu1 %v3517_v7  ;;  %v3596_v6 = vld [vmem:[#allocation4 + $0x4f0] ss:$48 sps:$4 sm:$0xff]   ;;  %v3599_v7 = vld [vmem:[#allocation4 + $0x4f8] ss:$48 sps:$4 sm:$0xff]  }
  0xa4   :  { %2432 = vmatpush1.bf16.msra.mxu0 %v3512_v8  ;;  %2518 = vmatpush1.bf16.msra.mxu1 %v3515_v10  ;;  %v3604_v8 = vld [vmem:[#allocation4 + $0x554] ss:$48 sps:$4 sm:$0xff]   ;;  %v3607_v10 = vld [vmem:[#allocation4 + $0x55c] ss:$48 sps:$4 sm:$0xff]  }
  0xa5   :  { %2530 = vmatprep.subr.bf16.mxu0 %v3520_v13  ;;  %2616 = vmatprep.subr.bf16.mxu1 %v3523_v14  ;;  %v3610_v13 = vld [vmem:[#allocation4 + $0x5b4] ss:$48 sps:$4 sm:$0xff]   ;;  %v3613_v14 = vld [vmem:[#allocation4 + $0x5bc] ss:$48 sps:$4 sm:$0xff]  }
  0xa7   :  { %2434 = vmatmul.mubr.bf16.vlgmr.msra.gmra.mrb[0].mxu0 %v4017_v15  ;;  %2520 = vmatmul.mubr.bf16.vlgmr.msra.gmra.mrb[0].mxu1 %v4017_v15 }
  0xa8   :  { %2531 = vmatpush1.bf16.msra.mxu0 %v3518_v16  ;;  %2617 = vmatpush1.bf16.msra.mxu1 %v3521_v17  ;;  %v3608_v16 = vld [vmem:[#allocation4 + $0x5b0] ss:$48 sps:$4 sm:$0xff]   ;;  %v3611_v17 = vld [vmem:[#allocation4 + $0x5b8] ss:$48 sps:$4 sm:$0xff]  }
  0xa9   :  { %2532 = vmatprep.subr.bf16.mxu0 %v3526_v18  ;;  %2618 = vmatprep.subr.bf16.mxu1 %v3529_v19  ;;  %v3616_v18 = vld [vmem:[#allocation4 + $0x614] ss:$48 sps:$4 sm:$0xff]   ;;  %v3619_v19 = vld [vmem:[#allocation4 + $0x61c] ss:$48 sps:$4 sm:$0xff]  }
  0xaa   :  { %2562 = vmatprep.mubr.bf16.mxu0 %v4005_v50  ;;  %2648 = vmatprep.mubr.bf16.mxu1 %v4005_v50 }
  0xac   :  { %2533 = vmatpush1.bf16.msra.mxu0 %v3524_v20  ;;  %2619 = vmatpush1.bf16.msra.mxu1 %v3527_v21  ;;  %v3614_v20 = vld [vmem:[#allocation4 + $0x610] ss:$48 sps:$4 sm:$0xff]   ;;  %v3617_v21 = vld [vmem:[#allocation4 + $0x618] ss:$48 sps:$4 sm:$0xff]  }
  0xad   :  { %2534 = vmatprep.subr.bf16.mxu0 %v3532_v22  ;;  %2620 = vmatprep.subr.bf16.mxu1 %v3535_v23  ;;  %v3622_v22 = vld [vmem:[#allocation4 + $0x674] ss:$48 sps:$4 sm:$0xff]   ;;  %v3625_v23 = vld [vmem:[#allocation4 + $0x67c] ss:$48 sps:$4 sm:$0xff]  }
  0xb0   :  { %2535 = vmatpush1.bf16.msra.mxu0 %v3530_v24  ;;  %2621 = vmatpush1.bf16.msra.mxu1 %v3533_v25  ;;  %v3620_v24 = vld [vmem:[#allocation4 + $0x670] ss:$48 sps:$4 sm:$0xff]   ;;  %v3623_v25 = vld [vmem:[#allocation4 + $0x678] ss:$48 sps:$4 sm:$0xff]  }
  0xb1   :  { %2536 = vmatprep.subr.bf16.mxu0 %v3538_v26  ;;  %2622 = vmatprep.subr.bf16.mxu1 %v3541_v27  ;;  %v3628_v26 = vld [vmem:[#allocation4 + $0x6d4] ss:$48 sps:$4 sm:$0xff]   ;;  %v3631_v27 = vld [vmem:[#allocation4 + $0x6dc] ss:$48 sps:$4 sm:$0xff]  }
  0xb4   :  { %2537 = vmatpush1.bf16.msra.mxu0 %v3536_v28  ;;  %2623 = vmatpush1.bf16.msra.mxu1 %v3539_v29  ;;  %v3626_v28 = vld [vmem:[#allocation4 + $0x6d0] ss:$48 sps:$4 sm:$0xff]   ;;  %v3629_v29 = vld [vmem:[#allocation4 + $0x6d8] ss:$48 sps:$4 sm:$0xff]  }
  0xb5   :  { %2538 = vmatprep.subr.bf16.mxu0 %v3544_v30  ;;  %2624 = vmatprep.subr.bf16.mxu1 %v3547_v31  ;;  %v3634_v30 = vld [vmem:[#allocation4 + $0x734] ss:$48 sps:$4 sm:$0xff]   ;;  %v3637_v31 = vld [vmem:[#allocation4 + $0x73c] ss:$48 sps:$4 sm:$0xff]  }
  0xb8   :  { %2539 = vmatpush1.bf16.msra.mxu0 %v3542_v32  ;;  %2625 = vmatpush1.bf16.msra.mxu1 %v3545_v33  ;;  %v3632_v32 = vld [vmem:[#allocation4 + $0x730] ss:$48 sps:$4 sm:$0xff]   ;;  %v3635_v33 = vld [vmem:[#allocation4 + $0x738] ss:$48 sps:$4 sm:$0xff]  }
  0xb9   :  { %2540 = vmatprep.subr.bf16.mxu0 %v3550_v34  ;;  %2626 = vmatprep.subr.bf16.mxu1 %v3553_v35  ;;  %v3640_v34 = vld [vmem:[#allocation4 + $0x794] ss:$48 sps:$4 sm:$0xff]   ;;  %v3643_v35 = vld [vmem:[#allocation4 + $0x79c] ss:$48 sps:$4 sm:$0xff]  }
  0xbc   :  { %2541 = vmatpush1.bf16.msra.mxu0 %v3548_v36  ;;  %2627 = vmatpush1.bf16.msra.mxu1 %v3551_v38  ;;  %v3638_v36 = vld [vmem:[#allocation4 + $0x790] ss:$48 sps:$4 sm:$0xff]   ;;  %v3641_v38 = vld [vmem:[#allocation4 + $0x798] ss:$48 sps:$4 sm:$0xff]  }
  0xbd   :  { %2542 = vmatprep.subr.bf16.mxu0 %v3556_v39  ;;  %2628 = vmatprep.subr.bf16.mxu1 %v3559_v40  ;;  %v3646_v39 = vld [vmem:[#allocation4 + $0x7f4] ss:$48 sps:$4 sm:$0xff]   ;;  %v3649_v40 = vld [vmem:[#allocation4 + $0x7fc] ss:$48 sps:$4 sm:$0xff]  }
  0xc0   :  { %2543 = vmatpush1.bf16.msra.mxu0 %v3554_v41  ;;  %2629 = vmatpush1.bf16.msra.mxu1 %v3557_v42  ;;  %v3644_v41 = vld [vmem:[#allocation4 + $0x7f0] ss:$48 sps:$4 sm:$0xff]   ;;  %v3647_v42 = vld [vmem:[#allocation4 + $0x7f8] ss:$48 sps:$4 sm:$0xff]  }
  0xc1   :  { %2544 = vmatprep.subr.bf16.mxu0 %v3562_v43  ;;  %2630 = vmatprep.subr.bf16.mxu1 %v3565_v44  ;;  %v3652_v43 = vld [vmem:[#allocation4 + $0x854] ss:$48 sps:$4 sm:$0xff]   ;;  %v3655_v44 = vld [vmem:[#allocation4 + $0x85c] ss:$48 sps:$4 sm:$0xff]  }
  0xc4   :  { %2545 = vmatpush1.bf16.msra.mxu0 %v3560_v45  ;;  %2631 = vmatpush1.bf16.msra.mxu1 %v3563_v46  ;;  %v3650_v45 = vld [vmem:[#allocation4 + $0x850] ss:$48 sps:$4 sm:$0xff]   ;;  %v3653_v46 = vld [vmem:[#allocation4 + $0x858] ss:$48 sps:$4 sm:$0xff]  }
  0xc5   :  { %2546 = vmatprep.subr.bf16.mxu0 %v3568_v47  ;;  %2632 = vmatprep.subr.bf16.mxu1 %v3571_v48  ;;  %v3658_v47 = vld [vmem:[#allocation4 + $0x8b4] ss:$48 sps:$4 sm:$0xff]   ;;  %v3661_v48 = vld [vmem:[#allocation4 + $0x8bc] ss:$48 sps:$4 sm:$0xff]  }
  0xc8   :  { %2547 = vmatpush1.bf16.msra.mxu0 %v3566_v49  ;;  %2633 = vmatpush1.bf16.msra.mxu1 %v3569_v51  ;;  %v3656_v49 = vld [vmem:[#allocation4 + $0x8b0] ss:$48 sps:$4 sm:$0xff]   ;;  %v3659_v51 = vld [vmem:[#allocation4 + $0x8b8] ss:$48 sps:$4 sm:$0xff]  }
  0xc9   :  { %2548 = vmatprep.subr.bf16.mxu0 %v3574_v52  ;;  %2634 = vmatprep.subr.bf16.mxu1 %v3577_v53  ;;  %v3664_v52 = vld [vmem:[#allocation4 + $0x914] ss:$48 sps:$4 sm:$0xff]   ;;  %v3667_v53 = vld [vmem:[#allocation4 + $0x91c] ss:$48 sps:$4 sm:$0xff]  }
  0xcc   :  { %2549 = vmatpush1.bf16.msra.mxu0 %v3572_v54  ;;  %2635 = vmatpush1.bf16.msra.mxu1 %v3575_v55  ;;  %v3662_v54 = vld [vmem:[#allocation4 + $0x910] ss:$48 sps:$4 sm:$0xff]   ;;  %v3665_v55 = vld [vmem:[#allocation4 + $0x918] ss:$48 sps:$4 sm:$0xff]  }
  0xcd   :  { %2550 = vmatprep.subr.bf16.mxu0 %v3580_v56  ;;  %2636 = vmatprep.subr.bf16.mxu1 %v3583_v57  ;;  %v3670_v56 = vld [vmem:[#allocation4 + $0x974] ss:$48 sps:$4 sm:$0xff]   ;;  %v3673_v57 = vld [vmem:[#allocation4 + $0x97c] ss:$48 sps:$4 sm:$0xff]  }
  0xd0   :  { %2551 = vmatpush1.bf16.msra.mxu0 %v3578_v58  ;;  %2637 = vmatpush1.bf16.msra.mxu1 %v3581_v59  ;;  %v3668_v58 = vld [vmem:[#allocation4 + $0x970] ss:$48 sps:$4 sm:$0xff]   ;;  %v3671_v59 = vld [vmem:[#allocation4 + $0x978] ss:$48 sps:$4 sm:$0xff]  }
  0xd1   :  { %2552 = vmatprep.subr.bf16.mxu0 %v3586_v60  ;;  %2638 = vmatprep.subr.bf16.mxu1 %v3589_v61  ;;  %v3676_v60 = vld [vmem:[#allocation4 + $0x9d4] ss:$48 sps:$4 sm:$0xff]   ;;  %v3679_v61 = vld [vmem:[#allocation4 + $0x9dc] ss:$48 sps:$4 sm:$0xff]  }
  0xd4   :  { %2553 = vmatpush1.bf16.msra.mxu0 %v3584_v62  ;;  %2639 = vmatpush1.bf16.msra.mxu1 %v3587_v63  ;;  %v3674_v62 = vld [vmem:[#allocation4 + $0x9d0] ss:$48 sps:$4 sm:$0xff]   ;;  %v3677_v63 = vld [vmem:[#allocation4 + $0x9d8] ss:$48 sps:$4 sm:$0xff]  }
  0xd5   :  { %2554 = vmatprep.subr.bf16.mxu0 %v3592_v0  ;;  %2640 = vmatprep.subr.bf16.mxu1 %v3595_v1  ;;  %v3682_v0 = vld [vmem:[#allocation4 + $0xa34] ss:$48 sps:$4 sm:$0xff]   ;;  %v3685_v1 = vld [vmem:[#allocation4 + $0xa3c] ss:$48 sps:$4 sm:$0xff]  }
  0xd8   :  { %2555 = vmatpush1.bf16.msra.mxu0 %v3590_v2  ;;  %2641 = vmatpush1.bf16.msra.mxu1 %v3593_v3  ;;  %v3680_v2 = vld [vmem:[#allocation4 + $0xa30] ss:$48 sps:$4 sm:$0xff]   ;;  %v3683_v3 = vld [vmem:[#allocation4 + $0xa38] ss:$48 sps:$4 sm:$0xff]  }
  0xd9   :  { %2556 = vmatprep.subr.bf16.mxu0 %v3598_v4  ;;  %2642 = vmatprep.subr.bf16.mxu1 %v3601_v5  ;;  %v3688_v4 = vld [vmem:[#allocation4 + $0xa94] ss:$48 sps:$4 sm:$0xff]   ;;  %v3691_v5 = vld [vmem:[#allocation4 + $0xa9c] ss:$48 sps:$4 sm:$0xff]  }
  0xdc   :  { %2557 = vmatpush1.bf16.msra.mxu0 %v3596_v6  ;;  %2643 = vmatpush1.bf16.msra.mxu1 %v3599_v7  ;;  %v3686_v6 = vld [vmem:[#allocation4 + $0xa90] ss:$48 sps:$4 sm:$0xff]   ;;  %v3689_v7 = vld [vmem:[#allocation4 + $0xa98] ss:$48 sps:$4 sm:$0xff]  }
  0xdd   :  { %2558 = vmatprep.subr.bf16.mxu0 %v3604_v8  ;;  %2644 = vmatprep.subr.bf16.mxu1 %v3607_v10  ;;  %v3694_v8 = vld [vmem:[#allocation4 + $0xaf4] ss:$48 sps:$4 sm:$0xff]   ;;  %v3697_v10 = vld [vmem:[#allocation4 + $0xafc] ss:$48 sps:$4 sm:$0xff]  }
  0xe0   :  { %2559 = vmatpush1.bf16.msra.mxu0 %v3602_v11  ;;  %2645 = vmatpush1.bf16.msra.mxu1 %v3605_v12  ;;  %v3692_v11 = vld [vmem:[#allocation4 + $0xaf0] ss:$48 sps:$4 sm:$0xff]   ;;  %v3695_v12 = vld [vmem:[#allocation4 + $0xaf8] ss:$48 sps:$4 sm:$0xff]  }
  0xe1   :  { %2560 = vmatprep.subr.bf16.mxu0 %v3610_v13  ;;  %2646 = vmatprep.subr.bf16.mxu1 %v3613_v14  ;;  %v3700_v13 = vld [vmem:[#allocation4 + $0xb54] ss:$48 sps:$4 sm:$0xff]   ;;  %v3703_v14 = vld [vmem:[#allocation4 + $0xb5c] ss:$48 sps:$4 sm:$0xff]  }
  0xe4   :  { %2561 = vmatpush1.bf16.msra.mxu0 %v3608_v16  ;;  %2647 = vmatpush1.bf16.msra.mxu1 %v3611_v17  ;;  %v3698_v16 = vld [vmem:[#allocation4 + $0xb50] ss:$48 sps:$4 sm:$0xff]   ;;  %v3701_v17 = vld [vmem:[#allocation4 + $0xb58] ss:$48 sps:$4 sm:$0xff]  }
  0xe5   :  { %2573 = vmatprep.subr.bf16.mxu0 %v3616_v18  ;;  %2659 = vmatprep.subr.bf16.mxu1 %v3619_v19  ;;  %v3706_v18 = vld [vmem:[#allocation4 + $0xbb4] ss:$48 sps:$4 sm:$0xff]   ;;  %v3709_v19 = vld [vmem:[#allocation4 + $0xbbc] ss:$48 sps:$4 sm:$0xff]  }
  0xe7   :  { %2563 = vmatmul.mubr.bf16.vlgmr.msra.gmra.mrb[4].mxu0 %v4009_v9  ;;  %2649 = vmatmul.mubr.bf16.vlgmr.msra.gmra.mrb[4].mxu1 %v4009_v9 }
  0xe8   :  { %2574 = vmatpush1.bf16.msra.mxu0 %v3614_v20  ;;  %2660 = vmatpush1.bf16.msra.mxu1 %v3617_v21  ;;  %v3704_v20 = vld [vmem:[#allocation4 + $0xbb0] ss:$48 sps:$4 sm:$0xff]   ;;  %v3707_v21 = vld [vmem:[#allocation4 + $0xbb8] ss:$48 sps:$4 sm:$0xff]  }
  0xe9   :  { %2575 = vmatprep.subr.bf16.mxu0 %v3622_v22  ;;  %2661 = vmatprep.subr.bf16.mxu1 %v3625_v23  ;;  %v3712_v22 = vld [vmem:[#allocation4 + $0x24] ss:$48 sps:$4 sm:$0xff]   ;;  %v3715_v23 = vld [vmem:[#allocation4 + $0x2c] ss:$48 sps:$4 sm:$0xff]  }
  0xea   :  { %2605 = vmatprep.mubr.bf16.mxu0 %v4013_v37  ;;  %2691 = vmatprep.mubr.bf16.mxu1 %v4013_v37 }
  0xec   :  { %2576 = vmatpush1.bf16.msra.mxu0 %v3620_v24  ;;  %2662 = vmatpush1.bf16.msra.mxu1 %v3623_v25  ;;  %v3710_v24 = vld [vmem:[#allocation4 + $0x20] ss:$48 sps:$4 sm:$0xff]   ;;  %v3713_v25 = vld [vmem:[#allocation4 + $0x28] ss:$48 sps:$4 sm:$0xff]  }
  0xed   :  { %2577 = vmatprep.subr.bf16.mxu0 %v3628_v26  ;;  %2663 = vmatprep.subr.bf16.mxu1 %v3631_v27  ;;  %v3718_v26 = vld [vmem:[#allocation4 + $0x84] ss:$48 sps:$4 sm:$0xff]   ;;  %v3721_v27 = vld [vmem:[#allocation4 + $0x8c] ss:$48 sps:$4 sm:$0xff]  }
  0xf0   :  { %2578 = vmatpush1.bf16.msra.mxu0 %v3626_v28  ;;  %2664 = vmatpush1.bf16.msra.mxu1 %v3629_v29  ;;  %v3716_v28 = vld [vmem:[#allocation4 + $0x80] ss:$48 sps:$4 sm:$0xff]   ;;  %v3719_v29 = vld [vmem:[#allocation4 + $0x88] ss:$48 sps:$4 sm:$0xff]  }
  0xf1   :  { %2579 = vmatprep.subr.bf16.mxu0 %v3634_v30  ;;  %2665 = vmatprep.subr.bf16.mxu1 %v3637_v31  ;;  %v3724_v30 = vld [vmem:[#allocation4 + $0xe4] ss:$48 sps:$4 sm:$0xff]   ;;  %v3727_v31 = vld [vmem:[#allocation4 + $0xec] ss:$48 sps:$4 sm:$0xff]  }
  0xf4   :  { %2580 = vmatpush1.bf16.msra.mxu0 %v3632_v32  ;;  %2666 = vmatpush1.bf16.msra.mxu1 %v3635_v33  ;;  %v3722_v32 = vld [vmem:[#allocation4 + $0xe0] ss:$48 sps:$4 sm:$0xff]   ;;  %v3725_v33 = vld [vmem:[#allocation4 + $0xe8] ss:$48 sps:$4 sm:$0xff]  }
  0xf5   :  { %2581 = vmatprep.subr.bf16.mxu0 %v3640_v34  ;;  %2667 = vmatprep.subr.bf16.mxu1 %v3643_v35  ;;  %v3730_v34 = vld [vmem:[#allocation4 + $0x144] ss:$48 sps:$4 sm:$0xff]   ;;  %v3733_v35 = vld [vmem:[#allocation4 + $0x14c] ss:$48 sps:$4 sm:$0xff]  }
  0xf8   :  { %2582 = vmatpush1.bf16.msra.mxu0 %v3638_v36  ;;  %2668 = vmatpush1.bf16.msra.mxu1 %v3641_v38  ;;  %v3728_v36 = vld [vmem:[#allocation4 + $0x140] ss:$48 sps:$4 sm:$0xff]   ;;  %v3731_v38 = vld [vmem:[#allocation4 + $0x148] ss:$48 sps:$4 sm:$0xff]  }
  0xf9   :  { %2583 = vmatprep.subr.bf16.mxu0 %v3646_v39  ;;  %2669 = vmatprep.subr.bf16.mxu1 %v3649_v40  ;;  %v3736_v39 = vld [vmem:[#allocation4 + $0x1a4] ss:$48 sps:$4 sm:$0xff]   ;;  %v3739_v40 = vld [vmem:[#allocation4 + $0x1ac] ss:$48 sps:$4 sm:$0xff]  }
  0xfc   :  { %2584 = vmatpush1.bf16.msra.mxu0 %v3644_v41  ;;  %2670 = vmatpush1.bf16.msra.mxu1 %v3647_v42  ;;  %v3734_v41 = vld [vmem:[#allocation4 + $0x1a0] ss:$48 sps:$4 sm:$0xff]   ;;  %v3742_v42 = vld [vmem:[#allocation4 + $0x204] ss:$48 sps:$4 sm:$0xff]  }
  0xfd   :  { %2585 = vmatprep.subr.bf16.mxu0 %v3652_v43  ;;  %2671 = vmatprep.subr.bf16.mxu1 %v3655_v44  ;;  %v3745_v43 = vld [vmem:[#allocation4 + $0x20c] ss:$48 sps:$4 sm:$0xff]   ;;  %v3740_v44 = vld [vmem:[#allocation4 + $0x200] ss:$48 sps:$4 sm:$0xff]  }
 0x100   :  { %2586 = vmatpush1.bf16.msra.mxu0 %v3650_v45  ;;  %2672 = vmatpush1.bf16.msra.mxu1 %v3653_v46  ;;  %v3743_v45 = vld [vmem:[#allocation4 + $0x208] ss:$48 sps:$4 sm:$0xff]   ;;  %v3748_v46 = vld [vmem:[#allocation4 + $0x264] ss:$48 sps:$4 sm:$0xff]  }
 0x101   :  { %2587 = vmatprep.subr.bf16.mxu0 %v3658_v47  ;;  %2673 = vmatprep.subr.bf16.mxu1 %v3661_v48  ;;  %v3751_v47 = vld [vmem:[#allocation4 + $0x26c] ss:$48 sps:$4 sm:$0xff]   ;;  %v3746_v48 = vld [vmem:[#allocation4 + $0x260] ss:$48 sps:$4 sm:$0xff]  }
 0x104   :  { %2588 = vmatpush1.bf16.msra.mxu0 %v3656_v49  ;;  %2674 = vmatpush1.bf16.msra.mxu1 %v3659_v51  ;;  %v3749_v49 = vld [vmem:[#allocation4 + $0x268] ss:$48 sps:$4 sm:$0xff]   ;;  %v3754_v51 = vld [vmem:[#allocation4 + $0x2c4] ss:$48 sps:$4 sm:$0xff]  }
 0x105   :  { %2589 = vmatprep.subr.bf16.mxu0 %v3664_v52  ;;  %2675 = vmatprep.subr.bf16.mxu1 %v3667_v53  ;;  %v3757_v52 = vld [vmem:[#allocation4 + $0x2cc] ss:$48 sps:$4 sm:$0xff]   ;;  %v3752_v53 = vld [vmem:[#allocation4 + $0x2c0] ss:$48 sps:$4 sm:$0xff]  }
 0x108   :  { %2590 = vmatpush1.bf16.msra.mxu0 %v3662_v54  ;;  %2676 = vmatpush1.bf16.msra.mxu1 %v3665_v55  ;;  %v3755_v54 = vld [vmem:[#allocation4 + $0x2c8] ss:$48 sps:$4 sm:$0xff]   ;;  %v3760_v55 = vld [vmem:[#allocation4 + $0x324] ss:$48 sps:$4 sm:$0xff]  }
 0x109   :  { %2591 = vmatprep.subr.bf16.mxu0 %v3670_v56  ;;  %2677 = vmatprep.subr.bf16.mxu1 %v3673_v57  ;;  %v3763_v56 = vld [vmem:[#allocation4 + $0x32c] ss:$48 sps:$4 sm:$0xff]   ;;  %v3758_v57 = vld [vmem:[#allocation4 + $0x320] ss:$48 sps:$4 sm:$0xff]  }
 0x10c   :  { %2592 = vmatpush1.bf16.msra.mxu0 %v3668_v58  ;;  %2678 = vmatpush1.bf16.msra.mxu1 %v3671_v59  ;;  %v3761_v58 = vld [vmem:[#allocation4 + $0x328] ss:$48 sps:$4 sm:$0xff]   ;;  %v3766_v59 = vld [vmem:[#allocation4 + $0x384] ss:$48 sps:$4 sm:$0xff]  }
 0x10d   :  { %2593 = vmatprep.subr.bf16.mxu0 %v3676_v60  ;;  %2679 = vmatprep.subr.bf16.mxu1 %v3679_v61  ;;  %v3769_v60 = vld [vmem:[#allocation4 + $0x38c] ss:$48 sps:$4 sm:$0xff]   ;;  %v3764_v61 = vld [vmem:[#allocation4 + $0x380] ss:$48 sps:$4 sm:$0xff]  }
 0x110   :  { %2594 = vmatpush1.bf16.msra.mxu0 %v3674_v62  ;;  %2680 = vmatpush1.bf16.msra.mxu1 %v3677_v63  ;;  %v3767_v62 = vld [vmem:[#allocation4 + $0x388] ss:$48 sps:$4 sm:$0xff]   ;;  %v3772_v63 = vld [vmem:[#allocation4 + $0x3e4] ss:$48 sps:$4 sm:$0xff]  }
 0x111   :  { %2595 = vmatprep.subr.bf16.mxu0 %v3682_v0  ;;  %2681 = vmatprep.subr.bf16.mxu1 %v3685_v1  ;;  %v3775_v0 = vld [vmem:[#allocation4 + $0x3ec] ss:$48 sps:$4 sm:$0xff]   ;;  %v3770_v1 = vld [vmem:[#allocation4 + $0x3e0] ss:$48 sps:$4 sm:$0xff]  }
 0x114   :  { %2596 = vmatpush1.bf16.msra.mxu0 %v3680_v2  ;;  %2682 = vmatpush1.bf16.msra.mxu1 %v3683_v3  ;;  %v3773_v2 = vld [vmem:[#allocation4 + $0x3e8] ss:$48 sps:$4 sm:$0xff]   ;;  %v3778_v3 = vld [vmem:[#allocation4 + $0x444] ss:$48 sps:$4 sm:$0xff]  }
 0x115   :  { %2597 = vmatprep.subr.bf16.mxu0 %v3688_v4  ;;  %2683 = vmatprep.subr.bf16.mxu1 %v3691_v5  ;;  %v3781_v4 = vld [vmem:[#allocation4 + $0x44c] ss:$48 sps:$4 sm:$0xff]   ;;  %v3776_v5 = vld [vmem:[#allocation4 + $0x440] ss:$48 sps:$4 sm:$0xff]  }
 0x118   :  { %2598 = vmatpush1.bf16.msra.mxu0 %v3686_v6  ;;  %2684 = vmatpush1.bf16.msra.mxu1 %v3689_v7  ;;  %v3779_v6 = vld [vmem:[#allocation4 + $0x448] ss:$48 sps:$4 sm:$0xff]   ;;  %v3784_v7 = vld [vmem:[#allocation4 + $0x4a4] ss:$48 sps:$4 sm:$0xff]  }
 0x119   :  { %2599 = vmatprep.subr.bf16.mxu0 %v3694_v8  ;;  %2685 = vmatprep.subr.bf16.mxu1 %v3697_v10  ;;  %v3787_v8 = vld [vmem:[#allocation4 + $0x4ac] ss:$48 sps:$4 sm:$0xff]   ;;  %v3782_v10 = vld [vmem:[#allocation4 + $0x4a0] ss:$48 sps:$4 sm:$0xff]  }
 0x11c   :  { %2600 = vmatpush1.bf16.msra.mxu0 %v3692_v11  ;;  %2686 = vmatpush1.bf16.msra.mxu1 %v3695_v12  ;;  %v3785_v11 = vld [vmem:[#allocation4 + $0x4a8] ss:$48 sps:$4 sm:$0xff]   ;;  %v3790_v12 = vld [vmem:[#allocation4 + $0x504] ss:$48 sps:$4 sm:$0xff]  }
 0x11d   :  { %2601 = vmatprep.subr.bf16.mxu0 %v3700_v13  ;;  %2687 = vmatprep.subr.bf16.mxu1 %v3703_v14  ;;  %v3793_v13 = vld [vmem:[#allocation4 + $0x50c] ss:$48 sps:$4 sm:$0xff]   ;;  %v3788_v14 = vld [vmem:[#allocation4 + $0x500] ss:$48 sps:$4 sm:$0xff]  }
 0x120   :  { %2602 = vmatpush1.bf16.msra.mxu0 %v3698_v16  ;;  %2688 = vmatpush1.bf16.msra.mxu1 %v3701_v17  ;;  %v3791_v16 = vld [vmem:[#allocation4 + $0x508] ss:$48 sps:$4 sm:$0xff]   ;;  %v3796_v17 = vld [vmem:[#allocation4 + $0x564] ss:$48 sps:$4 sm:$0xff]  }
 0x121   :  { %2603 = vmatprep.subr.bf16.mxu0 %v3706_v18  ;;  %2689 = vmatprep.subr.bf16.mxu1 %v3709_v19  ;;  %v3799_v18 = vld [vmem:[#allocation4 + $0x56c] ss:$48 sps:$4 sm:$0xff]   ;;  %v3794_v19 = vld [vmem:[#allocation4 + $0x560] ss:$48 sps:$4 sm:$0xff]  }
 0x124   :  { %2604 = vmatpush1.bf16.msra.mxu0 %v3704_v20  ;;  %2690 = vmatpush1.bf16.msra.mxu1 %v3707_v21  ;;  %v3797_v20 = vld [vmem:[#allocation4 + $0x568] ss:$48 sps:$4 sm:$0xff]   ;;  %v3802_v21 = vld [vmem:[#allocation4 + $0x5c4] ss:$48 sps:$4 sm:$0xff]  }
 0x125   :  { %2702 = vmatprep.subr.bf16.mxu0 %v3712_v22  ;;  %2788 = vmatprep.subr.bf16.mxu1 %v3715_v23  ;;  %v3805_v22 = vld [vmem:[#allocation4 + $0x5cc] ss:$48 sps:$4 sm:$0xff]   ;;  %v3800_v23 = vld [vmem:[#allocation4 + $0x5c0] ss:$48 sps:$4 sm:$0xff]  }
 0x127   :  { %2606 = vmatmul.mubr.bf16.vlgmr.msra.gmra.mrb[4].mxu0 %v4017_v15  ;;  %2692 = vmatmul.mubr.bf16.vlgmr.msra.gmra.mrb[4].mxu1 %v4017_v15 }
 0x128   :  { %2703 = vmatpush1.bf16.msra.mxu0 %v3710_v24  ;;  %2789 = vmatpush1.bf16.msra.mxu1 %v3713_v25  ;;  %v3803_v24 = vld [vmem:[#allocation4 + $0x5c8] ss:$48 sps:$4 sm:$0xff]   ;;  %v3808_v25 = vld [vmem:[#allocation4 + $0x624] ss:$48 sps:$4 sm:$0xff]  }
 0x129   :  { %2704 = vmatprep.subr.bf16.mxu0 %v3718_v26  ;;  %2790 = vmatprep.subr.bf16.mxu1 %v3721_v27  ;;  %v3811_v26 = vld [vmem:[#allocation4 + $0x62c] ss:$48 sps:$4 sm:$0xff]   ;;  %v3806_v27 = vld [vmem:[#allocation4 + $0x620] ss:$48 sps:$4 sm:$0xff]  }
 0x12a   :  { %2734 = vmatprep.mubr.bf16.mxu0 %v4005_v50  ;;  %2820 = vmatprep.mubr.bf16.mxu1 %v4005_v50  ;;  %v3737_v50 = vld [vmem:[#allocation4 + $0x1a8] ss:$48 sps:$4 sm:$0xff]  }
 0x12c   :  { %2705 = vmatpush1.bf16.msra.mxu0 %v3716_v28  ;;  %2791 = vmatpush1.bf16.msra.mxu1 %v3719_v29  ;;  %v3809_v28 = vld [vmem:[#allocation4 + $0x628] ss:$48 sps:$4 sm:$0xff]   ;;  %v3814_v29 = vld [vmem:[#allocation4 + $0x684] ss:$48 sps:$4 sm:$0xff]  }
 0x12d   :  { %2706 = vmatprep.subr.bf16.mxu0 %v3724_v30  ;;  %2792 = vmatprep.subr.bf16.mxu1 %v3727_v31  ;;  %v3817_v30 = vld [vmem:[#allocation4 + $0x68c] ss:$48 sps:$4 sm:$0xff]   ;;  %v3812_v31 = vld [vmem:[#allocation4 + $0x680] ss:$48 sps:$4 sm:$0xff]  }
 0x130   :  { %2707 = vmatpush1.bf16.msra.mxu0 %v3722_v32  ;;  %2793 = vmatpush1.bf16.msra.mxu1 %v3725_v33  ;;  %v3815_v32 = vld [vmem:[#allocation4 + $0x688] ss:$48 sps:$4 sm:$0xff]   ;;  %v3820_v33 = vld [vmem:[#allocation4 + $0x6e4] ss:$48 sps:$4 sm:$0xff]  }
 0x131   :  { %2708 = vmatprep.subr.bf16.mxu0 %v3730_v34  ;;  %2794 = vmatprep.subr.bf16.mxu1 %v3733_v35  ;;  %v3823_v34 = vld [vmem:[#allocation4 + $0x6ec] ss:$48 sps:$4 sm:$0xff]   ;;  %v3818_v35 = vld [vmem:[#allocation4 + $0x6e0] ss:$48 sps:$4 sm:$0xff]  }
 0x134   :  { %2709 = vmatpush1.bf16.msra.mxu0 %v3728_v36  ;;  %2795 = vmatpush1.bf16.msra.mxu1 %v3731_v38  ;;  %v3821_v36 = vld [vmem:[#allocation4 + $0x6e8] ss:$48 sps:$4 sm:$0xff]   ;;  %v3826_v38 = vld [vmem:[#allocation4 + $0x744] ss:$48 sps:$4 sm:$0xff]  }
 0x135   :  { %2710 = vmatprep.subr.bf16.mxu0 %v3736_v39  ;;  %2796 = vmatprep.subr.bf16.mxu1 %v3739_v40  ;;  %v3824_v39 = vld [vmem:[#allocation4 + $0x740] ss:$48 sps:$4 sm:$0xff]   ;;  %v3827_v40 = vld [vmem:[#allocation4 + $0x748] ss:$48 sps:$4 sm:$0xff]  }
 0x138   :  { %2711 = vmatpush1.bf16.msra.mxu0 %v3734_v41  ;;  %2797 = vmatpush1.bf16.msra.mxu1 %v3737_v50  ;;  %v3832_v41 = vld [vmem:[#allocation4 + $0x7a4] ss:$48 sps:$4 sm:$0xff]   ;;  %v3835_v50 = vld [vmem:[#allocation4 + $0x7ac] ss:$48 sps:$4 sm:$0xff]  }
 0x139   :  { %2712 = vmatprep.subr.bf16.mxu0 %v3742_v42  ;;  %2798 = vmatprep.subr.bf16.mxu1 %v3745_v43  ;;  %v3830_v42 = vld [vmem:[#allocation4 + $0x7a0] ss:$48 sps:$4 sm:$0xff]   ;;  %v3838_v43 = vld [vmem:[#allocation4 + $0x804] ss:$48 sps:$4 sm:$0xff]  }
 0x13c   :  { %2713 = vmatpush1.bf16.msra.mxu0 %v3740_v44  ;;  %2799 = vmatpush1.bf16.msra.mxu1 %v3743_v45  ;;  %v3841_v44 = vld [vmem:[#allocation4 + $0x80c] ss:$48 sps:$4 sm:$0xff]   ;;  %v3836_v45 = vld [vmem:[#allocation4 + $0x800] ss:$48 sps:$4 sm:$0xff]  }
 0x13d   :  { %2714 = vmatprep.subr.bf16.mxu0 %v3748_v46  ;;  %2800 = vmatprep.subr.bf16.mxu1 %v3751_v47  ;;  %v3839_v46 = vld [vmem:[#allocation4 + $0x808] ss:$48 sps:$4 sm:$0xff]   ;;  %v3844_v47 = vld [vmem:[#allocation4 + $0x864] ss:$48 sps:$4 sm:$0xff]  }
 0x140   :  { %2715 = vmatpush1.bf16.msra.mxu0 %v3746_v48  ;;  %2801 = vmatpush1.bf16.msra.mxu1 %v3749_v49  ;;  %v3847_v48 = vld [vmem:[#allocation4 + $0x86c] ss:$48 sps:$4 sm:$0xff]  }
 0x141   :  { %2716 = vmatprep.subr.bf16.mxu0 %v3754_v51  ;;  %2802 = vmatprep.subr.bf16.mxu1 %v3757_v52 }
 0x144   :  { %2717 = vmatpush1.bf16.msra.mxu0 %v3752_v53  ;;  %2803 = vmatpush1.bf16.msra.mxu1 %v3755_v54 }
 0x145   :  { %2718 = vmatprep.subr.bf16.mxu0 %v3760_v55  ;;  %2804 = vmatprep.subr.bf16.mxu1 %v3763_v56  ;;  %v3842_v56 = vld [vmem:[#allocation4 + $0x860] ss:$48 sps:$4 sm:$0xff]  }
 0x148   :  { %2719 = vmatpush1.bf16.msra.mxu0 %v3758_v57  ;;  %2805 = vmatpush1.bf16.msra.mxu1 %v3761_v58  ;;  %v3845_v57 = vld [vmem:[#allocation4 + $0x868] ss:$48 sps:$4 sm:$0xff]  }
 0x149   :  { %2720 = vmatprep.subr.bf16.mxu0 %v3766_v59  ;;  %2806 = vmatprep.subr.bf16.mxu1 %v3769_v60  ;;  %v3850_v60 = vld [vmem:[#allocation4 + $0x8c4] ss:$48 sps:$4 sm:$0xff]  }
 0x14c   :  { %2721 = vmatpush1.bf16.msra.mxu0 %v3764_v61  ;;  %2807 = vmatpush1.bf16.msra.mxu1 %v3767_v62  ;;  %v3853_v61 = vld [vmem:[#allocation4 + $0x8cc] ss:$48 sps:$4 sm:$0xff]   ;;  %v3848_v62 = vld [vmem:[#allocation4 + $0x8c0] ss:$48 sps:$4 sm:$0xff]  }
 0x14d   :  { %2722 = vmatprep.subr.bf16.mxu0 %v3772_v63  ;;  %2808 = vmatprep.subr.bf16.mxu1 %v3775_v0  ;;  %v3851_v63 = vld [vmem:[#allocation4 + $0x8c8] ss:$48 sps:$4 sm:$0xff]   ;;  %v3856_v0 = vld [vmem:[#allocation4 + $0x924] ss:$48 sps:$4 sm:$0xff]  }
 0x150   :  { %2723 = vmatpush1.bf16.msra.mxu0 %v3770_v1  ;;  %2809 = vmatpush1.bf16.msra.mxu1 %v3773_v2  ;;  %v3859_v1 = vld [vmem:[#allocation4 + $0x92c] ss:$48 sps:$4 sm:$0xff]   ;;  %v3854_v2 = vld [vmem:[#allocation4 + $0x920] ss:$48 sps:$4 sm:$0xff]  }
 0x151   :  { %2724 = vmatprep.subr.bf16.mxu0 %v3778_v3  ;;  %2810 = vmatprep.subr.bf16.mxu1 %v3781_v4  ;;  %v3857_v3 = vld [vmem:[#allocation4 + $0x928] ss:$48 sps:$4 sm:$0xff]   ;;  %v3862_v4 = vld [vmem:[#allocation4 + $0x984] ss:$48 sps:$4 sm:$0xff]  }
 0x154   :  { %2725 = vmatpush1.bf16.msra.mxu0 %v3776_v5  ;;  %2811 = vmatpush1.bf16.msra.mxu1 %v3779_v6  ;;  %v3865_v5 = vld [vmem:[#allocation4 + $0x98c] ss:$48 sps:$4 sm:$0xff]   ;;  %v3860_v6 = vld [vmem:[#allocation4 + $0x980] ss:$48 sps:$4 sm:$0xff]  }
 0x155   :  { %2726 = vmatprep.subr.bf16.mxu0 %v3784_v7  ;;  %2812 = vmatprep.subr.bf16.mxu1 %v3787_v8  ;;  %v3863_v7 = vld [vmem:[#allocation4 + $0x988] ss:$48 sps:$4 sm:$0xff]   ;;  %v3868_v8 = vld [vmem:[#allocation4 + $0x9e4] ss:$48 sps:$4 sm:$0xff]  }
 0x158   :  { %2727 = vmatpush1.bf16.msra.mxu0 %v3782_v10  ;;  %2813 = vmatpush1.bf16.msra.mxu1 %v3785_v11  ;;  %v3871_v10 = vld [vmem:[#allocation4 + $0x9ec] ss:$48 sps:$4 sm:$0xff]   ;;  %v3866_v11 = vld [vmem:[#allocation4 + $0x9e0] ss:$48 sps:$4 sm:$0xff]  }
 0x159   :  { %2728 = vmatprep.subr.bf16.mxu0 %v3790_v12  ;;  %2814 = vmatprep.subr.bf16.mxu1 %v3793_v13  ;;  %v3869_v12 = vld [vmem:[#allocation4 + $0x9e8] ss:$48 sps:$4 sm:$0xff]   ;;  %v3874_v13 = vld [vmem:[#allocation4 + $0xa44] ss:$48 sps:$4 sm:$0xff]  }
 0x15c   :  { %2729 = vmatpush1.bf16.msra.mxu0 %v3788_v14  ;;  %2815 = vmatpush1.bf16.msra.mxu1 %v3791_v16  ;;  %v3877_v14 = vld [vmem:[#allocation4 + $0xa4c] ss:$48 sps:$4 sm:$0xff]   ;;  %v3872_v16 = vld [vmem:[#allocation4 + $0xa40] ss:$48 sps:$4 sm:$0xff]  }
 0x15d   :  { %2730 = vmatprep.subr.bf16.mxu0 %v3796_v17  ;;  %2816 = vmatprep.subr.bf16.mxu1 %v3799_v18  ;;  %v3875_v17 = vld [vmem:[#allocation4 + $0xa48] ss:$48 sps:$4 sm:$0xff]   ;;  %v3880_v18 = vld [vmem:[#allocation4 + $0xaa4] ss:$48 sps:$4 sm:$0xff]  }
 0x160   :  { %2731 = vmatpush1.bf16.msra.mxu0 %v3794_v19  ;;  %2817 = vmatpush1.bf16.msra.mxu1 %v3797_v20  ;;  %v3883_v19 = vld [vmem:[#allocation4 + $0xaac] ss:$48 sps:$4 sm:$0xff]   ;;  %v3878_v20 = vld [vmem:[#allocation4 + $0xaa0] ss:$48 sps:$4 sm:$0xff]  }
 0x161   :  { %2732 = vmatprep.subr.bf16.mxu0 %v3802_v21  ;;  %2818 = vmatprep.subr.bf16.mxu1 %v3805_v22  ;;  %v3881_v21 = vld [vmem:[#allocation4 + $0xaa8] ss:$48 sps:$4 sm:$0xff]   ;;  %v3886_v22 = vld [vmem:[#allocation4 + $0xb04] ss:$48 sps:$4 sm:$0xff]  }
 0x164   :  { %2733 = vmatpush1.bf16.msra.mxu0 %v3800_v23  ;;  %2819 = vmatpush1.bf16.msra.mxu1 %v3803_v24  ;;  %v3889_v23 = vld [vmem:[#allocation4 + $0xb0c] ss:$48 sps:$4 sm:$0xff]   ;;  %v3884_v24 = vld [vmem:[#allocation4 + $0xb00] ss:$48 sps:$4 sm:$0xff]  }
 0x165   :  { %2745 = vmatprep.subr.bf16.mxu0 %v3808_v25  ;;  %2831 = vmatprep.subr.bf16.mxu1 %v3811_v26  ;;  %v3887_v25 = vld [vmem:[#allocation4 + $0xb08] ss:$48 sps:$4 sm:$0xff]   ;;  %v3892_v26 = vld [vmem:[#allocation4 + $0xb64] ss:$48 sps:$4 sm:$0xff]  }
 0x167   :  { %2735 = vmatmul.mubr.bf16.vlgmr.msra.gmra.mrb[8].mxu0 %v4009_v9  ;;  %2821 = vmatmul.mubr.bf16.vlgmr.msra.gmra.mrb[8].mxu1 %v4009_v9  ;;  %v3829_v9 = vld [vmem:[#allocation4 + $0x74c] ss:$48 sps:$4 sm:$0xff]  }
 0x168   :  { %2746 = vmatpush1.bf16.msra.mxu0 %v3806_v27  ;;  %2832 = vmatpush1.bf16.msra.mxu1 %v3809_v28  ;;  %v3895_v27 = vld [vmem:[#allocation4 + $0xb6c] ss:$48 sps:$4 sm:$0xff]   ;;  %v3890_v28 = vld [vmem:[#allocation4 + $0xb60] ss:$48 sps:$4 sm:$0xff]  }
 0x169   :  { %2747 = vmatprep.subr.bf16.mxu0 %v3814_v29  ;;  %2833 = vmatprep.subr.bf16.mxu1 %v3817_v30  ;;  %v3893_v29 = vld [vmem:[#allocation4 + $0xb68] ss:$48 sps:$4 sm:$0xff]   ;;  %v3898_v30 = vld [vmem:[#allocation4 + $0xbc4] ss:$48 sps:$4 sm:$0xff]  }
 0x16a   :  { %2777 = vmatprep.mubr.bf16.mxu0 %v4013_v37  ;;  %2863 = vmatprep.mubr.bf16.mxu1 %v4013_v37  ;;  %v3833_v37 = vld [vmem:[#allocation4 + $0x7a8] ss:$48 sps:$4 sm:$0xff]  }
 0x16c   :  { %2748 = vmatpush1.bf16.msra.mxu0 %v3812_v31  ;;  %2834 = vmatpush1.bf16.msra.mxu1 %v3815_v32  ;;  %v3901_v31 = vld [vmem:[#allocation4 + $0xbcc] ss:$48 sps:$4 sm:$0xff]   ;;  %v3896_v32 = vld [vmem:[#allocation4 + $0xbc0] ss:$48 sps:$4 sm:$0xff]  }
 0x16d   :  { %2749 = vmatprep.subr.bf16.mxu0 %v3820_v33  ;;  %2835 = vmatprep.subr.bf16.mxu1 %v3823_v34  ;;  %v3899_v33 = vld [vmem:[#allocation4 + $0xbc8] ss:$48 sps:$4 sm:$0xff]  }
 0x170   :  { %2750 = vmatpush1.bf16.msra.mxu0 %v3818_v35  ;;  %2836 = vmatpush1.bf16.msra.mxu1 %v3821_v36 }
 0x171   :  { %2751 = vmatprep.subr.bf16.mxu0 %v3826_v38  ;;  %2837 = vmatprep.subr.bf16.mxu1 %v3829_v9 }
 0x174   :  { %2752 = vmatpush1.bf16.msra.mxu0 %v3824_v39  ;;  %2838 = vmatpush1.bf16.msra.mxu1 %v3827_v40 }
 0x175   :  { %2753 = vmatprep.subr.bf16.mxu0 %v3832_v41  ;;  %2839 = vmatprep.subr.bf16.mxu1 %v3835_v50 }
 0x178   :  { %2754 = vmatpush1.bf16.msra.mxu0 %v3830_v42  ;;  %2840 = vmatpush1.bf16.msra.mxu1 %v3833_v37 }
 0x179   :  { %2755 = vmatprep.subr.bf16.mxu0 %v3838_v43  ;;  %2841 = vmatprep.subr.bf16.mxu1 %v3841_v44 }
 0x17a   :  { %v2435_v49 = vpop.f32.mrb[0].mxu0  ;;  %v2521_v51 = vpop.f32.mrb[0].mxu1 }
 0x17b   :  { %2874 = vst [vmem:[%s4111_s2] sm:$0xff] %v2435_v49  ;;  %2876 = vst [vmem:[%s4111_s2 + $0x10] sm:$0xff] %v2521_v51  ;;  %v2437_v52 = vpop.f32.mrb[1].mxu0  ;;  %v2523_v53 = vpop.f32.mrb[1].mxu1 }
 0x17c   :  { %2875 = vst [vmem:[%s4111_s2 + $0x8] sm:$0xff] %v2437_v52  ;;  %2877 = vst [vmem:[%s4111_s2 + $0x18] sm:$0xff] %v2523_v53  ;;  %v2439_v54 = vpop.f32.mrb[2].mxu0  ;;  %v2525_v55 = vpop.f32.mrb[2].mxu1  ;;  %2756 = vmatpush1.bf16.msra.mxu0 %v3836_v45  ;;  %2842 = vmatpush1.bf16.msra.mxu1 %v3839_v46 }
 0x17d   :  { %2878 = vst [vmem:[%s4111_s2 + $0x20] sm:$0xff] %v2439_v54  ;;  %2880 = vst [vmem:[%s4111_s2 + $0x30] sm:$0xff] %v2525_v55  ;;  %v2441_v58 = vpop.f32.mrb[3].mxu0  ;;  %v2527_v59 = vpop.f32.mrb[3].mxu1  ;;  %2757 = vmatprep.subr.bf16.mxu0 %v3844_v47  ;;  %2843 = vmatprep.subr.bf16.mxu1 %v3847_v48 }
 0x17e   :  { %2879 = vst [vmem:[%s4111_s2 + $0x28] sm:$0xff] %v2441_v58  ;;  %2881 = vst [vmem:[%s4111_s2 + $0x38] sm:$0xff] %v2527_v59 }
 0x180   :  { %2758 = vmatpush1.bf16.msra.mxu0 %v3842_v56  ;;  %2844 = vmatpush1.bf16.msra.mxu1 %v3845_v57 }
 0x181   :  { %2759 = vmatprep.subr.bf16.mxu0 %v3850_v60  ;;  %2845 = vmatprep.subr.bf16.mxu1 %v3853_v61 }
 0x184   :  { %2760 = vmatpush1.bf16.msra.mxu0 %v3848_v62  ;;  %2846 = vmatpush1.bf16.msra.mxu1 %v3851_v63 }
 0x185   :  { %2761 = vmatprep.subr.bf16.mxu0 %v3856_v0  ;;  %2847 = vmatprep.subr.bf16.mxu1 %v3859_v1 }
 0x188   :  { %2762 = vmatpush1.bf16.msra.mxu0 %v3854_v2  ;;  %2848 = vmatpush1.bf16.msra.mxu1 %v3857_v3 }
 0x189   :  { %2763 = vmatprep.subr.bf16.mxu0 %v3862_v4  ;;  %2849 = vmatprep.subr.bf16.mxu1 %v3865_v5 }
 0x18c   :  { %2764 = vmatpush1.bf16.msra.mxu0 %v3860_v6  ;;  %2850 = vmatpush1.bf16.msra.mxu1 %v3863_v7 }
 0x18d   :  { %2765 = vmatprep.subr.bf16.mxu0 %v3868_v8  ;;  %2851 = vmatprep.subr.bf16.mxu1 %v3871_v10 }
 0x190   :  { %2766 = vmatpush1.bf16.msra.mxu0 %v3866_v11  ;;  %2852 = vmatpush1.bf16.msra.mxu1 %v3869_v12 }
 0x191   :  { %2767 = vmatprep.subr.bf16.mxu0 %v3874_v13  ;;  %2853 = vmatprep.subr.bf16.mxu1 %v3877_v14 }
 0x194   :  { %2768 = vmatpush1.bf16.msra.mxu0 %v3872_v16  ;;  %2854 = vmatpush1.bf16.msra.mxu1 %v3875_v17 }
 0x195   :  { %2769 = vmatprep.subr.bf16.mxu0 %v3880_v18  ;;  %2855 = vmatprep.subr.bf16.mxu1 %v3883_v19 }
 0x198   :  { %2770 = vmatpush1.bf16.msra.mxu0 %v3878_v20  ;;  %2856 = vmatpush1.bf16.msra.mxu1 %v3881_v21 }
 0x199   :  { %2771 = vmatprep.subr.bf16.mxu0 %v3886_v22  ;;  %2857 = vmatprep.subr.bf16.mxu1 %v3889_v23 }
 0x19c   :  { %2772 = vmatpush1.bf16.msra.mxu0 %v3884_v24  ;;  %2858 = vmatpush1.bf16.msra.mxu1 %v3887_v25 }
 0x19d   :  { %2773 = vmatprep.subr.bf16.mxu0 %v3892_v26  ;;  %2859 = vmatprep.subr.bf16.mxu1 %v3895_v27 }
 0x1a0   :  { %2774 = vmatpush1.bf16.msra.mxu0 %v3890_v28  ;;  %2860 = vmatpush1.bf16.msra.mxu1 %v3893_v29 }
 0x1a1   :  { %2775 = vmatprep.subr.bf16.mxu0 %v3898_v30  ;;  %2861 = vmatprep.subr.bf16.mxu1 %v3901_v31 }
 0x1a4   :  { %2776 = vmatpush1.bf16.msra.mxu0 %v3896_v32  ;;  %2862 = vmatpush1.bf16.msra.mxu1 %v3899_v33 }
 0x1a7   :  { %2778 = vmatmul.mubr.bf16.vlgmr.msra.gmra.mrb[8].mxu0 %v4017_v15  ;;  %2864 = vmatmul.mubr.bf16.vlgmr.msra.gmra.mrb[8].mxu1 %v4017_v15 }
 0x1fa   :  { %v2607_v34 = vpop.f32.mrb[4].mxu0  ;;  %v2693_v35 = vpop.f32.mrb[4].mxu1 }
 0x1fb   :  { %2882 = vst [vmem:[%s4112_s3] sm:$0xff] %v2607_v34  ;;  %2884 = vst [vmem:[%s4112_s3 + $0x10] sm:$0xff] %v2693_v35  ;;  %v2609_v36 = vpop.f32.mrb[5].mxu0  ;;  %v2695_v38 = vpop.f32.mrb[5].mxu1 }
 0x1fc   :  { %2883 = vst [vmem:[%s4112_s3 + $0x8] sm:$0xff] %v2609_v36  ;;  %2885 = vst [vmem:[%s4112_s3 + $0x18] sm:$0xff] %v2695_v38  ;;  %v2611_v15 = vpop.f32.mrb[6].mxu0  ;;  %v2697_v9 = vpop.f32.mrb[6].mxu1 }
 0x1fd   :  { %2886 = vst [vmem:[%s4112_s3 + $0x20] sm:$0xff] %v2611_v15  ;;  %2888 = vst [vmem:[%s4112_s3 + $0x30] sm:$0xff] %v2697_v9  ;;  %v2613_v39 = vpop.f32.mrb[7].mxu0  ;;  %v2699_v40 = vpop.f32.mrb[7].mxu1 }
 0x1fe   :  { %2887 = vst [vmem:[%s4112_s3 + $0x28] sm:$0xff] %v2613_v39  ;;  %2889 = vst [vmem:[%s4112_s3 + $0x38] sm:$0xff] %v2699_v40 }
 0x27a   :  { %v2779_v41 = vpop.f32.mrb[8].mxu0  ;;  %v2865_v50 = vpop.f32.mrb[8].mxu1 }
 0x27b   :  { %2890 = vst [vmem:[%s4113_s4] sm:$0xff] %v2779_v41  ;;  %2892 = vst [vmem:[%s4113_s4 + $0x10] sm:$0xff] %v2865_v50  ;;  %v2781_v42 = vpop.f32.mrb[9].mxu0  ;;  %v2867_v37 = vpop.f32.mrb[9].mxu1 }
 0x27c   :  { %2891 = vst [vmem:[%s4113_s4 + $0x8] sm:$0xff] %v2781_v42  ;;  %2893 = vst [vmem:[%s4113_s4 + $0x18] sm:$0xff] %v2867_v37  ;;  %v2783_v43 = vpop.f32.mrb[10].mxu0  ;;  %v2869_v44 = vpop.f32.mrb[10].mxu1 }
 0x27d   :  { %2894 = vst [vmem:[%s4113_s4 + $0x20] sm:$0xff] %v2783_v43  ;;  %2896 = vst [vmem:[%s4113_s4 + $0x30] sm:$0xff] %v2869_v44  ;;  %v2785_v45 = vpop.f32.mrb[11].mxu0  ;;  %v2871_v46 = vpop.f32.mrb[11].mxu1 }
 0x27e   :  { %2895 = vst [vmem:[%s4113_s4 + $0x28] sm:$0xff] %v2785_v45  ;;  %2897 = vst [vmem:[%s4113_s4 + $0x38] sm:$0xff] %v2871_v46 }
 0x27f   :  { %2910 = vsyncpa [#allocation3], 1 }
 0x280   :  { %2911 = vsyncpa [#allocation5], 1 }

// kernel: encoder_layer.5
= control target key start
LH: loop header
LB: loop body
LE: loop exit
PB: predicated region body
PF: predicated region fallthrough
CT: control target
= control target key end

     0   :  { %8 = vsyncpa [#allocation3], 0  ;;  %s11379_s0 = inlined_call_operand.vmem [shape: f32[16,512], index: 0, kind: input, shape index: {}]   ;;  %s11380_s1 = inlined_call_operand.vmem [shape: bf16[512,2048], index: 1, kind: input, shape index: {}]   ;;  %s11381_s2 = inlined_call_operand.hbm [shape: bf16[2048,512], index: 2, kind: input, shape index: {}]   ;;  %s11382_s3 = inlined_call_operand.hbm [shape: f32[16,512], index: 3, kind: output, shape index: {}]  }
   0x1   :  { %9 = vsyncpa [#allocation4], 0  ;;  %s9641_s12 = smov [#allocation2]   ;;  %s9593_s16 = scalar_lea.hbm %s11381_s2, 65536 }
   0x2   :  { %s19_s13 = sshll.u32 %s9641_s12, 4  ;;  %p9594_p0 = scmp.ne.s32.totalorder %s11381_s2, %s9593_s16  ;;  %s20_s13 = int_to_ptr.vmem [resolvable:$true] %s19_s13 }
   0x3   :  { %p9597_p1 = scmp.lt.u32.totalorder %s9593_s16, %s11381_s2 }
   0x5   :  { %p9599_p2 = pnand %p9597_p1, %p9594_p0 }
   0x7   :  { %9602 = shalt.err (!%p9599_p2)
}
   0x8   :  { %s9603_s21 = scalar_lea.vmem %s20_s13, 65536  ;;  %p9608_p4 = scmp.lt.s32.totalorder %s20_s13, %s20_s13 }
   0x9   :  { %p9604_p3 = scmp.ne.s32.totalorder %s20_s13, %s9603_s21  ;;  %p9609_p5 = scmp.lt.s32.totalorder %s9603_s21, %s9603_s21 }
   0xb   :  { %p9610_p6 = por %p9609_p5, %p9608_p4 }
   0xd   :  { %p9611_p7 = pnand %p9610_p6, %p9604_p3 }
   0xf   :  { %9614 = shalt.err (!%p9611_p7)
}
  0x10   :  { %s9642_s22 = smov 256   ;;  %s9643_s23 = smov 16  }
  0x11   :  { %25 = dma.hbm_to_vmem [thread:$0]  %s11381_s2, 65536, %s20_s13, [#allocation3], %s9642_s22, %s9642_s22, %s9643_s23  }
  0x12   :  { %9637 = dma.done.wait [#allocation3], 65536  }
  0x13   :  { %9638 = vsyncadd [#allocation3], 4294901760  ;;  %v41_v0 = vld [vmem:[%s11380_s1] sm:$0xff]  ;;  %v42_v2 = vld [vmem:[%s11380_s1 + $0x8] sm:$0xff] }
  0x14   :  { %v49_v1 = vld [vmem:[%s11380_s1 + $0x40] sm:$0xff]  ;;  %v50_v4 = vld [vmem:[%s11380_s1 + $0x48] sm:$0xff] }
  0x15   :  { %v7688_v3 = vcombine.high %v41_v0, %v49_v1  ;;  %v7687_v5 = vcombine.low %v41_v0, %v49_v1  ;;  %v57_v6 = vld [vmem:[%s11380_s1 + $0x80] sm:$0xff]  ;;  %v7690_v8 = vcombine.high %v42_v2, %v50_v4  ;;  %v7689_v9 = vcombine.low %v42_v2, %v50_v4  ;;  %v58_v11 = vld [vmem:[%s11380_s1 + $0x88] sm:$0xff] }
  0x16   :  { %v65_v7 = vld [vmem:[%s11380_s1 + $0xc0] sm:$0xff]  ;;  %v66_v12 = vld [vmem:[%s11380_s1 + $0xc8] sm:$0xff] }
  0x17   :  { %v7704_v10 = vcombine.high %v57_v6, %v65_v7  ;;  %v73_v13 = vld [vmem:[%s11380_s1 + $0x100] sm:$0xff]  ;;  %3113 = vmatprep.subr.bf16.mxu0 %v7688_v3  ;;  %v7706_v14 = vcombine.high %v58_v11, %v66_v12  ;;  %v74_v16 = vld [vmem:[%s11380_s1 + $0x108] sm:$0xff]  ;;  %3199 = vmatprep.subr.bf16.mxu1 %v7690_v8  ;;  %v7703_v18 = vcombine.low %v57_v6, %v65_v7 }
  0x18   :  { %v81_v15 = vld [vmem:[%s11380_s1 + $0x140] sm:$0xff]  ;;  %v82_v17 = vld [vmem:[%s11380_s1 + $0x148] sm:$0xff]  ;;  %3114 = vmatpush1.bf16.msra.mxu0 %v7687_v5  ;;  %3200 = vmatpush1.bf16.msra.mxu1 %v7689_v9  ;;  %v7705_v19 = vcombine.low %v58_v11, %v66_v12 }
  0x19   :  { %3115 = vmatprep.subr.bf16.mxu0 %v7704_v10  ;;  %v7720_v20 = vcombine.high %v73_v13, %v81_v15  ;;  %3201 = vmatprep.subr.bf16.mxu1 %v7706_v14  ;;  %v7722_v21 = vcombine.high %v74_v16, %v82_v17  ;;  %v89_v22 = vld [vmem:[%s11380_s1 + $0x180] sm:$0xff]  ;;  %v90_v24 = vld [vmem:[%s11380_s1 + $0x188] sm:$0xff]  ;;  %v7719_v26 = vcombine.low %v73_v13, %v81_v15 }
  0x1a   :  { %v97_v23 = vld [vmem:[%s11380_s1 + $0x1c0] sm:$0xff]  ;;  %v98_v25 = vld [vmem:[%s11380_s1 + $0x1c8] sm:$0xff]  ;;  %v7721_v27 = vcombine.low %v74_v16, %v82_v17 }
  0x1b   :  { %v7736_v28 = vcombine.high %v89_v22, %v97_v23  ;;  %v7738_v29 = vcombine.high %v90_v24, %v98_v25  ;;  %v105_v30 = vld [vmem:[%s11380_s1 + $0x200] sm:$0xff]  ;;  %v106_v32 = vld [vmem:[%s11380_s1 + $0x208] sm:$0xff]  ;;  %v7735_v34 = vcombine.low %v89_v22, %v97_v23  ;;  %v7737_v35 = vcombine.low %v90_v24, %v98_v25 }
  0x1c   :  { %3116 = vmatpush1.bf16.msra.mxu0 %v7703_v18  ;;  %3202 = vmatpush1.bf16.msra.mxu1 %v7705_v19  ;;  %v113_v31 = vld [vmem:[%s11380_s1 + $0x240] sm:$0xff]  ;;  %v114_v33 = vld [vmem:[%s11380_s1 + $0x248] sm:$0xff] }
  0x1d   :  { %3117 = vmatprep.subr.bf16.mxu0 %v7720_v20  ;;  %3203 = vmatprep.subr.bf16.mxu1 %v7722_v21  ;;  %v7752_v36 = vcombine.high %v105_v30, %v113_v31  ;;  %v7754_v37 = vcombine.high %v106_v32, %v114_v33  ;;  %v121_v38 = vld [vmem:[%s11380_s1 + $0x280] sm:$0xff]  ;;  %v122_v40 = vld [vmem:[%s11380_s1 + $0x288] sm:$0xff]  ;;  %v7751_v42 = vcombine.low %v105_v30, %v113_v31 }
  0x1e   :  { %v129_v39 = vld [vmem:[%s11380_s1 + $0x2c0] sm:$0xff]  ;;  %v130_v41 = vld [vmem:[%s11380_s1 + $0x2c8] sm:$0xff]  ;;  %v7753_v43 = vcombine.low %v106_v32, %v114_v33 }
  0x1f   :  { %v7768_v44 = vcombine.high %v121_v38, %v129_v39  ;;  %v7770_v45 = vcombine.high %v122_v40, %v130_v41  ;;  %v137_v46 = vld [vmem:[%s11380_s1 + $0x300] sm:$0xff]  ;;  %v138_v48 = vld [vmem:[%s11380_s1 + $0x308] sm:$0xff]  ;;  %v7767_v50 = vcombine.low %v121_v38, %v129_v39  ;;  %v7769_v51 = vcombine.low %v122_v40, %v130_v41 }
  0x20   :  { %3118 = vmatpush1.bf16.msra.mxu0 %v7719_v26  ;;  %3204 = vmatpush1.bf16.msra.mxu1 %v7721_v27  ;;  %v145_v47 = vld [vmem:[%s11380_s1 + $0x340] sm:$0xff]  ;;  %v146_v49 = vld [vmem:[%s11380_s1 + $0x348] sm:$0xff] }
  0x21   :  { %3119 = vmatprep.subr.bf16.mxu0 %v7736_v28  ;;  %3205 = vmatprep.subr.bf16.mxu1 %v7738_v29  ;;  %v7784_v52 = vcombine.high %v137_v46, %v145_v47  ;;  %v30_v53 = vld [vmem:[%s11379_s0 + $0x8] sm:$0xff]  ;;  %v7786_v55 = vcombine.high %v138_v48, %v146_v49  ;;  %v153_v56 = vld [vmem:[%s11380_s1 + $0x380] sm:$0xff]  ;;  %v7783_v61 = vcombine.low %v137_v46, %v145_v47 }
  0x22   :  { %v34_v54 = vld [vmem:[%s11379_s0 + $0x28] sm:$0xff]  ;;  %v161_v57 = vld [vmem:[%s11380_s1 + $0x3c0] sm:$0xff]  ;;  %v7785_v62 = vcombine.low %v138_v48, %v146_v49 }
  0x23   :  { %v9775_v58 = vpack.c.bf16 %v34_v54, %v30_v53  ;;  %v154_v59 = vld [vmem:[%s11380_s1 + $0x388] sm:$0xff]  ;;  %v7800_v63 = vcombine.high %v153_v56, %v161_v57  ;;  %v169_v1 = vld [vmem:[%s11380_s1 + $0x400] sm:$0xff]  ;;  %v7799_v5 = vcombine.low %v153_v56, %v161_v57 }
  0x24   :  { %3120 = vmatpush1.bf16.msra.mxu0 %v7735_v34  ;;  %3206 = vmatpush1.bf16.msra.mxu1 %v7737_v35  ;;  %v162_v60 = vld [vmem:[%s11380_s1 + $0x3c8] sm:$0xff]  ;;  %v177_v2 = vld [vmem:[%s11380_s1 + $0x440] sm:$0xff] }
  0x25   :  { %3121 = vmatprep.subr.bf16.mxu0 %v7752_v36  ;;  %3207 = vmatprep.subr.bf16.mxu1 %v7754_v37  ;;  %v7802_v0 = vcombine.high %v154_v59, %v162_v60  ;;  %v170_v3 = vld [vmem:[%s11380_s1 + $0x408] sm:$0xff]  ;;  %v7801_v6 = vcombine.low %v154_v59, %v162_v60  ;;  %v7816_v7 = vcombine.high %v169_v1, %v177_v2  ;;  %v185_v9 = vld [vmem:[%s11380_s1 + $0x480] sm:$0xff] }
  0x26   :  { %3145 = vmatprep.mubr.bf16.mxu0 %v9775_v58  ;;  %3231 = vmatprep.mubr.bf16.mxu1 %v9775_v58  ;;  %v178_v4 = vld [vmem:[%s11380_s1 + $0x448] sm:$0xff]  ;;  %v193_v10 = vld [vmem:[%s11380_s1 + $0x4c0] sm:$0xff]  ;;  %v7815_v13 = vcombine.low %v169_v1, %v177_v2 }
  0x27   :  { %v7818_v8 = vcombine.high %v170_v3, %v178_v4  ;;  %v186_v11 = vld [vmem:[%s11380_s1 + $0x488] sm:$0xff]  ;;  %v7817_v14 = vcombine.low %v170_v3, %v178_v4  ;;  %v7832_v15 = vcombine.high %v185_v9, %v193_v10  ;;  %v201_v17 = vld [vmem:[%s11380_s1 + $0x500] sm:$0xff]  ;;  %v7831_v21 = vcombine.low %v185_v9, %v193_v10 }
  0x28   :  { %3122 = vmatpush1.bf16.msra.mxu0 %v7751_v42  ;;  %3208 = vmatpush1.bf16.msra.mxu1 %v7753_v43  ;;  %v194_v12 = vld [vmem:[%s11380_s1 + $0x4c8] sm:$0xff]  ;;  %v209_v18 = vld [vmem:[%s11380_s1 + $0x540] sm:$0xff] }
  0x29   :  { %3123 = vmatprep.subr.bf16.mxu0 %v7768_v44  ;;  %3209 = vmatprep.subr.bf16.mxu1 %v7770_v45  ;;  %v7834_v16 = vcombine.high %v186_v11, %v194_v12  ;;  %v202_v19 = vld [vmem:[%s11380_s1 + $0x508] sm:$0xff]  ;;  %v7833_v22 = vcombine.low %v186_v11, %v194_v12  ;;  %v7848_v23 = vcombine.high %v201_v17, %v209_v18  ;;  %v217_v25 = vld [vmem:[%s11380_s1 + $0x580] sm:$0xff] }
  0x2a   :  { %v210_v20 = vld [vmem:[%s11380_s1 + $0x548] sm:$0xff]  ;;  %v225_v26 = vld [vmem:[%s11380_s1 + $0x5c0] sm:$0xff]  ;;  %v7847_v29 = vcombine.low %v201_v17, %v209_v18  ;;  %v32_v17 = vld [vmem:[%s11379_s0 + $0x18] sm:$0xff] }
  0x2b   :  { %v7850_v24 = vcombine.high %v202_v19, %v210_v20  ;;  %v218_v27 = vld [vmem:[%s11380_s1 + $0x588] sm:$0xff]  ;;  %v7849_v30 = vcombine.low %v202_v19, %v210_v20  ;;  %v7864_v31 = vcombine.high %v217_v25, %v225_v26  ;;  %v233_v33 = vld [vmem:[%s11380_s1 + $0x600] sm:$0xff]  ;;  %v7863_v37 = vcombine.low %v217_v25, %v225_v26  ;;  %v36_v18 = vld [vmem:[%s11379_s0 + $0x38] sm:$0xff] }
  0x2c   :  { %3124 = vmatpush1.bf16.msra.mxu0 %v7767_v50  ;;  %3210 = vmatpush1.bf16.msra.mxu1 %v7769_v51  ;;  %v226_v28 = vld [vmem:[%s11380_s1 + $0x5c8] sm:$0xff]  ;;  %v241_v34 = vld [vmem:[%s11380_s1 + $0x640] sm:$0xff]  ;;  %v9925_v25 = vpack.c.bf16 %v36_v18, %v32_v17 }
  0x2d   :  { %3125 = vmatprep.subr.bf16.mxu0 %v7784_v52  ;;  %3211 = vmatprep.subr.bf16.mxu1 %v7786_v55  ;;  %v7866_v32 = vcombine.high %v218_v27, %v226_v28  ;;  %v234_v35 = vld [vmem:[%s11380_s1 + $0x608] sm:$0xff]  ;;  %v7865_v38 = vcombine.low %v218_v27, %v226_v28  ;;  %v7880_v39 = vcombine.high %v233_v33, %v241_v34  ;;  %v249_v41 = vld [vmem:[%s11380_s1 + $0x680] sm:$0xff] }
  0x2e   :  { %v242_v36 = vld [vmem:[%s11380_s1 + $0x648] sm:$0xff]  ;;  %v257_v42 = vld [vmem:[%s11380_s1 + $0x6c0] sm:$0xff]  ;;  %v7879_v45 = vcombine.low %v233_v33, %v241_v34 }
  0x2f   :  { %v7882_v40 = vcombine.high %v234_v35, %v242_v36  ;;  %v250_v43 = vld [vmem:[%s11380_s1 + $0x688] sm:$0xff]  ;;  %v7881_v46 = vcombine.low %v234_v35, %v242_v36  ;;  %v7896_v47 = vcombine.high %v249_v41, %v257_v42  ;;  %v265_v49 = vld [vmem:[%s11380_s1 + $0x700] sm:$0xff]  ;;  %v7895_v53 = vcombine.low %v249_v41, %v257_v42 }
  0x30   :  { %3126 = vmatpush1.bf16.msra.mxu0 %v7783_v61  ;;  %3212 = vmatpush1.bf16.msra.mxu1 %v7785_v62  ;;  %v258_v44 = vld [vmem:[%s11380_s1 + $0x6c8] sm:$0xff]  ;;  %v273_v50 = vld [vmem:[%s11380_s1 + $0x740] sm:$0xff] }
  0x31   :  { %3127 = vmatprep.subr.bf16.mxu0 %v7800_v63  ;;  %3213 = vmatprep.subr.bf16.mxu1 %v7802_v0  ;;  %v7898_v48 = vcombine.high %v250_v43, %v258_v44  ;;  %v266_v51 = vld [vmem:[%s11380_s1 + $0x708] sm:$0xff]  ;;  %v7897_v54 = vcombine.low %v250_v43, %v258_v44  ;;  %v7912_v55 = vcombine.high %v265_v49, %v273_v50  ;;  %v281_v57 = vld [vmem:[%s11380_s1 + $0x780] sm:$0xff] }
  0x32   :  { %v274_v52 = vld [vmem:[%s11380_s1 + $0x748] sm:$0xff]  ;;  %v289_v59 = vld [vmem:[%s11380_s1 + $0x7c0] sm:$0xff]  ;;  %v7911_v62 = vcombine.low %v265_v49, %v273_v50 }
  0x33   :  { %v7914_v56 = vcombine.high %v266_v51, %v274_v52  ;;  %v282_v60 = vld [vmem:[%s11380_s1 + $0x788] sm:$0xff]  ;;  %v7913_v63 = vcombine.low %v266_v51, %v274_v52  ;;  %v7928_v0 = vcombine.high %v281_v57, %v289_v59  ;;  %v297_v2 = vld [vmem:[%s11380_s1 + $0x800] sm:$0xff] }
  0x34   :  { %3128 = vmatpush1.bf16.msra.mxu0 %v7799_v5  ;;  %3214 = vmatpush1.bf16.msra.mxu1 %v7801_v6  ;;  %v290_v61 = vld [vmem:[%s11380_s1 + $0x7c8] sm:$0xff]  ;;  %v305_v3 = vld [vmem:[%s11380_s1 + $0x840] sm:$0xff]  ;;  %v7927_v6 = vcombine.low %v281_v57, %v289_v59 }
  0x35   :  { %3129 = vmatprep.subr.bf16.mxu0 %v7816_v7  ;;  %3215 = vmatprep.subr.bf16.mxu1 %v7818_v8  ;;  %v7930_v1 = vcombine.high %v282_v60, %v290_v61  ;;  %v298_v4 = vld [vmem:[%s11380_s1 + $0x808] sm:$0xff]  ;;  %v29_v7 = vld [vmem:[%s11379_s0] sm:$0xff]  ;;  %v7929_v9 = vcombine.low %v282_v60, %v290_v61  ;;  %v7944_v10 = vcombine.high %v297_v2, %v305_v3 }
  0x36   :  { %v306_v5 = vld [vmem:[%s11380_s1 + $0x848] sm:$0xff]  ;;  %v33_v8 = vld [vmem:[%s11379_s0 + $0x20] sm:$0xff]  ;;  %v7943_v19 = vcombine.low %v297_v2, %v305_v3 }
  0x37   :  { %v7946_v11 = vcombine.high %v298_v4, %v306_v5  ;;  %v313_v12 = vld [vmem:[%s11380_s1 + $0x880] sm:$0xff]  ;;  %v7945_v20 = vcombine.low %v298_v4, %v306_v5  ;;  %v330_v26 = vld [vmem:[%s11380_s1 + $0x908] sm:$0xff] }
  0x38   :  { %3130 = vmatpush1.bf16.msra.mxu0 %v7815_v13  ;;  %3216 = vmatpush1.bf16.msra.mxu1 %v7817_v14  ;;  %v321_v13 = vld [vmem:[%s11380_s1 + $0x8c0] sm:$0xff]  ;;  %v314_v14 = vld [vmem:[%s11380_s1 + $0x888] sm:$0xff] }
  0x39   :  { %3131 = vmatprep.subr.bf16.mxu0 %v7832_v15  ;;  %3217 = vmatprep.subr.bf16.mxu1 %v7834_v16  ;;  %v9908_v15 = vpack.c.bf16 %v33_v8, %v29_v7  ;;  %v322_v16 = vld [vmem:[%s11380_s1 + $0x8c8] sm:$0xff]  ;;  %v7959_v28 = vcombine.low %v313_v12, %v321_v13  ;;  %v425_v8 = vld [vmem:[%s11380_s1 + $0xc00] sm:$0xff] }
  0x3a   :  { %v338_v27 = vld [vmem:[%s11380_s1 + $0x948] sm:$0xff]  ;;  %v441_v17 = vld [vmem:[%s11380_s1 + $0xc80] sm:$0xff] }
  0x3b   :  { %v346_v33 = vld [vmem:[%s11380_s1 + $0x988] sm:$0xff]  ;;  %v7978_v34 = vcombine.high %v330_v26, %v338_v27  ;;  %v449_v18 = vld [vmem:[%s11380_s1 + $0xcc0] sm:$0xff] }
  0x3c   :  { %3132 = vmatpush1.bf16.msra.mxu0 %v7831_v21  ;;  %3218 = vmatpush1.bf16.msra.mxu1 %v7833_v22  ;;  %v7960_v21 = vcombine.high %v313_v12, %v321_v13  ;;  %v7962_v22 = vcombine.high %v314_v14, %v322_v16  ;;  %v354_v35 = vld [vmem:[%s11380_s1 + $0x9c8] sm:$0xff] }
  0x3d   :  { %3133 = vmatprep.subr.bf16.mxu0 %v7848_v23  ;;  %3219 = vmatprep.subr.bf16.mxu1 %v7850_v24  ;;  %v329_v23 = vld [vmem:[%s11380_s1 + $0x900] sm:$0xff]  ;;  %v362_v41 = vld [vmem:[%s11380_s1 + $0xa08] sm:$0xff]  ;;  %v7994_v42 = vcombine.high %v346_v33, %v354_v35 }
  0x3e   :  { %v337_v24 = vld [vmem:[%s11380_s1 + $0x940] sm:$0xff]  ;;  %v370_v43 = vld [vmem:[%s11380_s1 + $0xa48] sm:$0xff] }
  0x3f   :  { %v7975_v36 = vcombine.low %v329_v23, %v337_v24  ;;  %v378_v49 = vld [vmem:[%s11380_s1 + $0xa88] sm:$0xff]  ;;  %v8010_v50 = vcombine.high %v362_v41, %v370_v43 }
  0x40   :  { %3134 = vmatpush1.bf16.msra.mxu0 %v7847_v29  ;;  %3220 = vmatpush1.bf16.msra.mxu1 %v7849_v30  ;;  %v7961_v29 = vcombine.low %v314_v14, %v322_v16  ;;  %v7976_v30 = vcombine.high %v329_v23, %v337_v24  ;;  %v386_v51 = vld [vmem:[%s11380_s1 + $0xac8] sm:$0xff]  ;;  %v8088_v24 = vcombine.high %v441_v17, %v449_v18 }
  0x41   :  { %3135 = vmatprep.subr.bf16.mxu0 %v7864_v31  ;;  %3221 = vmatprep.subr.bf16.mxu1 %v7866_v32  ;;  %v345_v31 = vld [vmem:[%s11380_s1 + $0x980] sm:$0xff]  ;;  %v394_v57 = vld [vmem:[%s11380_s1 + $0xb08] sm:$0xff]  ;;  %v8026_v59 = vcombine.high %v378_v49, %v386_v51 }
  0x42   :  { %v353_v32 = vld [vmem:[%s11380_s1 + $0x9c0] sm:$0xff]  ;;  %v402_v60 = vld [vmem:[%s11380_s1 + $0xb48] sm:$0xff] }
  0x43   :  { %v7991_v44 = vcombine.low %v345_v31, %v353_v32  ;;  %v410_v2 = vld [vmem:[%s11380_s1 + $0xb88] sm:$0xff]  ;;  %v8042_v3 = vcombine.high %v394_v57, %v402_v60 }
  0x44   :  { %3136 = vmatpush1.bf16.msra.mxu0 %v7863_v37  ;;  %3222 = vmatpush1.bf16.msra.mxu1 %v7865_v38  ;;  %v7977_v37 = vcombine.low %v330_v26, %v338_v27  ;;  %v7992_v38 = vcombine.high %v345_v31, %v353_v32  ;;  %v418_v4 = vld [vmem:[%s11380_s1 + $0xbc8] sm:$0xff]  ;;  %v457_v26 = vld [vmem:[%s11380_s1 + $0xd00] sm:$0xff]  ;;  %v8087_v31 = vcombine.low %v441_v17, %v449_v18  ;;  %v35_v17 = vld [vmem:[%s11379_s0 + $0x30] sm:$0xff] }
  0x45   :  { %3137 = vmatprep.subr.bf16.mxu0 %v7880_v39  ;;  %3223 = vmatprep.subr.bf16.mxu1 %v7882_v40  ;;  %v361_v39 = vld [vmem:[%s11380_s1 + $0xa00] sm:$0xff]  ;;  %v434_v12 = vld [vmem:[%s11380_s1 + $0xc48] sm:$0xff]  ;;  %v8057_v14 = vcombine.low %v410_v2, %v418_v4  ;;  %v52_v18 = vld [vmem:[%s11380_s1 + $0x58] sm:$0xff] }
  0x46   :  { %v369_v40 = vld [vmem:[%s11380_s1 + $0xa40] sm:$0xff] }
  0x47   :  { %v8007_v52 = vcombine.low %v361_v39, %v369_v40  ;;  %v465_v27 = vld [vmem:[%s11380_s1 + $0xd40] sm:$0xff] }
  0x48   :  { %3138 = vmatpush1.bf16.msra.mxu0 %v7879_v45  ;;  %3224 = vmatpush1.bf16.msra.mxu1 %v7881_v46  ;;  %v7993_v45 = vcombine.low %v346_v33, %v354_v35  ;;  %v8008_v46 = vcombine.high %v361_v39, %v369_v40  ;;  %v8104_v33 = vcombine.high %v457_v26, %v465_v27  ;;  %v481_v35 = vld [vmem:[%s11380_s1 + $0xdc0] sm:$0xff] }
  0x49   :  { %3139 = vmatprep.subr.bf16.mxu0 %v7896_v47  ;;  %3225 = vmatprep.subr.bf16.mxu1 %v7898_v48  ;;  %v377_v47 = vld [vmem:[%s11380_s1 + $0xa80] sm:$0xff]  ;;  %v8103_v39 = vcombine.low %v457_v26, %v465_v27  ;;  %v68_v27 = vld [vmem:[%s11380_s1 + $0xd8] sm:$0xff] }
  0x4a   :  { %v385_v48 = vld [vmem:[%s11380_s1 + $0xac0] sm:$0xff] }
  0x4b   :  { %v8023_v61 = vcombine.low %v377_v47, %v385_v48 }
  0x4c   :  { %3140 = vmatpush1.bf16.msra.mxu0 %v7895_v53  ;;  %3226 = vmatpush1.bf16.msra.mxu1 %v7897_v54  ;;  %v8009_v53 = vcombine.low %v362_v41, %v370_v43  ;;  %v8024_v54 = vcombine.high %v377_v47, %v385_v48  ;;  %v497_v43 = vld [vmem:[%s11380_s1 + $0xe40] sm:$0xff] }
  0x4d   :  { %3141 = vmatprep.subr.bf16.mxu0 %v7912_v55  ;;  %3227 = vmatprep.subr.bf16.mxu1 %v7914_v56  ;;  %v393_v55 = vld [vmem:[%s11380_s1 + $0xb00] sm:$0xff] }
  0x4e   :  { %v401_v56 = vld [vmem:[%s11380_s1 + $0xb40] sm:$0xff] }
  0x4f   :  { %v8039_v5 = vcombine.low %v393_v55, %v401_v56 }
  0x50   :  { %3142 = vmatpush1.bf16.msra.mxu0 %v7911_v62  ;;  %3228 = vmatpush1.bf16.msra.mxu1 %v7913_v63  ;;  %v8025_v62 = vcombine.low %v378_v49, %v386_v51  ;;  %v8040_v63 = vcombine.high %v393_v55, %v401_v56  ;;  %v513_v51 = vld [vmem:[%s11380_s1 + $0xec0] sm:$0xff] }
  0x51   :  { %3143 = vmatprep.subr.bf16.mxu0 %v7928_v0  ;;  %3229 = vmatprep.subr.bf16.mxu1 %v7930_v1  ;;  %v409_v0 = vld [vmem:[%s11380_s1 + $0xb80] sm:$0xff] }
  0x52   :  { %v417_v1 = vld [vmem:[%s11380_s1 + $0xbc0] sm:$0xff] }
  0x53   :  { %v8056_v7 = vcombine.high %v409_v0, %v417_v1  ;;  %v8055_v13 = vcombine.low %v409_v0, %v417_v1 }
  0x54   :  { %3144 = vmatpush1.bf16.msra.mxu0 %v7927_v6  ;;  %3230 = vmatpush1.bf16.msra.mxu1 %v7929_v9  ;;  %v8041_v6 = vcombine.low %v394_v57, %v402_v60  ;;  %v433_v9 = vld [vmem:[%s11380_s1 + $0xc40] sm:$0xff] }
  0x55   :  { %3156 = vmatprep.subr.bf16.mxu0 %v7944_v10  ;;  %3242 = vmatprep.subr.bf16.mxu1 %v7946_v11  ;;  %v426_v10 = vld [vmem:[%s11380_s1 + $0xc08] sm:$0xff]  ;;  %v8058_v11 = vcombine.high %v410_v2, %v418_v4  ;;  %v8072_v16 = vcombine.high %v425_v8, %v433_v9  ;;  %v529_v60 = vld [vmem:[%s11380_s1 + $0xf40] sm:$0xff] }
  0x56   :  { %v8073_v23 = vcombine.low %v426_v10, %v434_v12  ;;  %v545_v4 = vld [vmem:[%s11380_s1 + $0xfc0] sm:$0xff] }
  0x57   :  { %3146 = vmatmul.mubr.bf16.vlgmr.msra.gmra.mrb[0].mxu0 %v9908_v15  ;;  %3232 = vmatmul.mubr.bf16.vlgmr.msra.gmra.mrb[0].mxu1 %v9908_v15 }
  0x58   :  { %3157 = vmatpush1.bf16.msra.mxu0 %v7943_v19  ;;  %3243 = vmatpush1.bf16.msra.mxu1 %v7945_v20  ;;  %v442_v19 = vld [vmem:[%s11380_s1 + $0xc88] sm:$0xff]  ;;  %v8074_v20 = vcombine.high %v426_v10, %v434_v12  ;;  %v51_v12 = vld [vmem:[%s11380_s1 + $0x50] sm:$0xff] }
  0x59   :  { %3158 = vmatprep.subr.bf16.mxu0 %v7960_v21  ;;  %3244 = vmatprep.subr.bf16.mxu1 %v7962_v22  ;;  %v450_v21 = vld [vmem:[%s11380_s1 + $0xcc8] sm:$0xff]  ;;  %v8071_v22 = vcombine.low %v425_v8, %v433_v9 }
  0x5a   :  { %3188 = vmatprep.mubr.bf16.mxu0 %v9925_v25  ;;  %3274 = vmatprep.mubr.bf16.mxu1 %v9925_v25  ;;  %v8089_v32 = vcombine.low %v442_v19, %v450_v21 }
  0x5c   :  { %3159 = vmatpush1.bf16.msra.mxu0 %v7959_v28  ;;  %3245 = vmatpush1.bf16.msra.mxu1 %v7961_v29  ;;  %v458_v28 = vld [vmem:[%s11380_s1 + $0xd08] sm:$0xff]  ;;  %v8090_v29 = vcombine.high %v442_v19, %v450_v21 }
  0x5d   :  { %3160 = vmatprep.subr.bf16.mxu0 %v7976_v30  ;;  %3246 = vmatprep.subr.bf16.mxu1 %v7978_v34  ;;  %v466_v30 = vld [vmem:[%s11380_s1 + $0xd48] sm:$0xff]  ;;  %v473_v34 = vld [vmem:[%s11380_s1 + $0xd80] sm:$0xff] }
  0x5e   :  { %v8105_v40 = vcombine.low %v458_v28, %v466_v30  ;;  %v8120_v41 = vcombine.high %v473_v34, %v481_v35  ;;  %v8119_v47 = vcombine.low %v473_v34, %v481_v35  ;;  %v76_v34 = vld [vmem:[%s11380_s1 + $0x118] sm:$0xff] }
  0x60   :  { %3161 = vmatpush1.bf16.msra.mxu0 %v7975_v36  ;;  %3247 = vmatpush1.bf16.msra.mxu1 %v7977_v37  ;;  %v474_v36 = vld [vmem:[%s11380_s1 + $0xd88] sm:$0xff]  ;;  %v8106_v37 = vcombine.high %v458_v28, %v466_v30 }
  0x61   :  { %3162 = vmatprep.subr.bf16.mxu0 %v7992_v38  ;;  %3248 = vmatprep.subr.bf16.mxu1 %v7994_v42  ;;  %v482_v38 = vld [vmem:[%s11380_s1 + $0xdc8] sm:$0xff]  ;;  %v489_v42 = vld [vmem:[%s11380_s1 + $0xe00] sm:$0xff] }
  0x62   :  { %v8121_v48 = vcombine.low %v474_v36, %v482_v38  ;;  %v8136_v49 = vcombine.high %v489_v42, %v497_v43  ;;  %v8135_v55 = vcombine.low %v489_v42, %v497_v43  ;;  %v92_v42 = vld [vmem:[%s11380_s1 + $0x198] sm:$0xff] }
  0x64   :  { %3163 = vmatpush1.bf16.msra.mxu0 %v7991_v44  ;;  %3249 = vmatpush1.bf16.msra.mxu1 %v7993_v45  ;;  %v490_v44 = vld [vmem:[%s11380_s1 + $0xe08] sm:$0xff]  ;;  %v8122_v45 = vcombine.high %v474_v36, %v482_v38  ;;  %v84_v36 = vld [vmem:[%s11380_s1 + $0x158] sm:$0xff] }
  0x65   :  { %3164 = vmatprep.subr.bf16.mxu0 %v8008_v46  ;;  %3250 = vmatprep.subr.bf16.mxu1 %v8010_v50  ;;  %v498_v46 = vld [vmem:[%s11380_s1 + $0xe48] sm:$0xff]  ;;  %v505_v50 = vld [vmem:[%s11380_s1 + $0xe80] sm:$0xff]  ;;  %v7726_v43 = vcombine.high %v76_v34, %v84_v36 }
  0x66   :  { %v8137_v56 = vcombine.low %v490_v44, %v498_v46  ;;  %v8152_v57 = vcombine.high %v505_v50, %v513_v51  ;;  %v8151_v0 = vcombine.low %v505_v50, %v513_v51  ;;  %v108_v50 = vld [vmem:[%s11380_s1 + $0x218] sm:$0xff] }
  0x68   :  { %3165 = vmatpush1.bf16.msra.mxu0 %v8007_v52  ;;  %3251 = vmatpush1.bf16.msra.mxu1 %v8009_v53  ;;  %v506_v52 = vld [vmem:[%s11380_s1 + $0xe88] sm:$0xff]  ;;  %v8138_v53 = vcombine.high %v490_v44, %v498_v46  ;;  %v100_v44 = vld [vmem:[%s11380_s1 + $0x1d8] sm:$0xff]  ;;  %v7725_v46 = vcombine.low %v76_v34, %v84_v36  ;;  %v203_v36 = vld [vmem:[%s11380_s1 + $0x510] sm:$0xff] }
  0x69   :  { %3166 = vmatprep.subr.bf16.mxu0 %v8024_v54  ;;  %3252 = vmatprep.subr.bf16.mxu1 %v8026_v59  ;;  %v514_v54 = vld [vmem:[%s11380_s1 + $0xec8] sm:$0xff]  ;;  %v521_v59 = vld [vmem:[%s11380_s1 + $0xf00] sm:$0xff]  ;;  %v7742_v51 = vcombine.high %v92_v42, %v100_v44 }
  0x6a   :  { %v8153_v1 = vcombine.low %v506_v52, %v514_v54  ;;  %v8168_v2 = vcombine.high %v521_v59, %v529_v60  ;;  %v8167_v8 = vcombine.low %v521_v59, %v529_v60  ;;  %v124_v59 = vld [vmem:[%s11380_s1 + $0x298] sm:$0xff] }
  0x6c   :  { %3167 = vmatpush1.bf16.msra.mxu0 %v8023_v61  ;;  %3253 = vmatpush1.bf16.msra.mxu1 %v8025_v62  ;;  %v522_v61 = vld [vmem:[%s11380_s1 + $0xf08] sm:$0xff]  ;;  %v8154_v62 = vcombine.high %v506_v52, %v514_v54  ;;  %v116_v52 = vld [vmem:[%s11380_s1 + $0x258] sm:$0xff]  ;;  %v7741_v54 = vcombine.low %v92_v42, %v100_v44  ;;  %v219_v44 = vld [vmem:[%s11380_s1 + $0x590] sm:$0xff] }
  0x6d   :  { %3168 = vmatprep.subr.bf16.mxu0 %v8040_v63  ;;  %3254 = vmatprep.subr.bf16.mxu1 %v8042_v3  ;;  %v530_v63 = vld [vmem:[%s11380_s1 + $0xf48] sm:$0xff]  ;;  %v537_v3 = vld [vmem:[%s11380_s1 + $0xf80] sm:$0xff]  ;;  %v7758_v60 = vcombine.high %v108_v50, %v116_v52 }
  0x6e   :  { %v8169_v9 = vcombine.low %v522_v61, %v530_v63  ;;  %v8184_v10 = vcombine.high %v537_v3, %v545_v4  ;;  %v8183_v19 = vcombine.low %v537_v3, %v545_v4  ;;  %v140_v3 = vld [vmem:[%s11380_s1 + $0x318] sm:$0xff] }
  0x70   :  { %3169 = vmatpush1.bf16.msra.mxu0 %v8039_v5  ;;  %3255 = vmatpush1.bf16.msra.mxu1 %v8041_v6  ;;  %v538_v5 = vld [vmem:[%s11380_s1 + $0xf88] sm:$0xff]  ;;  %v8170_v6 = vcombine.high %v522_v61, %v530_v63  ;;  %v132_v61 = vld [vmem:[%s11380_s1 + $0x2d8] sm:$0xff]  ;;  %v7757_v63 = vcombine.low %v108_v50, %v116_v52  ;;  %v235_v52 = vld [vmem:[%s11380_s1 + $0x610] sm:$0xff] }
  0x71   :  { %3170 = vmatprep.subr.bf16.mxu0 %v8056_v7  ;;  %3256 = vmatprep.subr.bf16.mxu1 %v8058_v11  ;;  %v546_v7 = vld [vmem:[%s11380_s1 + $0xfc8] sm:$0xff]  ;;  %v43_v11 = vld [vmem:[%s11380_s1 + $0x10] sm:$0xff]  ;;  %v7774_v4 = vcombine.high %v124_v59, %v132_v61 }
  0x72   :  { %v7692_v21 = vcombine.high %v43_v11, %v51_v12 }
  0x74   :  { %3171 = vmatpush1.bf16.msra.mxu0 %v8055_v13  ;;  %3257 = vmatpush1.bf16.msra.mxu1 %v8057_v14  ;;  %v44_v13 = vld [vmem:[%s11380_s1 + $0x18] sm:$0xff]  ;;  %v8186_v14 = vcombine.high %v538_v5, %v546_v7 }
  0x75   :  { %3172 = vmatprep.subr.bf16.mxu0 %v8072_v16  ;;  %3258 = vmatprep.subr.bf16.mxu1 %v8074_v20  ;;  %v31_v16 = vld [vmem:[%s11379_s0 + $0x10] sm:$0xff]  ;;  %v8185_v20 = vcombine.low %v538_v5, %v546_v7  ;;  %v7694_v26 = vcombine.high %v44_v13, %v52_v18  ;;  %v7693_v30 = vcombine.low %v44_v13, %v52_v18  ;;  %v148_v5 = vld [vmem:[%s11380_s1 + $0x358] sm:$0xff] }
  0x76   :  { %v10123_v28 = vpack.c.bf16 %v35_v17, %v31_v16  ;;  %v7773_v7 = vcombine.low %v124_v59, %v132_v61  ;;  %v164_v13 = vld [vmem:[%s11380_s1 + $0x3d8] sm:$0xff]  ;;  %v7789_v16 = vcombine.low %v140_v3, %v148_v5  ;;  %v171_v18 = vld [vmem:[%s11380_s1 + $0x410] sm:$0xff] }
  0x77   :  { %v251_v61 = vld [vmem:[%s11380_s1 + $0x690] sm:$0xff] }
  0x78   :  { %3173 = vmatpush1.bf16.msra.mxu0 %v8071_v22  ;;  %3259 = vmatpush1.bf16.msra.mxu1 %v8073_v23  ;;  %v59_v22 = vld [vmem:[%s11380_s1 + $0x90] sm:$0xff] }
  0x79   :  { %3174 = vmatprep.subr.bf16.mxu0 %v8088_v24  ;;  %3260 = vmatprep.subr.bf16.mxu1 %v8090_v29  ;;  %v67_v23 = vld [vmem:[%s11380_s1 + $0xd0] sm:$0xff]  ;;  %v60_v24 = vld [vmem:[%s11380_s1 + $0x98] sm:$0xff]  ;;  %v7691_v29 = vcombine.low %v43_v11, %v51_v12  ;;  %v7790_v12 = vcombine.high %v140_v3, %v148_v5 }
  0x7a   :  { %v7710_v35 = vcombine.high %v60_v24, %v68_v27  ;;  %v7709_v38 = vcombine.low %v60_v24, %v68_v27  ;;  %v156_v11 = vld [vmem:[%s11380_s1 + $0x398] sm:$0xff]  ;;  %v187_v27 = vld [vmem:[%s11380_s1 + $0x490] sm:$0xff] }
  0x7b   :  { %v7805_v24 = vcombine.low %v156_v11, %v164_v13  ;;  %v267_v5 = vld [vmem:[%s11380_s1 + $0x710] sm:$0xff] }
  0x7c   :  { %3175 = vmatpush1.bf16.msra.mxu0 %v8087_v31  ;;  %3261 = vmatpush1.bf16.msra.mxu1 %v8089_v32  ;;  %v7708_v31 = vcombine.high %v59_v22, %v67_v23  ;;  %v75_v32 = vld [vmem:[%s11380_s1 + $0x110] sm:$0xff] }
  0x7d   :  { %3176 = vmatprep.subr.bf16.mxu0 %v8104_v33  ;;  %3262 = vmatprep.subr.bf16.mxu1 %v8106_v37  ;;  %v83_v33 = vld [vmem:[%s11380_s1 + $0x150] sm:$0xff]  ;;  %v7707_v37 = vcombine.low %v59_v22, %v67_v23  ;;  %v180_v22 = vld [vmem:[%s11380_s1 + $0x458] sm:$0xff] }
  0x80   :  { %3177 = vmatpush1.bf16.msra.mxu0 %v8103_v39  ;;  %3263 = vmatpush1.bf16.msra.mxu1 %v8105_v40  ;;  %v7724_v39 = vcombine.high %v75_v32, %v83_v33  ;;  %v91_v40 = vld [vmem:[%s11380_s1 + $0x190] sm:$0xff] }
  0x81   :  { %3178 = vmatprep.subr.bf16.mxu0 %v8120_v41  ;;  %3264 = vmatprep.subr.bf16.mxu1 %v8122_v45  ;;  %v99_v41 = vld [vmem:[%s11380_s1 + $0x1d0] sm:$0xff]  ;;  %v7723_v45 = vcombine.low %v75_v32, %v83_v33  ;;  %v196_v32 = vld [vmem:[%s11380_s1 + $0x4d8] sm:$0xff] }
  0x84   :  { %3179 = vmatpush1.bf16.msra.mxu0 %v8119_v47  ;;  %3265 = vmatpush1.bf16.msra.mxu1 %v8121_v48  ;;  %v7740_v47 = vcombine.high %v91_v40, %v99_v41  ;;  %v107_v48 = vld [vmem:[%s11380_s1 + $0x210] sm:$0xff] }
  0x85   :  { %3180 = vmatprep.subr.bf16.mxu0 %v8136_v49  ;;  %3266 = vmatprep.subr.bf16.mxu1 %v8138_v53  ;;  %v115_v49 = vld [vmem:[%s11380_s1 + $0x250] sm:$0xff]  ;;  %v7739_v53 = vcombine.low %v91_v40, %v99_v41  ;;  %v212_v40 = vld [vmem:[%s11380_s1 + $0x558] sm:$0xff] }
  0x88   :  { %3181 = vmatpush1.bf16.msra.mxu0 %v8135_v55  ;;  %3267 = vmatpush1.bf16.msra.mxu1 %v8137_v56  ;;  %v7756_v55 = vcombine.high %v107_v48, %v115_v49  ;;  %v123_v56 = vld [vmem:[%s11380_s1 + $0x290] sm:$0xff] }
  0x89   :  { %3182 = vmatprep.subr.bf16.mxu0 %v8152_v57  ;;  %3268 = vmatprep.subr.bf16.mxu1 %v8154_v62  ;;  %v131_v57 = vld [vmem:[%s11380_s1 + $0x2d0] sm:$0xff]  ;;  %v7755_v62 = vcombine.low %v107_v48, %v115_v49  ;;  %v228_v48 = vld [vmem:[%s11380_s1 + $0x5d8] sm:$0xff] }
  0x8c   :  { %3183 = vmatpush1.bf16.msra.mxu0 %v8151_v0  ;;  %3269 = vmatpush1.bf16.msra.mxu1 %v8153_v1  ;;  %v7772_v0 = vcombine.high %v123_v56, %v131_v57  ;;  %v139_v1 = vld [vmem:[%s11380_s1 + $0x310] sm:$0xff] }
  0x8d   :  { %3184 = vmatprep.subr.bf16.mxu0 %v8168_v2  ;;  %3270 = vmatprep.subr.bf16.mxu1 %v8170_v6  ;;  %v147_v2 = vld [vmem:[%s11380_s1 + $0x350] sm:$0xff]  ;;  %v7771_v6 = vcombine.low %v123_v56, %v131_v57  ;;  %v244_v56 = vld [vmem:[%s11380_s1 + $0x658] sm:$0xff] }
  0x90   :  { %3185 = vmatpush1.bf16.msra.mxu0 %v8167_v8  ;;  %3271 = vmatpush1.bf16.msra.mxu1 %v8169_v9  ;;  %v7788_v8 = vcombine.high %v139_v1, %v147_v2  ;;  %v155_v9 = vld [vmem:[%s11380_s1 + $0x390] sm:$0xff] }
  0x91   :  { %3186 = vmatprep.subr.bf16.mxu0 %v8184_v10  ;;  %3272 = vmatprep.subr.bf16.mxu1 %v8186_v14  ;;  %v163_v10 = vld [vmem:[%s11380_s1 + $0x3d0] sm:$0xff]  ;;  %v7787_v14 = vcombine.low %v139_v1, %v147_v2  ;;  %v260_v1 = vld [vmem:[%s11380_s1 + $0x6d8] sm:$0xff] }
  0x92   :  { %v7804_v17 = vcombine.high %v155_v9, %v163_v10  ;;  %v7803_v23 = vcombine.low %v155_v9, %v163_v10  ;;  %v276_v9 = vld [vmem:[%s11380_s1 + $0x758] sm:$0xff] }
  0x94   :  { %3187 = vmatpush1.bf16.msra.mxu0 %v8183_v19  ;;  %3273 = vmatpush1.bf16.msra.mxu1 %v8185_v20  ;;  %v179_v19 = vld [vmem:[%s11380_s1 + $0x450] sm:$0xff]  ;;  %v172_v20 = vld [vmem:[%s11380_s1 + $0x418] sm:$0xff] }
  0x95   :  { %3285 = vmatprep.subr.bf16.mxu0 %v7692_v21  ;;  %3371 = vmatprep.subr.bf16.mxu1 %v7694_v26  ;;  %v7806_v21 = vcombine.high %v156_v11, %v164_v13  ;;  %v7820_v26 = vcombine.high %v171_v18, %v179_v19  ;;  %v7819_v33 = vcombine.low %v171_v18, %v179_v19  ;;  %v283_v13 = vld [vmem:[%s11380_s1 + $0x790] sm:$0xff]  ;;  %v292_v18 = vld [vmem:[%s11380_s1 + $0x7d8] sm:$0xff] }
  0x96   :  { %v7821_v34 = vcombine.low %v172_v20, %v180_v22 }
  0x97   :  { %3189 = vmatmul.mubr.bf16.vlgmr.msra.gmra.mrb[0].mxu0 %v10123_v28  ;;  %3275 = vmatmul.mubr.bf16.vlgmr.msra.gmra.mrb[0].mxu1 %v10123_v28 }
  0x98   :  { %3286 = vmatpush1.bf16.msra.mxu0 %v7691_v29  ;;  %3372 = vmatpush1.bf16.msra.mxu1 %v7693_v30  ;;  %v195_v29 = vld [vmem:[%s11380_s1 + $0x4d0] sm:$0xff]  ;;  %v188_v30 = vld [vmem:[%s11380_s1 + $0x498] sm:$0xff] }
  0x99   :  { %3287 = vmatprep.subr.bf16.mxu0 %v7708_v31  ;;  %3373 = vmatprep.subr.bf16.mxu1 %v7710_v35  ;;  %v7822_v31 = vcombine.high %v172_v20, %v180_v22  ;;  %v7836_v35 = vcombine.high %v187_v27, %v195_v29  ;;  %v7835_v41 = vcombine.low %v187_v27, %v195_v29  ;;  %v299_v22 = vld [vmem:[%s11380_s1 + $0x810] sm:$0xff]  ;;  %v308_v27 = vld [vmem:[%s11380_s1 + $0x858] sm:$0xff] }
  0x9a   :  { %3317 = vmatprep.mubr.bf16.mxu0 %v9775_v58  ;;  %3403 = vmatprep.mubr.bf16.mxu1 %v9775_v58  ;;  %v7837_v42 = vcombine.low %v188_v30, %v196_v32 }
  0x9c   :  { %3288 = vmatpush1.bf16.msra.mxu0 %v7707_v37  ;;  %3374 = vmatpush1.bf16.msra.mxu1 %v7709_v38  ;;  %v211_v37 = vld [vmem:[%s11380_s1 + $0x550] sm:$0xff]  ;;  %v204_v38 = vld [vmem:[%s11380_s1 + $0x518] sm:$0xff] }
  0x9d   :  { %3289 = vmatprep.subr.bf16.mxu0 %v7724_v39  ;;  %3375 = vmatprep.subr.bf16.mxu1 %v7726_v43  ;;  %v7838_v39 = vcombine.high %v188_v30, %v196_v32  ;;  %v7852_v43 = vcombine.high %v203_v36, %v211_v37  ;;  %v7851_v49 = vcombine.low %v203_v36, %v211_v37  ;;  %v315_v32 = vld [vmem:[%s11380_s1 + $0x890] sm:$0xff]  ;;  %v324_v36 = vld [vmem:[%s11380_s1 + $0x8d8] sm:$0xff] }
  0x9e   :  { %v7853_v50 = vcombine.low %v204_v38, %v212_v40 }
  0xa0   :  { %3290 = vmatpush1.bf16.msra.mxu0 %v7723_v45  ;;  %3376 = vmatpush1.bf16.msra.mxu1 %v7725_v46  ;;  %v227_v45 = vld [vmem:[%s11380_s1 + $0x5d0] sm:$0xff]  ;;  %v220_v46 = vld [vmem:[%s11380_s1 + $0x598] sm:$0xff] }
  0xa1   :  { %3291 = vmatprep.subr.bf16.mxu0 %v7740_v47  ;;  %3377 = vmatprep.subr.bf16.mxu1 %v7742_v51  ;;  %v7854_v47 = vcombine.high %v204_v38, %v212_v40  ;;  %v7868_v51 = vcombine.high %v219_v44, %v227_v45  ;;  %v7867_v57 = vcombine.low %v219_v44, %v227_v45  ;;  %v331_v40 = vld [vmem:[%s11380_s1 + $0x910] sm:$0xff]  ;;  %v340_v44 = vld [vmem:[%s11380_s1 + $0x958] sm:$0xff] }
  0xa2   :  { %v7869_v59 = vcombine.low %v220_v46, %v228_v48 }
  0xa4   :  { %3292 = vmatpush1.bf16.msra.mxu0 %v7739_v53  ;;  %3378 = vmatpush1.bf16.msra.mxu1 %v7741_v54  ;;  %v243_v53 = vld [vmem:[%s11380_s1 + $0x650] sm:$0xff]  ;;  %v236_v54 = vld [vmem:[%s11380_s1 + $0x618] sm:$0xff] }
  0xa5   :  { %3293 = vmatprep.subr.bf16.mxu0 %v7756_v55  ;;  %3379 = vmatprep.subr.bf16.mxu1 %v7758_v60  ;;  %v7870_v55 = vcombine.high %v220_v46, %v228_v48  ;;  %v7884_v60 = vcombine.high %v235_v52, %v243_v53  ;;  %v7883_v2 = vcombine.low %v235_v52, %v243_v53  ;;  %v347_v48 = vld [vmem:[%s11380_s1 + $0x990] sm:$0xff]  ;;  %v356_v52 = vld [vmem:[%s11380_s1 + $0x9d8] sm:$0xff] }
  0xa6   :  { %v7885_v3 = vcombine.low %v236_v54, %v244_v56 }
  0xa8   :  { %3294 = vmatpush1.bf16.msra.mxu0 %v7755_v62  ;;  %3380 = vmatpush1.bf16.msra.mxu1 %v7757_v63  ;;  %v259_v62 = vld [vmem:[%s11380_s1 + $0x6d0] sm:$0xff]  ;;  %v252_v63 = vld [vmem:[%s11380_s1 + $0x698] sm:$0xff] }
  0xa9   :  { %3295 = vmatprep.subr.bf16.mxu0 %v7772_v0  ;;  %3381 = vmatprep.subr.bf16.mxu1 %v7774_v4  ;;  %v7886_v0 = vcombine.high %v236_v54, %v244_v56  ;;  %v7900_v4 = vcombine.high %v251_v61, %v259_v62  ;;  %v7899_v10 = vcombine.low %v251_v61, %v259_v62  ;;  %v363_v56 = vld [vmem:[%s11380_s1 + $0xa10] sm:$0xff]  ;;  %v372_v61 = vld [vmem:[%s11380_s1 + $0xa58] sm:$0xff] }
  0xaa   :  { %v7901_v11 = vcombine.low %v252_v63, %v260_v1 }
  0xac   :  { %3296 = vmatpush1.bf16.msra.mxu0 %v7771_v6  ;;  %3382 = vmatpush1.bf16.msra.mxu1 %v7773_v7  ;;  %v275_v6 = vld [vmem:[%s11380_s1 + $0x750] sm:$0xff]  ;;  %v268_v7 = vld [vmem:[%s11380_s1 + $0x718] sm:$0xff] }
  0xad   :  { %3297 = vmatprep.subr.bf16.mxu0 %v7788_v8  ;;  %3383 = vmatprep.subr.bf16.mxu1 %v7790_v12  ;;  %v7902_v8 = vcombine.high %v252_v63, %v260_v1  ;;  %v7916_v12 = vcombine.high %v267_v5, %v275_v6  ;;  %v7915_v19 = vcombine.low %v267_v5, %v275_v6  ;;  %v379_v1 = vld [vmem:[%s11380_s1 + $0xa90] sm:$0xff]  ;;  %v388_v5 = vld [vmem:[%s11380_s1 + $0xad8] sm:$0xff] }
  0xae   :  { %v7917_v20 = vcombine.low %v268_v7, %v276_v9 }
  0xb0   :  { %3298 = vmatpush1.bf16.msra.mxu0 %v7787_v14  ;;  %3384 = vmatpush1.bf16.msra.mxu1 %v7789_v16  ;;  %v291_v14 = vld [vmem:[%s11380_s1 + $0x7d0] sm:$0xff]  ;;  %v284_v16 = vld [vmem:[%s11380_s1 + $0x798] sm:$0xff] }
  0xb1   :  { %3299 = vmatprep.subr.bf16.mxu0 %v7804_v17  ;;  %3385 = vmatprep.subr.bf16.mxu1 %v7806_v21  ;;  %v7918_v17 = vcombine.high %v268_v7, %v276_v9  ;;  %v7932_v21 = vcombine.high %v283_v13, %v291_v14  ;;  %v7931_v29 = vcombine.low %v283_v13, %v291_v14  ;;  %v395_v9 = vld [vmem:[%s11380_s1 + $0xb10] sm:$0xff]  ;;  %v404_v13 = vld [vmem:[%s11380_s1 + $0xb58] sm:$0xff] }
  0xb2   :  { %v7933_v30 = vcombine.low %v284_v16, %v292_v18 }
  0xb4   :  { %3300 = vmatpush1.bf16.msra.mxu0 %v7803_v23  ;;  %3386 = vmatpush1.bf16.msra.mxu1 %v7805_v24  ;;  %v307_v23 = vld [vmem:[%s11380_s1 + $0x850] sm:$0xff]  ;;  %v300_v24 = vld [vmem:[%s11380_s1 + $0x818] sm:$0xff] }
  0xb5   :  { %3301 = vmatprep.subr.bf16.mxu0 %v7820_v26  ;;  %3387 = vmatprep.subr.bf16.mxu1 %v7822_v31  ;;  %v7934_v26 = vcombine.high %v284_v16, %v292_v18  ;;  %v7948_v31 = vcombine.high %v299_v22, %v307_v23  ;;  %v7947_v37 = vcombine.low %v299_v22, %v307_v23  ;;  %v411_v18 = vld [vmem:[%s11380_s1 + $0xb90] sm:$0xff]  ;;  %v420_v22 = vld [vmem:[%s11380_s1 + $0xbd8] sm:$0xff] }
  0xb6   :  { %v7949_v38 = vcombine.low %v300_v24, %v308_v27 }
  0xb8   :  { %3302 = vmatpush1.bf16.msra.mxu0 %v7819_v33  ;;  %3388 = vmatpush1.bf16.msra.mxu1 %v7821_v34  ;;  %v323_v33 = vld [vmem:[%s11380_s1 + $0x8d0] sm:$0xff]  ;;  %v316_v34 = vld [vmem:[%s11380_s1 + $0x898] sm:$0xff] }
  0xb9   :  { %3303 = vmatprep.subr.bf16.mxu0 %v7836_v35  ;;  %3389 = vmatprep.subr.bf16.mxu1 %v7838_v39  ;;  %v7950_v35 = vcombine.high %v300_v24, %v308_v27  ;;  %v7964_v39 = vcombine.high %v315_v32, %v323_v33  ;;  %v7963_v45 = vcombine.low %v315_v32, %v323_v33  ;;  %v427_v27 = vld [vmem:[%s11380_s1 + $0xc10] sm:$0xff]  ;;  %v436_v32 = vld [vmem:[%s11380_s1 + $0xc58] sm:$0xff] }
  0xba   :  { %v7965_v46 = vcombine.low %v316_v34, %v324_v36 }
  0xbc   :  { %3304 = vmatpush1.bf16.msra.mxu0 %v7835_v41  ;;  %3390 = vmatpush1.bf16.msra.mxu1 %v7837_v42  ;;  %v339_v41 = vld [vmem:[%s11380_s1 + $0x950] sm:$0xff]  ;;  %v332_v42 = vld [vmem:[%s11380_s1 + $0x918] sm:$0xff] }
  0xbd   :  { %3305 = vmatprep.subr.bf16.mxu0 %v7852_v43  ;;  %3391 = vmatprep.subr.bf16.mxu1 %v7854_v47  ;;  %v7966_v43 = vcombine.high %v316_v34, %v324_v36  ;;  %v7980_v47 = vcombine.high %v331_v40, %v339_v41  ;;  %v7979_v53 = vcombine.low %v331_v40, %v339_v41  ;;  %v443_v36 = vld [vmem:[%s11380_s1 + $0xc90] sm:$0xff]  ;;  %v452_v40 = vld [vmem:[%s11380_s1 + $0xcd8] sm:$0xff] }
  0xbe   :  { %v7981_v54 = vcombine.low %v332_v42, %v340_v44 }
  0xc0   :  { %3306 = vmatpush1.bf16.msra.mxu0 %v7851_v49  ;;  %3392 = vmatpush1.bf16.msra.mxu1 %v7853_v50  ;;  %v355_v49 = vld [vmem:[%s11380_s1 + $0x9d0] sm:$0xff]  ;;  %v348_v50 = vld [vmem:[%s11380_s1 + $0x998] sm:$0xff] }
  0xc1   :  { %3307 = vmatprep.subr.bf16.mxu0 %v7868_v51  ;;  %3393 = vmatprep.subr.bf16.mxu1 %v7870_v55  ;;  %v7982_v51 = vcombine.high %v332_v42, %v340_v44  ;;  %v7996_v55 = vcombine.high %v347_v48, %v355_v49  ;;  %v7995_v62 = vcombine.low %v347_v48, %v355_v49  ;;  %v459_v44 = vld [vmem:[%s11380_s1 + $0xd10] sm:$0xff]  ;;  %v468_v48 = vld [vmem:[%s11380_s1 + $0xd58] sm:$0xff] }
  0xc2   :  { %v7997_v63 = vcombine.low %v348_v50, %v356_v52 }
  0xc4   :  { %3308 = vmatpush1.bf16.msra.mxu0 %v7867_v57  ;;  %3394 = vmatpush1.bf16.msra.mxu1 %v7869_v59  ;;  %v371_v57 = vld [vmem:[%s11380_s1 + $0xa50] sm:$0xff]  ;;  %v364_v59 = vld [vmem:[%s11380_s1 + $0xa18] sm:$0xff] }
  0xc5   :  { %3309 = vmatprep.subr.bf16.mxu0 %v7884_v60  ;;  %3395 = vmatprep.subr.bf16.mxu1 %v7886_v0  ;;  %v7998_v60 = vcombine.high %v348_v50, %v356_v52  ;;  %v8012_v0 = vcombine.high %v363_v56, %v371_v57  ;;  %v8011_v6 = vcombine.low %v363_v56, %v371_v57  ;;  %v475_v52 = vld [vmem:[%s11380_s1 + $0xd90] sm:$0xff]  ;;  %v484_v56 = vld [vmem:[%s11380_s1 + $0xdd8] sm:$0xff] }
  0xc6   :  { %v8013_v7 = vcombine.low %v364_v59, %v372_v61 }
  0xc8   :  { %3310 = vmatpush1.bf16.msra.mxu0 %v7883_v2  ;;  %3396 = vmatpush1.bf16.msra.mxu1 %v7885_v3  ;;  %v387_v2 = vld [vmem:[%s11380_s1 + $0xad0] sm:$0xff]  ;;  %v380_v3 = vld [vmem:[%s11380_s1 + $0xa98] sm:$0xff] }
  0xc9   :  { %3311 = vmatprep.subr.bf16.mxu0 %v7900_v4  ;;  %3397 = vmatprep.subr.bf16.mxu1 %v7902_v8  ;;  %v8014_v4 = vcombine.high %v364_v59, %v372_v61  ;;  %v8028_v8 = vcombine.high %v379_v1, %v387_v2  ;;  %v8027_v14 = vcombine.low %v379_v1, %v387_v2  ;;  %v491_v61 = vld [vmem:[%s11380_s1 + $0xe10] sm:$0xff]  ;;  %v500_v1 = vld [vmem:[%s11380_s1 + $0xe58] sm:$0xff] }
  0xca   :  { %v8029_v16 = vcombine.low %v380_v3, %v388_v5 }
  0xcc   :  { %3312 = vmatpush1.bf16.msra.mxu0 %v7899_v10  ;;  %3398 = vmatpush1.bf16.msra.mxu1 %v7901_v11  ;;  %v403_v10 = vld [vmem:[%s11380_s1 + $0xb50] sm:$0xff]  ;;  %v396_v11 = vld [vmem:[%s11380_s1 + $0xb18] sm:$0xff] }
  0xcd   :  { %3313 = vmatprep.subr.bf16.mxu0 %v7916_v12  ;;  %3399 = vmatprep.subr.bf16.mxu1 %v7918_v17  ;;  %v8030_v12 = vcombine.high %v380_v3, %v388_v5  ;;  %v8044_v17 = vcombine.high %v395_v9, %v403_v10  ;;  %v8043_v23 = vcombine.low %v395_v9, %v403_v10  ;;  %v507_v5 = vld [vmem:[%s11380_s1 + $0xe90] sm:$0xff]  ;;  %v516_v9 = vld [vmem:[%s11380_s1 + $0xed8] sm:$0xff] }
  0xce   :  { %v8045_v24 = vcombine.low %v396_v11, %v404_v13 }
  0xd0   :  { %3314 = vmatpush1.bf16.msra.mxu0 %v7915_v19  ;;  %3400 = vmatpush1.bf16.msra.mxu1 %v7917_v20  ;;  %v419_v19 = vld [vmem:[%s11380_s1 + $0xbd0] sm:$0xff]  ;;  %v412_v20 = vld [vmem:[%s11380_s1 + $0xb98] sm:$0xff] }
  0xd1   :  { %3315 = vmatprep.subr.bf16.mxu0 %v7932_v21  ;;  %3401 = vmatprep.subr.bf16.mxu1 %v7934_v26  ;;  %v8046_v21 = vcombine.high %v396_v11, %v404_v13  ;;  %v8060_v26 = vcombine.high %v411_v18, %v419_v19  ;;  %v8059_v33 = vcombine.low %v411_v18, %v419_v19  ;;  %v523_v13 = vld [vmem:[%s11380_s1 + $0xf10] sm:$0xff]  ;;  %v532_v18 = vld [vmem:[%s11380_s1 + $0xf58] sm:$0xff] }
  0xd2   :  { %v8061_v34 = vcombine.low %v412_v20, %v420_v22 }
  0xd4   :  { %3316 = vmatpush1.bf16.msra.mxu0 %v7931_v29  ;;  %3402 = vmatpush1.bf16.msra.mxu1 %v7933_v30  ;;  %v435_v29 = vld [vmem:[%s11380_s1 + $0xc50] sm:$0xff]  ;;  %v428_v30 = vld [vmem:[%s11380_s1 + $0xc18] sm:$0xff] }
  0xd5   :  { %3328 = vmatprep.subr.bf16.mxu0 %v7948_v31  ;;  %3414 = vmatprep.subr.bf16.mxu1 %v7950_v35  ;;  %v8062_v31 = vcombine.high %v412_v20, %v420_v22  ;;  %v8076_v35 = vcombine.high %v427_v27, %v435_v29  ;;  %v8075_v41 = vcombine.low %v427_v27, %v435_v29  ;;  %v539_v22 = vld [vmem:[%s11380_s1 + $0xf90] sm:$0xff]  ;;  %v548_v27 = vld [vmem:[%s11380_s1 + $0xfd8] sm:$0xff] }
  0xd6   :  { %v8077_v42 = vcombine.low %v428_v30, %v436_v32 }
  0xd7   :  { %3318 = vmatmul.mubr.bf16.vlgmr.msra.gmra.mrb[4].mxu0 %v9908_v15  ;;  %3404 = vmatmul.mubr.bf16.vlgmr.msra.gmra.mrb[4].mxu1 %v9908_v15 }
  0xd8   :  { %3329 = vmatpush1.bf16.msra.mxu0 %v7947_v37  ;;  %3415 = vmatpush1.bf16.msra.mxu1 %v7949_v38  ;;  %v451_v37 = vld [vmem:[%s11380_s1 + $0xcd0] sm:$0xff]  ;;  %v444_v38 = vld [vmem:[%s11380_s1 + $0xc98] sm:$0xff] }
  0xd9   :  { %3330 = vmatprep.subr.bf16.mxu0 %v7964_v39  ;;  %3416 = vmatprep.subr.bf16.mxu1 %v7966_v43  ;;  %v8078_v39 = vcombine.high %v428_v30, %v436_v32  ;;  %v8092_v43 = vcombine.high %v443_v36, %v451_v37  ;;  %v8091_v49 = vcombine.low %v443_v36, %v451_v37  ;;  %v45_v32 = vld [vmem:[%s11380_s1 + $0x20] sm:$0xff]  ;;  %v54_v36 = vld [vmem:[%s11380_s1 + $0x68] sm:$0xff] }
  0xda   :  { %3360 = vmatprep.mubr.bf16.mxu0 %v9925_v25  ;;  %3446 = vmatprep.mubr.bf16.mxu1 %v9925_v25  ;;  %v8093_v50 = vcombine.low %v444_v38, %v452_v40 }
  0xdc   :  { %3331 = vmatpush1.bf16.msra.mxu0 %v7963_v45  ;;  %3417 = vmatpush1.bf16.msra.mxu1 %v7965_v46  ;;  %v467_v45 = vld [vmem:[%s11380_s1 + $0xd50] sm:$0xff]  ;;  %v460_v46 = vld [vmem:[%s11380_s1 + $0xd18] sm:$0xff] }
  0xdd   :  { %3332 = vmatprep.subr.bf16.mxu0 %v7980_v47  ;;  %3418 = vmatprep.subr.bf16.mxu1 %v7982_v51  ;;  %v8094_v47 = vcombine.high %v444_v38, %v452_v40  ;;  %v8108_v51 = vcombine.high %v459_v44, %v467_v45  ;;  %v8107_v57 = vcombine.low %v459_v44, %v467_v45  ;;  %v61_v40 = vld [vmem:[%s11380_s1 + $0xa0] sm:$0xff]  ;;  %v70_v44 = vld [vmem:[%s11380_s1 + $0xe8] sm:$0xff] }
  0xde   :  { %v8109_v59 = vcombine.low %v460_v46, %v468_v48 }
  0xe0   :  { %3333 = vmatpush1.bf16.msra.mxu0 %v7979_v53  ;;  %3419 = vmatpush1.bf16.msra.mxu1 %v7981_v54  ;;  %v483_v53 = vld [vmem:[%s11380_s1 + $0xdd0] sm:$0xff]  ;;  %v476_v54 = vld [vmem:[%s11380_s1 + $0xd98] sm:$0xff] }
  0xe1   :  { %3334 = vmatprep.subr.bf16.mxu0 %v7996_v55  ;;  %3420 = vmatprep.subr.bf16.mxu1 %v7998_v60  ;;  %v8110_v55 = vcombine.high %v460_v46, %v468_v48  ;;  %v8124_v60 = vcombine.high %v475_v52, %v483_v53  ;;  %v8123_v2 = vcombine.low %v475_v52, %v483_v53  ;;  %v77_v48 = vld [vmem:[%s11380_s1 + $0x120] sm:$0xff]  ;;  %v86_v52 = vld [vmem:[%s11380_s1 + $0x168] sm:$0xff] }
  0xe2   :  { %v8125_v3 = vcombine.low %v476_v54, %v484_v56 }
  0xe4   :  { %3335 = vmatpush1.bf16.msra.mxu0 %v7995_v62  ;;  %3421 = vmatpush1.bf16.msra.mxu1 %v7997_v63  ;;  %v499_v62 = vld [vmem:[%s11380_s1 + $0xe50] sm:$0xff]  ;;  %v492_v63 = vld [vmem:[%s11380_s1 + $0xe18] sm:$0xff] }
  0xe5   :  { %3336 = vmatprep.subr.bf16.mxu0 %v8012_v0  ;;  %3422 = vmatprep.subr.bf16.mxu1 %v8014_v4  ;;  %v8126_v0 = vcombine.high %v476_v54, %v484_v56  ;;  %v8140_v4 = vcombine.high %v491_v61, %v499_v62  ;;  %v8139_v10 = vcombine.low %v491_v61, %v499_v62  ;;  %v93_v56 = vld [vmem:[%s11380_s1 + $0x1a0] sm:$0xff]  ;;  %v102_v61 = vld [vmem:[%s11380_s1 + $0x1e8] sm:$0xff] }
  0xe6   :  { %v8141_v11 = vcombine.low %v492_v63, %v500_v1 }
  0xe8   :  { %3337 = vmatpush1.bf16.msra.mxu0 %v8011_v6  ;;  %3423 = vmatpush1.bf16.msra.mxu1 %v8013_v7  ;;  %v515_v6 = vld [vmem:[%s11380_s1 + $0xed0] sm:$0xff]  ;;  %v508_v7 = vld [vmem:[%s11380_s1 + $0xe98] sm:$0xff] }
  0xe9   :  { %3338 = vmatprep.subr.bf16.mxu0 %v8028_v8  ;;  %3424 = vmatprep.subr.bf16.mxu1 %v8030_v12  ;;  %v8142_v8 = vcombine.high %v492_v63, %v500_v1  ;;  %v8156_v12 = vcombine.high %v507_v5, %v515_v6  ;;  %v8155_v19 = vcombine.low %v507_v5, %v515_v6  ;;  %v109_v1 = vld [vmem:[%s11380_s1 + $0x220] sm:$0xff]  ;;  %v118_v5 = vld [vmem:[%s11380_s1 + $0x268] sm:$0xff] }
  0xea   :  { %v8157_v20 = vcombine.low %v508_v7, %v516_v9 }
  0xec   :  { %3339 = vmatpush1.bf16.msra.mxu0 %v8027_v14  ;;  %3425 = vmatpush1.bf16.msra.mxu1 %v8029_v16  ;;  %v531_v14 = vld [vmem:[%s11380_s1 + $0xf50] sm:$0xff]  ;;  %v524_v16 = vld [vmem:[%s11380_s1 + $0xf18] sm:$0xff] }
  0xed   :  { %3340 = vmatprep.subr.bf16.mxu0 %v8044_v17  ;;  %3426 = vmatprep.subr.bf16.mxu1 %v8046_v21  ;;  %v8158_v17 = vcombine.high %v508_v7, %v516_v9  ;;  %v8172_v21 = vcombine.high %v523_v13, %v531_v14  ;;  %v8171_v29 = vcombine.low %v523_v13, %v531_v14  ;;  %v125_v9 = vld [vmem:[%s11380_s1 + $0x2a0] sm:$0xff]  ;;  %v134_v13 = vld [vmem:[%s11380_s1 + $0x2e8] sm:$0xff] }
  0xee   :  { %v8173_v30 = vcombine.low %v524_v16, %v532_v18 }
  0xf0   :  { %3341 = vmatpush1.bf16.msra.mxu0 %v8043_v23  ;;  %3427 = vmatpush1.bf16.msra.mxu1 %v8045_v24  ;;  %v547_v23 = vld [vmem:[%s11380_s1 + $0xfd0] sm:$0xff]  ;;  %v540_v24 = vld [vmem:[%s11380_s1 + $0xf98] sm:$0xff] }
  0xf1   :  { %3342 = vmatprep.subr.bf16.mxu0 %v8060_v26  ;;  %3428 = vmatprep.subr.bf16.mxu1 %v8062_v31  ;;  %v8174_v26 = vcombine.high %v524_v16, %v532_v18  ;;  %v8188_v31 = vcombine.high %v539_v22, %v547_v23  ;;  %v8187_v37 = vcombine.low %v539_v22, %v547_v23  ;;  %v141_v18 = vld [vmem:[%s11380_s1 + $0x320] sm:$0xff]  ;;  %v150_v22 = vld [vmem:[%s11380_s1 + $0x368] sm:$0xff] }
  0xf2   :  { %v8189_v38 = vcombine.low %v540_v24, %v548_v27 }
  0xf4   :  { %3343 = vmatpush1.bf16.msra.mxu0 %v8059_v33  ;;  %3429 = vmatpush1.bf16.msra.mxu1 %v8061_v34  ;;  %v53_v33 = vld [vmem:[%s11380_s1 + $0x60] sm:$0xff]  ;;  %v46_v34 = vld [vmem:[%s11380_s1 + $0x28] sm:$0xff] }
  0xf5   :  { %3344 = vmatprep.subr.bf16.mxu0 %v8076_v35  ;;  %3430 = vmatprep.subr.bf16.mxu1 %v8078_v39  ;;  %v8190_v35 = vcombine.high %v540_v24, %v548_v27  ;;  %v7696_v39 = vcombine.high %v45_v32, %v53_v33  ;;  %v7695_v45 = vcombine.low %v45_v32, %v53_v33  ;;  %v157_v27 = vld [vmem:[%s11380_s1 + $0x3a0] sm:$0xff]  ;;  %v166_v32 = vld [vmem:[%s11380_s1 + $0x3e8] sm:$0xff] }
  0xf6   :  { %v7697_v46 = vcombine.low %v46_v34, %v54_v36 }
  0xf8   :  { %3345 = vmatpush1.bf16.msra.mxu0 %v8075_v41  ;;  %3431 = vmatpush1.bf16.msra.mxu1 %v8077_v42  ;;  %v69_v41 = vld [vmem:[%s11380_s1 + $0xe0] sm:$0xff]  ;;  %v62_v42 = vld [vmem:[%s11380_s1 + $0xa8] sm:$0xff] }
  0xf9   :  { %3346 = vmatprep.subr.bf16.mxu0 %v8092_v43  ;;  %3432 = vmatprep.subr.bf16.mxu1 %v8094_v47  ;;  %v7698_v43 = vcombine.high %v46_v34, %v54_v36  ;;  %v7712_v47 = vcombine.high %v61_v40, %v69_v41  ;;  %v7711_v53 = vcombine.low %v61_v40, %v69_v41  ;;  %v173_v36 = vld [vmem:[%s11380_s1 + $0x420] sm:$0xff]  ;;  %v182_v40 = vld [vmem:[%s11380_s1 + $0x468] sm:$0xff] }
  0xfa   :  { %v7713_v54 = vcombine.low %v62_v42, %v70_v44 }
  0xfc   :  { %3347 = vmatpush1.bf16.msra.mxu0 %v8091_v49  ;;  %3433 = vmatpush1.bf16.msra.mxu1 %v8093_v50  ;;  %v85_v49 = vld [vmem:[%s11380_s1 + $0x160] sm:$0xff]  ;;  %v78_v50 = vld [vmem:[%s11380_s1 + $0x128] sm:$0xff] }
  0xfd   :  { %3348 = vmatprep.subr.bf16.mxu0 %v8108_v51  ;;  %3434 = vmatprep.subr.bf16.mxu1 %v8110_v55  ;;  %v7714_v51 = vcombine.high %v62_v42, %v70_v44  ;;  %v7728_v55 = vcombine.high %v77_v48, %v85_v49  ;;  %v7727_v62 = vcombine.low %v77_v48, %v85_v49  ;;  %v189_v44 = vld [vmem:[%s11380_s1 + $0x4a0] sm:$0xff]  ;;  %v198_v48 = vld [vmem:[%s11380_s1 + $0x4e8] sm:$0xff] }
  0xfe   :  { %v7729_v63 = vcombine.low %v78_v50, %v86_v52 }
 0x100   :  { %3349 = vmatpush1.bf16.msra.mxu0 %v8107_v57  ;;  %3435 = vmatpush1.bf16.msra.mxu1 %v8109_v59  ;;  %v101_v57 = vld [vmem:[%s11380_s1 + $0x1e0] sm:$0xff]  ;;  %v94_v59 = vld [vmem:[%s11380_s1 + $0x1a8] sm:$0xff] }
 0x101   :  { %3350 = vmatprep.subr.bf16.mxu0 %v8124_v60  ;;  %3436 = vmatprep.subr.bf16.mxu1 %v8126_v0  ;;  %v7730_v60 = vcombine.high %v78_v50, %v86_v52  ;;  %v7744_v0 = vcombine.high %v93_v56, %v101_v57  ;;  %v7743_v6 = vcombine.low %v93_v56, %v101_v57  ;;  %v205_v52 = vld [vmem:[%s11380_s1 + $0x520] sm:$0xff]  ;;  %v214_v56 = vld [vmem:[%s11380_s1 + $0x568] sm:$0xff] }
 0x102   :  { %v7745_v7 = vcombine.low %v94_v59, %v102_v61 }
 0x104   :  { %3351 = vmatpush1.bf16.msra.mxu0 %v8123_v2  ;;  %3437 = vmatpush1.bf16.msra.mxu1 %v8125_v3  ;;  %v117_v2 = vld [vmem:[%s11380_s1 + $0x260] sm:$0xff]  ;;  %v110_v3 = vld [vmem:[%s11380_s1 + $0x228] sm:$0xff] }
 0x105   :  { %3352 = vmatprep.subr.bf16.mxu0 %v8140_v4  ;;  %3438 = vmatprep.subr.bf16.mxu1 %v8142_v8  ;;  %v7746_v4 = vcombine.high %v94_v59, %v102_v61  ;;  %v7760_v8 = vcombine.high %v109_v1, %v117_v2  ;;  %v7759_v14 = vcombine.low %v109_v1, %v117_v2  ;;  %v221_v61 = vld [vmem:[%s11380_s1 + $0x5a0] sm:$0xff]  ;;  %v230_v1 = vld [vmem:[%s11380_s1 + $0x5e8] sm:$0xff] }
 0x106   :  { %v7761_v16 = vcombine.low %v110_v3, %v118_v5 }
 0x108   :  { %3353 = vmatpush1.bf16.msra.mxu0 %v8139_v10  ;;  %3439 = vmatpush1.bf16.msra.mxu1 %v8141_v11  ;;  %v133_v10 = vld [vmem:[%s11380_s1 + $0x2e0] sm:$0xff]  ;;  %v126_v11 = vld [vmem:[%s11380_s1 + $0x2a8] sm:$0xff] }
 0x109   :  { %3354 = vmatprep.subr.bf16.mxu0 %v8156_v12  ;;  %3440 = vmatprep.subr.bf16.mxu1 %v8158_v17  ;;  %v7762_v12 = vcombine.high %v110_v3, %v118_v5  ;;  %v7776_v17 = vcombine.high %v125_v9, %v133_v10  ;;  %v7775_v23 = vcombine.low %v125_v9, %v133_v10  ;;  %v237_v5 = vld [vmem:[%s11380_s1 + $0x620] sm:$0xff]  ;;  %v246_v9 = vld [vmem:[%s11380_s1 + $0x668] sm:$0xff] }
 0x10a   :  { %v7777_v24 = vcombine.low %v126_v11, %v134_v13 }
 0x10c   :  { %3355 = vmatpush1.bf16.msra.mxu0 %v8155_v19  ;;  %3441 = vmatpush1.bf16.msra.mxu1 %v8157_v20  ;;  %v149_v19 = vld [vmem:[%s11380_s1 + $0x360] sm:$0xff]  ;;  %v142_v20 = vld [vmem:[%s11380_s1 + $0x328] sm:$0xff] }
 0x10d   :  { %3356 = vmatprep.subr.bf16.mxu0 %v8172_v21  ;;  %3442 = vmatprep.subr.bf16.mxu1 %v8174_v26  ;;  %v7778_v21 = vcombine.high %v126_v11, %v134_v13  ;;  %v7792_v26 = vcombine.high %v141_v18, %v149_v19  ;;  %v7791_v33 = vcombine.low %v141_v18, %v149_v19  ;;  %v253_v13 = vld [vmem:[%s11380_s1 + $0x6a0] sm:$0xff]  ;;  %v262_v18 = vld [vmem:[%s11380_s1 + $0x6e8] sm:$0xff] }
 0x10e   :  { %v7793_v34 = vcombine.low %v142_v20, %v150_v22 }
 0x110   :  { %3357 = vmatpush1.bf16.msra.mxu0 %v8171_v29  ;;  %3443 = vmatpush1.bf16.msra.mxu1 %v8173_v30  ;;  %v165_v29 = vld [vmem:[%s11380_s1 + $0x3e0] sm:$0xff]  ;;  %v158_v30 = vld [vmem:[%s11380_s1 + $0x3a8] sm:$0xff] }
 0x111   :  { %3358 = vmatprep.subr.bf16.mxu0 %v8188_v31  ;;  %3444 = vmatprep.subr.bf16.mxu1 %v8190_v35  ;;  %v7794_v31 = vcombine.high %v142_v20, %v150_v22  ;;  %v7808_v35 = vcombine.high %v157_v27, %v165_v29  ;;  %v7807_v41 = vcombine.low %v157_v27, %v165_v29  ;;  %v269_v22 = vld [vmem:[%s11380_s1 + $0x720] sm:$0xff]  ;;  %v278_v27 = vld [vmem:[%s11380_s1 + $0x768] sm:$0xff] }
 0x112   :  { %v7809_v42 = vcombine.low %v158_v30, %v166_v32 }
 0x114   :  { %3359 = vmatpush1.bf16.msra.mxu0 %v8187_v37  ;;  %3445 = vmatpush1.bf16.msra.mxu1 %v8189_v38  ;;  %v181_v37 = vld [vmem:[%s11380_s1 + $0x460] sm:$0xff]  ;;  %v174_v38 = vld [vmem:[%s11380_s1 + $0x428] sm:$0xff] }
 0x115   :  { %3457 = vmatprep.subr.bf16.mxu0 %v7696_v39  ;;  %3543 = vmatprep.subr.bf16.mxu1 %v7698_v43  ;;  %v7810_v39 = vcombine.high %v158_v30, %v166_v32  ;;  %v7824_v43 = vcombine.high %v173_v36, %v181_v37  ;;  %v7823_v49 = vcombine.low %v173_v36, %v181_v37  ;;  %v285_v32 = vld [vmem:[%s11380_s1 + $0x7a0] sm:$0xff]  ;;  %v294_v36 = vld [vmem:[%s11380_s1 + $0x7e8] sm:$0xff] }
 0x116   :  { %v7825_v50 = vcombine.low %v174_v38, %v182_v40 }
 0x117   :  { %3361 = vmatmul.mubr.bf16.vlgmr.msra.gmra.mrb[4].mxu0 %v10123_v28  ;;  %3447 = vmatmul.mubr.bf16.vlgmr.msra.gmra.mrb[4].mxu1 %v10123_v28 }
 0x118   :  { %3458 = vmatpush1.bf16.msra.mxu0 %v7695_v45  ;;  %3544 = vmatpush1.bf16.msra.mxu1 %v7697_v46  ;;  %v197_v45 = vld [vmem:[%s11380_s1 + $0x4e0] sm:$0xff]  ;;  %v190_v46 = vld [vmem:[%s11380_s1 + $0x4a8] sm:$0xff] }
 0x119   :  { %3459 = vmatprep.subr.bf16.mxu0 %v7712_v47  ;;  %3545 = vmatprep.subr.bf16.mxu1 %v7714_v51  ;;  %v7826_v47 = vcombine.high %v174_v38, %v182_v40  ;;  %v7840_v51 = vcombine.high %v189_v44, %v197_v45  ;;  %v7839_v57 = vcombine.low %v189_v44, %v197_v45  ;;  %v301_v40 = vld [vmem:[%s11380_s1 + $0x820] sm:$0xff]  ;;  %v310_v44 = vld [vmem:[%s11380_s1 + $0x868] sm:$0xff] }
 0x11a   :  { %3489 = vmatprep.mubr.bf16.mxu0 %v9775_v58  ;;  %3575 = vmatprep.mubr.bf16.mxu1 %v9775_v58  ;;  %v7841_v59 = vcombine.low %v190_v46, %v198_v48 }
 0x11c   :  { %3460 = vmatpush1.bf16.msra.mxu0 %v7711_v53  ;;  %3546 = vmatpush1.bf16.msra.mxu1 %v7713_v54  ;;  %v213_v53 = vld [vmem:[%s11380_s1 + $0x560] sm:$0xff]  ;;  %v206_v54 = vld [vmem:[%s11380_s1 + $0x528] sm:$0xff] }
 0x11d   :  { %3461 = vmatprep.subr.bf16.mxu0 %v7728_v55  ;;  %3547 = vmatprep.subr.bf16.mxu1 %v7730_v60  ;;  %v7842_v55 = vcombine.high %v190_v46, %v198_v48  ;;  %v7856_v60 = vcombine.high %v205_v52, %v213_v53  ;;  %v7855_v2 = vcombine.low %v205_v52, %v213_v53  ;;  %v317_v48 = vld [vmem:[%s11380_s1 + $0x8a0] sm:$0xff]  ;;  %v326_v52 = vld [vmem:[%s11380_s1 + $0x8e8] sm:$0xff] }
 0x11e   :  { %v7857_v3 = vcombine.low %v206_v54, %v214_v56 }
 0x120   :  { %3462 = vmatpush1.bf16.msra.mxu0 %v7727_v62  ;;  %3548 = vmatpush1.bf16.msra.mxu1 %v7729_v63  ;;  %v229_v62 = vld [vmem:[%s11380_s1 + $0x5e0] sm:$0xff]  ;;  %v222_v63 = vld [vmem:[%s11380_s1 + $0x5a8] sm:$0xff] }
 0x121   :  { %3463 = vmatprep.subr.bf16.mxu0 %v7744_v0  ;;  %3549 = vmatprep.subr.bf16.mxu1 %v7746_v4  ;;  %v7858_v0 = vcombine.high %v206_v54, %v214_v56  ;;  %v7872_v4 = vcombine.high %v221_v61, %v229_v62  ;;  %v7871_v10 = vcombine.low %v221_v61, %v229_v62  ;;  %v333_v56 = vld [vmem:[%s11380_s1 + $0x920] sm:$0xff]  ;;  %v342_v61 = vld [vmem:[%s11380_s1 + $0x968] sm:$0xff] }
 0x122   :  { %v7873_v11 = vcombine.low %v222_v63, %v230_v1 }
 0x124   :  { %3464 = vmatpush1.bf16.msra.mxu0 %v7743_v6  ;;  %3550 = vmatpush1.bf16.msra.mxu1 %v7745_v7  ;;  %v245_v6 = vld [vmem:[%s11380_s1 + $0x660] sm:$0xff]  ;;  %v238_v7 = vld [vmem:[%s11380_s1 + $0x628] sm:$0xff] }
 0x125   :  { %3465 = vmatprep.subr.bf16.mxu0 %v7760_v8  ;;  %3551 = vmatprep.subr.bf16.mxu1 %v7762_v12  ;;  %v7874_v8 = vcombine.high %v222_v63, %v230_v1  ;;  %v7888_v12 = vcombine.high %v237_v5, %v245_v6  ;;  %v7887_v19 = vcombine.low %v237_v5, %v245_v6  ;;  %v358_v5 = vld [vmem:[%s11380_s1 + $0x9e8] sm:$0xff] }
 0x126   :  { %v7889_v20 = vcombine.low %v238_v7, %v246_v9 }
 0x128   :  { %3466 = vmatpush1.bf16.msra.mxu0 %v7759_v14  ;;  %3552 = vmatpush1.bf16.msra.mxu1 %v7761_v16  ;;  %v261_v14 = vld [vmem:[%s11380_s1 + $0x6e0] sm:$0xff]  ;;  %v254_v16 = vld [vmem:[%s11380_s1 + $0x6a8] sm:$0xff] }
 0x129   :  { %3467 = vmatprep.subr.bf16.mxu0 %v7776_v17  ;;  %3553 = vmatprep.subr.bf16.mxu1 %v7778_v21  ;;  %v7890_v17 = vcombine.high %v238_v7, %v246_v9  ;;  %v7904_v21 = vcombine.high %v253_v13, %v261_v14  ;;  %v7903_v29 = vcombine.low %v253_v13, %v261_v14  ;;  %v374_v13 = vld [vmem:[%s11380_s1 + $0xa68] sm:$0xff] }
 0x12a   :  { %v7905_v30 = vcombine.low %v254_v16, %v262_v18 }
 0x12c   :  { %3468 = vmatpush1.bf16.msra.mxu0 %v7775_v23  ;;  %3554 = vmatpush1.bf16.msra.mxu1 %v7777_v24  ;;  %v277_v23 = vld [vmem:[%s11380_s1 + $0x760] sm:$0xff]  ;;  %v270_v24 = vld [vmem:[%s11380_s1 + $0x728] sm:$0xff] }
 0x12d   :  { %3469 = vmatprep.subr.bf16.mxu0 %v7792_v26  ;;  %3555 = vmatprep.subr.bf16.mxu1 %v7794_v31  ;;  %v7906_v26 = vcombine.high %v254_v16, %v262_v18  ;;  %v7920_v31 = vcombine.high %v269_v22, %v277_v23  ;;  %v7919_v37 = vcombine.low %v269_v22, %v277_v23  ;;  %v390_v22 = vld [vmem:[%s11380_s1 + $0xae8] sm:$0xff] }
 0x12e   :  { %v7921_v38 = vcombine.low %v270_v24, %v278_v27 }
 0x130   :  { %3470 = vmatpush1.bf16.msra.mxu0 %v7791_v33  ;;  %3556 = vmatpush1.bf16.msra.mxu1 %v7793_v34  ;;  %v293_v33 = vld [vmem:[%s11380_s1 + $0x7e0] sm:$0xff]  ;;  %v286_v34 = vld [vmem:[%s11380_s1 + $0x7a8] sm:$0xff] }
 0x131   :  { %3471 = vmatprep.subr.bf16.mxu0 %v7808_v35  ;;  %3557 = vmatprep.subr.bf16.mxu1 %v7810_v39  ;;  %v7922_v35 = vcombine.high %v270_v24, %v278_v27  ;;  %v7936_v39 = vcombine.high %v285_v32, %v293_v33  ;;  %v7935_v45 = vcombine.low %v285_v32, %v293_v33  ;;  %v406_v32 = vld [vmem:[%s11380_s1 + $0xb68] sm:$0xff] }
 0x132   :  { %v7937_v46 = vcombine.low %v286_v34, %v294_v36 }
 0x134   :  { %3472 = vmatpush1.bf16.msra.mxu0 %v7807_v41  ;;  %3558 = vmatpush1.bf16.msra.mxu1 %v7809_v42  ;;  %v309_v41 = vld [vmem:[%s11380_s1 + $0x860] sm:$0xff]  ;;  %v302_v42 = vld [vmem:[%s11380_s1 + $0x828] sm:$0xff] }
 0x135   :  { %3473 = vmatprep.subr.bf16.mxu0 %v7824_v43  ;;  %3559 = vmatprep.subr.bf16.mxu1 %v7826_v47  ;;  %v7938_v43 = vcombine.high %v286_v34, %v294_v36  ;;  %v7952_v47 = vcombine.high %v301_v40, %v309_v41  ;;  %v7951_v53 = vcombine.low %v301_v40, %v309_v41  ;;  %v413_v36 = vld [vmem:[%s11380_s1 + $0xba0] sm:$0xff]  ;;  %v414_v40 = vld [vmem:[%s11380_s1 + $0xba8] sm:$0xff] }
 0x136   :  { %v7953_v54 = vcombine.low %v302_v42, %v310_v44  ;;  %v422_v41 = vld [vmem:[%s11380_s1 + $0xbe8] sm:$0xff] }
 0x138   :  { %3474 = vmatpush1.bf16.msra.mxu0 %v7823_v49  ;;  %3560 = vmatpush1.bf16.msra.mxu1 %v7825_v50  ;;  %v325_v49 = vld [vmem:[%s11380_s1 + $0x8e0] sm:$0xff]  ;;  %v318_v50 = vld [vmem:[%s11380_s1 + $0x8a8] sm:$0xff] }
 0x139   :  { %3475 = vmatprep.subr.bf16.mxu0 %v7840_v51  ;;  %3561 = vmatprep.subr.bf16.mxu1 %v7842_v55  ;;  %v7954_v51 = vcombine.high %v302_v42, %v310_v44  ;;  %v7968_v55 = vcombine.high %v317_v48, %v325_v49  ;;  %v7967_v62 = vcombine.low %v317_v48, %v325_v49 }
 0x13a   :  { %v7969_v63 = vcombine.low %v318_v50, %v326_v52 }
 0x13c   :  { %3476 = vmatpush1.bf16.msra.mxu0 %v7839_v57  ;;  %3562 = vmatpush1.bf16.msra.mxu1 %v7841_v59  ;;  %v341_v57 = vld [vmem:[%s11380_s1 + $0x960] sm:$0xff]  ;;  %v334_v59 = vld [vmem:[%s11380_s1 + $0x928] sm:$0xff] }
 0x13d   :  { %3477 = vmatprep.subr.bf16.mxu0 %v7856_v60  ;;  %3563 = vmatprep.subr.bf16.mxu1 %v7858_v0  ;;  %v7970_v60 = vcombine.high %v318_v50, %v326_v52  ;;  %v7984_v0 = vcombine.high %v333_v56, %v341_v57  ;;  %v7986_v1 = vcombine.high %v334_v59, %v342_v61 }
 0x13e   :  { %v7983_v6 = vcombine.low %v333_v56, %v341_v57  ;;  %v7985_v7 = vcombine.low %v334_v59, %v342_v61  ;;  %v437_v61 = vld [vmem:[%s11380_s1 + $0xc60] sm:$0xff] }
 0x140   :  { %3478 = vmatpush1.bf16.msra.mxu0 %v7855_v2  ;;  %3564 = vmatpush1.bf16.msra.mxu1 %v7857_v3  ;;  %v349_v2 = vld [vmem:[%s11380_s1 + $0x9a0] sm:$0xff] }
 0x141   :  { %3479 = vmatprep.subr.bf16.mxu0 %v7872_v4  ;;  %3565 = vmatprep.subr.bf16.mxu1 %v7874_v8  ;;  %v357_v3 = vld [vmem:[%s11380_s1 + $0x9e0] sm:$0xff]  ;;  %v350_v4 = vld [vmem:[%s11380_s1 + $0x9a8] sm:$0xff] }
 0x142   :  { %v8000_v8 = vcombine.high %v349_v2, %v357_v3  ;;  %v8002_v9 = vcombine.high %v350_v4, %v358_v5  ;;  %v7999_v14 = vcombine.low %v349_v2, %v357_v3  ;;  %v8001_v16 = vcombine.low %v350_v4, %v358_v5  ;;  %v438_v2 = vld [vmem:[%s11380_s1 + $0xc68] sm:$0xff] }
 0x144   :  { %3480 = vmatpush1.bf16.msra.mxu0 %v7871_v10  ;;  %3566 = vmatpush1.bf16.msra.mxu1 %v7873_v11  ;;  %v365_v10 = vld [vmem:[%s11380_s1 + $0xa20] sm:$0xff] }
 0x145   :  { %3481 = vmatprep.subr.bf16.mxu0 %v7888_v12  ;;  %3567 = vmatprep.subr.bf16.mxu1 %v7890_v17  ;;  %v373_v11 = vld [vmem:[%s11380_s1 + $0xa60] sm:$0xff]  ;;  %v366_v12 = vld [vmem:[%s11380_s1 + $0xa28] sm:$0xff] }
 0x146   :  { %v8016_v17 = vcombine.high %v365_v10, %v373_v11  ;;  %v8018_v18 = vcombine.high %v366_v12, %v374_v13  ;;  %v8015_v23 = vcombine.low %v365_v10, %v373_v11  ;;  %v8017_v24 = vcombine.low %v366_v12, %v374_v13  ;;  %v445_v10 = vld [vmem:[%s11380_s1 + $0xca0] sm:$0xff]  ;;  %v446_v12 = vld [vmem:[%s11380_s1 + $0xca8] sm:$0xff] }
 0x147   :  { %v453_v11 = vld [vmem:[%s11380_s1 + $0xce0] sm:$0xff]  ;;  %v454_v13 = vld [vmem:[%s11380_s1 + $0xce8] sm:$0xff] }
 0x148   :  { %3482 = vmatpush1.bf16.msra.mxu0 %v7887_v19  ;;  %3568 = vmatpush1.bf16.msra.mxu1 %v7889_v20  ;;  %v381_v19 = vld [vmem:[%s11380_s1 + $0xaa0] sm:$0xff] }
 0x149   :  { %3483 = vmatprep.subr.bf16.mxu0 %v7904_v21  ;;  %3569 = vmatprep.subr.bf16.mxu1 %v7906_v26  ;;  %v389_v20 = vld [vmem:[%s11380_s1 + $0xae0] sm:$0xff]  ;;  %v382_v21 = vld [vmem:[%s11380_s1 + $0xaa8] sm:$0xff] }
 0x14a   :  { %v8032_v26 = vcombine.high %v381_v19, %v389_v20  ;;  %v8034_v27 = vcombine.high %v382_v21, %v390_v22  ;;  %v8031_v33 = vcombine.low %v381_v19, %v389_v20  ;;  %v8033_v34 = vcombine.low %v382_v21, %v390_v22  ;;  %v461_v19 = vld [vmem:[%s11380_s1 + $0xd20] sm:$0xff]  ;;  %v462_v21 = vld [vmem:[%s11380_s1 + $0xd28] sm:$0xff] }
 0x14b   :  { %v469_v20 = vld [vmem:[%s11380_s1 + $0xd60] sm:$0xff]  ;;  %v470_v22 = vld [vmem:[%s11380_s1 + $0xd68] sm:$0xff] }
 0x14c   :  { %3484 = vmatpush1.bf16.msra.mxu0 %v7903_v29  ;;  %3570 = vmatpush1.bf16.msra.mxu1 %v7905_v30  ;;  %v397_v29 = vld [vmem:[%s11380_s1 + $0xb20] sm:$0xff] }
 0x14d   :  { %3485 = vmatprep.subr.bf16.mxu0 %v7920_v31  ;;  %3571 = vmatprep.subr.bf16.mxu1 %v7922_v35  ;;  %v405_v30 = vld [vmem:[%s11380_s1 + $0xb60] sm:$0xff]  ;;  %v398_v31 = vld [vmem:[%s11380_s1 + $0xb28] sm:$0xff] }
 0x14e   :  { %v8048_v35 = vcombine.high %v397_v29, %v405_v30 }
 0x150   :  { %3486 = vmatpush1.bf16.msra.mxu0 %v7919_v37  ;;  %3572 = vmatpush1.bf16.msra.mxu1 %v7921_v38  ;;  %v8050_v38 = vcombine.high %v398_v31, %v406_v32 }
 0x151   :  { %3487 = vmatprep.subr.bf16.mxu0 %v7936_v39  ;;  %3573 = vmatprep.subr.bf16.mxu1 %v7938_v43  ;;  %v421_v39 = vld [vmem:[%s11380_s1 + $0xbe0] sm:$0xff] }
 0x152   :  { %v8064_v52 = vcombine.high %v413_v36, %v421_v39  ;;  %v8063_v5 = vcombine.low %v413_v36, %v421_v39  ;;  %v494_v39 = vld [vmem:[%s11380_s1 + $0xe28] sm:$0xff] }
 0x154   :  { %3488 = vmatpush1.bf16.msra.mxu0 %v7935_v45  ;;  %3574 = vmatpush1.bf16.msra.mxu1 %v7937_v46  ;;  %v8047_v46 = vcombine.low %v397_v29, %v405_v30  ;;  %v477_v29 = vld [vmem:[%s11380_s1 + $0xda0] sm:$0xff] }
 0x155   :  { %3500 = vmatprep.subr.bf16.mxu0 %v7952_v47  ;;  %3586 = vmatprep.subr.bf16.mxu1 %v7954_v51  ;;  %v8049_v47 = vcombine.low %v398_v31, %v406_v32  ;;  %v485_v30 = vld [vmem:[%s11380_s1 + $0xde0] sm:$0xff]  ;;  %v478_v31 = vld [vmem:[%s11380_s1 + $0xda8] sm:$0xff] }
 0x156   :  { %v486_v32 = vld [vmem:[%s11380_s1 + $0xde8] sm:$0xff] }
 0x157   :  { %3490 = vmatmul.mubr.bf16.vlgmr.msra.gmra.mrb[8].mxu0 %v9908_v15  ;;  %3576 = vmatmul.mubr.bf16.vlgmr.msra.gmra.mrb[8].mxu1 %v9908_v15  ;;  %v8130_v36 = vcombine.high %v478_v31, %v486_v32 }
 0x158   :  { %3501 = vmatpush1.bf16.msra.mxu0 %v7951_v53  ;;  %3587 = vmatpush1.bf16.msra.mxu1 %v7953_v54  ;;  %v8066_v53 = vcombine.high %v414_v40, %v422_v41  ;;  %v429_v54 = vld [vmem:[%s11380_s1 + $0xc20] sm:$0xff] }
 0x159   :  { %3502 = vmatprep.subr.bf16.mxu0 %v7968_v55  ;;  %3588 = vmatprep.subr.bf16.mxu1 %v7970_v60 }
 0x15a   :  { %3532 = vmatprep.mubr.bf16.mxu0 %v9925_v25  ;;  %3618 = vmatprep.mubr.bf16.mxu1 %v9925_v25 }
 0x15c   :  { %3503 = vmatpush1.bf16.msra.mxu0 %v7967_v62  ;;  %3589 = vmatpush1.bf16.msra.mxu1 %v7969_v63 }
 0x15d   :  { %3504 = vmatprep.subr.bf16.mxu0 %v7984_v0  ;;  %3590 = vmatprep.subr.bf16.mxu1 %v7986_v1  ;;  %v430_v1 = vld [vmem:[%s11380_s1 + $0xc28] sm:$0xff] }
 0x160   :  { %3505 = vmatpush1.bf16.msra.mxu0 %v7983_v6  ;;  %3591 = vmatpush1.bf16.msra.mxu1 %v7985_v7  ;;  %v8065_v7 = vcombine.low %v414_v40, %v422_v41  ;;  %v502_v40 = vld [vmem:[%s11380_s1 + $0xe68] sm:$0xff]  ;;  %v8127_v41 = vcombine.low %v477_v29, %v485_v30 }
 0x161   :  { %3506 = vmatprep.subr.bf16.mxu0 %v8000_v8  ;;  %3592 = vmatprep.subr.bf16.mxu1 %v8002_v9  ;;  %v8080_v8 = vcombine.high %v429_v54, %v437_v61  ;;  %v8082_v9 = vcombine.high %v430_v1, %v438_v2 }
 0x164   :  { %3507 = vmatpush1.bf16.msra.mxu0 %v7999_v14  ;;  %3593 = vmatpush1.bf16.msra.mxu1 %v8001_v16  ;;  %v8079_v14 = vcombine.low %v429_v54, %v437_v61  ;;  %v8081_v16 = vcombine.low %v430_v1, %v438_v2  ;;  %v533_v54 = vld [vmem:[%s11380_s1 + $0xf60] sm:$0xff]  ;;  %v542_v1 = vld [vmem:[%s11380_s1 + $0xfa8] sm:$0xff] }
 0x165   :  { %3508 = vmatprep.subr.bf16.mxu0 %v8016_v17  ;;  %3594 = vmatprep.subr.bf16.mxu1 %v8018_v18  ;;  %v8096_v17 = vcombine.high %v445_v10, %v453_v11  ;;  %v8098_v18 = vcombine.high %v446_v12, %v454_v13  ;;  %v550_v2 = vld [vmem:[%s11380_s1 + $0xfe8] sm:$0xff] }
 0x168   :  { %3509 = vmatpush1.bf16.msra.mxu0 %v8015_v23  ;;  %3595 = vmatpush1.bf16.msra.mxu1 %v8017_v24  ;;  %v8095_v23 = vcombine.low %v445_v10, %v453_v11  ;;  %v8097_v24 = vcombine.low %v446_v12, %v454_v13  ;;  %v47_v10 = vld [vmem:[%s11380_s1 + $0x30] sm:$0xff]  ;;  %v48_v12 = vld [vmem:[%s11380_s1 + $0x38] sm:$0xff] }
 0x169   :  { %3510 = vmatprep.subr.bf16.mxu0 %v8032_v26  ;;  %3596 = vmatprep.subr.bf16.mxu1 %v8034_v27  ;;  %v8112_v26 = vcombine.high %v461_v19, %v469_v20  ;;  %v8114_v27 = vcombine.high %v462_v21, %v470_v22  ;;  %v55_v11 = vld [vmem:[%s11380_s1 + $0x70] sm:$0xff]  ;;  %v56_v13 = vld [vmem:[%s11380_s1 + $0x78] sm:$0xff] }
 0x16a   :  { %v3190_v37 = vpop.f32.mrb[0].mxu0  ;;  %v3276_v42 = vpop.f32.mrb[0].mxu1 }
 0x16b   :  { %v3192_v43 = vpop.f32.mrb[1].mxu0  ;;  %v3278_v44 = vpop.f32.mrb[1].mxu1  ;;  %v3801_v48 = vmax.f32 %v3190_v37, 0.0  ;;  %v3803_v55 = vmax.f32 %v3276_v42, 0.0  ;;  %v493_v37 = vld [vmem:[%s11380_s1 + $0xe20] sm:$0xff]  ;;  %v8129_v42 = vcombine.low %v478_v31, %v486_v32  ;;  %v80_v31 = vld [vmem:[%s11380_s1 + $0x138] sm:$0xff] }
 0x16c   :  { %v3194_v45 = vpop.f32.mrb[2].mxu0  ;;  %3511 = vmatpush1.bf16.msra.mxu0 %v8031_v33  ;;  %v3280_v50 = vpop.f32.mrb[2].mxu1  ;;  %3597 = vmatpush1.bf16.msra.mxu1 %v8033_v34  ;;  %v3802_v56 = vmax.f32 %v3192_v43, 0.0  ;;  %v3804_v62 = vmax.f32 %v3278_v44, 0.0  ;;  %v8111_v33 = vcombine.low %v461_v19, %v469_v20  ;;  %v8113_v34 = vcombine.low %v462_v21, %v470_v22  ;;  %v63_v19 = vld [vmem:[%s11380_s1 + $0xb0] sm:$0xff]  ;;  %v64_v21 = vld [vmem:[%s11380_s1 + $0xb8] sm:$0xff] }
 0x16d   :  { %v3817_v49 = vmax.f32 %v3194_v45, 0.0  ;;  %v3196_v51 = vpop.f32.mrb[3].mxu0  ;;  %3512 = vmatprep.subr.bf16.mxu0 %v8048_v35  ;;  %v3819_v57 = vmax.f32 %v3280_v50, 0.0  ;;  %v3282_v60 = vpop.f32.mrb[3].mxu1  ;;  %3598 = vmatprep.subr.bf16.mxu1 %v8050_v38  ;;  %v8128_v35 = vcombine.high %v477_v29, %v485_v30  ;;  %v501_v38 = vld [vmem:[%s11380_s1 + $0xe60] sm:$0xff]  ;;  %v8146_v44 = vcombine.high %v494_v39, %v502_v40  ;;  %v71_v20 = vld [vmem:[%s11380_s1 + $0xf0] sm:$0xff] }
 0x16e   :  { %v3818_v59 = vmax.f32 %v3196_v51, 0.0  ;;  %v3820_v0 = vmax.f32 %v3282_v60, 0.0  ;;  %v8144_v43 = vcombine.high %v493_v37, %v501_v38  ;;  %v509_v45 = vld [vmem:[%s11380_s1 + $0xea0] sm:$0xff]  ;;  %v8145_v50 = vcombine.low %v494_v39, %v502_v40  ;;  %v72_v22 = vld [vmem:[%s11380_s1 + $0xf8] sm:$0xff]  ;;  %v79_v29 = vld [vmem:[%s11380_s1 + $0x130] sm:$0xff] }
 0x16f   :  { %v10795_v63 = vpack.c.bf16 %v3817_v49, %v3801_v48  ;;  %v10803_v3 = vpack.c.bf16 %v3819_v57, %v3803_v55  ;;  %v518_v48 = vld [vmem:[%s11380_s1 + $0xee8] sm:$0xff]  ;;  %v8143_v49 = vcombine.low %v493_v37, %v501_v38  ;;  %v87_v30 = vld [vmem:[%s11380_s1 + $0x170] sm:$0xff]  ;;  %v88_v32 = vld [vmem:[%s11380_s1 + $0x178] sm:$0xff] }
 0x170   :  { %v10805_v4 = vpack.c.bf16 %v3818_v59, %v3802_v56  ;;  %3513 = vmatpush1.bf16.msra.mxu0 %v8047_v46  ;;  %v10807_v6 = vpack.c.bf16 %v3820_v0, %v3804_v62  ;;  %3599 = vmatpush1.bf16.msra.mxu1 %v8049_v47  ;;  %v517_v46 = vld [vmem:[%s11380_s1 + $0xee0] sm:$0xff]  ;;  %v510_v47 = vld [vmem:[%s11380_s1 + $0xea8] sm:$0xff]  ;;  %v95_v37 = vld [vmem:[%s11380_s1 + $0x1b0] sm:$0xff] }
 0x171   :  { %3514 = vmatprep.subr.bf16.mxu0 %v8064_v52  ;;  %3600 = vmatprep.subr.bf16.mxu1 %v8066_v53  ;;  %v8160_v51 = vcombine.high %v509_v45, %v517_v46  ;;  %v8162_v52 = vcombine.high %v510_v47, %v518_v48  ;;  %v525_v53 = vld [vmem:[%s11380_s1 + $0xf20] sm:$0xff]  ;;  %v526_v55 = vld [vmem:[%s11380_s1 + $0xf28] sm:$0xff]  ;;  %v8159_v57 = vcombine.low %v509_v45, %v517_v46  ;;  %v103_v38 = vld [vmem:[%s11380_s1 + $0x1f0] sm:$0xff] }
 0x172   :  { %v534_v56 = vld [vmem:[%s11380_s1 + $0xf68] sm:$0xff]  ;;  %v8161_v59 = vcombine.low %v510_v47, %v518_v48  ;;  %v8176_v60 = vcombine.high %v525_v53, %v533_v54  ;;  %v541_v62 = vld [vmem:[%s11380_s1 + $0xfa0] sm:$0xff]  ;;  %v96_v39 = vld [vmem:[%s11380_s1 + $0x1b8] sm:$0xff]  ;;  %v7747_v48 = vcombine.low %v95_v37, %v103_v38 }
 0x173   :  { %v8178_v61 = vcombine.high %v526_v55, %v534_v56  ;;  %v549_v0 = vld [vmem:[%s11380_s1 + $0xfe0] sm:$0xff]  ;;  %v104_v40 = vld [vmem:[%s11380_s1 + $0x1f8] sm:$0xff]  ;;  %v111_v45 = vld [vmem:[%s11380_s1 + $0x230] sm:$0xff] }
 0x174   :  { %3515 = vmatpush1.bf16.msra.mxu0 %v8063_v5  ;;  %3601 = vmatpush1.bf16.msra.mxu1 %v8065_v7  ;;  %v8175_v5 = vcombine.low %v525_v53, %v533_v54  ;;  %v8177_v7 = vcombine.low %v526_v55, %v534_v56  ;;  %v119_v46 = vld [vmem:[%s11380_s1 + $0x270] sm:$0xff]  ;;  %v120_v47 = vld [vmem:[%s11380_s1 + $0x278] sm:$0xff] }
 0x175   :  { %3516 = vmatprep.subr.bf16.mxu0 %v8080_v8  ;;  %3602 = vmatprep.subr.bf16.mxu1 %v8082_v9  ;;  %v8192_v8 = vcombine.high %v541_v62, %v549_v0  ;;  %v8194_v9 = vcombine.high %v542_v1, %v550_v2  ;;  %v135_v53 = vld [vmem:[%s11380_s1 + $0x2f0] sm:$0xff]  ;;  %v128_v54 = vld [vmem:[%s11380_s1 + $0x2b8] sm:$0xff]  ;;  %v7763_v56 = vcombine.low %v111_v45, %v119_v46 }
 0x176   :  { %v136_v55 = vld [vmem:[%s11380_s1 + $0x2f8] sm:$0xff] }
 0x178   :  { %3517 = vmatpush1.bf16.msra.mxu0 %v8079_v14  ;;  %3603 = vmatpush1.bf16.msra.mxu1 %v8081_v16  ;;  %v8191_v14 = vcombine.low %v541_v62, %v549_v0  ;;  %v8193_v16 = vcombine.low %v542_v1, %v550_v2  ;;  %v151_v62 = vld [vmem:[%s11380_s1 + $0x370] sm:$0xff]  ;;  %v144_v0 = vld [vmem:[%s11380_s1 + $0x338] sm:$0xff] }
 0x179   :  { %3518 = vmatprep.subr.bf16.mxu0 %v8096_v17  ;;  %3604 = vmatprep.subr.bf16.mxu1 %v8098_v18  ;;  %v7700_v17 = vcombine.high %v47_v10, %v55_v11  ;;  %v7702_v18 = vcombine.high %v48_v12, %v56_v13  ;;  %v152_v1 = vld [vmem:[%s11380_s1 + $0x378] sm:$0xff] }
 0x17c   :  { %3519 = vmatpush1.bf16.msra.mxu0 %v8095_v23  ;;  %3605 = vmatpush1.bf16.msra.mxu1 %v8097_v24  ;;  %v7699_v23 = vcombine.low %v47_v10, %v55_v11  ;;  %v7701_v24 = vcombine.low %v48_v12, %v56_v13  ;;  %v167_v10 = vld [vmem:[%s11380_s1 + $0x3f0] sm:$0xff]  ;;  %v160_v11 = vld [vmem:[%s11380_s1 + $0x3b8] sm:$0xff] }
 0x17d   :  { %3520 = vmatprep.subr.bf16.mxu0 %v8112_v26  ;;  %3606 = vmatprep.subr.bf16.mxu1 %v8114_v27  ;;  %v7716_v26 = vcombine.high %v63_v19, %v71_v20  ;;  %v7718_v27 = vcombine.high %v64_v21, %v72_v22  ;;  %v168_v12 = vld [vmem:[%s11380_s1 + $0x3f8] sm:$0xff] }
 0x180   :  { %3521 = vmatpush1.bf16.msra.mxu0 %v8111_v33  ;;  %3607 = vmatpush1.bf16.msra.mxu1 %v8113_v34  ;;  %v7715_v33 = vcombine.low %v63_v19, %v71_v20  ;;  %v7717_v34 = vcombine.low %v64_v21, %v72_v22  ;;  %v183_v19 = vld [vmem:[%s11380_s1 + $0x470] sm:$0xff]  ;;  %v176_v20 = vld [vmem:[%s11380_s1 + $0x438] sm:$0xff] }
 0x181   :  { %3522 = vmatprep.subr.bf16.mxu0 %v8128_v35  ;;  %3608 = vmatprep.subr.bf16.mxu1 %v8130_v36  ;;  %v7732_v35 = vcombine.high %v79_v29, %v87_v30  ;;  %v7734_v36 = vcombine.high %v80_v31, %v88_v32  ;;  %v184_v21 = vld [vmem:[%s11380_s1 + $0x478] sm:$0xff] }
 0x184   :  { %3523 = vmatpush1.bf16.msra.mxu0 %v8127_v41  ;;  %3609 = vmatpush1.bf16.msra.mxu1 %v8129_v42  ;;  %v7731_v41 = vcombine.low %v79_v29, %v87_v30  ;;  %v7733_v42 = vcombine.low %v80_v31, %v88_v32  ;;  %v199_v29 = vld [vmem:[%s11380_s1 + $0x4f0] sm:$0xff]  ;;  %v192_v30 = vld [vmem:[%s11380_s1 + $0x4b8] sm:$0xff] }
 0x185   :  { %3524 = vmatprep.subr.bf16.mxu0 %v8144_v43  ;;  %3610 = vmatprep.subr.bf16.mxu1 %v8146_v44  ;;  %v7748_v43 = vcombine.high %v95_v37, %v103_v38  ;;  %v7750_v44 = vcombine.high %v96_v39, %v104_v40  ;;  %v200_v31 = vld [vmem:[%s11380_s1 + $0x4f8] sm:$0xff]  ;;  %v215_v37 = vld [vmem:[%s11380_s1 + $0x570] sm:$0xff] }
 0x186   :  { %v208_v38 = vld [vmem:[%s11380_s1 + $0x538] sm:$0xff] }
 0x188   :  { %3525 = vmatpush1.bf16.msra.mxu0 %v8143_v49  ;;  %3611 = vmatpush1.bf16.msra.mxu1 %v8145_v50  ;;  %v7749_v49 = vcombine.low %v96_v39, %v104_v40  ;;  %v7764_v50 = vcombine.high %v111_v45, %v119_v46  ;;  %v216_v39 = vld [vmem:[%s11380_s1 + $0x578] sm:$0xff]  ;;  %v231_v45 = vld [vmem:[%s11380_s1 + $0x5f0] sm:$0xff] }
 0x189   :  { %3526 = vmatprep.subr.bf16.mxu0 %v8160_v51  ;;  %3612 = vmatprep.subr.bf16.mxu1 %v8162_v52  ;;  %v127_v52 = vld [vmem:[%s11380_s1 + $0x2b0] sm:$0xff]  ;;  %v224_v46 = vld [vmem:[%s11380_s1 + $0x5b8] sm:$0xff] }
 0x18a   :  { %v7779_v2 = vcombine.low %v127_v52, %v135_v53 }
 0x18c   :  { %3527 = vmatpush1.bf16.msra.mxu0 %v8159_v57  ;;  %3613 = vmatpush1.bf16.msra.mxu1 %v8161_v59  ;;  %v7780_v59 = vcombine.high %v127_v52, %v135_v53  ;;  %v247_v52 = vld [vmem:[%s11380_s1 + $0x670] sm:$0xff]  ;;  %v240_v53 = vld [vmem:[%s11380_s1 + $0x638] sm:$0xff] }
 0x18d   :  { %3528 = vmatprep.subr.bf16.mxu0 %v8176_v60  ;;  %3614 = vmatprep.subr.bf16.mxu1 %v8178_v61  ;;  %v7782_v60 = vcombine.high %v128_v54, %v136_v55  ;;  %v143_v61 = vld [vmem:[%s11380_s1 + $0x330] sm:$0xff] }
 0x18e   :  { %v7795_v13 = vcombine.low %v143_v61, %v151_v62 }
 0x190   :  { %3529 = vmatpush1.bf16.msra.mxu0 %v8175_v5  ;;  %3615 = vmatpush1.bf16.msra.mxu1 %v8177_v7  ;;  %v7781_v5 = vcombine.low %v128_v54, %v136_v55  ;;  %v7796_v7 = vcombine.high %v143_v61, %v151_v62  ;;  %v248_v54 = vld [vmem:[%s11380_s1 + $0x678] sm:$0xff]  ;;  %v263_v61 = vld [vmem:[%s11380_s1 + $0x6f0] sm:$0xff] }
 0x191   :  { %3530 = vmatprep.subr.bf16.mxu0 %v8192_v8  ;;  %3616 = vmatprep.subr.bf16.mxu1 %v8194_v9  ;;  %v7798_v8 = vcombine.high %v144_v0, %v152_v1  ;;  %v159_v9 = vld [vmem:[%s11380_s1 + $0x3b0] sm:$0xff]  ;;  %v256_v62 = vld [vmem:[%s11380_s1 + $0x6b8] sm:$0xff] }
 0x192   :  { %v7811_v22 = vcombine.low %v159_v9, %v167_v10 }
 0x194   :  { %3531 = vmatpush1.bf16.msra.mxu0 %v8191_v14  ;;  %3617 = vmatpush1.bf16.msra.mxu1 %v8193_v16  ;;  %v7797_v14 = vcombine.low %v144_v0, %v152_v1  ;;  %v7812_v16 = vcombine.high %v159_v9, %v167_v10  ;;  %v264_v0 = vld [vmem:[%s11380_s1 + $0x6f8] sm:$0xff]  ;;  %v279_v9 = vld [vmem:[%s11380_s1 + $0x770] sm:$0xff] }
 0x195   :  { %3629 = vmatprep.subr.bf16.mxu0 %v7700_v17  ;;  %3715 = vmatprep.subr.bf16.mxu1 %v7702_v18  ;;  %v7814_v17 = vcombine.high %v160_v11, %v168_v12  ;;  %v175_v18 = vld [vmem:[%s11380_s1 + $0x430] sm:$0xff]  ;;  %v272_v10 = vld [vmem:[%s11380_s1 + $0x738] sm:$0xff] }
 0x196   :  { %v7827_v32 = vcombine.low %v175_v18, %v183_v19 }
 0x197   :  { %3533 = vmatmul.mubr.bf16.vlgmr.msra.gmra.mrb[8].mxu0 %v10123_v28  ;;  %3619 = vmatmul.mubr.bf16.vlgmr.msra.gmra.mrb[8].mxu1 %v10123_v28 }
 0x198   :  { %3630 = vmatpush1.bf16.msra.mxu0 %v7699_v23  ;;  %3716 = vmatpush1.bf16.msra.mxu1 %v7701_v24  ;;  %v7813_v23 = vcombine.low %v160_v11, %v168_v12  ;;  %v7828_v24 = vcombine.high %v175_v18, %v183_v19  ;;  %v280_v11 = vld [vmem:[%s11380_s1 + $0x778] sm:$0xff]  ;;  %v295_v18 = vld [vmem:[%s11380_s1 + $0x7f0] sm:$0xff] }
 0x199   :  { %3631 = vmatprep.subr.bf16.mxu0 %v7716_v26  ;;  %3717 = vmatprep.subr.bf16.mxu1 %v7718_v27  ;;  %v7830_v26 = vcombine.high %v176_v20, %v184_v21  ;;  %v191_v27 = vld [vmem:[%s11380_s1 + $0x4b0] sm:$0xff]  ;;  %v288_v19 = vld [vmem:[%s11380_s1 + $0x7b8] sm:$0xff] }
 0x19a   :  { %3661 = vmatprep.mubr.bf16.mxu0 %v9775_v58  ;;  %3747 = vmatprep.mubr.bf16.mxu1 %v9775_v58  ;;  %v112_v58 = vld [vmem:[%s11380_s1 + $0x238] sm:$0xff]  ;;  %v7843_v40 = vcombine.low %v191_v27, %v199_v29 }
 0x19b   :  { %v7766_v51 = vcombine.high %v112_v58, %v120_v47  ;;  %v7765_v57 = vcombine.low %v112_v58, %v120_v47  ;;  %v232_v58 = vld [vmem:[%s11380_s1 + $0x5f8] sm:$0xff] }
 0x19c   :  { %3632 = vmatpush1.bf16.msra.mxu0 %v7715_v33  ;;  %3718 = vmatpush1.bf16.msra.mxu1 %v7717_v34  ;;  %v7829_v33 = vcombine.low %v176_v20, %v184_v21  ;;  %v7844_v34 = vcombine.high %v191_v27, %v199_v29  ;;  %v296_v20 = vld [vmem:[%s11380_s1 + $0x7f8] sm:$0xff]  ;;  %v311_v27 = vld [vmem:[%s11380_s1 + $0x870] sm:$0xff] }
 0x19d   :  { %3633 = vmatprep.subr.bf16.mxu0 %v7732_v35  ;;  %3719 = vmatprep.subr.bf16.mxu1 %v7734_v36  ;;  %v7846_v35 = vcombine.high %v192_v30, %v200_v31  ;;  %v207_v36 = vld [vmem:[%s11380_s1 + $0x530] sm:$0xff]  ;;  %v304_v29 = vld [vmem:[%s11380_s1 + $0x838] sm:$0xff] }
 0x19e   :  { %v7859_v47 = vcombine.low %v207_v36, %v215_v37 }
 0x1a0   :  { %3634 = vmatpush1.bf16.msra.mxu0 %v7731_v41  ;;  %3720 = vmatpush1.bf16.msra.mxu1 %v7733_v42  ;;  %v7845_v41 = vcombine.low %v192_v30, %v200_v31  ;;  %v7860_v42 = vcombine.high %v207_v36, %v215_v37  ;;  %v312_v30 = vld [vmem:[%s11380_s1 + $0x878] sm:$0xff]  ;;  %v327_v36 = vld [vmem:[%s11380_s1 + $0x8f0] sm:$0xff] }
 0x1a1   :  { %3635 = vmatprep.subr.bf16.mxu0 %v7748_v43  ;;  %3721 = vmatprep.subr.bf16.mxu1 %v7750_v44  ;;  %v7862_v43 = vcombine.high %v208_v38, %v216_v39  ;;  %v223_v44 = vld [vmem:[%s11380_s1 + $0x5b0] sm:$0xff]  ;;  %v320_v37 = vld [vmem:[%s11380_s1 + $0x8b8] sm:$0xff] }
 0x1a2   :  { %v7875_v55 = vcombine.low %v223_v44, %v231_v45 }
 0x1a4   :  { %3636 = vmatpush1.bf16.msra.mxu0 %v7747_v48  ;;  %3722 = vmatpush1.bf16.msra.mxu1 %v7749_v49  ;;  %v7861_v48 = vcombine.low %v208_v38, %v216_v39  ;;  %v7876_v49 = vcombine.high %v223_v44, %v231_v45  ;;  %v328_v38 = vld [vmem:[%s11380_s1 + $0x8f8] sm:$0xff]  ;;  %v343_v44 = vld [vmem:[%s11380_s1 + $0x970] sm:$0xff] }
 0x1a5   :  { %3637 = vmatprep.subr.bf16.mxu0 %v7764_v50  ;;  %3723 = vmatprep.subr.bf16.mxu1 %v7766_v51  ;;  %v7878_v50 = vcombine.high %v224_v46, %v232_v58  ;;  %v239_v51 = vld [vmem:[%s11380_s1 + $0x630] sm:$0xff]  ;;  %v336_v45 = vld [vmem:[%s11380_s1 + $0x938] sm:$0xff] }
 0x1a6   :  { %v7891_v1 = vcombine.low %v239_v51, %v247_v52 }
 0x1a8   :  { %3638 = vmatpush1.bf16.msra.mxu0 %v7763_v56  ;;  %3724 = vmatpush1.bf16.msra.mxu1 %v7765_v57  ;;  %v7877_v56 = vcombine.low %v224_v46, %v232_v58  ;;  %v7892_v57 = vcombine.high %v239_v51, %v247_v52  ;;  %v344_v46 = vld [vmem:[%s11380_s1 + $0x978] sm:$0xff]  ;;  %v359_v51 = vld [vmem:[%s11380_s1 + $0x9f0] sm:$0xff] }
 0x1a9   :  { %3639 = vmatprep.subr.bf16.mxu0 %v7780_v59  ;;  %3725 = vmatprep.subr.bf16.mxu1 %v7782_v60  ;;  %v7894_v59 = vcombine.high %v240_v53, %v248_v54  ;;  %v255_v60 = vld [vmem:[%s11380_s1 + $0x6b0] sm:$0xff]  ;;  %v360_v52 = vld [vmem:[%s11380_s1 + $0x9f8] sm:$0xff] }
 0x1aa   :  { %v7907_v12 = vcombine.low %v255_v60, %v263_v61 }
 0x1ac   :  { %3640 = vmatpush1.bf16.msra.mxu0 %v7779_v2  ;;  %3726 = vmatpush1.bf16.msra.mxu1 %v7781_v5  ;;  %v7893_v2 = vcombine.low %v240_v53, %v248_v54  ;;  %v7908_v5 = vcombine.high %v255_v60, %v263_v61  ;;  %v7989_v54 = vcombine.low %v336_v45, %v344_v46  ;;  %v376_v60 = vld [vmem:[%s11380_s1 + $0xa78] sm:$0xff] }
 0x1ad   :  { %3641 = vmatprep.subr.bf16.mxu0 %v7796_v7  ;;  %3727 = vmatprep.subr.bf16.mxu1 %v7798_v8  ;;  %v7910_v7 = vcombine.high %v256_v62, %v264_v0  ;;  %v271_v8 = vld [vmem:[%s11380_s1 + $0x730] sm:$0xff] }
 0x1ae   :  { %v7923_v21 = vcombine.low %v271_v8, %v279_v9 }
 0x1b0   :  { %3642 = vmatpush1.bf16.msra.mxu0 %v7795_v13  ;;  %3728 = vmatpush1.bf16.msra.mxu1 %v7797_v14  ;;  %v7909_v13 = vcombine.low %v256_v62, %v264_v0  ;;  %v7924_v14 = vcombine.high %v271_v8, %v279_v9  ;;  %v392_v8 = vld [vmem:[%s11380_s1 + $0xaf8] sm:$0xff] }
 0x1b1   :  { %3643 = vmatprep.subr.bf16.mxu0 %v7812_v16  ;;  %3729 = vmatprep.subr.bf16.mxu1 %v7814_v17  ;;  %v7926_v16 = vcombine.high %v272_v10, %v280_v11  ;;  %v287_v17 = vld [vmem:[%s11380_s1 + $0x7b0] sm:$0xff] }
 0x1b2   :  { %v7939_v31 = vcombine.low %v287_v17, %v295_v18 }
 0x1b4   :  { %3644 = vmatpush1.bf16.msra.mxu0 %v7811_v22  ;;  %3730 = vmatpush1.bf16.msra.mxu1 %v7813_v23  ;;  %v7925_v22 = vcombine.low %v272_v10, %v280_v11  ;;  %v7940_v23 = vcombine.high %v287_v17, %v295_v18  ;;  %v408_v17 = vld [vmem:[%s11380_s1 + $0xb78] sm:$0xff] }
 0x1b5   :  { %3645 = vmatprep.subr.bf16.mxu0 %v7828_v24  ;;  %3731 = vmatprep.subr.bf16.mxu1 %v7830_v26  ;;  %v7942_v24 = vcombine.high %v288_v19, %v296_v20  ;;  %v303_v26 = vld [vmem:[%s11380_s1 + $0x830] sm:$0xff] }
 0x1b6   :  { %v7955_v39 = vcombine.low %v303_v26, %v311_v27 }
 0x1b8   :  { %3646 = vmatpush1.bf16.msra.mxu0 %v7827_v32  ;;  %3732 = vmatpush1.bf16.msra.mxu1 %v7829_v33  ;;  %v7941_v32 = vcombine.low %v288_v19, %v296_v20  ;;  %v7956_v33 = vcombine.high %v303_v26, %v311_v27  ;;  %v416_v26 = vld [vmem:[%s11380_s1 + $0xbb8] sm:$0xff] }
 0x1b9   :  { %3647 = vmatprep.subr.bf16.mxu0 %v7844_v34  ;;  %3733 = vmatprep.subr.bf16.mxu1 %v7846_v35  ;;  %v7958_v34 = vcombine.high %v304_v29, %v312_v30  ;;  %v319_v35 = vld [vmem:[%s11380_s1 + $0x8b0] sm:$0xff]  ;;  %v424_v27 = vld [vmem:[%s11380_s1 + $0xbf8] sm:$0xff] }
 0x1ba   :  { %v7971_v58 = vcombine.low %v319_v35, %v327_v36 }
 0x1bc   :  { %3648 = vmatpush1.bf16.msra.mxu0 %v7843_v40  ;;  %3734 = vmatpush1.bf16.msra.mxu1 %v7845_v41  ;;  %v7957_v40 = vcombine.low %v304_v29, %v312_v30  ;;  %v7972_v41 = vcombine.high %v319_v35, %v327_v36 }
 0x1bd   :  { %3649 = vmatprep.subr.bf16.mxu0 %v7860_v42  ;;  %3735 = vmatprep.subr.bf16.mxu1 %v7862_v43  ;;  %v7974_v42 = vcombine.high %v320_v37, %v328_v38  ;;  %v335_v43 = vld [vmem:[%s11380_s1 + $0x930] sm:$0xff] }
 0x1be   :  { %v7987_v53 = vcombine.low %v335_v43, %v343_v44 }
 0x1c0   :  { %3650 = vmatpush1.bf16.msra.mxu0 %v7859_v47  ;;  %3736 = vmatpush1.bf16.msra.mxu1 %v7861_v48  ;;  %v7973_v47 = vcombine.low %v320_v37, %v328_v38  ;;  %v7988_v48 = vcombine.high %v335_v43, %v343_v44 }
 0x1c1   :  { %3651 = vmatprep.subr.bf16.mxu0 %v7876_v49  ;;  %3737 = vmatprep.subr.bf16.mxu1 %v7878_v50  ;;  %v7990_v49 = vcombine.high %v336_v45, %v344_v46  ;;  %v351_v50 = vld [vmem:[%s11380_s1 + $0x9b0] sm:$0xff] }
 0x1c2   :  { %v8003_v61 = vcombine.low %v351_v50, %v359_v51 }
 0x1c4   :  { %3652 = vmatpush1.bf16.msra.mxu0 %v7875_v55  ;;  %3738 = vmatpush1.bf16.msra.mxu1 %v7877_v56  ;;  %v8004_v55 = vcombine.high %v351_v50, %v359_v51  ;;  %v432_v50 = vld [vmem:[%s11380_s1 + $0xc38] sm:$0xff] }
 0x1c5   :  { %3653 = vmatprep.subr.bf16.mxu0 %v7892_v57  ;;  %3739 = vmatprep.subr.bf16.mxu1 %v7894_v59  ;;  %v367_v57 = vld [vmem:[%s11380_s1 + $0xa30] sm:$0xff]  ;;  %v440_v51 = vld [vmem:[%s11380_s1 + $0xc78] sm:$0xff] }
 0x1c6   :  { %v375_v59 = vld [vmem:[%s11380_s1 + $0xa70] sm:$0xff] }
 0x1c7   :  { %v8020_v0 = vcombine.high %v367_v57, %v375_v59  ;;  %v8019_v9 = vcombine.low %v367_v57, %v375_v59  ;;  %v8086_v57 = vcombine.high %v432_v50, %v440_v51  ;;  %v447_v59 = vld [vmem:[%s11380_s1 + $0xcb0] sm:$0xff] }
 0x1c8   :  { %3654 = vmatpush1.bf16.msra.mxu0 %v7891_v1  ;;  %3740 = vmatpush1.bf16.msra.mxu1 %v7893_v2  ;;  %v383_v2 = vld [vmem:[%s11380_s1 + $0xab0] sm:$0xff] }
 0x1c9   :  { %3655 = vmatprep.subr.bf16.mxu0 %v7908_v5  ;;  %3741 = vmatprep.subr.bf16.mxu1 %v7910_v7  ;;  %v391_v5 = vld [vmem:[%s11380_s1 + $0xaf0] sm:$0xff]  ;;  %v384_v7 = vld [vmem:[%s11380_s1 + $0xab8] sm:$0xff] }
 0x1ca   :  { %v8036_v11 = vcombine.high %v383_v2, %v391_v5  ;;  %v8035_v18 = vcombine.low %v383_v2, %v391_v5  ;;  %v8037_v19 = vcombine.low %v384_v7, %v392_v8  ;;  %v463_v5 = vld [vmem:[%s11380_s1 + $0xd30] sm:$0xff] }
 0x1cc   :  { %3656 = vmatpush1.bf16.msra.mxu0 %v7907_v12  ;;  %3742 = vmatpush1.bf16.msra.mxu1 %v7909_v13  ;;  %v8038_v12 = vcombine.high %v384_v7, %v392_v8  ;;  %v399_v13 = vld [vmem:[%s11380_s1 + $0xb30] sm:$0xff]  ;;  %v464_v8 = vld [vmem:[%s11380_s1 + $0xd38] sm:$0xff] }
 0x1cd   :  { %3657 = vmatprep.subr.bf16.mxu0 %v7924_v14  ;;  %3743 = vmatprep.subr.bf16.mxu1 %v7926_v16  ;;  %v407_v14 = vld [vmem:[%s11380_s1 + $0xb70] sm:$0xff]  ;;  %v400_v16 = vld [vmem:[%s11380_s1 + $0xb38] sm:$0xff] }
 0x1ce   :  { %v8052_v20 = vcombine.high %v399_v13, %v407_v14  ;;  %v471_v7 = vld [vmem:[%s11380_s1 + $0xd70] sm:$0xff] }
 0x1d0   :  { %3658 = vmatpush1.bf16.msra.mxu0 %v7923_v21  ;;  %3744 = vmatpush1.bf16.msra.mxu1 %v7925_v22  ;;  %v415_v21 = vld [vmem:[%s11380_s1 + $0xbb0] sm:$0xff] }
 0x1d1   :  { %3659 = vmatprep.subr.bf16.mxu0 %v7940_v23  ;;  %3745 = vmatprep.subr.bf16.mxu1 %v7942_v24  ;;  %v8054_v23 = vcombine.high %v400_v16, %v408_v17  ;;  %v423_v24 = vld [vmem:[%s11380_s1 + $0xbf0] sm:$0xff] }
 0x1d4   :  { %3660 = vmatpush1.bf16.msra.mxu0 %v7939_v31  ;;  %3746 = vmatpush1.bf16.msra.mxu1 %v7941_v32 }
 0x1d5   :  { %3672 = vmatprep.subr.bf16.mxu0 %v7956_v33  ;;  %3758 = vmatprep.subr.bf16.mxu1 %v7958_v34  ;;  %v8051_v33 = vcombine.low %v399_v13, %v407_v14  ;;  %v8053_v34 = vcombine.low %v400_v16, %v408_v17  ;;  %v479_v14 = vld [vmem:[%s11380_s1 + $0xdb0] sm:$0xff]  ;;  %v480_v17 = vld [vmem:[%s11380_s1 + $0xdb8] sm:$0xff] }
 0x1d6   :  { %v487_v16 = vld [vmem:[%s11380_s1 + $0xdf0] sm:$0xff] }
 0x1d7   :  { %3662 = vmatmul.mubr.bf16.vlgmr.msra.gmra.mrb[12].mxu0 %v9908_v15  ;;  %3748 = vmatmul.mubr.bf16.vlgmr.msra.gmra.mrb[12].mxu1 %v9908_v15  ;;  %v352_v15 = vld [vmem:[%s11380_s1 + $0x9b8] sm:$0xff] }
 0x1d8   :  { %3673 = vmatpush1.bf16.msra.mxu0 %v7955_v39  ;;  %3759 = vmatpush1.bf16.msra.mxu1 %v7957_v40  ;;  %v8006_v56 = vcombine.high %v352_v15, %v360_v52  ;;  %v8005_v62 = vcombine.low %v352_v15, %v360_v52  ;;  %v8068_v39 = vcombine.high %v415_v21, %v423_v24 }
 0x1d9   :  { %3674 = vmatprep.subr.bf16.mxu0 %v7972_v41  ;;  %3760 = vmatprep.subr.bf16.mxu1 %v7974_v42  ;;  %v8070_v40 = vcombine.high %v416_v26, %v424_v27  ;;  %v431_v41 = vld [vmem:[%s11380_s1 + $0xc30] sm:$0xff] }
 0x1da   :  { %3704 = vmatprep.mubr.bf16.mxu0 %v9925_v25  ;;  %3790 = vmatprep.mubr.bf16.mxu1 %v9925_v25  ;;  %v368_v25 = vld [vmem:[%s11380_s1 + $0xa38] sm:$0xff] }
 0x1db   :  { %v8022_v1 = vcombine.high %v368_v25, %v376_v60  ;;  %v8021_v10 = vcombine.low %v368_v25, %v376_v60  ;;  %v455_v25 = vld [vmem:[%s11380_s1 + $0xcf0] sm:$0xff]  ;;  %v448_v60 = vld [vmem:[%s11380_s1 + $0xcb8] sm:$0xff] }
 0x1dc   :  { %3675 = vmatpush1.bf16.msra.mxu0 %v7971_v58  ;;  %3761 = vmatpush1.bf16.msra.mxu1 %v7973_v47  ;;  %v439_v58 = vld [vmem:[%s11380_s1 + $0xc70] sm:$0xff] }
 0x1dd   :  { %3676 = vmatprep.subr.bf16.mxu0 %v7988_v48  ;;  %3762 = vmatprep.subr.bf16.mxu1 %v7990_v49 }
 0x1e0   :  { %3677 = vmatpush1.bf16.msra.mxu0 %v7987_v53  ;;  %3763 = vmatpush1.bf16.msra.mxu1 %v7989_v54  ;;  %v8067_v53 = vcombine.low %v415_v21, %v423_v24  ;;  %v8132_v21 = vcombine.high %v479_v14, %v487_v16  ;;  %v503_v24 = vld [vmem:[%s11380_s1 + $0xe70] sm:$0xff] }
 0x1e1   :  { %3678 = vmatprep.subr.bf16.mxu0 %v8004_v55  ;;  %3764 = vmatprep.subr.bf16.mxu1 %v8006_v56  ;;  %v8069_v55 = vcombine.low %v416_v26, %v424_v27  ;;  %v8084_v56 = vcombine.high %v431_v41, %v439_v58  ;;  %v496_v26 = vld [vmem:[%s11380_s1 + $0xe38] sm:$0xff] }
 0x1e2   :  { %v504_v27 = vld [vmem:[%s11380_s1 + $0xe78] sm:$0xff] }
 0x1e4   :  { %3679 = vmatpush1.bf16.msra.mxu0 %v8003_v61  ;;  %3765 = vmatpush1.bf16.msra.mxu1 %v8005_v62  ;;  %v456_v61 = vld [vmem:[%s11380_s1 + $0xcf8] sm:$0xff]  ;;  %v8083_v62 = vcombine.low %v431_v41, %v439_v58  ;;  %v527_v41 = vld [vmem:[%s11380_s1 + $0xf30] sm:$0xff] }
 0x1e5   :  { %3680 = vmatprep.subr.bf16.mxu0 %v8020_v0  ;;  %3766 = vmatprep.subr.bf16.mxu1 %v8022_v1  ;;  %v8085_v0 = vcombine.low %v432_v50, %v440_v51  ;;  %v8100_v1 = vcombine.high %v447_v59, %v455_v25  ;;  %v8102_v2 = vcombine.high %v448_v60, %v456_v61  ;;  %v551_v50 = vld [vmem:[%s11380_s1 + $0xff0] sm:$0xff]  ;;  %v544_v51 = vld [vmem:[%s11380_s1 + $0xfb8] sm:$0xff] }
 0x1e8   :  { %3681 = vmatpush1.bf16.msra.mxu0 %v8019_v9  ;;  %3767 = vmatpush1.bf16.msra.mxu1 %v8021_v10  ;;  %v472_v9 = vld [vmem:[%s11380_s1 + $0xd78] sm:$0xff]  ;;  %v8099_v10 = vcombine.low %v447_v59, %v455_v25 }
 0x1e9   :  { %3682 = vmatprep.subr.bf16.mxu0 %v8036_v11  ;;  %3768 = vmatprep.subr.bf16.mxu1 %v8038_v12  ;;  %v8101_v11 = vcombine.low %v448_v60, %v456_v61  ;;  %v8116_v12 = vcombine.high %v463_v5, %v471_v7  ;;  %v8118_v13 = vcombine.high %v464_v8, %v472_v9  ;;  %v8815_v61 = vld [vmem:[#allocation2 + $0x4] ss:$16 sps:$4 sm:$0xff]  }
 0x1ea   :  { %v3362_v22 = vpop.f32.mrb[4].mxu0  ;;  %v3448_v29 = vpop.f32.mrb[4].mxu1 }
 0x1eb   :  { %v3364_v30 = vpop.f32.mrb[5].mxu0  ;;  %v3450_v31 = vpop.f32.mrb[5].mxu1  ;;  %v3805_v35 = vmax.f32 %v3362_v22, 0.0  ;;  %v3807_v42 = vmax.f32 %v3448_v29, 0.0  ;;  %v8131_v29 = vcombine.low %v479_v14, %v487_v16  ;;  %v8831_v14 = vld [vmem:[#allocation2 + $0x60] ss:$16 sps:$4 sm:$0xff]  }
 0x1ec   :  { %v3366_v32 = vpop.f32.mrb[6].mxu0  ;;  %3683 = vmatpush1.bf16.msra.mxu0 %v8035_v18  ;;  %v3452_v37 = vpop.f32.mrb[6].mxu1  ;;  %3769 = vmatpush1.bf16.msra.mxu1 %v8037_v19  ;;  %v3806_v43 = vmax.f32 %v3364_v30, 0.0  ;;  %v3808_v47 = vmax.f32 %v3450_v31, 0.0  ;;  %v488_v18 = vld [vmem:[%s11380_s1 + $0xdf8] sm:$0xff]  ;;  %v8115_v19 = vcombine.low %v463_v5, %v471_v7 }
 0x1ed   :  { %v3821_v36 = vmax.f32 %v3366_v32, 0.0  ;;  %v3368_v38 = vpop.f32.mrb[7].mxu0  ;;  %3684 = vmatprep.subr.bf16.mxu0 %v8052_v20  ;;  %v3823_v44 = vmax.f32 %v3452_v37, 0.0  ;;  %v3454_v46 = vpop.f32.mrb[7].mxu1  ;;  %3770 = vmatprep.subr.bf16.mxu1 %v8054_v23  ;;  %v8117_v20 = vcombine.low %v464_v8, %v472_v9  ;;  %v8134_v22 = vcombine.high %v480_v17, %v488_v18  ;;  %v495_v23 = vld [vmem:[%s11380_s1 + $0xe30] sm:$0xff] }
 0x1ee   :  { %v3822_v45 = vmax.f32 %v3368_v38, 0.0  ;;  %v3824_v49 = vmax.f32 %v3454_v46, 0.0  ;;  %v8133_v30 = vcombine.low %v480_v17, %v488_v18  ;;  %v8148_v31 = vcombine.high %v495_v23, %v503_v24  ;;  %v8824_v5 = vld [vmem:[#allocation2 + $0x2c] ss:$16 sps:$4 sm:$0xff]   ;;  %v8819_v7 = vld [vmem:[#allocation2 + $0x20] ss:$16 sps:$4 sm:$0xff]  }
 0x1ef   :  { %v11195_v48 = vpack.c.bf16 %v3821_v36, %v3805_v35  ;;  %v11203_v15 = vpack.c.bf16 %v3823_v44, %v3807_v42  ;;  %v8150_v32 = vcombine.high %v496_v26, %v504_v27  ;;  %v512_v35 = vld [vmem:[%s11380_s1 + $0xeb8] sm:$0xff]  ;;  %v8147_v37 = vcombine.low %v495_v23, %v503_v24  ;;  %v535_v42 = vld [vmem:[%s11380_s1 + $0xf70] sm:$0xff] }
 0x1f0   :  { %v11205_v52 = vpack.c.bf16 %v3822_v45, %v3806_v43  ;;  %3685 = vmatpush1.bf16.msra.mxu0 %v8051_v33  ;;  %v11207_v54 = vpack.c.bf16 %v3824_v49, %v3808_v47  ;;  %3771 = vmatpush1.bf16.msra.mxu1 %v8053_v34  ;;  %v511_v33 = vld [vmem:[%s11380_s1 + $0xeb0] sm:$0xff]  ;;  %v520_v36 = vld [vmem:[%s11380_s1 + $0xef8] sm:$0xff]  ;;  %v8149_v38 = vcombine.low %v496_v26, %v504_v27 }
 0x1f1   :  { %3686 = vmatprep.subr.bf16.mxu0 %v8068_v39  ;;  %3772 = vmatprep.subr.bf16.mxu1 %v8070_v40  ;;  %v519_v34 = vld [vmem:[%s11380_s1 + $0xef0] sm:$0xff]  ;;  %v8166_v40 = vcombine.high %v512_v35, %v520_v36  ;;  %v528_v43 = vld [vmem:[%s11380_s1 + $0xf38] sm:$0xff]  ;;  %v8165_v46 = vcombine.low %v512_v35, %v520_v36  ;;  %v8180_v58 = vcombine.high %v527_v41, %v535_v42 }
 0x1f2   :  { %v8164_v39 = vcombine.high %v511_v33, %v519_v34  ;;  %v536_v44 = vld [vmem:[%s11380_s1 + $0xf78] sm:$0xff]  ;;  %v8163_v45 = vcombine.low %v511_v33, %v519_v34  ;;  %v543_v49 = vld [vmem:[%s11380_s1 + $0xfb0] sm:$0xff] }
 0x1f3   :  { %v8182_v47 = vcombine.high %v528_v43, %v536_v44  ;;  %v8195_v25 = vcombine.low %v543_v49, %v551_v50  ;;  %v8822_v8 = vld [vmem:[#allocation2 + $0x28] ss:$16 sps:$4 sm:$0xff]   ;;  %v8827_v9 = vld [vmem:[#allocation2 + $0x44] ss:$16 sps:$4 sm:$0xff]   ;;  %v8842_v18 = vld [vmem:[#allocation2 + $0x8c] ss:$16 sps:$4 sm:$0xff]  }
 0x1f4   :  { %3687 = vmatpush1.bf16.msra.mxu0 %v8067_v53  ;;  %3773 = vmatpush1.bf16.msra.mxu1 %v8069_v55  ;;  %v552_v53 = vld [vmem:[%s11380_s1 + $0xff8] sm:$0xff]  ;;  %v8179_v55 = vcombine.low %v527_v41, %v535_v42  ;;  %v8839_v17 = vld [vmem:[#allocation2 + $0x84] ss:$16 sps:$4 sm:$0xff]   ;;  %v8849_v27 = vld [vmem:[#allocation2 + $0xc0] ss:$16 sps:$4 sm:$0xff]  }
 0x1f5   :  { %3688 = vmatprep.subr.bf16.mxu0 %v8084_v56  ;;  %3774 = vmatprep.subr.bf16.mxu1 %v8086_v57  ;;  %v8181_v56 = vcombine.low %v528_v43, %v536_v44  ;;  %v8196_v57 = vcombine.high %v543_v49, %v551_v50  ;;  %v8198_v59 = vcombine.high %v544_v51, %v552_v53  ;;  %v8834_v16 = vld [vmem:[#allocation2 + $0x68] ss:$16 sps:$4 sm:$0xff]   ;;  %v8851_v24 = vld [vmem:[#allocation2 + $0xc4] ss:$16 sps:$4 sm:$0xff]   ;;  %v8854_v26 = vld [vmem:[#allocation2 + $0xcc] ss:$16 sps:$4 sm:$0xff]  }
 0x1f6   :  { %v8197_v60 = vcombine.low %v544_v51, %v552_v53  ;;  %v8846_v23 = vld [vmem:[#allocation2 + $0xa8] ss:$16 sps:$4 sm:$0xff]   ;;  %v8863_v34 = vld [vmem:[#allocation2 + $0x104] ss:$16 sps:$4 sm:$0xff]   ;;  %v8866_v35 = vld [vmem:[#allocation2 + $0x10c] ss:$16 sps:$4 sm:$0xff]  }
 0x1f7   :  { %v8858_v33 = vld [vmem:[#allocation2 + $0xe8] ss:$16 sps:$4 sm:$0xff]   ;;  %v8861_v36 = vld [vmem:[#allocation2 + $0x100] ss:$16 sps:$4 sm:$0xff]   ;;  %v8875_v42 = vld [vmem:[#allocation2 + $0x144] ss:$16 sps:$4 sm:$0xff]  }
 0x1f8   :  { %3689 = vmatpush1.bf16.msra.mxu0 %v8083_v62  ;;  %3775 = vmatpush1.bf16.msra.mxu1 %v8085_v0  ;;  %v8818_v62 = vld [vmem:[#allocation2 + $0xc] ss:$16 sps:$4 sm:$0xff]   ;;  %v8813_v0 = vld [vmem:[#allocation2] ss:$16 sps:$4 sm:$0xff]   ;;  %v8870_v41 = vld [vmem:[#allocation2 + $0x128] ss:$16 sps:$4 sm:$0xff]  }
 0x1f9   :  { %3690 = vmatprep.subr.bf16.mxu0 %v8100_v1  ;;  %3776 = vmatprep.subr.bf16.mxu1 %v8102_v2  ;;  %v8816_v1 = vld [vmem:[#allocation2 + $0x8] ss:$16 sps:$4 sm:$0xff]   ;;  %v8821_v2 = vld [vmem:[#allocation2 + $0x24] ss:$16 sps:$4 sm:$0xff]   ;;  %v8878_v43 = vld [vmem:[#allocation2 + $0x14c] ss:$16 sps:$4 sm:$0xff]  }
 0x1fa   :  { %v8873_v44 = vld [vmem:[#allocation2 + $0x140] ss:$16 sps:$4 sm:$0xff]   ;;  %v8882_v49 = vld [vmem:[#allocation2 + $0x168] ss:$16 sps:$4 sm:$0xff]   ;;  %v8887_v50 = vld [vmem:[#allocation2 + $0x184] ss:$16 sps:$4 sm:$0xff]  }
 0x1fb   :  { %v8890_v51 = vld [vmem:[#allocation2 + $0x18c] ss:$16 sps:$4 sm:$0xff]   ;;  %v8885_v53 = vld [vmem:[#allocation2 + $0x180] ss:$16 sps:$4 sm:$0xff]  }
 0x1fc   :  { %3691 = vmatpush1.bf16.msra.mxu0 %v8099_v10  ;;  %3777 = vmatpush1.bf16.msra.mxu1 %v8101_v11  ;;  %v8830_v10 = vld [vmem:[#allocation2 + $0x4c] ss:$16 sps:$4 sm:$0xff]   ;;  %v8825_v11 = vld [vmem:[#allocation2 + $0x40] ss:$16 sps:$4 sm:$0xff]  }
 0x1fd   :  { %3692 = vmatprep.subr.bf16.mxu0 %v8116_v12  ;;  %3778 = vmatprep.subr.bf16.mxu1 %v8118_v13  ;;  %v8828_v12 = vld [vmem:[#allocation2 + $0x48] ss:$16 sps:$4 sm:$0xff]   ;;  %v8833_v13 = vld [vmem:[#allocation2 + $0x64] ss:$16 sps:$4 sm:$0xff]  }
 0x200   :  { %3693 = vmatpush1.bf16.msra.mxu0 %v8115_v19  ;;  %3779 = vmatpush1.bf16.msra.mxu1 %v8117_v20  ;;  %v8840_v19 = vld [vmem:[#allocation2 + $0x88] ss:$16 sps:$4 sm:$0xff]   ;;  %v8845_v20 = vld [vmem:[#allocation2 + $0xa4] ss:$16 sps:$4 sm:$0xff]  }
 0x201   :  { %3694 = vmatprep.subr.bf16.mxu0 %v8132_v21  ;;  %3780 = vmatprep.subr.bf16.mxu1 %v8134_v22  ;;  %v8848_v21 = vld [vmem:[#allocation2 + $0xac] ss:$16 sps:$4 sm:$0xff]   ;;  %v8843_v22 = vld [vmem:[#allocation2 + $0xa0] ss:$16 sps:$4 sm:$0xff]  }
 0x204   :  { %3695 = vmatpush1.bf16.msra.mxu0 %v8131_v29  ;;  %3781 = vmatpush1.bf16.msra.mxu1 %v8133_v30  ;;  %v8852_v29 = vld [vmem:[#allocation2 + $0xc8] ss:$16 sps:$4 sm:$0xff]   ;;  %v8857_v30 = vld [vmem:[#allocation2 + $0xe4] ss:$16 sps:$4 sm:$0xff]  }
 0x205   :  { %3696 = vmatprep.subr.bf16.mxu0 %v8148_v31  ;;  %3782 = vmatprep.subr.bf16.mxu1 %v8150_v32  ;;  %v8860_v31 = vld [vmem:[#allocation2 + $0xec] ss:$16 sps:$4 sm:$0xff]   ;;  %v8855_v32 = vld [vmem:[#allocation2 + $0xe0] ss:$16 sps:$4 sm:$0xff]  }
 0x208   :  { %3697 = vmatpush1.bf16.msra.mxu0 %v8147_v37  ;;  %3783 = vmatpush1.bf16.msra.mxu1 %v8149_v38  ;;  %v8864_v37 = vld [vmem:[#allocation2 + $0x108] ss:$16 sps:$4 sm:$0xff]   ;;  %v8869_v38 = vld [vmem:[#allocation2 + $0x124] ss:$16 sps:$4 sm:$0xff]  }
 0x209   :  { %3698 = vmatprep.subr.bf16.mxu0 %v8164_v39  ;;  %3784 = vmatprep.subr.bf16.mxu1 %v8166_v40  ;;  %v8872_v39 = vld [vmem:[#allocation2 + $0x12c] ss:$16 sps:$4 sm:$0xff]   ;;  %v8867_v40 = vld [vmem:[#allocation2 + $0x120] ss:$16 sps:$4 sm:$0xff]  }
 0x20c   :  { %3699 = vmatpush1.bf16.msra.mxu0 %v8163_v45  ;;  %3785 = vmatpush1.bf16.msra.mxu1 %v8165_v46  ;;  %v8876_v45 = vld [vmem:[#allocation2 + $0x148] ss:$16 sps:$4 sm:$0xff]   ;;  %v8881_v46 = vld [vmem:[#allocation2 + $0x164] ss:$16 sps:$4 sm:$0xff]  }
 0x20d   :  { %3700 = vmatprep.subr.bf16.mxu0 %v8180_v58  ;;  %3786 = vmatprep.subr.bf16.mxu1 %v8182_v47  ;;  %v8884_v58 = vld [vmem:[#allocation2 + $0x16c] ss:$16 sps:$4 sm:$0xff]   ;;  %v8879_v47 = vld [vmem:[#allocation2 + $0x160] ss:$16 sps:$4 sm:$0xff]  }
 0x210   :  { %3701 = vmatpush1.bf16.msra.mxu0 %v8179_v55  ;;  %3787 = vmatpush1.bf16.msra.mxu1 %v8181_v56  ;;  %v8888_v55 = vld [vmem:[#allocation2 + $0x188] ss:$16 sps:$4 sm:$0xff]   ;;  %v8893_v56 = vld [vmem:[#allocation2 + $0x1a4] ss:$16 sps:$4 sm:$0xff]  }
 0x211   :  { %3702 = vmatprep.subr.bf16.mxu0 %v8196_v57  ;;  %3788 = vmatprep.subr.bf16.mxu1 %v8198_v59  ;;  %v8896_v57 = vld [vmem:[#allocation2 + $0x1ac] ss:$16 sps:$4 sm:$0xff]   ;;  %v8891_v59 = vld [vmem:[#allocation2 + $0x1a0] ss:$16 sps:$4 sm:$0xff]  }
 0x214   :  { %3703 = vmatpush1.bf16.msra.mxu0 %v8195_v25  ;;  %3789 = vmatpush1.bf16.msra.mxu1 %v8197_v60  ;;  %v8894_v25 = vld [vmem:[#allocation2 + $0x1a8] ss:$16 sps:$4 sm:$0xff]   ;;  %v8899_v60 = vld [vmem:[#allocation2 + $0x1c4] ss:$16 sps:$4 sm:$0xff]  }
 0x215   :  { %6921 = vmatprep.subr.bf16.mxu0 %v8815_v61  ;;  %7265 = vmatprep.subr.bf16.mxu1 %v8818_v62  ;;  %v8902_v61 = vld [vmem:[#allocation2 + $0x1cc] ss:$16 sps:$4 sm:$0xff]   ;;  %v8897_v62 = vld [vmem:[#allocation2 + $0x1c0] ss:$16 sps:$4 sm:$0xff]  }
 0x217   :  { %3705 = vmatmul.mubr.bf16.vlgmr.msra.gmra.mrb[12].mxu0 %v10123_v28  ;;  %3791 = vmatmul.mubr.bf16.vlgmr.msra.gmra.mrb[12].mxu1 %v10123_v28  ;;  %v8836_v28 = vld [vmem:[#allocation2 + $0x6c] ss:$16 sps:$4 sm:$0xff]  }
 0x218   :  { %6922 = vmatpush1.bf16.msra.mxu0 %v8813_v0  ;;  %6953 = vmatprep.mubr.bf16.mxu0 %v10805_v4  ;;  %v8900_v0 = vld [vmem:[#allocation2 + $0x1c8] ss:$16 sps:$4 sm:$0xff]  }
 0x219   :  { %7266 = vmatpush1.bf16.msra.mxu1 %v8816_v1  ;;  %7297 = vmatprep.mubr.bf16.mxu1 %v10805_v4  ;;  %v8837_v4 = vld [vmem:[#allocation2 + $0x80] ss:$16 sps:$4 sm:$0xff]   ;;  %v8905_v1 = vld [vmem:[#allocation2 + $0x1e4] ss:$16 sps:$4 sm:$0xff]  }
 0x21a   :  { %6923 = vmatprep.subr.bf16.mxu0 %v8821_v2  ;;  %7267 = vmatprep.subr.bf16.mxu1 %v8824_v5  ;;  %v8908_v2 = vld [vmem:[#allocation2 + $0x1ec] ss:$16 sps:$4 sm:$0xff]   ;;  %v8903_v5 = vld [vmem:[#allocation2 + $0x1e0] ss:$16 sps:$4 sm:$0xff]  }
 0x21c   :  { %6924 = vmatpush1.bf16.msra.mxu0 %v8819_v7  ;;  %v8906_v7 = vld [vmem:[#allocation2 + $0x1e8] ss:$16 sps:$4 sm:$0xff]  }
 0x21d   :  { %7268 = vmatpush1.bf16.msra.mxu1 %v8822_v8  ;;  %6925 = vmatprep.subr.bf16.mxu0 %v8827_v9  ;;  %v8911_v8 = vld [vmem:[#allocation2 + $0x204] ss:$16 sps:$4 sm:$0xff]   ;;  %v8914_v9 = vld [vmem:[#allocation2 + $0x20c] ss:$16 sps:$4 sm:$0xff]  }
 0x21e   :  { %7269 = vmatprep.subr.bf16.mxu1 %v8830_v10  ;;  %v8909_v10 = vld [vmem:[#allocation2 + $0x200] ss:$16 sps:$4 sm:$0xff]  }
 0x220   :  { %6926 = vmatpush1.bf16.msra.mxu0 %v8825_v11  ;;  %v8912_v11 = vld [vmem:[#allocation2 + $0x208] ss:$16 sps:$4 sm:$0xff]  }
 0x221   :  { %7270 = vmatpush1.bf16.msra.mxu1 %v8828_v12  ;;  %6927 = vmatprep.subr.bf16.mxu0 %v8833_v13  ;;  %v8917_v12 = vld [vmem:[#allocation2 + $0x224] ss:$16 sps:$4 sm:$0xff]   ;;  %v8920_v13 = vld [vmem:[#allocation2 + $0x22c] ss:$16 sps:$4 sm:$0xff]  }
 0x222   :  { %7271 = vmatprep.subr.bf16.mxu1 %v8836_v28  ;;  %v8915_v28 = vld [vmem:[#allocation2 + $0x220] ss:$16 sps:$4 sm:$0xff]  }
 0x224   :  { %6928 = vmatpush1.bf16.msra.mxu0 %v8831_v14  ;;  %v8918_v14 = vld [vmem:[#allocation2 + $0x228] ss:$16 sps:$4 sm:$0xff]  }
 0x225   :  { %7272 = vmatpush1.bf16.msra.mxu1 %v8834_v16  ;;  %6929 = vmatprep.subr.bf16.mxu0 %v8839_v17  ;;  %v8923_v16 = vld [vmem:[#allocation2 + $0x244] ss:$16 sps:$4 sm:$0xff]   ;;  %v8926_v17 = vld [vmem:[#allocation2 + $0x24c] ss:$16 sps:$4 sm:$0xff]  }
 0x226   :  { %7273 = vmatprep.subr.bf16.mxu1 %v8842_v18  ;;  %v8921_v18 = vld [vmem:[#allocation2 + $0x240] ss:$16 sps:$4 sm:$0xff]  }
 0x228   :  { %6930 = vmatpush1.bf16.msra.mxu0 %v8837_v4  ;;  %v8924_v4 = vld [vmem:[#allocation2 + $0x248] ss:$16 sps:$4 sm:$0xff]  }
 0x229   :  { %7274 = vmatpush1.bf16.msra.mxu1 %v8840_v19  ;;  %6931 = vmatprep.subr.bf16.mxu0 %v8845_v20  ;;  %v8929_v19 = vld [vmem:[#allocation2 + $0x264] ss:$16 sps:$4 sm:$0xff]   ;;  %v8927_v20 = vld [vmem:[#allocation2 + $0x260] ss:$16 sps:$4 sm:$0xff]  }
 0x22a   :  { %7275 = vmatprep.subr.bf16.mxu1 %v8848_v21  ;;  %v8930_v21 = vld [vmem:[#allocation2 + $0x268] ss:$16 sps:$4 sm:$0xff]  }
 0x22c   :  { %6932 = vmatpush1.bf16.msra.mxu0 %v8843_v22  ;;  %v8935_v22 = vld [vmem:[#allocation2 + $0x284] ss:$16 sps:$4 sm:$0xff]  }
 0x22d   :  { %7276 = vmatpush1.bf16.msra.mxu1 %v8846_v23  ;;  %6933 = vmatprep.subr.bf16.mxu0 %v8851_v24  ;;  %v8938_v23 = vld [vmem:[#allocation2 + $0x28c] ss:$16 sps:$4 sm:$0xff]   ;;  %v8936_v24 = vld [vmem:[#allocation2 + $0x288] ss:$16 sps:$4 sm:$0xff]  }
 0x22e   :  { %7277 = vmatprep.subr.bf16.mxu1 %v8854_v26  ;;  %v8941_v26 = vld [vmem:[#allocation2 + $0x2a4] ss:$16 sps:$4 sm:$0xff]  }
 0x230   :  { %6934 = vmatpush1.bf16.msra.mxu0 %v8849_v27  ;;  %v8944_v27 = vld [vmem:[#allocation2 + $0x2ac] ss:$16 sps:$4 sm:$0xff]  }
 0x231   :  { %7278 = vmatpush1.bf16.msra.mxu1 %v8852_v29  ;;  %6935 = vmatprep.subr.bf16.mxu0 %v8857_v30  ;;  %v8939_v29 = vld [vmem:[#allocation2 + $0x2a0] ss:$16 sps:$4 sm:$0xff]   ;;  %v8942_v30 = vld [vmem:[#allocation2 + $0x2a8] ss:$16 sps:$4 sm:$0xff]  }
 0x232   :  { %7279 = vmatprep.subr.bf16.mxu1 %v8860_v31  ;;  %v8947_v31 = vld [vmem:[#allocation2 + $0x2c4] ss:$16 sps:$4 sm:$0xff]  }
 0x234   :  { %6936 = vmatpush1.bf16.msra.mxu0 %v8855_v32 }
 0x235   :  { %7280 = vmatpush1.bf16.msra.mxu1 %v8858_v33  ;;  %6937 = vmatprep.subr.bf16.mxu0 %v8863_v34  ;;  %v8950_v33 = vld [vmem:[#allocation2 + $0x2cc] ss:$16 sps:$4 sm:$0xff]  }
 0x236   :  { %7281 = vmatprep.subr.bf16.mxu1 %v8866_v35 }
 0x238   :  { %6938 = vmatpush1.bf16.msra.mxu0 %v8861_v36  ;;  %v8945_v36 = vld [vmem:[#allocation2 + $0x2c0] ss:$16 sps:$4 sm:$0xff]  }
 0x239   :  { %7282 = vmatpush1.bf16.msra.mxu1 %v8864_v37  ;;  %6939 = vmatprep.subr.bf16.mxu0 %v8869_v38 }
 0x23a   :  { %7283 = vmatprep.subr.bf16.mxu1 %v8872_v39  ;;  %v8948_v39 = vld [vmem:[#allocation2 + $0x2c8] ss:$16 sps:$4 sm:$0xff]  }
 0x23c   :  { %6940 = vmatpush1.bf16.msra.mxu0 %v8867_v40  ;;  %v8953_v40 = vld [vmem:[#allocation2 + $0x2e4] ss:$16 sps:$4 sm:$0xff]  }
 0x23d   :  { %7284 = vmatpush1.bf16.msra.mxu1 %v8870_v41  ;;  %6941 = vmatprep.subr.bf16.mxu0 %v8875_v42 }
 0x23e   :  { %7285 = vmatprep.subr.bf16.mxu1 %v8878_v43 }
 0x240   :  { %6942 = vmatpush1.bf16.msra.mxu0 %v8873_v44 }
 0x241   :  { %7286 = vmatpush1.bf16.msra.mxu1 %v8876_v45  ;;  %6943 = vmatprep.subr.bf16.mxu0 %v8881_v46  ;;  %v8956_v45 = vld [vmem:[#allocation2 + $0x2ec] ss:$16 sps:$4 sm:$0xff]  }
 0x242   :  { %7287 = vmatprep.subr.bf16.mxu1 %v8884_v58 }
 0x244   :  { %6944 = vmatpush1.bf16.msra.mxu0 %v8879_v47 }
 0x245   :  { %7288 = vmatpush1.bf16.msra.mxu1 %v8882_v49  ;;  %6945 = vmatprep.subr.bf16.mxu0 %v8887_v50 }
 0x246   :  { %7289 = vmatprep.subr.bf16.mxu1 %v8890_v51 }
 0x248   :  { %6946 = vmatpush1.bf16.msra.mxu0 %v8885_v53 }
 0x249   :  { %7290 = vmatpush1.bf16.msra.mxu1 %v8888_v55  ;;  %6947 = vmatprep.subr.bf16.mxu0 %v8893_v56 }
 0x24a   :  { %7291 = vmatprep.subr.bf16.mxu1 %v8896_v57 }
 0x24c   :  { %6948 = vmatpush1.bf16.msra.mxu0 %v8891_v59  ;;  %v8951_v59 = vld [vmem:[#allocation2 + $0x2e0] ss:$16 sps:$4 sm:$0xff]  }
 0x24d   :  { %7292 = vmatpush1.bf16.msra.mxu1 %v8894_v25  ;;  %6949 = vmatprep.subr.bf16.mxu0 %v8899_v60  ;;  %v8954_v60 = vld [vmem:[#allocation2 + $0x2e8] ss:$16 sps:$4 sm:$0xff]  }
 0x24e   :  { %7293 = vmatprep.subr.bf16.mxu1 %v8902_v61  ;;  %v8959_v61 = vld [vmem:[#allocation2 + $0x304] ss:$16 sps:$4 sm:$0xff]  }
 0x250   :  { %6950 = vmatpush1.bf16.msra.mxu0 %v8897_v62  ;;  %v8962_v62 = vld [vmem:[#allocation2 + $0x30c] ss:$16 sps:$4 sm:$0xff]  }
 0x251   :  { %7294 = vmatpush1.bf16.msra.mxu1 %v8900_v0  ;;  %6951 = vmatprep.subr.bf16.mxu0 %v8905_v1  ;;  %v8957_v0 = vld [vmem:[#allocation2 + $0x300] ss:$16 sps:$4 sm:$0xff]   ;;  %v8960_v1 = vld [vmem:[#allocation2 + $0x308] ss:$16 sps:$4 sm:$0xff]  }
 0x252   :  { %7295 = vmatprep.subr.bf16.mxu1 %v8908_v2  ;;  %v8965_v2 = vld [vmem:[#allocation2 + $0x324] ss:$16 sps:$4 sm:$0xff]  }
 0x254   :  { %6952 = vmatpush1.bf16.msra.mxu0 %v8903_v5  ;;  %v8968_v5 = vld [vmem:[#allocation2 + $0x32c] ss:$16 sps:$4 sm:$0xff]  }
 0x255   :  { %7296 = vmatpush1.bf16.msra.mxu1 %v8906_v7  ;;  %6964 = vmatprep.subr.bf16.mxu0 %v8911_v8  ;;  %v8963_v7 = vld [vmem:[#allocation2 + $0x320] ss:$16 sps:$4 sm:$0xff]   ;;  %v8966_v8 = vld [vmem:[#allocation2 + $0x328] ss:$16 sps:$4 sm:$0xff]  }
 0x256   :  { %7308 = vmatprep.subr.bf16.mxu1 %v8914_v9  ;;  %v8971_v9 = vld [vmem:[#allocation2 + $0x344] ss:$16 sps:$4 sm:$0xff]  }
 0x257   :  { %6954 = vmatmul.mubr.bf16.vlgmr.msra.gmra.mrb[16].mxu0 %v10795_v63 }
 0x258   :  { %7298 = vmatmul.mubr.bf16.vlgmr.msra.gmra.mrb[16].mxu1 %v10795_v63  ;;  %6965 = vmatpush1.bf16.msra.mxu0 %v8909_v10  ;;  %v8932_v63 = vld [vmem:[#allocation2 + $0x26c] ss:$16 sps:$4 sm:$0xff]  }
 0x259   :  { %6996 = vmatprep.mubr.bf16.mxu0 %v10807_v6  ;;  %7309 = vmatpush1.bf16.msra.mxu1 %v8912_v11  ;;  %v8974_v10 = vld [vmem:[#allocation2 + $0x34c] ss:$16 sps:$4 sm:$0xff]   ;;  %v8969_v11 = vld [vmem:[#allocation2 + $0x340] ss:$16 sps:$4 sm:$0xff]  }
 0x25a   :  { %7340 = vmatprep.mubr.bf16.mxu1 %v10807_v6  ;;  %6966 = vmatprep.subr.bf16.mxu0 %v8917_v12  ;;  %v8933_v6 = vld [vmem:[#allocation2 + $0x280] ss:$16 sps:$4 sm:$0xff]   ;;  %v8972_v12 = vld [vmem:[#allocation2 + $0x348] ss:$16 sps:$4 sm:$0xff]  }
 0x25b   :  { %7310 = vmatprep.subr.bf16.mxu1 %v8920_v13  ;;  %v8977_v13 = vld [vmem:[#allocation2 + $0x364] ss:$16 sps:$4 sm:$0xff]  }
 0x25c   :  { %6967 = vmatpush1.bf16.msra.mxu0 %v8915_v28  ;;  %v8980_v28 = vld [vmem:[#allocation2 + $0x36c] ss:$16 sps:$4 sm:$0xff]  }
 0x25d   :  { %7311 = vmatpush1.bf16.msra.mxu1 %v8918_v14  ;;  %6968 = vmatprep.subr.bf16.mxu0 %v8923_v16  ;;  %v8975_v14 = vld [vmem:[#allocation2 + $0x360] ss:$16 sps:$4 sm:$0xff]   ;;  %v8978_v16 = vld [vmem:[#allocation2 + $0x368] ss:$16 sps:$4 sm:$0xff]  }
 0x25e   :  { %7312 = vmatprep.subr.bf16.mxu1 %v8926_v17  ;;  %v8983_v17 = vld [vmem:[#allocation2 + $0x384] ss:$16 sps:$4 sm:$0xff]  }
 0x260   :  { %6969 = vmatpush1.bf16.msra.mxu0 %v8921_v18  ;;  %v8986_v18 = vld [vmem:[#allocation2 + $0x38c] ss:$16 sps:$4 sm:$0xff]  }
 0x261   :  { %7313 = vmatpush1.bf16.msra.mxu1 %v8924_v4  ;;  %6970 = vmatprep.subr.bf16.mxu0 %v8929_v19  ;;  %v8981_v4 = vld [vmem:[#allocation2 + $0x380] ss:$16 sps:$4 sm:$0xff]   ;;  %v8984_v19 = vld [vmem:[#allocation2 + $0x388] ss:$16 sps:$4 sm:$0xff]  }
 0x262   :  { %7314 = vmatprep.subr.bf16.mxu1 %v8932_v63  ;;  %v8989_v63 = vld [vmem:[#allocation2 + $0x3a4] ss:$16 sps:$4 sm:$0xff]  }
 0x264   :  { %6971 = vmatpush1.bf16.msra.mxu0 %v8927_v20  ;;  %v8992_v20 = vld [vmem:[#allocation2 + $0x3ac] ss:$16 sps:$4 sm:$0xff]  }
 0x265   :  { %7315 = vmatpush1.bf16.msra.mxu1 %v8930_v21  ;;  %6972 = vmatprep.subr.bf16.mxu0 %v8935_v22  ;;  %v8987_v21 = vld [vmem:[#allocation2 + $0x3a0] ss:$16 sps:$4 sm:$0xff]   ;;  %v8990_v22 = vld [vmem:[#allocation2 + $0x3a8] ss:$16 sps:$4 sm:$0xff]  }
 0x266   :  { %7316 = vmatprep.subr.bf16.mxu1 %v8938_v23  ;;  %v8995_v23 = vld [vmem:[#allocation2 + $0x3c4] ss:$16 sps:$4 sm:$0xff]  }
 0x268   :  { %6973 = vmatpush1.bf16.msra.mxu0 %v8933_v6  ;;  %v8998_v6 = vld [vmem:[#allocation2 + $0x3cc] ss:$16 sps:$4 sm:$0xff]  }
 0x269   :  { %7317 = vmatpush1.bf16.msra.mxu1 %v8936_v24  ;;  %6974 = vmatprep.subr.bf16.mxu0 %v8941_v26  ;;  %v8993_v24 = vld [vmem:[#allocation2 + $0x3c0] ss:$16 sps:$4 sm:$0xff]   ;;  %v8996_v26 = vld [vmem:[#allocation2 + $0x3c8] ss:$16 sps:$4 sm:$0xff]  }
 0x26a   :  { %v3534_v32 = vpop.f32.mrb[8].mxu0  ;;  %7318 = vmatprep.subr.bf16.mxu1 %v8944_v27  ;;  %v3620_v34 = vpop.f32.mrb[8].mxu1  ;;  %v9001_v27 = vld [vmem:[#allocation2 + $0x3e4] ss:$16 sps:$4 sm:$0xff]  }
 0x26b   :  { %v3536_v35 = vpop.f32.mrb[9].mxu0  ;;  %v3622_v37 = vpop.f32.mrb[9].mxu1  ;;  %v3809_v41 = vmax.f32 %v3534_v32, 0.0  ;;  %v3811_v46 = vmax.f32 %v3620_v34, 0.0  ;;  %v9007_v32 = vld [vmem:[#allocation2 + $0x404] ss:$16 sps:$4 sm:$0xff]  }
 0x26c   :  { %v3538_v38 = vpop.f32.mrb[10].mxu0  ;;  %6975 = vmatpush1.bf16.msra.mxu0 %v8939_v29  ;;  %v3624_v43 = vpop.f32.mrb[10].mxu1  ;;  %v3810_v58 = vmax.f32 %v3536_v35, 0.0  ;;  %v3812_v51 = vmax.f32 %v3622_v37, 0.0  ;;  %v9004_v29 = vld [vmem:[#allocation2 + $0x3ec] ss:$16 sps:$4 sm:$0xff]  }
 0x26d   :  { %v3825_v42 = vmax.f32 %v3538_v38, 0.0  ;;  %7319 = vmatpush1.bf16.msra.mxu1 %v8942_v30  ;;  %v3540_v44 = vpop.f32.mrb[11].mxu0  ;;  %6976 = vmatprep.subr.bf16.mxu0 %v8947_v31  ;;  %v3827_v47 = vmax.f32 %v3624_v43, 0.0  ;;  %v3626_v50 = vpop.f32.mrb[11].mxu1  ;;  %v8999_v30 = vld [vmem:[#allocation2 + $0x3e0] ss:$16 sps:$4 sm:$0xff]  }
 0x26e   :  { %v3826_v49 = vmax.f32 %v3540_v44, 0.0  ;;  %7320 = vmatprep.subr.bf16.mxu1 %v8950_v33  ;;  %v3828_v55 = vmax.f32 %v3626_v50, 0.0  ;;  %v9002_v31 = vld [vmem:[#allocation2 + $0x3e8] ss:$16 sps:$4 sm:$0xff]   ;;  %v9010_v33 = vld [vmem:[#allocation2 + $0x40c] ss:$16 sps:$4 sm:$0xff]  }
 0x26f   :  { %v11301_v53 = vpack.c.bf16 %v3825_v42, %v3809_v41  ;;  %v11303_v56 = vpack.c.bf16 %v3827_v47, %v3811_v46  ;;  %v9005_v34 = vld [vmem:[#allocation2 + $0x400] ss:$16 sps:$4 sm:$0xff]   ;;  %v9008_v35 = vld [vmem:[#allocation2 + $0x408] ss:$16 sps:$4 sm:$0xff]   ;;  %v9016_v37 = vld [vmem:[#allocation2 + $0x42c] ss:$16 sps:$4 sm:$0xff]  }
 0x270   :  { %v11305_v57 = vpack.c.bf16 %v3826_v49, %v3810_v58  ;;  %6977 = vmatpush1.bf16.msra.mxu0 %v8945_v36  ;;  %v11307_v25 = vpack.c.bf16 %v3828_v55, %v3812_v51  ;;  %v9013_v36 = vld [vmem:[#allocation2 + $0x424] ss:$16 sps:$4 sm:$0xff]   ;;  %v9011_v38 = vld [vmem:[#allocation2 + $0x420] ss:$16 sps:$4 sm:$0xff]   ;;  %v9022_v41 = vld [vmem:[#allocation2 + $0x44c] ss:$16 sps:$4 sm:$0xff]  }
 0x271   :  { %7321 = vmatpush1.bf16.msra.mxu1 %v8948_v39  ;;  %6978 = vmatprep.subr.bf16.mxu0 %v8953_v40  ;;  %v9014_v39 = vld [vmem:[#allocation2 + $0x428] ss:$16 sps:$4 sm:$0xff]   ;;  %v9019_v40 = vld [vmem:[#allocation2 + $0x444] ss:$16 sps:$4 sm:$0xff]   ;;  %v9017_v42 = vld [vmem:[#allocation2 + $0x440] ss:$16 sps:$4 sm:$0xff]  }
 0x272   :  { %7322 = vmatprep.subr.bf16.mxu1 %v8956_v45  ;;  %v9020_v43 = vld [vmem:[#allocation2 + $0x448] ss:$16 sps:$4 sm:$0xff]   ;;  %v9025_v44 = vld [vmem:[#allocation2 + $0x464] ss:$16 sps:$4 sm:$0xff]   ;;  %v9023_v45 = vld [vmem:[#allocation2 + $0x460] ss:$16 sps:$4 sm:$0xff]  }
 0x273   :  { %v9026_v46 = vld [vmem:[#allocation2 + $0x468] ss:$16 sps:$4 sm:$0xff]   ;;  %v9031_v58 = vld [vmem:[#allocation2 + $0x484] ss:$16 sps:$4 sm:$0xff]   ;;  %v9034_v47 = vld [vmem:[#allocation2 + $0x48c] ss:$16 sps:$4 sm:$0xff]  }
 0x274   :  { %6979 = vmatpush1.bf16.msra.mxu0 %v8951_v59  ;;  %v9032_v49 = vld [vmem:[#allocation2 + $0x488] ss:$16 sps:$4 sm:$0xff]   ;;  %v9037_v50 = vld [vmem:[#allocation2 + $0x4a4] ss:$16 sps:$4 sm:$0xff]   ;;  %v9040_v51 = vld [vmem:[#allocation2 + $0x4ac] ss:$16 sps:$4 sm:$0xff]  }
 0x275   :  { %7323 = vmatpush1.bf16.msra.mxu1 %v8954_v60  ;;  %6980 = vmatprep.subr.bf16.mxu0 %v8959_v61  ;;  %v9035_v55 = vld [vmem:[#allocation2 + $0x4a0] ss:$16 sps:$4 sm:$0xff]   ;;  %v9038_v59 = vld [vmem:[#allocation2 + $0x4a8] ss:$16 sps:$4 sm:$0xff]   ;;  %v9043_v60 = vld [vmem:[#allocation2 + $0x4c4] ss:$16 sps:$4 sm:$0xff]  }
 0x276   :  { %7324 = vmatprep.subr.bf16.mxu1 %v8962_v62  ;;  %v9046_v61 = vld [vmem:[#allocation2 + $0x4cc] ss:$16 sps:$4 sm:$0xff]   ;;  %v9041_v62 = vld [vmem:[#allocation2 + $0x4c0] ss:$16 sps:$4 sm:$0xff]  }
 0x278   :  { %6981 = vmatpush1.bf16.msra.mxu0 %v8957_v0  ;;  %v9044_v0 = vld [vmem:[#allocation2 + $0x4c8] ss:$16 sps:$4 sm:$0xff]  }
 0x279   :  { %7325 = vmatpush1.bf16.msra.mxu1 %v8960_v1  ;;  %6982 = vmatprep.subr.bf16.mxu0 %v8965_v2  ;;  %v9049_v1 = vld [vmem:[#allocation2 + $0x4e4] ss:$16 sps:$4 sm:$0xff]   ;;  %v9052_v2 = vld [vmem:[#allocation2 + $0x4ec] ss:$16 sps:$4 sm:$0xff]  }
 0x27a   :  { %7326 = vmatprep.subr.bf16.mxu1 %v8968_v5  ;;  %v9047_v5 = vld [vmem:[#allocation2 + $0x4e0] ss:$16 sps:$4 sm:$0xff]  }
 0x27c   :  { %6983 = vmatpush1.bf16.msra.mxu0 %v8963_v7  ;;  %v9050_v7 = vld [vmem:[#allocation2 + $0x4e8] ss:$16 sps:$4 sm:$0xff]  }
 0x27d   :  { %7327 = vmatpush1.bf16.msra.mxu1 %v8966_v8  ;;  %6984 = vmatprep.subr.bf16.mxu0 %v8971_v9  ;;  %v9055_v8 = vld [vmem:[#allocation2 + $0x504] ss:$16 sps:$4 sm:$0xff]   ;;  %v9058_v9 = vld [vmem:[#allocation2 + $0x50c] ss:$16 sps:$4 sm:$0xff]  }
 0x27e   :  { %7328 = vmatprep.subr.bf16.mxu1 %v8974_v10  ;;  %v9053_v10 = vld [vmem:[#allocation2 + $0x500] ss:$16 sps:$4 sm:$0xff]  }
 0x280   :  { %6985 = vmatpush1.bf16.msra.mxu0 %v8969_v11  ;;  %v9056_v11 = vld [vmem:[#allocation2 + $0x508] ss:$16 sps:$4 sm:$0xff]  }
 0x281   :  { %7329 = vmatpush1.bf16.msra.mxu1 %v8972_v12  ;;  %6986 = vmatprep.subr.bf16.mxu0 %v8977_v13  ;;  %v9061_v12 = vld [vmem:[#allocation2 + $0x524] ss:$16 sps:$4 sm:$0xff]   ;;  %v9064_v13 = vld [vmem:[#allocation2 + $0x52c] ss:$16 sps:$4 sm:$0xff]  }
 0x282   :  { %7330 = vmatprep.subr.bf16.mxu1 %v8980_v28  ;;  %v9059_v28 = vld [vmem:[#allocation2 + $0x520] ss:$16 sps:$4 sm:$0xff]  }
 0x284   :  { %6987 = vmatpush1.bf16.msra.mxu0 %v8975_v14  ;;  %v9062_v14 = vld [vmem:[#allocation2 + $0x528] ss:$16 sps:$4 sm:$0xff]  }
 0x285   :  { %7331 = vmatpush1.bf16.msra.mxu1 %v8978_v16  ;;  %6988 = vmatprep.subr.bf16.mxu0 %v8983_v17  ;;  %v9067_v16 = vld [vmem:[#allocation2 + $0x544] ss:$16 sps:$4 sm:$0xff]   ;;  %v9070_v17 = vld [vmem:[#allocation2 + $0x54c] ss:$16 sps:$4 sm:$0xff]  }
 0x286   :  { %7332 = vmatprep.subr.bf16.mxu1 %v8986_v18  ;;  %v9065_v18 = vld [vmem:[#allocation2 + $0x540] ss:$16 sps:$4 sm:$0xff]  }
 0x288   :  { %6989 = vmatpush1.bf16.msra.mxu0 %v8981_v4  ;;  %v9068_v4 = vld [vmem:[#allocation2 + $0x548] ss:$16 sps:$4 sm:$0xff]  }
 0x289   :  { %7333 = vmatpush1.bf16.msra.mxu1 %v8984_v19  ;;  %6990 = vmatprep.subr.bf16.mxu0 %v8989_v63  ;;  %v9073_v19 = vld [vmem:[#allocation2 + $0x564] ss:$16 sps:$4 sm:$0xff]   ;;  %v9076_v63 = vld [vmem:[#allocation2 + $0x56c] ss:$16 sps:$4 sm:$0xff]  }
 0x28a   :  { %7334 = vmatprep.subr.bf16.mxu1 %v8992_v20  ;;  %v9071_v20 = vld [vmem:[#allocation2 + $0x560] ss:$16 sps:$4 sm:$0xff]  }
 0x28c   :  { %6991 = vmatpush1.bf16.msra.mxu0 %v8987_v21  ;;  %v9074_v21 = vld [vmem:[#allocation2 + $0x568] ss:$16 sps:$4 sm:$0xff]  }
 0x28d   :  { %7335 = vmatpush1.bf16.msra.mxu1 %v8990_v22  ;;  %6992 = vmatprep.subr.bf16.mxu0 %v8995_v23  ;;  %v9079_v22 = vld [vmem:[#allocation2 + $0x584] ss:$16 sps:$4 sm:$0xff]   ;;  %v9082_v23 = vld [vmem:[#allocation2 + $0x58c] ss:$16 sps:$4 sm:$0xff]  }
 0x28e   :  { %7336 = vmatprep.subr.bf16.mxu1 %v8998_v6  ;;  %v9077_v6 = vld [vmem:[#allocation2 + $0x580] ss:$16 sps:$4 sm:$0xff]  }
 0x290   :  { %6993 = vmatpush1.bf16.msra.mxu0 %v8993_v24  ;;  %v9080_v24 = vld [vmem:[#allocation2 + $0x588] ss:$16 sps:$4 sm:$0xff]  }
 0x291   :  { %7337 = vmatpush1.bf16.msra.mxu1 %v8996_v26  ;;  %6994 = vmatprep.subr.bf16.mxu0 %v9001_v27  ;;  %v9085_v26 = vld [vmem:[#allocation2 + $0x5a4] ss:$16 sps:$4 sm:$0xff]   ;;  %v9088_v27 = vld [vmem:[#allocation2 + $0x5ac] ss:$16 sps:$4 sm:$0xff]  }
 0x292   :  { %7338 = vmatprep.subr.bf16.mxu1 %v9004_v29  ;;  %v9083_v29 = vld [vmem:[#allocation2 + $0x5a0] ss:$16 sps:$4 sm:$0xff]  }
 0x294   :  { %6995 = vmatpush1.bf16.msra.mxu0 %v8999_v30  ;;  %v9086_v30 = vld [vmem:[#allocation2 + $0x5a8] ss:$16 sps:$4 sm:$0xff]  }
 0x295   :  { %7339 = vmatpush1.bf16.msra.mxu1 %v9002_v31  ;;  %7007 = vmatprep.subr.bf16.mxu0 %v9007_v32  ;;  %v9091_v31 = vld [vmem:[#allocation2 + $0x5c4] ss:$16 sps:$4 sm:$0xff]   ;;  %v9094_v32 = vld [vmem:[#allocation2 + $0x5cc] ss:$16 sps:$4 sm:$0xff]  }
 0x296   :  { %7351 = vmatprep.subr.bf16.mxu1 %v9010_v33  ;;  %v9089_v33 = vld [vmem:[#allocation2 + $0x5c0] ss:$16 sps:$4 sm:$0xff]  }
 0x297   :  { %6997 = vmatmul.mubr.bf16.vlgmr.msra.gmra.mrb[16].mxu0 %v10803_v3 }
 0x298   :  { %7341 = vmatmul.mubr.bf16.vlgmr.msra.gmra.mrb[16].mxu1 %v10803_v3  ;;  %7008 = vmatpush1.bf16.msra.mxu0 %v9005_v34  ;;  %v9028_v3 = vld [vmem:[#allocation2 + $0x46c] ss:$16 sps:$4 sm:$0xff]   ;;  %v9092_v34 = vld [vmem:[#allocation2 + $0x5c8] ss:$16 sps:$4 sm:$0xff]  }
 0x299   :  { %7039 = vmatprep.mubr.bf16.mxu0 %v11205_v52  ;;  %7352 = vmatpush1.bf16.msra.mxu1 %v9008_v35  ;;  %v9097_v35 = vld [vmem:[#allocation2 + $0x5e4] ss:$16 sps:$4 sm:$0xff]  }
 0x29a   :  { %7383 = vmatprep.mubr.bf16.mxu1 %v11205_v52  ;;  %7009 = vmatprep.subr.bf16.mxu0 %v9013_v36  ;;  %v9029_v52 = vld [vmem:[#allocation2 + $0x480] ss:$16 sps:$4 sm:$0xff]   ;;  %v9100_v36 = vld [vmem:[#allocation2 + $0x5ec] ss:$16 sps:$4 sm:$0xff]  }
 0x29b   :  { %7353 = vmatprep.subr.bf16.mxu1 %v9016_v37  ;;  %v9095_v37 = vld [vmem:[#allocation2 + $0x5e0] ss:$16 sps:$4 sm:$0xff]  }
 0x29c   :  { %7010 = vmatpush1.bf16.msra.mxu0 %v9011_v38  ;;  %v9098_v38 = vld [vmem:[#allocation2 + $0x5e8] ss:$16 sps:$4 sm:$0xff]  }
 0x29d   :  { %7354 = vmatpush1.bf16.msra.mxu1 %v9014_v39  ;;  %7011 = vmatprep.subr.bf16.mxu0 %v9019_v40  ;;  %v9103_v39 = vld [vmem:[#allocation2 + $0x604] ss:$16 sps:$4 sm:$0xff]   ;;  %v9106_v40 = vld [vmem:[#allocation2 + $0x60c] ss:$16 sps:$4 sm:$0xff]  }
 0x29e   :  { %7355 = vmatprep.subr.bf16.mxu1 %v9022_v41  ;;  %v9101_v41 = vld [vmem:[#allocation2 + $0x600] ss:$16 sps:$4 sm:$0xff]  }
 0x2a0   :  { %7012 = vmatpush1.bf16.msra.mxu0 %v9017_v42  ;;  %v9104_v42 = vld [vmem:[#allocation2 + $0x608] ss:$16 sps:$4 sm:$0xff]  }
 0x2a1   :  { %7356 = vmatpush1.bf16.msra.mxu1 %v9020_v43  ;;  %7013 = vmatprep.subr.bf16.mxu0 %v9025_v44  ;;  %v9109_v43 = vld [vmem:[#allocation2 + $0x624] ss:$16 sps:$4 sm:$0xff]   ;;  %v9112_v44 = vld [vmem:[#allocation2 + $0x62c] ss:$16 sps:$4 sm:$0xff]  }
 0x2a2   :  { %7357 = vmatprep.subr.bf16.mxu1 %v9028_v3  ;;  %v9107_v3 = vld [vmem:[#allocation2 + $0x620] ss:$16 sps:$4 sm:$0xff]  }
 0x2a4   :  { %7014 = vmatpush1.bf16.msra.mxu0 %v9023_v45  ;;  %v9110_v45 = vld [vmem:[#allocation2 + $0x628] ss:$16 sps:$4 sm:$0xff]  }
 0x2a5   :  { %7358 = vmatpush1.bf16.msra.mxu1 %v9026_v46  ;;  %7015 = vmatprep.subr.bf16.mxu0 %v9031_v58  ;;  %v9115_v46 = vld [vmem:[#allocation2 + $0x644] ss:$16 sps:$4 sm:$0xff]   ;;  %v9118_v58 = vld [vmem:[#allocation2 + $0x64c] ss:$16 sps:$4 sm:$0xff]  }
 0x2a6   :  { %7359 = vmatprep.subr.bf16.mxu1 %v9034_v47  ;;  %v9113_v47 = vld [vmem:[#allocation2 + $0x640] ss:$16 sps:$4 sm:$0xff]  }
 0x2a8   :  { %7016 = vmatpush1.bf16.msra.mxu0 %v9029_v52  ;;  %v9116_v52 = vld [vmem:[#allocation2 + $0x648] ss:$16 sps:$4 sm:$0xff]  }
 0x2a9   :  { %7360 = vmatpush1.bf16.msra.mxu1 %v9032_v49  ;;  %7017 = vmatprep.subr.bf16.mxu0 %v9037_v50  ;;  %v9121_v49 = vld [vmem:[#allocation2 + $0x664] ss:$16 sps:$4 sm:$0xff]   ;;  %v9119_v50 = vld [vmem:[#allocation2 + $0x660] ss:$16 sps:$4 sm:$0xff]  }
 0x2aa   :  { %7361 = vmatprep.subr.bf16.mxu1 %v9040_v51  ;;  %v9122_v51 = vld [vmem:[#allocation2 + $0x668] ss:$16 sps:$4 sm:$0xff]  }
 0x2ac   :  { %7018 = vmatpush1.bf16.msra.mxu0 %v9035_v55  ;;  %v9127_v55 = vld [vmem:[#allocation2 + $0x684] ss:$16 sps:$4 sm:$0xff]  }
 0x2ad   :  { %7362 = vmatpush1.bf16.msra.mxu1 %v9038_v59  ;;  %7019 = vmatprep.subr.bf16.mxu0 %v9043_v60  ;;  %v9130_v59 = vld [vmem:[#allocation2 + $0x68c] ss:$16 sps:$4 sm:$0xff]   ;;  %v9128_v60 = vld [vmem:[#allocation2 + $0x688] ss:$16 sps:$4 sm:$0xff]  }
 0x2ae   :  { %7363 = vmatprep.subr.bf16.mxu1 %v9046_v61  ;;  %v9133_v61 = vld [vmem:[#allocation2 + $0x6a4] ss:$16 sps:$4 sm:$0xff]  }
 0x2b0   :  { %7020 = vmatpush1.bf16.msra.mxu0 %v9041_v62  ;;  %v9136_v62 = vld [vmem:[#allocation2 + $0x6ac] ss:$16 sps:$4 sm:$0xff]  }
 0x2b1   :  { %7364 = vmatpush1.bf16.msra.mxu1 %v9044_v0  ;;  %7021 = vmatprep.subr.bf16.mxu0 %v9049_v1  ;;  %v9131_v0 = vld [vmem:[#allocation2 + $0x6a0] ss:$16 sps:$4 sm:$0xff]   ;;  %v9134_v1 = vld [vmem:[#allocation2 + $0x6a8] ss:$16 sps:$4 sm:$0xff]  }
 0x2b2   :  { %7365 = vmatprep.subr.bf16.mxu1 %v9052_v2  ;;  %v9139_v2 = vld [vmem:[#allocation2 + $0x6c4] ss:$16 sps:$4 sm:$0xff]  }
 0x2b4   :  { %7022 = vmatpush1.bf16.msra.mxu0 %v9047_v5 }
 0x2b5   :  { %7366 = vmatpush1.bf16.msra.mxu1 %v9050_v7  ;;  %7023 = vmatprep.subr.bf16.mxu0 %v9055_v8  ;;  %v9142_v7 = vld [vmem:[#allocation2 + $0x6cc] ss:$16 sps:$4 sm:$0xff]  }
 0x2b6   :  { %7367 = vmatprep.subr.bf16.mxu1 %v9058_v9 }
 0x2b8   :  { %7024 = vmatpush1.bf16.msra.mxu0 %v9053_v10  ;;  %v9137_v10 = vld [vmem:[#allocation2 + $0x6c0] ss:$16 sps:$4 sm:$0xff]  }
 0x2b9   :  { %7368 = vmatpush1.bf16.msra.mxu1 %v9056_v11  ;;  %7025 = vmatprep.subr.bf16.mxu0 %v9061_v12 }
 0x2ba   :  { %7369 = vmatprep.subr.bf16.mxu1 %v9064_v13  ;;  %v9140_v13 = vld [vmem:[#allocation2 + $0x6c8] ss:$16 sps:$4 sm:$0xff]  }
 0x2bc   :  { %7026 = vmatpush1.bf16.msra.mxu0 %v9059_v28  ;;  %v9145_v28 = vld [vmem:[#allocation2 + $0x6e4] ss:$16 sps:$4 sm:$0xff]  }
 0x2bd   :  { %7370 = vmatpush1.bf16.msra.mxu1 %v9062_v14  ;;  %7027 = vmatprep.subr.bf16.mxu0 %v9067_v16 }
 0x2be   :  { %7371 = vmatprep.subr.bf16.mxu1 %v9070_v17 }
 0x2c0   :  { %7028 = vmatpush1.bf16.msra.mxu0 %v9065_v18 }
 0x2c1   :  { %7372 = vmatpush1.bf16.msra.mxu1 %v9068_v4  ;;  %7029 = vmatprep.subr.bf16.mxu0 %v9073_v19  ;;  %v9148_v4 = vld [vmem:[#allocation2 + $0x6ec] ss:$16 sps:$4 sm:$0xff]  }
 0x2c2   :  { %7373 = vmatprep.subr.bf16.mxu1 %v9076_v63 }
 0x2c4   :  { %7030 = vmatpush1.bf16.msra.mxu0 %v9071_v20 }
 0x2c5   :  { %7374 = vmatpush1.bf16.msra.mxu1 %v9074_v21  ;;  %7031 = vmatprep.subr.bf16.mxu0 %v9079_v22 }
 0x2c6   :  { %7375 = vmatprep.subr.bf16.mxu1 %v9082_v23 }
 0x2c8   :  { %7032 = vmatpush1.bf16.msra.mxu0 %v9077_v6 }
 0x2c9   :  { %7376 = vmatpush1.bf16.msra.mxu1 %v9080_v24  ;;  %7033 = vmatprep.subr.bf16.mxu0 %v9085_v26 }
 0x2ca   :  { %7377 = vmatprep.subr.bf16.mxu1 %v9088_v27 }
 0x2cc   :  { %7034 = vmatpush1.bf16.msra.mxu0 %v9083_v29  ;;  %v9143_v29 = vld [vmem:[#allocation2 + $0x6e0] ss:$16 sps:$4 sm:$0xff]  }
 0x2cd   :  { %7378 = vmatpush1.bf16.msra.mxu1 %v9086_v30  ;;  %7035 = vmatprep.subr.bf16.mxu0 %v9091_v31  ;;  %v9146_v31 = vld [vmem:[#allocation2 + $0x6e8] ss:$16 sps:$4 sm:$0xff]  }
 0x2ce   :  { %7379 = vmatprep.subr.bf16.mxu1 %v9094_v32  ;;  %v9151_v32 = vld [vmem:[#allocation2 + $0x704] ss:$16 sps:$4 sm:$0xff]  }
 0x2d0   :  { %7036 = vmatpush1.bf16.msra.mxu0 %v9089_v33  ;;  %v9154_v33 = vld [vmem:[#allocation2 + $0x70c] ss:$16 sps:$4 sm:$0xff]  }
 0x2d1   :  { %7380 = vmatpush1.bf16.msra.mxu1 %v9092_v34  ;;  %7037 = vmatprep.subr.bf16.mxu0 %v9097_v35  ;;  %v9149_v34 = vld [vmem:[#allocation2 + $0x700] ss:$16 sps:$4 sm:$0xff]   ;;  %v9152_v35 = vld [vmem:[#allocation2 + $0x708] ss:$16 sps:$4 sm:$0xff]  }
 0x2d2   :  { %7381 = vmatprep.subr.bf16.mxu1 %v9100_v36  ;;  %v9157_v36 = vld [vmem:[#allocation2 + $0x724] ss:$16 sps:$4 sm:$0xff]  }
 0x2d4   :  { %7038 = vmatpush1.bf16.msra.mxu0 %v9095_v37  ;;  %v9160_v37 = vld [vmem:[#allocation2 + $0x72c] ss:$16 sps:$4 sm:$0xff]  }
 0x2d5   :  { %7382 = vmatpush1.bf16.msra.mxu1 %v9098_v38  ;;  %7050 = vmatprep.subr.bf16.mxu0 %v9103_v39  ;;  %v9155_v38 = vld [vmem:[#allocation2 + $0x720] ss:$16 sps:$4 sm:$0xff]   ;;  %v9158_v39 = vld [vmem:[#allocation2 + $0x728] ss:$16 sps:$4 sm:$0xff]  }
 0x2d6   :  { %7394 = vmatprep.subr.bf16.mxu1 %v9106_v40  ;;  %v9163_v40 = vld [vmem:[#allocation2 + $0x744] ss:$16 sps:$4 sm:$0xff]  }
 0x2d7   :  { %7040 = vmatmul.mubr.bf16.vlgmr.msra.gmra.mrb[16].mxu0 %v11195_v48 }
 0x2d8   :  { %7384 = vmatmul.mubr.bf16.vlgmr.msra.gmra.mrb[16].mxu1 %v11195_v48  ;;  %7051 = vmatpush1.bf16.msra.mxu0 %v9101_v41  ;;  %v9124_v48 = vld [vmem:[#allocation2 + $0x66c] ss:$16 sps:$4 sm:$0xff]  }
 0x2d9   :  { %7082 = vmatprep.mubr.bf16.mxu0 %v11207_v54  ;;  %7395 = vmatpush1.bf16.msra.mxu1 %v9104_v42  ;;  %v9166_v41 = vld [vmem:[#allocation2 + $0x74c] ss:$16 sps:$4 sm:$0xff]   ;;  %v9161_v42 = vld [vmem:[#allocation2 + $0x740] ss:$16 sps:$4 sm:$0xff]  }
 0x2da   :  { %7426 = vmatprep.mubr.bf16.mxu1 %v11207_v54  ;;  %7052 = vmatprep.subr.bf16.mxu0 %v9109_v43  ;;  %v9125_v54 = vld [vmem:[#allocation2 + $0x680] ss:$16 sps:$4 sm:$0xff]   ;;  %v9164_v43 = vld [vmem:[#allocation2 + $0x748] ss:$16 sps:$4 sm:$0xff]  }
 0x2db   :  { %7396 = vmatprep.subr.bf16.mxu1 %v9112_v44  ;;  %v9169_v44 = vld [vmem:[#allocation2 + $0x764] ss:$16 sps:$4 sm:$0xff]  }
 0x2dc   :  { %7053 = vmatpush1.bf16.msra.mxu0 %v9107_v3  ;;  %v9172_v3 = vld [vmem:[#allocation2 + $0x76c] ss:$16 sps:$4 sm:$0xff]  }
 0x2dd   :  { %7397 = vmatpush1.bf16.msra.mxu1 %v9110_v45  ;;  %7054 = vmatprep.subr.bf16.mxu0 %v9115_v46  ;;  %v9167_v45 = vld [vmem:[#allocation2 + $0x760] ss:$16 sps:$4 sm:$0xff]   ;;  %v9170_v46 = vld [vmem:[#allocation2 + $0x768] ss:$16 sps:$4 sm:$0xff]  }
 0x2de   :  { %7398 = vmatprep.subr.bf16.mxu1 %v9118_v58  ;;  %v9175_v58 = vld [vmem:[#allocation2 + $0x784] ss:$16 sps:$4 sm:$0xff]  }
 0x2e0   :  { %7055 = vmatpush1.bf16.msra.mxu0 %v9113_v47  ;;  %v9178_v47 = vld [vmem:[#allocation2 + $0x78c] ss:$16 sps:$4 sm:$0xff]  }
 0x2e1   :  { %7399 = vmatpush1.bf16.msra.mxu1 %v9116_v52  ;;  %7056 = vmatprep.subr.bf16.mxu0 %v9121_v49  ;;  %v9173_v52 = vld [vmem:[#allocation2 + $0x780] ss:$16 sps:$4 sm:$0xff]   ;;  %v9176_v49 = vld [vmem:[#allocation2 + $0x788] ss:$16 sps:$4 sm:$0xff]  }
 0x2e2   :  { %7400 = vmatprep.subr.bf16.mxu1 %v9124_v48  ;;  %v9181_v48 = vld [vmem:[#allocation2 + $0x7a4] ss:$16 sps:$4 sm:$0xff]  }
 0x2e4   :  { %7057 = vmatpush1.bf16.msra.mxu0 %v9119_v50  ;;  %v9184_v50 = vld [vmem:[#allocation2 + $0x7ac] ss:$16 sps:$4 sm:$0xff]  }
 0x2e5   :  { %7401 = vmatpush1.bf16.msra.mxu1 %v9122_v51  ;;  %7058 = vmatprep.subr.bf16.mxu0 %v9127_v55  ;;  %v9179_v51 = vld [vmem:[#allocation2 + $0x7a0] ss:$16 sps:$4 sm:$0xff]   ;;  %v9182_v55 = vld [vmem:[#allocation2 + $0x7a8] ss:$16 sps:$4 sm:$0xff]  }
 0x2e6   :  { %7402 = vmatprep.subr.bf16.mxu1 %v9130_v59  ;;  %v9187_v59 = vld [vmem:[#allocation2 + $0x7c4] ss:$16 sps:$4 sm:$0xff]  }
 0x2e8   :  { %7059 = vmatpush1.bf16.msra.mxu0 %v9125_v54  ;;  %v9190_v54 = vld [vmem:[#allocation2 + $0x7cc] ss:$16 sps:$4 sm:$0xff]  }
 0x2e9   :  { %7403 = vmatpush1.bf16.msra.mxu1 %v9128_v60  ;;  %7060 = vmatprep.subr.bf16.mxu0 %v9133_v61  ;;  %v9185_v60 = vld [vmem:[#allocation2 + $0x7c0] ss:$16 sps:$4 sm:$0xff]   ;;  %v9188_v61 = vld [vmem:[#allocation2 + $0x7c8] ss:$16 sps:$4 sm:$0xff]  }
 0x2ea   :  { %v3706_v5 = vpop.f32.mrb[12].mxu0  ;;  %7404 = vmatprep.subr.bf16.mxu1 %v9136_v62  ;;  %v3792_v8 = vpop.f32.mrb[12].mxu1  ;;  %v9193_v62 = vld [vmem:[#allocation2 + $0x7e4] ss:$16 sps:$4 sm:$0xff]  }
 0x2eb   :  { %v3708_v9 = vpop.f32.mrb[13].mxu0  ;;  %v3794_v11 = vpop.f32.mrb[13].mxu1  ;;  %v3813_v14 = vmax.f32 %v3706_v5, 0.0  ;;  %v3815_v19 = vmax.f32 %v3792_v8, 0.0  ;;  %v9199_v5 = vld [vmem:[#allocation2 + $0x804] ss:$16 sps:$4 sm:$0xff]  }
 0x2ec   :  { %v3710_v12 = vpop.f32.mrb[14].mxu0  ;;  %7061 = vmatpush1.bf16.msra.mxu0 %v9131_v0  ;;  %v3796_v17 = vpop.f32.mrb[14].mxu1  ;;  %v3814_v63 = vmax.f32 %v3708_v9, 0.0  ;;  %v3816_v23 = vmax.f32 %v3794_v11, 0.0  ;;  %v9196_v0 = vld [vmem:[#allocation2 + $0x7ec] ss:$16 sps:$4 sm:$0xff]  }
 0x2ed   :  { %v3829_v16 = vmax.f32 %v3710_v12, 0.0  ;;  %7405 = vmatpush1.bf16.msra.mxu1 %v9134_v1  ;;  %v3712_v18 = vpop.f32.mrb[15].mxu0  ;;  %7062 = vmatprep.subr.bf16.mxu0 %v9139_v2  ;;  %v3831_v20 = vmax.f32 %v3796_v17, 0.0  ;;  %v3798_v22 = vpop.f32.mrb[15].mxu1  ;;  %v9191_v1 = vld [vmem:[#allocation2 + $0x7e0] ss:$16 sps:$4 sm:$0xff]  }
 0x2ee   :  { %v3830_v21 = vmax.f32 %v3712_v18, 0.0  ;;  %7406 = vmatprep.subr.bf16.mxu1 %v9142_v7  ;;  %v3832_v24 = vmax.f32 %v3798_v22, 0.0  ;;  %v9194_v2 = vld [vmem:[#allocation2 + $0x7e8] ss:$16 sps:$4 sm:$0xff]   ;;  %v9202_v7 = vld [vmem:[#allocation2 + $0x80c] ss:$16 sps:$4 sm:$0xff]  }
 0x2ef   :  { %v11317_v6 = vpack.c.bf16 %v3829_v16, %v3813_v14  ;;  %v11319_v26 = vpack.c.bf16 %v3831_v20, %v3815_v19  ;;  %v9197_v8 = vld [vmem:[#allocation2 + $0x800] ss:$16 sps:$4 sm:$0xff]   ;;  %v9200_v9 = vld [vmem:[#allocation2 + $0x808] ss:$16 sps:$4 sm:$0xff]   ;;  %v9208_v11 = vld [vmem:[#allocation2 + $0x82c] ss:$16 sps:$4 sm:$0xff]  }
 0x2f0   :  { %v11321_v27 = vpack.c.bf16 %v3830_v21, %v3814_v63  ;;  %7063 = vmatpush1.bf16.msra.mxu0 %v9137_v10  ;;  %v11323_v30 = vpack.c.bf16 %v3832_v24, %v3816_v23  ;;  %v9205_v10 = vld [vmem:[#allocation2 + $0x824] ss:$16 sps:$4 sm:$0xff]   ;;  %v9203_v12 = vld [vmem:[#allocation2 + $0x820] ss:$16 sps:$4 sm:$0xff]   ;;  %v9214_v14 = vld [vmem:[#allocation2 + $0x84c] ss:$16 sps:$4 sm:$0xff]  }
 0x2f1   :  { %7407 = vmatpush1.bf16.msra.mxu1 %v9140_v13  ;;  %7064 = vmatprep.subr.bf16.mxu0 %v9145_v28  ;;  %v9206_v13 = vld [vmem:[#allocation2 + $0x828] ss:$16 sps:$4 sm:$0xff]   ;;  %v9211_v28 = vld [vmem:[#allocation2 + $0x844] ss:$16 sps:$4 sm:$0xff]   ;;  %v9209_v16 = vld [vmem:[#allocation2 + $0x840] ss:$16 sps:$4 sm:$0xff]  }
 0x2f2   :  { %7408 = vmatprep.subr.bf16.mxu1 %v9148_v4  ;;  %v9212_v17 = vld [vmem:[#allocation2 + $0x848] ss:$16 sps:$4 sm:$0xff]   ;;  %v9217_v18 = vld [vmem:[#allocation2 + $0x864] ss:$16 sps:$4 sm:$0xff]   ;;  %v9215_v4 = vld [vmem:[#allocation2 + $0x860] ss:$16 sps:$4 sm:$0xff]  }
 0x2f3   :  { %v9218_v19 = vld [vmem:[#allocation2 + $0x868] ss:$16 sps:$4 sm:$0xff]   ;;  %v9223_v63 = vld [vmem:[#allocation2 + $0x884] ss:$16 sps:$4 sm:$0xff]   ;;  %v9226_v20 = vld [vmem:[#allocation2 + $0x88c] ss:$16 sps:$4 sm:$0xff]  }
 0x2f4   :  { %7065 = vmatpush1.bf16.msra.mxu0 %v9143_v29  ;;  %v9224_v21 = vld [vmem:[#allocation2 + $0x888] ss:$16 sps:$4 sm:$0xff]   ;;  %v9229_v22 = vld [vmem:[#allocation2 + $0x8a4] ss:$16 sps:$4 sm:$0xff]   ;;  %v9232_v23 = vld [vmem:[#allocation2 + $0x8ac] ss:$16 sps:$4 sm:$0xff]  }
 0x2f5   :  { %7409 = vmatpush1.bf16.msra.mxu1 %v9146_v31  ;;  %7066 = vmatprep.subr.bf16.mxu0 %v9151_v32  ;;  %v9227_v24 = vld [vmem:[#allocation2 + $0x8a0] ss:$16 sps:$4 sm:$0xff]   ;;  %v9230_v29 = vld [vmem:[#allocation2 + $0x8a8] ss:$16 sps:$4 sm:$0xff]   ;;  %v9235_v31 = vld [vmem:[#allocation2 + $0x8c4] ss:$16 sps:$4 sm:$0xff]  }
 0x2f6   :  { %7410 = vmatprep.subr.bf16.mxu1 %v9154_v33  ;;  %v9238_v32 = vld [vmem:[#allocation2 + $0x8cc] ss:$16 sps:$4 sm:$0xff]   ;;  %v9233_v33 = vld [vmem:[#allocation2 + $0x8c0] ss:$16 sps:$4 sm:$0xff]  }
 0x2f8   :  { %7067 = vmatpush1.bf16.msra.mxu0 %v9149_v34  ;;  %v9236_v34 = vld [vmem:[#allocation2 + $0x8c8] ss:$16 sps:$4 sm:$0xff]  }
 0x2f9   :  { %7411 = vmatpush1.bf16.msra.mxu1 %v9152_v35  ;;  %7068 = vmatprep.subr.bf16.mxu0 %v9157_v36  ;;  %v9241_v35 = vld [vmem:[#allocation2 + $0x8e4] ss:$16 sps:$4 sm:$0xff]   ;;  %v9244_v36 = vld [vmem:[#allocation2 + $0x8ec] ss:$16 sps:$4 sm:$0xff]  }
 0x2fa   :  { %7412 = vmatprep.subr.bf16.mxu1 %v9160_v37  ;;  %v9239_v37 = vld [vmem:[#allocation2 + $0x8e0] ss:$16 sps:$4 sm:$0xff]  }
 0x2fc   :  { %7069 = vmatpush1.bf16.msra.mxu0 %v9155_v38  ;;  %v9242_v38 = vld [vmem:[#allocation2 + $0x8e8] ss:$16 sps:$4 sm:$0xff]  }
 0x2fd   :  { %7413 = vmatpush1.bf16.msra.mxu1 %v9158_v39  ;;  %7070 = vmatprep.subr.bf16.mxu0 %v9163_v40  ;;  %v9247_v39 = vld [vmem:[#allocation2 + $0x904] ss:$16 sps:$4 sm:$0xff]   ;;  %v9250_v40 = vld [vmem:[#allocation2 + $0x90c] ss:$16 sps:$4 sm:$0xff]  }
 0x2fe   :  { %7414 = vmatprep.subr.bf16.mxu1 %v9166_v41  ;;  %v9245_v41 = vld [vmem:[#allocation2 + $0x900] ss:$16 sps:$4 sm:$0xff]  }
 0x300   :  { %7071 = vmatpush1.bf16.msra.mxu0 %v9161_v42  ;;  %v9248_v42 = vld [vmem:[#allocation2 + $0x908] ss:$16 sps:$4 sm:$0xff]  }
 0x301   :  { %7415 = vmatpush1.bf16.msra.mxu1 %v9164_v43  ;;  %7072 = vmatprep.subr.bf16.mxu0 %v9169_v44  ;;  %v9253_v43 = vld [vmem:[#allocation2 + $0x924] ss:$16 sps:$4 sm:$0xff]   ;;  %v9256_v44 = vld [vmem:[#allocation2 + $0x92c] ss:$16 sps:$4 sm:$0xff]  }
 0x302   :  { %7416 = vmatprep.subr.bf16.mxu1 %v9172_v3  ;;  %v9251_v3 = vld [vmem:[#allocation2 + $0x920] ss:$16 sps:$4 sm:$0xff]  }
 0x304   :  { %7073 = vmatpush1.bf16.msra.mxu0 %v9167_v45  ;;  %v9254_v45 = vld [vmem:[#allocation2 + $0x928] ss:$16 sps:$4 sm:$0xff]  }
 0x305   :  { %7417 = vmatpush1.bf16.msra.mxu1 %v9170_v46  ;;  %7074 = vmatprep.subr.bf16.mxu0 %v9175_v58  ;;  %v9259_v46 = vld [vmem:[#allocation2 + $0x944] ss:$16 sps:$4 sm:$0xff]   ;;  %v9262_v58 = vld [vmem:[#allocation2 + $0x94c] ss:$16 sps:$4 sm:$0xff]  }
 0x306   :  { %7418 = vmatprep.subr.bf16.mxu1 %v9178_v47  ;;  %v9257_v47 = vld [vmem:[#allocation2 + $0x940] ss:$16 sps:$4 sm:$0xff]  }
 0x308   :  { %7075 = vmatpush1.bf16.msra.mxu0 %v9173_v52  ;;  %v9260_v52 = vld [vmem:[#allocation2 + $0x948] ss:$16 sps:$4 sm:$0xff]  }
 0x309   :  { %7419 = vmatpush1.bf16.msra.mxu1 %v9176_v49  ;;  %7076 = vmatprep.subr.bf16.mxu0 %v9181_v48  ;;  %v9265_v49 = vld [vmem:[#allocation2 + $0x964] ss:$16 sps:$4 sm:$0xff]   ;;  %v9268_v48 = vld [vmem:[#allocation2 + $0x96c] ss:$16 sps:$4 sm:$0xff]  }
 0x30a   :  { %7420 = vmatprep.subr.bf16.mxu1 %v9184_v50  ;;  %v9263_v50 = vld [vmem:[#allocation2 + $0x960] ss:$16 sps:$4 sm:$0xff]  }
 0x30c   :  { %7077 = vmatpush1.bf16.msra.mxu0 %v9179_v51  ;;  %v9266_v51 = vld [vmem:[#allocation2 + $0x968] ss:$16 sps:$4 sm:$0xff]  }
 0x30d   :  { %7421 = vmatpush1.bf16.msra.mxu1 %v9182_v55  ;;  %7078 = vmatprep.subr.bf16.mxu0 %v9187_v59  ;;  %v9271_v55 = vld [vmem:[#allocation2 + $0x984] ss:$16 sps:$4 sm:$0xff]   ;;  %v9274_v59 = vld [vmem:[#allocation2 + $0x98c] ss:$16 sps:$4 sm:$0xff]  }
 0x30e   :  { %7422 = vmatprep.subr.bf16.mxu1 %v9190_v54  ;;  %v9269_v54 = vld [vmem:[#allocation2 + $0x980] ss:$16 sps:$4 sm:$0xff]  }
 0x310   :  { %7079 = vmatpush1.bf16.msra.mxu0 %v9185_v60  ;;  %v9272_v60 = vld [vmem:[#allocation2 + $0x988] ss:$16 sps:$4 sm:$0xff]  }
 0x311   :  { %7423 = vmatpush1.bf16.msra.mxu1 %v9188_v61  ;;  %7080 = vmatprep.subr.bf16.mxu0 %v9193_v62  ;;  %v9277_v61 = vld [vmem:[#allocation2 + $0x9a4] ss:$16 sps:$4 sm:$0xff]   ;;  %v9280_v62 = vld [vmem:[#allocation2 + $0x9ac] ss:$16 sps:$4 sm:$0xff]  }
 0x312   :  { %7424 = vmatprep.subr.bf16.mxu1 %v9196_v0  ;;  %v9275_v0 = vld [vmem:[#allocation2 + $0x9a0] ss:$16 sps:$4 sm:$0xff]  }
 0x314   :  { %7081 = vmatpush1.bf16.msra.mxu0 %v9191_v1  ;;  %v9278_v1 = vld [vmem:[#allocation2 + $0x9a8] ss:$16 sps:$4 sm:$0xff]  }
 0x315   :  { %7425 = vmatpush1.bf16.msra.mxu1 %v9194_v2  ;;  %7093 = vmatprep.subr.bf16.mxu0 %v9199_v5  ;;  %v9283_v2 = vld [vmem:[#allocation2 + $0x9c4] ss:$16 sps:$4 sm:$0xff]   ;;  %v9286_v5 = vld [vmem:[#allocation2 + $0x9cc] ss:$16 sps:$4 sm:$0xff]  }
 0x316   :  { %7437 = vmatprep.subr.bf16.mxu1 %v9202_v7  ;;  %v9281_v7 = vld [vmem:[#allocation2 + $0x9c0] ss:$16 sps:$4 sm:$0xff]  }
 0x317   :  { %7083 = vmatmul.mubr.bf16.vlgmr.msra.gmra.mrb[16].mxu0 %v11203_v15 }
 0x318   :  { %7427 = vmatmul.mubr.bf16.vlgmr.msra.gmra.mrb[16].mxu1 %v11203_v15  ;;  %7094 = vmatpush1.bf16.msra.mxu0 %v9197_v8  ;;  %v9220_v15 = vld [vmem:[#allocation2 + $0x86c] ss:$16 sps:$4 sm:$0xff]   ;;  %v9284_v8 = vld [vmem:[#allocation2 + $0x9c8] ss:$16 sps:$4 sm:$0xff]  }
 0x319   :  { %7125 = vmatprep.mubr.bf16.mxu0 %v11305_v57  ;;  %7438 = vmatpush1.bf16.msra.mxu1 %v9200_v9  ;;  %v9289_v9 = vld [vmem:[#allocation2 + $0x9e4] ss:$16 sps:$4 sm:$0xff]  }
 0x31a   :  { %7469 = vmatprep.mubr.bf16.mxu1 %v11305_v57  ;;  %7095 = vmatprep.subr.bf16.mxu0 %v9205_v10  ;;  %v9221_v57 = vld [vmem:[#allocation2 + $0x880] ss:$16 sps:$4 sm:$0xff]   ;;  %v9292_v10 = vld [vmem:[#allocation2 + $0x9ec] ss:$16 sps:$4 sm:$0xff]  }
 0x31b   :  { %7439 = vmatprep.subr.bf16.mxu1 %v9208_v11  ;;  %v9287_v11 = vld [vmem:[#allocation2 + $0x9e0] ss:$16 sps:$4 sm:$0xff]  }
 0x31c   :  { %7096 = vmatpush1.bf16.msra.mxu0 %v9203_v12  ;;  %v9290_v12 = vld [vmem:[#allocation2 + $0x9e8] ss:$16 sps:$4 sm:$0xff]  }
 0x31d   :  { %7440 = vmatpush1.bf16.msra.mxu1 %v9206_v13  ;;  %7097 = vmatprep.subr.bf16.mxu0 %v9211_v28  ;;  %v9295_v13 = vld [vmem:[#allocation2 + $0xa04] ss:$16 sps:$4 sm:$0xff]   ;;  %v9298_v28 = vld [vmem:[#allocation2 + $0xa0c] ss:$16 sps:$4 sm:$0xff]  }
 0x31e   :  { %7441 = vmatprep.subr.bf16.mxu1 %v9214_v14  ;;  %v9293_v14 = vld [vmem:[#allocation2 + $0xa00] ss:$16 sps:$4 sm:$0xff]  }
 0x320   :  { %7098 = vmatpush1.bf16.msra.mxu0 %v9209_v16  ;;  %v9296_v16 = vld [vmem:[#allocation2 + $0xa08] ss:$16 sps:$4 sm:$0xff]  }
 0x321   :  { %7442 = vmatpush1.bf16.msra.mxu1 %v9212_v17  ;;  %7099 = vmatprep.subr.bf16.mxu0 %v9217_v18  ;;  %v9301_v17 = vld [vmem:[#allocation2 + $0xa24] ss:$16 sps:$4 sm:$0xff]   ;;  %v9304_v18 = vld [vmem:[#allocation2 + $0xa2c] ss:$16 sps:$4 sm:$0xff]  }
 0x322   :  { %7443 = vmatprep.subr.bf16.mxu1 %v9220_v15  ;;  %v9299_v15 = vld [vmem:[#allocation2 + $0xa20] ss:$16 sps:$4 sm:$0xff]  }
 0x324   :  { %7100 = vmatpush1.bf16.msra.mxu0 %v9215_v4  ;;  %v9302_v4 = vld [vmem:[#allocation2 + $0xa28] ss:$16 sps:$4 sm:$0xff]  }
 0x325   :  { %7444 = vmatpush1.bf16.msra.mxu1 %v9218_v19  ;;  %7101 = vmatprep.subr.bf16.mxu0 %v9223_v63  ;;  %v9307_v19 = vld [vmem:[#allocation2 + $0xa44] ss:$16 sps:$4 sm:$0xff]   ;;  %v9310_v63 = vld [vmem:[#allocation2 + $0xa4c] ss:$16 sps:$4 sm:$0xff]  }
 0x326   :  { %7445 = vmatprep.subr.bf16.mxu1 %v9226_v20  ;;  %v9305_v20 = vld [vmem:[#allocation2 + $0xa40] ss:$16 sps:$4 sm:$0xff]  }
 0x328   :  { %7102 = vmatpush1.bf16.msra.mxu0 %v9221_v57  ;;  %v9308_v57 = vld [vmem:[#allocation2 + $0xa48] ss:$16 sps:$4 sm:$0xff]  }
 0x329   :  { %7446 = vmatpush1.bf16.msra.mxu1 %v9224_v21  ;;  %7103 = vmatprep.subr.bf16.mxu0 %v9229_v22  ;;  %v9313_v21 = vld [vmem:[#allocation2 + $0xa64] ss:$16 sps:$4 sm:$0xff]   ;;  %v9311_v22 = vld [vmem:[#allocation2 + $0xa60] ss:$16 sps:$4 sm:$0xff]  }
 0x32a   :  { %7447 = vmatprep.subr.bf16.mxu1 %v9232_v23  ;;  %v9314_v23 = vld [vmem:[#allocation2 + $0xa68] ss:$16 sps:$4 sm:$0xff]  }
 0x32c   :  { %7104 = vmatpush1.bf16.msra.mxu0 %v9227_v24  ;;  %v9319_v24 = vld [vmem:[#allocation2 + $0xa84] ss:$16 sps:$4 sm:$0xff]  }
 0x32d   :  { %7448 = vmatpush1.bf16.msra.mxu1 %v9230_v29  ;;  %7105 = vmatprep.subr.bf16.mxu0 %v9235_v31  ;;  %v9322_v29 = vld [vmem:[#allocation2 + $0xa8c] ss:$16 sps:$4 sm:$0xff]   ;;  %v9320_v31 = vld [vmem:[#allocation2 + $0xa88] ss:$16 sps:$4 sm:$0xff]  }
 0x32e   :  { %7449 = vmatprep.subr.bf16.mxu1 %v9238_v32  ;;  %v9325_v32 = vld [vmem:[#allocation2 + $0xaa4] ss:$16 sps:$4 sm:$0xff]  }
 0x330   :  { %7106 = vmatpush1.bf16.msra.mxu0 %v9233_v33  ;;  %v9328_v33 = vld [vmem:[#allocation2 + $0xaac] ss:$16 sps:$4 sm:$0xff]  }
 0x331   :  { %7450 = vmatpush1.bf16.msra.mxu1 %v9236_v34  ;;  %7107 = vmatprep.subr.bf16.mxu0 %v9241_v35  ;;  %v9323_v34 = vld [vmem:[#allocation2 + $0xaa0] ss:$16 sps:$4 sm:$0xff]   ;;  %v9326_v35 = vld [vmem:[#allocation2 + $0xaa8] ss:$16 sps:$4 sm:$0xff]  }
 0x332   :  { %7451 = vmatprep.subr.bf16.mxu1 %v9244_v36  ;;  %v9331_v36 = vld [vmem:[#allocation2 + $0xac4] ss:$16 sps:$4 sm:$0xff]  }
 0x334   :  { %7108 = vmatpush1.bf16.msra.mxu0 %v9239_v37  ;;  %v9334_v37 = vld [vmem:[#allocation2 + $0xacc] ss:$16 sps:$4 sm:$0xff]  }
 0x335   :  { %7452 = vmatpush1.bf16.msra.mxu1 %v9242_v38  ;;  %7109 = vmatprep.subr.bf16.mxu0 %v9247_v39  ;;  %v9329_v38 = vld [vmem:[#allocation2 + $0xac0] ss:$16 sps:$4 sm:$0xff]   ;;  %v9332_v39 = vld [vmem:[#allocation2 + $0xac8] ss:$16 sps:$4 sm:$0xff]  }
 0x336   :  { %7453 = vmatprep.subr.bf16.mxu1 %v9250_v40  ;;  %v9337_v40 = vld [vmem:[#allocation2 + $0xae4] ss:$16 sps:$4 sm:$0xff]  }
 0x338   :  { %7110 = vmatpush1.bf16.msra.mxu0 %v9245_v41  ;;  %v9340_v41 = vld [vmem:[#allocation2 + $0xaec] ss:$16 sps:$4 sm:$0xff]  }
 0x339   :  { %7454 = vmatpush1.bf16.msra.mxu1 %v9248_v42  ;;  %7111 = vmatprep.subr.bf16.mxu0 %v9253_v43  ;;  %v9335_v42 = vld [vmem:[#allocation2 + $0xae0] ss:$16 sps:$4 sm:$0xff]   ;;  %v9338_v43 = vld [vmem:[#allocation2 + $0xae8] ss:$16 sps:$4 sm:$0xff]  }
 0x33a   :  { %7455 = vmatprep.subr.bf16.mxu1 %v9256_v44  ;;  %v9343_v44 = vld [vmem:[#allocation2 + $0xb04] ss:$16 sps:$4 sm:$0xff]  }
 0x33c   :  { %7112 = vmatpush1.bf16.msra.mxu0 %v9251_v3  ;;  %v9346_v3 = vld [vmem:[#allocation2 + $0xb0c] ss:$16 sps:$4 sm:$0xff]  }
 0x33d   :  { %7456 = vmatpush1.bf16.msra.mxu1 %v9254_v45  ;;  %7113 = vmatprep.subr.bf16.mxu0 %v9259_v46  ;;  %v9341_v45 = vld [vmem:[#allocation2 + $0xb00] ss:$16 sps:$4 sm:$0xff]   ;;  %v9344_v46 = vld [vmem:[#allocation2 + $0xb08] ss:$16 sps:$4 sm:$0xff]  }
 0x33e   :  { %7457 = vmatprep.subr.bf16.mxu1 %v9262_v58  ;;  %v9349_v58 = vld [vmem:[#allocation2 + $0xb24] ss:$16 sps:$4 sm:$0xff]  }
 0x340   :  { %7114 = vmatpush1.bf16.msra.mxu0 %v9257_v47  ;;  %v9352_v47 = vld [vmem:[#allocation2 + $0xb2c] ss:$16 sps:$4 sm:$0xff]  }
 0x341   :  { %7458 = vmatpush1.bf16.msra.mxu1 %v9260_v52  ;;  %7115 = vmatprep.subr.bf16.mxu0 %v9265_v49  ;;  %v9347_v52 = vld [vmem:[#allocation2 + $0xb20] ss:$16 sps:$4 sm:$0xff]   ;;  %v9350_v49 = vld [vmem:[#allocation2 + $0xb28] ss:$16 sps:$4 sm:$0xff]  }
 0x342   :  { %7459 = vmatprep.subr.bf16.mxu1 %v9268_v48  ;;  %v9355_v48 = vld [vmem:[#allocation2 + $0xb44] ss:$16 sps:$4 sm:$0xff]  }
 0x344   :  { %7116 = vmatpush1.bf16.msra.mxu0 %v9263_v50  ;;  %v9358_v50 = vld [vmem:[#allocation2 + $0xb4c] ss:$16 sps:$4 sm:$0xff]  }
 0x345   :  { %7460 = vmatpush1.bf16.msra.mxu1 %v9266_v51  ;;  %7117 = vmatprep.subr.bf16.mxu0 %v9271_v55  ;;  %v9353_v51 = vld [vmem:[#allocation2 + $0xb40] ss:$16 sps:$4 sm:$0xff]   ;;  %v9356_v55 = vld [vmem:[#allocation2 + $0xb48] ss:$16 sps:$4 sm:$0xff]  }
 0x346   :  { %7461 = vmatprep.subr.bf16.mxu1 %v9274_v59  ;;  %v9361_v59 = vld [vmem:[#allocation2 + $0xb64] ss:$16 sps:$4 sm:$0xff]  }
 0x348   :  { %7118 = vmatpush1.bf16.msra.mxu0 %v9269_v54  ;;  %v9364_v54 = vld [vmem:[#allocation2 + $0xb6c] ss:$16 sps:$4 sm:$0xff]  }
 0x349   :  { %7462 = vmatpush1.bf16.msra.mxu1 %v9272_v60  ;;  %7119 = vmatprep.subr.bf16.mxu0 %v9277_v61  ;;  %v9359_v60 = vld [vmem:[#allocation2 + $0xb60] ss:$16 sps:$4 sm:$0xff]   ;;  %v9362_v61 = vld [vmem:[#allocation2 + $0xb68] ss:$16 sps:$4 sm:$0xff]  }
 0x34a   :  { %7463 = vmatprep.subr.bf16.mxu1 %v9280_v62  ;;  %v9367_v62 = vld [vmem:[#allocation2 + $0xb84] ss:$16 sps:$4 sm:$0xff]  }
 0x34c   :  { %7120 = vmatpush1.bf16.msra.mxu0 %v9275_v0  ;;  %v9370_v0 = vld [vmem:[#allocation2 + $0xb8c] ss:$16 sps:$4 sm:$0xff]  }
 0x34d   :  { %7464 = vmatpush1.bf16.msra.mxu1 %v9278_v1  ;;  %7121 = vmatprep.subr.bf16.mxu0 %v9283_v2  ;;  %v9365_v1 = vld [vmem:[#allocation2 + $0xb80] ss:$16 sps:$4 sm:$0xff]   ;;  %v9368_v2 = vld [vmem:[#allocation2 + $0xb88] ss:$16 sps:$4 sm:$0xff]  }
 0x34e   :  { %7465 = vmatprep.subr.bf16.mxu1 %v9286_v5  ;;  %v9373_v5 = vld [vmem:[#allocation2 + $0xba4] ss:$16 sps:$4 sm:$0xff]  }
 0x350   :  { %7122 = vmatpush1.bf16.msra.mxu0 %v9281_v7  ;;  %v9376_v7 = vld [vmem:[#allocation2 + $0xbac] ss:$16 sps:$4 sm:$0xff]  }
 0x351   :  { %7466 = vmatpush1.bf16.msra.mxu1 %v9284_v8  ;;  %7123 = vmatprep.subr.bf16.mxu0 %v9289_v9  ;;  %v9371_v8 = vld [vmem:[#allocation2 + $0xba0] ss:$16 sps:$4 sm:$0xff]   ;;  %v9374_v9 = vld [vmem:[#allocation2 + $0xba8] ss:$16 sps:$4 sm:$0xff]  }
 0x352   :  { %7467 = vmatprep.subr.bf16.mxu1 %v9292_v10  ;;  %v9379_v10 = vld [vmem:[#allocation2 + $0xbc4] ss:$16 sps:$4 sm:$0xff]  }
 0x354   :  { %7124 = vmatpush1.bf16.msra.mxu0 %v9287_v11  ;;  %v9382_v11 = vld [vmem:[#allocation2 + $0xbcc] ss:$16 sps:$4 sm:$0xff]  }
 0x355   :  { %7468 = vmatpush1.bf16.msra.mxu1 %v9290_v12  ;;  %7136 = vmatprep.subr.bf16.mxu0 %v9295_v13  ;;  %v9377_v12 = vld [vmem:[#allocation2 + $0xbc0] ss:$16 sps:$4 sm:$0xff]   ;;  %v9380_v13 = vld [vmem:[#allocation2 + $0xbc8] ss:$16 sps:$4 sm:$0xff]  }
 0x356   :  { %7480 = vmatprep.subr.bf16.mxu1 %v9298_v28  ;;  %v9385_v28 = vld [vmem:[#allocation2 + $0xbe4] ss:$16 sps:$4 sm:$0xff]  }
 0x357   :  { %7126 = vmatmul.mubr.bf16.vlgmr.msra.gmra.mrb[16].mxu0 %v11301_v53 }
 0x358   :  { %7470 = vmatmul.mubr.bf16.vlgmr.msra.gmra.mrb[16].mxu1 %v11301_v53  ;;  %7137 = vmatpush1.bf16.msra.mxu0 %v9293_v14  ;;  %v9316_v53 = vld [vmem:[#allocation2 + $0xa6c] ss:$16 sps:$4 sm:$0xff]  }
 0x359   :  { %7168 = vmatprep.mubr.bf16.mxu0 %v11307_v25  ;;  %7481 = vmatpush1.bf16.msra.mxu1 %v9296_v16  ;;  %v9388_v14 = vld [vmem:[#allocation2 + $0xbec] ss:$16 sps:$4 sm:$0xff]   ;;  %v9383_v16 = vld [vmem:[#allocation2 + $0xbe0] ss:$16 sps:$4 sm:$0xff]  }
 0x35a   :  { %7512 = vmatprep.mubr.bf16.mxu1 %v11307_v25  ;;  %7138 = vmatprep.subr.bf16.mxu0 %v9301_v17  ;;  %v9317_v25 = vld [vmem:[#allocation2 + $0xa80] ss:$16 sps:$4 sm:$0xff]   ;;  %v9386_v17 = vld [vmem:[#allocation2 + $0xbe8] ss:$16 sps:$4 sm:$0xff]  }
 0x35b   :  { %7482 = vmatprep.subr.bf16.mxu1 %v9304_v18  ;;  %v9391_v18 = vld [vmem:[#allocation2 + $0xc04] ss:$16 sps:$4 sm:$0xff]  }
 0x35c   :  { %7139 = vmatpush1.bf16.msra.mxu0 %v9299_v15  ;;  %v9394_v15 = vld [vmem:[#allocation2 + $0xc0c] ss:$16 sps:$4 sm:$0xff]  }
 0x35d   :  { %7483 = vmatpush1.bf16.msra.mxu1 %v9302_v4  ;;  %7140 = vmatprep.subr.bf16.mxu0 %v9307_v19  ;;  %v9389_v4 = vld [vmem:[#allocation2 + $0xc00] ss:$16 sps:$4 sm:$0xff]   ;;  %v9392_v19 = vld [vmem:[#allocation2 + $0xc08] ss:$16 sps:$4 sm:$0xff]  }
 0x35e   :  { %7484 = vmatprep.subr.bf16.mxu1 %v9310_v63  ;;  %v9397_v63 = vld [vmem:[#allocation2 + $0xc24] ss:$16 sps:$4 sm:$0xff]  }
 0x360   :  { %7141 = vmatpush1.bf16.msra.mxu0 %v9305_v20  ;;  %v9400_v20 = vld [vmem:[#allocation2 + $0xc2c] ss:$16 sps:$4 sm:$0xff]  }
 0x361   :  { %7485 = vmatpush1.bf16.msra.mxu1 %v9308_v57  ;;  %7142 = vmatprep.subr.bf16.mxu0 %v9313_v21  ;;  %v9395_v57 = vld [vmem:[#allocation2 + $0xc20] ss:$16 sps:$4 sm:$0xff]   ;;  %v9398_v21 = vld [vmem:[#allocation2 + $0xc28] ss:$16 sps:$4 sm:$0xff]  }
 0x362   :  { %7486 = vmatprep.subr.bf16.mxu1 %v9316_v53  ;;  %v9403_v53 = vld [vmem:[#allocation2 + $0xc44] ss:$16 sps:$4 sm:$0xff]  }
 0x364   :  { %7143 = vmatpush1.bf16.msra.mxu0 %v9311_v22  ;;  %v9406_v22 = vld [vmem:[#allocation2 + $0xc4c] ss:$16 sps:$4 sm:$0xff]  }
 0x365   :  { %7487 = vmatpush1.bf16.msra.mxu1 %v9314_v23  ;;  %7144 = vmatprep.subr.bf16.mxu0 %v9319_v24  ;;  %v9401_v23 = vld [vmem:[#allocation2 + $0xc40] ss:$16 sps:$4 sm:$0xff]   ;;  %v9404_v24 = vld [vmem:[#allocation2 + $0xc48] ss:$16 sps:$4 sm:$0xff]  }
 0x366   :  { %7488 = vmatprep.subr.bf16.mxu1 %v9322_v29  ;;  %v9409_v29 = vld [vmem:[#allocation2 + $0xc64] ss:$16 sps:$4 sm:$0xff]  }
 0x368   :  { %7145 = vmatpush1.bf16.msra.mxu0 %v9317_v25  ;;  %v9407_v25 = vld [vmem:[#allocation2 + $0xc60] ss:$16 sps:$4 sm:$0xff]  }
 0x369   :  { %7489 = vmatpush1.bf16.msra.mxu1 %v9320_v31  ;;  %7146 = vmatprep.subr.bf16.mxu0 %v9325_v32  ;;  %v9410_v31 = vld [vmem:[#allocation2 + $0xc68] ss:$16 sps:$4 sm:$0xff]   ;;  %v9415_v32 = vld [vmem:[#allocation2 + $0xc84] ss:$16 sps:$4 sm:$0xff]  }
 0x36a   :  { %7490 = vmatprep.subr.bf16.mxu1 %v9328_v33  ;;  %v9418_v33 = vld [vmem:[#allocation2 + $0xc8c] ss:$16 sps:$4 sm:$0xff]  }
 0x36c   :  { %7147 = vmatpush1.bf16.msra.mxu0 %v9323_v34  ;;  %v9416_v34 = vld [vmem:[#allocation2 + $0xc88] ss:$16 sps:$4 sm:$0xff]  }
 0x36d   :  { %7491 = vmatpush1.bf16.msra.mxu1 %v9326_v35  ;;  %7148 = vmatprep.subr.bf16.mxu0 %v9331_v36  ;;  %v9421_v35 = vld [vmem:[#allocation2 + $0xca4] ss:$16 sps:$4 sm:$0xff]   ;;  %v9424_v36 = vld [vmem:[#allocation2 + $0xcac] ss:$16 sps:$4 sm:$0xff]  }
 0x36e   :  { %7492 = vmatprep.subr.bf16.mxu1 %v9334_v37  ;;  %v9419_v37 = vld [vmem:[#allocation2 + $0xca0] ss:$16 sps:$4 sm:$0xff]  }
 0x370   :  { %7149 = vmatpush1.bf16.msra.mxu0 %v9329_v38  ;;  %v9422_v38 = vld [vmem:[#allocation2 + $0xca8] ss:$16 sps:$4 sm:$0xff]  }
 0x371   :  { %7493 = vmatpush1.bf16.msra.mxu1 %v9332_v39  ;;  %7150 = vmatprep.subr.bf16.mxu0 %v9337_v40  ;;  %v9427_v39 = vld [vmem:[#allocation2 + $0xcc4] ss:$16 sps:$4 sm:$0xff]   ;;  %v9430_v40 = vld [vmem:[#allocation2 + $0xccc] ss:$16 sps:$4 sm:$0xff]  }
 0x372   :  { %7494 = vmatprep.subr.bf16.mxu1 %v9340_v41  ;;  %v9425_v41 = vld [vmem:[#allocation2 + $0xcc0] ss:$16 sps:$4 sm:$0xff]  }
 0x374   :  { %7151 = vmatpush1.bf16.msra.mxu0 %v9335_v42  ;;  %v9428_v42 = vld [vmem:[#allocation2 + $0xcc8] ss:$16 sps:$4 sm:$0xff]  }
 0x375   :  { %7495 = vmatpush1.bf16.msra.mxu1 %v9338_v43  ;;  %7152 = vmatprep.subr.bf16.mxu0 %v9343_v44  ;;  %v9433_v43 = vld [vmem:[#allocation2 + $0xce4] ss:$16 sps:$4 sm:$0xff]   ;;  %v9436_v44 = vld [vmem:[#allocation2 + $0xcec] ss:$16 sps:$4 sm:$0xff]  }
 0x376   :  { %7496 = vmatprep.subr.bf16.mxu1 %v9346_v3  ;;  %v9431_v3 = vld [vmem:[#allocation2 + $0xce0] ss:$16 sps:$4 sm:$0xff]  }
 0x378   :  { %7153 = vmatpush1.bf16.msra.mxu0 %v9341_v45  ;;  %v9434_v45 = vld [vmem:[#allocation2 + $0xce8] ss:$16 sps:$4 sm:$0xff]  }
 0x379   :  { %7497 = vmatpush1.bf16.msra.mxu1 %v9344_v46  ;;  %7154 = vmatprep.subr.bf16.mxu0 %v9349_v58  ;;  %v9439_v46 = vld [vmem:[#allocation2 + $0xd04] ss:$16 sps:$4 sm:$0xff]   ;;  %v9442_v58 = vld [vmem:[#allocation2 + $0xd0c] ss:$16 sps:$4 sm:$0xff]  }
 0x37a   :  { %7498 = vmatprep.subr.bf16.mxu1 %v9352_v47  ;;  %v9437_v47 = vld [vmem:[#allocation2 + $0xd00] ss:$16 sps:$4 sm:$0xff]  }
 0x37c   :  { %7155 = vmatpush1.bf16.msra.mxu0 %v9347_v52  ;;  %v9440_v52 = vld [vmem:[#allocation2 + $0xd08] ss:$16 sps:$4 sm:$0xff]  }
 0x37d   :  { %7499 = vmatpush1.bf16.msra.mxu1 %v9350_v49  ;;  %7156 = vmatprep.subr.bf16.mxu0 %v9355_v48  ;;  %v9445_v49 = vld [vmem:[#allocation2 + $0xd24] ss:$16 sps:$4 sm:$0xff]   ;;  %v9448_v48 = vld [vmem:[#allocation2 + $0xd2c] ss:$16 sps:$4 sm:$0xff]  }
 0x37e   :  { %7500 = vmatprep.subr.bf16.mxu1 %v9358_v50  ;;  %v9443_v50 = vld [vmem:[#allocation2 + $0xd20] ss:$16 sps:$4 sm:$0xff]  }
 0x380   :  { %7157 = vmatpush1.bf16.msra.mxu0 %v9353_v51  ;;  %v9446_v51 = vld [vmem:[#allocation2 + $0xd28] ss:$16 sps:$4 sm:$0xff]  }
 0x381   :  { %7501 = vmatpush1.bf16.msra.mxu1 %v9356_v55  ;;  %7158 = vmatprep.subr.bf16.mxu0 %v9361_v59  ;;  %v9451_v55 = vld [vmem:[#allocation2 + $0xd44] ss:$16 sps:$4 sm:$0xff]   ;;  %v9454_v59 = vld [vmem:[#allocation2 + $0xd4c] ss:$16 sps:$4 sm:$0xff]  }
 0x382   :  { %7502 = vmatprep.subr.bf16.mxu1 %v9364_v54  ;;  %v9449_v54 = vld [vmem:[#allocation2 + $0xd40] ss:$16 sps:$4 sm:$0xff]  }
 0x384   :  { %7159 = vmatpush1.bf16.msra.mxu0 %v9359_v60  ;;  %v9452_v60 = vld [vmem:[#allocation2 + $0xd48] ss:$16 sps:$4 sm:$0xff]  }
 0x385   :  { %7503 = vmatpush1.bf16.msra.mxu1 %v9362_v61  ;;  %7160 = vmatprep.subr.bf16.mxu0 %v9367_v62  ;;  %v9457_v61 = vld [vmem:[#allocation2 + $0xd64] ss:$16 sps:$4 sm:$0xff]   ;;  %v9460_v62 = vld [vmem:[#allocation2 + $0xd6c] ss:$16 sps:$4 sm:$0xff]  }
 0x386   :  { %7504 = vmatprep.subr.bf16.mxu1 %v9370_v0  ;;  %v9455_v0 = vld [vmem:[#allocation2 + $0xd60] ss:$16 sps:$4 sm:$0xff]  }
 0x388   :  { %7161 = vmatpush1.bf16.msra.mxu0 %v9365_v1  ;;  %v9458_v1 = vld [vmem:[#allocation2 + $0xd68] ss:$16 sps:$4 sm:$0xff]  }
 0x389   :  { %7505 = vmatpush1.bf16.msra.mxu1 %v9368_v2  ;;  %7162 = vmatprep.subr.bf16.mxu0 %v9373_v5  ;;  %v9463_v2 = vld [vmem:[#allocation2 + $0xd84] ss:$16 sps:$4 sm:$0xff]   ;;  %v9466_v5 = vld [vmem:[#allocation2 + $0xd8c] ss:$16 sps:$4 sm:$0xff]  }
 0x38a   :  { %7506 = vmatprep.subr.bf16.mxu1 %v9376_v7  ;;  %v9461_v7 = vld [vmem:[#allocation2 + $0xd80] ss:$16 sps:$4 sm:$0xff]  }
 0x38c   :  { %7163 = vmatpush1.bf16.msra.mxu0 %v9371_v8  ;;  %v9464_v8 = vld [vmem:[#allocation2 + $0xd88] ss:$16 sps:$4 sm:$0xff]  }
 0x38d   :  { %7507 = vmatpush1.bf16.msra.mxu1 %v9374_v9  ;;  %7164 = vmatprep.subr.bf16.mxu0 %v9379_v10  ;;  %v9469_v9 = vld [vmem:[#allocation2 + $0xda4] ss:$16 sps:$4 sm:$0xff]   ;;  %v9472_v10 = vld [vmem:[#allocation2 + $0xdac] ss:$16 sps:$4 sm:$0xff]  }
 0x38e   :  { %7508 = vmatprep.subr.bf16.mxu1 %v9382_v11  ;;  %v9467_v11 = vld [vmem:[#allocation2 + $0xda0] ss:$16 sps:$4 sm:$0xff]  }
 0x390   :  { %7165 = vmatpush1.bf16.msra.mxu0 %v9377_v12  ;;  %v9470_v12 = vld [vmem:[#allocation2 + $0xda8] ss:$16 sps:$4 sm:$0xff]  }
 0x391   :  { %7509 = vmatpush1.bf16.msra.mxu1 %v9380_v13  ;;  %7166 = vmatprep.subr.bf16.mxu0 %v9385_v28  ;;  %v9475_v13 = vld [vmem:[#allocation2 + $0xdc4] ss:$16 sps:$4 sm:$0xff]   ;;  %v9478_v28 = vld [vmem:[#allocation2 + $0xdcc] ss:$16 sps:$4 sm:$0xff]  }
 0x392   :  { %7510 = vmatprep.subr.bf16.mxu1 %v9388_v14  ;;  %v9473_v14 = vld [vmem:[#allocation2 + $0xdc0] ss:$16 sps:$4 sm:$0xff]  }
 0x394   :  { %7167 = vmatpush1.bf16.msra.mxu0 %v9383_v16  ;;  %v9476_v16 = vld [vmem:[#allocation2 + $0xdc8] ss:$16 sps:$4 sm:$0xff]  }
 0x395   :  { %7511 = vmatpush1.bf16.msra.mxu1 %v9386_v17  ;;  %7179 = vmatprep.subr.bf16.mxu0 %v9391_v18  ;;  %v9481_v17 = vld [vmem:[#allocation2 + $0xde4] ss:$16 sps:$4 sm:$0xff]   ;;  %v9484_v18 = vld [vmem:[#allocation2 + $0xdec] ss:$16 sps:$4 sm:$0xff]  }
 0x396   :  { %7523 = vmatprep.subr.bf16.mxu1 %v9394_v15  ;;  %v9479_v15 = vld [vmem:[#allocation2 + $0xde0] ss:$16 sps:$4 sm:$0xff]  }
 0x397   :  { %7169 = vmatmul.mubr.bf16.vlgmr.msra.gmra.mrb[16].mxu0 %v11303_v56 }
 0x398   :  { %7513 = vmatmul.mubr.bf16.vlgmr.msra.gmra.mrb[16].mxu1 %v11303_v56  ;;  %7180 = vmatpush1.bf16.msra.mxu0 %v9389_v4  ;;  %v9412_v56 = vld [vmem:[#allocation2 + $0xc6c] ss:$16 sps:$4 sm:$0xff]   ;;  %v9482_v4 = vld [vmem:[#allocation2 + $0xde8] ss:$16 sps:$4 sm:$0xff]  }
 0x399   :  { %7211 = vmatprep.mubr.bf16.mxu0 %v11321_v27  ;;  %7524 = vmatpush1.bf16.msra.mxu1 %v9392_v19  ;;  %v9487_v19 = vld [vmem:[#allocation2 + $0xe04] ss:$16 sps:$4 sm:$0xff]  }
 0x39a   :  { %7555 = vmatprep.mubr.bf16.mxu1 %v11321_v27  ;;  %7181 = vmatprep.subr.bf16.mxu0 %v9397_v63  ;;  %v9413_v27 = vld [vmem:[#allocation2 + $0xc80] ss:$16 sps:$4 sm:$0xff]   ;;  %v9490_v63 = vld [vmem:[#allocation2 + $0xe0c] ss:$16 sps:$4 sm:$0xff]  }
 0x39b   :  { %7525 = vmatprep.subr.bf16.mxu1 %v9400_v20  ;;  %v9485_v20 = vld [vmem:[#allocation2 + $0xe00] ss:$16 sps:$4 sm:$0xff]  }
 0x39c   :  { %7182 = vmatpush1.bf16.msra.mxu0 %v9395_v57  ;;  %v9488_v57 = vld [vmem:[#allocation2 + $0xe08] ss:$16 sps:$4 sm:$0xff]  }
 0x39d   :  { %7526 = vmatpush1.bf16.msra.mxu1 %v9398_v21  ;;  %7183 = vmatprep.subr.bf16.mxu0 %v9403_v53  ;;  %v9493_v21 = vld [vmem:[#allocation2 + $0xe24] ss:$16 sps:$4 sm:$0xff]   ;;  %v9496_v53 = vld [vmem:[#allocation2 + $0xe2c] ss:$16 sps:$4 sm:$0xff]  }
 0x39e   :  { %7527 = vmatprep.subr.bf16.mxu1 %v9406_v22  ;;  %v9491_v22 = vld [vmem:[#allocation2 + $0xe20] ss:$16 sps:$4 sm:$0xff]  }
 0x3a0   :  { %7184 = vmatpush1.bf16.msra.mxu0 %v9401_v23  ;;  %v9494_v23 = vld [vmem:[#allocation2 + $0xe28] ss:$16 sps:$4 sm:$0xff]  }
 0x3a1   :  { %7528 = vmatpush1.bf16.msra.mxu1 %v9404_v24  ;;  %7185 = vmatprep.subr.bf16.mxu0 %v9409_v29  ;;  %v9499_v24 = vld [vmem:[#allocation2 + $0xe44] ss:$16 sps:$4 sm:$0xff]   ;;  %v9502_v29 = vld [vmem:[#allocation2 + $0xe4c] ss:$16 sps:$4 sm:$0xff]  }
 0x3a2   :  { %7529 = vmatprep.subr.bf16.mxu1 %v9412_v56  ;;  %v9497_v56 = vld [vmem:[#allocation2 + $0xe40] ss:$16 sps:$4 sm:$0xff]  }
 0x3a4   :  { %7186 = vmatpush1.bf16.msra.mxu0 %v9407_v25  ;;  %v9500_v25 = vld [vmem:[#allocation2 + $0xe48] ss:$16 sps:$4 sm:$0xff]  }
 0x3a5   :  { %7530 = vmatpush1.bf16.msra.mxu1 %v9410_v31  ;;  %7187 = vmatprep.subr.bf16.mxu0 %v9415_v32  ;;  %v9505_v31 = vld [vmem:[#allocation2 + $0xe64] ss:$16 sps:$4 sm:$0xff]   ;;  %v9503_v32 = vld [vmem:[#allocation2 + $0xe60] ss:$16 sps:$4 sm:$0xff]  }
 0x3a6   :  { %7531 = vmatprep.subr.bf16.mxu1 %v9418_v33  ;;  %v9506_v33 = vld [vmem:[#allocation2 + $0xe68] ss:$16 sps:$4 sm:$0xff]  }
 0x3a8   :  { %7188 = vmatpush1.bf16.msra.mxu0 %v9413_v27  ;;  %v9511_v27 = vld [vmem:[#allocation2 + $0xe84] ss:$16 sps:$4 sm:$0xff]  }
 0x3a9   :  { %7532 = vmatpush1.bf16.msra.mxu1 %v9416_v34  ;;  %7189 = vmatprep.subr.bf16.mxu0 %v9421_v35  ;;  %v9514_v34 = vld [vmem:[#allocation2 + $0xe8c] ss:$16 sps:$4 sm:$0xff]   ;;  %v9512_v35 = vld [vmem:[#allocation2 + $0xe88] ss:$16 sps:$4 sm:$0xff]  }
 0x3aa   :  { %7533 = vmatprep.subr.bf16.mxu1 %v9424_v36  ;;  %v9517_v36 = vld [vmem:[#allocation2 + $0xea4] ss:$16 sps:$4 sm:$0xff]  }
 0x3ac   :  { %7190 = vmatpush1.bf16.msra.mxu0 %v9419_v37  ;;  %v9520_v37 = vld [vmem:[#allocation2 + $0xeac] ss:$16 sps:$4 sm:$0xff]  }
 0x3ad   :  { %7534 = vmatpush1.bf16.msra.mxu1 %v9422_v38  ;;  %7191 = vmatprep.subr.bf16.mxu0 %v9427_v39  ;;  %v9515_v38 = vld [vmem:[#allocation2 + $0xea0] ss:$16 sps:$4 sm:$0xff]   ;;  %v9518_v39 = vld [vmem:[#allocation2 + $0xea8] ss:$16 sps:$4 sm:$0xff]  }
 0x3ae   :  { %7535 = vmatprep.subr.bf16.mxu1 %v9430_v40  ;;  %v9523_v40 = vld [vmem:[#allocation2 + $0xec4] ss:$16 sps:$4 sm:$0xff]  }
 0x3b0   :  { %7192 = vmatpush1.bf16.msra.mxu0 %v9425_v41  ;;  %v9526_v41 = vld [vmem:[#allocation2 + $0xecc] ss:$16 sps:$4 sm:$0xff]  }
 0x3b1   :  { %7536 = vmatpush1.bf16.msra.mxu1 %v9428_v42  ;;  %7193 = vmatprep.subr.bf16.mxu0 %v9433_v43  ;;  %v9521_v42 = vld [vmem:[#allocation2 + $0xec0] ss:$16 sps:$4 sm:$0xff]   ;;  %v9524_v43 = vld [vmem:[#allocation2 + $0xec8] ss:$16 sps:$4 sm:$0xff]  }
 0x3b2   :  { %7537 = vmatprep.subr.bf16.mxu1 %v9436_v44  ;;  %v9529_v44 = vld [vmem:[#allocation2 + $0xee4] ss:$16 sps:$4 sm:$0xff]  }
 0x3b4   :  { %7194 = vmatpush1.bf16.msra.mxu0 %v9431_v3  ;;  %v9532_v3 = vld [vmem:[#allocation2 + $0xeec] ss:$16 sps:$4 sm:$0xff]  }
 0x3b5   :  { %7538 = vmatpush1.bf16.msra.mxu1 %v9434_v45  ;;  %7195 = vmatprep.subr.bf16.mxu0 %v9439_v46  ;;  %v9527_v45 = vld [vmem:[#allocation2 + $0xee0] ss:$16 sps:$4 sm:$0xff]   ;;  %v9530_v46 = vld [vmem:[#allocation2 + $0xee8] ss:$16 sps:$4 sm:$0xff]  }
 0x3b6   :  { %7539 = vmatprep.subr.bf16.mxu1 %v9442_v58  ;;  %v9535_v58 = vld [vmem:[#allocation2 + $0xf04] ss:$16 sps:$4 sm:$0xff]  }
 0x3b8   :  { %7196 = vmatpush1.bf16.msra.mxu0 %v9437_v47  ;;  %v9538_v47 = vld [vmem:[#allocation2 + $0xf0c] ss:$16 sps:$4 sm:$0xff]  }
 0x3b9   :  { %7540 = vmatpush1.bf16.msra.mxu1 %v9440_v52  ;;  %7197 = vmatprep.subr.bf16.mxu0 %v9445_v49  ;;  %v9533_v52 = vld [vmem:[#allocation2 + $0xf00] ss:$16 sps:$4 sm:$0xff]   ;;  %v9536_v49 = vld [vmem:[#allocation2 + $0xf08] ss:$16 sps:$4 sm:$0xff]  }
 0x3ba   :  { %7541 = vmatprep.subr.bf16.mxu1 %v9448_v48  ;;  %v9541_v48 = vld [vmem:[#allocation2 + $0xf24] ss:$16 sps:$4 sm:$0xff]  }
 0x3bc   :  { %7198 = vmatpush1.bf16.msra.mxu0 %v9443_v50  ;;  %v9544_v50 = vld [vmem:[#allocation2 + $0xf2c] ss:$16 sps:$4 sm:$0xff]  }
 0x3bd   :  { %7542 = vmatpush1.bf16.msra.mxu1 %v9446_v51  ;;  %7199 = vmatprep.subr.bf16.mxu0 %v9451_v55  ;;  %v9539_v51 = vld [vmem:[#allocation2 + $0xf20] ss:$16 sps:$4 sm:$0xff]   ;;  %v9542_v55 = vld [vmem:[#allocation2 + $0xf28] ss:$16 sps:$4 sm:$0xff]  }
 0x3be   :  { %7543 = vmatprep.subr.bf16.mxu1 %v9454_v59  ;;  %v9547_v59 = vld [vmem:[#allocation2 + $0xf44] ss:$16 sps:$4 sm:$0xff]  }
 0x3c0   :  { %7200 = vmatpush1.bf16.msra.mxu0 %v9449_v54  ;;  %v9550_v54 = vld [vmem:[#allocation2 + $0xf4c] ss:$16 sps:$4 sm:$0xff]  }
 0x3c1   :  { %7544 = vmatpush1.bf16.msra.mxu1 %v9452_v60  ;;  %7201 = vmatprep.subr.bf16.mxu0 %v9457_v61  ;;  %v9545_v60 = vld [vmem:[#allocation2 + $0xf40] ss:$16 sps:$4 sm:$0xff]   ;;  %v9548_v61 = vld [vmem:[#allocation2 + $0xf48] ss:$16 sps:$4 sm:$0xff]  }
 0x3c2   :  { %7545 = vmatprep.subr.bf16.mxu1 %v9460_v62  ;;  %v9553_v62 = vld [vmem:[#allocation2 + $0xf64] ss:$16 sps:$4 sm:$0xff]  }
 0x3c4   :  { %7202 = vmatpush1.bf16.msra.mxu0 %v9455_v0  ;;  %v9556_v0 = vld [vmem:[#allocation2 + $0xf6c] ss:$16 sps:$4 sm:$0xff]  }
 0x3c5   :  { %7546 = vmatpush1.bf16.msra.mxu1 %v9458_v1  ;;  %7203 = vmatprep.subr.bf16.mxu0 %v9463_v2  ;;  %v9551_v1 = vld [vmem:[#allocation2 + $0xf60] ss:$16 sps:$4 sm:$0xff]   ;;  %v9554_v2 = vld [vmem:[#allocation2 + $0xf68] ss:$16 sps:$4 sm:$0xff]  }
 0x3c6   :  { %7547 = vmatprep.subr.bf16.mxu1 %v9466_v5  ;;  %v9559_v5 = vld [vmem:[#allocation2 + $0xf84] ss:$16 sps:$4 sm:$0xff]  }
 0x3c8   :  { %7204 = vmatpush1.bf16.msra.mxu0 %v9461_v7  ;;  %v9562_v7 = vld [vmem:[#allocation2 + $0xf8c] ss:$16 sps:$4 sm:$0xff]  }
 0x3c9   :  { %7548 = vmatpush1.bf16.msra.mxu1 %v9464_v8  ;;  %7205 = vmatprep.subr.bf16.mxu0 %v9469_v9  ;;  %v9557_v8 = vld [vmem:[#allocation2 + $0xf80] ss:$16 sps:$4 sm:$0xff]   ;;  %v9560_v9 = vld [vmem:[#allocation2 + $0xf88] ss:$16 sps:$4 sm:$0xff]  }
 0x3ca   :  { %7549 = vmatprep.subr.bf16.mxu1 %v9472_v10  ;;  %v9565_v10 = vld [vmem:[#allocation2 + $0xfa4] ss:$16 sps:$4 sm:$0xff]  }
 0x3cc   :  { %7206 = vmatpush1.bf16.msra.mxu0 %v9467_v11  ;;  %v9568_v11 = vld [vmem:[#allocation2 + $0xfac] ss:$16 sps:$4 sm:$0xff]  }
 0x3cd   :  { %7550 = vmatpush1.bf16.msra.mxu1 %v9470_v12  ;;  %7207 = vmatprep.subr.bf16.mxu0 %v9475_v13  ;;  %v9563_v12 = vld [vmem:[#allocation2 + $0xfa0] ss:$16 sps:$4 sm:$0xff]   ;;  %v9566_v13 = vld [vmem:[#allocation2 + $0xfa8] ss:$16 sps:$4 sm:$0xff]  }
 0x3ce   :  { %7551 = vmatprep.subr.bf16.mxu1 %v9478_v28  ;;  %v9571_v28 = vld [vmem:[#allocation2 + $0xfc4] ss:$16 sps:$4 sm:$0xff]  }
 0x3d0   :  { %7208 = vmatpush1.bf16.msra.mxu0 %v9473_v14  ;;  %v9574_v14 = vld [vmem:[#allocation2 + $0xfcc] ss:$16 sps:$4 sm:$0xff]  }
 0x3d1   :  { %7552 = vmatpush1.bf16.msra.mxu1 %v9476_v16  ;;  %7209 = vmatprep.subr.bf16.mxu0 %v9481_v17  ;;  %v9569_v16 = vld [vmem:[#allocation2 + $0xfc0] ss:$16 sps:$4 sm:$0xff]   ;;  %v9572_v17 = vld [vmem:[#allocation2 + $0xfc8] ss:$16 sps:$4 sm:$0xff]  }
 0x3d2   :  { %7553 = vmatprep.subr.bf16.mxu1 %v9484_v18  ;;  %v9577_v18 = vld [vmem:[#allocation2 + $0xfe4] ss:$16 sps:$4 sm:$0xff]  }
 0x3d4   :  { %7210 = vmatpush1.bf16.msra.mxu0 %v9479_v15  ;;  %v9580_v15 = vld [vmem:[#allocation2 + $0xfec] ss:$16 sps:$4 sm:$0xff]  }
 0x3d5   :  { %7554 = vmatpush1.bf16.msra.mxu1 %v9482_v4  ;;  %7222 = vmatprep.subr.bf16.mxu0 %v9487_v19  ;;  %v9575_v4 = vld [vmem:[#allocation2 + $0xfe0] ss:$16 sps:$4 sm:$0xff]   ;;  %v9578_v19 = vld [vmem:[#allocation2 + $0xfe8] ss:$16 sps:$4 sm:$0xff]  }
 0x3d6   :  { %7566 = vmatprep.subr.bf16.mxu1 %v9490_v63 }
 0x3d7   :  { %7212 = vmatmul.mubr.bf16.vlgmr.msra.gmra.mrb[16].mxu0 %v11317_v6 }
 0x3d8   :  { %7556 = vmatmul.mubr.bf16.vlgmr.msra.gmra.mrb[16].mxu1 %v11317_v6  ;;  %7223 = vmatpush1.bf16.msra.mxu0 %v9485_v20  ;;  %v9508_v6 = vld [vmem:[#allocation2 + $0xe6c] ss:$16 sps:$4 sm:$0xff]   ;;  %v9585_v20 = vld [vmem:[%s11379_s0] sm:$0xff] }
 0x3d9   :  { %7254 = vmatprep.mubr.bf16.mxu0 %v11323_v30  ;;  %7567 = vmatpush1.bf16.msra.mxu1 %v9488_v57 }
 0x3da   :  { %7598 = vmatprep.mubr.bf16.mxu1 %v11323_v30  ;;  %7224 = vmatprep.subr.bf16.mxu0 %v9493_v21  ;;  %v9509_v30 = vld [vmem:[#allocation2 + $0xe80] ss:$16 sps:$4 sm:$0xff]  }
 0x3db   :  { %7568 = vmatprep.subr.bf16.mxu1 %v9496_v53 }
 0x3dc   :  { %7225 = vmatpush1.bf16.msra.mxu0 %v9491_v22  ;;  %v9586_v22 = vld [vmem:[%s11379_s0 + $0x8] sm:$0xff] }
 0x3dd   :  { %7569 = vmatpush1.bf16.msra.mxu1 %v9494_v23  ;;  %7226 = vmatprep.subr.bf16.mxu0 %v9499_v24 }
 0x3de   :  { %7570 = vmatprep.subr.bf16.mxu1 %v9502_v29 }
 0x3e0   :  { %7227 = vmatpush1.bf16.msra.mxu0 %v9497_v56  ;;  %v9587_v56 = vld [vmem:[%s11379_s0 + $0x20] sm:$0xff] }
 0x3e1   :  { %7571 = vmatpush1.bf16.msra.mxu1 %v9500_v25  ;;  %7228 = vmatprep.subr.bf16.mxu0 %v9505_v31 }
 0x3e2   :  { %7572 = vmatprep.subr.bf16.mxu1 %v9508_v6  ;;  %v9588_v6 = vld [vmem:[%s11379_s0 + $0x10] sm:$0xff] }
 0x3e4   :  { %7229 = vmatpush1.bf16.msra.mxu0 %v9503_v32 }
 0x3e5   :  { %7573 = vmatpush1.bf16.msra.mxu1 %v9506_v33  ;;  %7230 = vmatprep.subr.bf16.mxu0 %v9511_v27  ;;  %v9589_v27 = vld [vmem:[%s11379_s0 + $0x28] sm:$0xff] }
 0x3e6   :  { %7574 = vmatprep.subr.bf16.mxu1 %v9514_v34 }
 0x3e8   :  { %7231 = vmatpush1.bf16.msra.mxu0 %v9509_v30 }
 0x3e9   :  { %7575 = vmatpush1.bf16.msra.mxu1 %v9512_v35  ;;  %7232 = vmatprep.subr.bf16.mxu0 %v9517_v36  ;;  %v9590_v35 = vld [vmem:[%s11379_s0 + $0x18] sm:$0xff] }
 0x3ea   :  { %7576 = vmatprep.subr.bf16.mxu1 %v9520_v37  ;;  %v9591_v37 = vld [vmem:[%s11379_s0 + $0x30] sm:$0xff] }
 0x3ec   :  { %7233 = vmatpush1.bf16.msra.mxu0 %v9515_v38 }
 0x3ed   :  { %7577 = vmatpush1.bf16.msra.mxu1 %v9518_v39  ;;  %7234 = vmatprep.subr.bf16.mxu0 %v9523_v40 }
 0x3ee   :  { %7578 = vmatprep.subr.bf16.mxu1 %v9526_v41 }
 0x3f0   :  { %7235 = vmatpush1.bf16.msra.mxu0 %v9521_v42 }
 0x3f1   :  { %7579 = vmatpush1.bf16.msra.mxu1 %v9524_v43  ;;  %7236 = vmatprep.subr.bf16.mxu0 %v9529_v44  ;;  %v9592_v43 = vld [vmem:[%s11379_s0 + $0x38] sm:$0xff]  ;;  %s9644_s0 = smov [#allocation5]  }
 0x3f2   :  { %7580 = vmatprep.subr.bf16.mxu1 %v9532_v3  ;;  %s7675_s17 = sshll.u32 %s9644_s0, 4  ;;  %s7676_s17 = int_to_ptr.vmem [resolvable:$true] %s7675_s17 }
 0x3f3   :  { %s9615_s18 = scalar_lea.vmem %s7676_s17, 1024  ;;  %p9620_p9 = scmp.lt.s32.totalorder %s7676_s17, %s7676_s17 }
 0x3f4   :  { %7237 = vmatpush1.bf16.msra.mxu0 %v9527_v45  ;;  %p9616_p8 = scmp.ne.s32.totalorder %s7676_s17, %s9615_s18  ;;  %p9621_p10 = scmp.lt.s32.totalorder %s9615_s18, %s9615_s18 }
 0x3f5   :  { %7581 = vmatpush1.bf16.msra.mxu1 %v9530_v46  ;;  %7238 = vmatprep.subr.bf16.mxu0 %v9535_v58 }
 0x3f6   :  { %7582 = vmatprep.subr.bf16.mxu1 %v9538_v47  ;;  %p9622_p11 = por %p9621_p10, %p9620_p9 }
 0x3f8   :  { %7239 = vmatpush1.bf16.msra.mxu0 %v9533_v52  ;;  %p9623_p12 = pnand %p9622_p11, %p9616_p8 }
 0x3f9   :  { %7583 = vmatpush1.bf16.msra.mxu1 %v9536_v49  ;;  %7240 = vmatprep.subr.bf16.mxu0 %v9541_v48 }
 0x3fa   :  { %7584 = vmatprep.subr.bf16.mxu1 %v9544_v50 }
 0x3fc   :  { %7241 = vmatpush1.bf16.msra.mxu0 %v9539_v51 }
 0x3fd   :  { %7585 = vmatpush1.bf16.msra.mxu1 %v9542_v55  ;;  %7242 = vmatprep.subr.bf16.mxu0 %v9547_v59 }
 0x3fe   :  { %7586 = vmatprep.subr.bf16.mxu1 %v9550_v54 }
 0x400   :  { %7243 = vmatpush1.bf16.msra.mxu0 %v9545_v60 }
 0x401   :  { %7587 = vmatpush1.bf16.msra.mxu1 %v9548_v61  ;;  %7244 = vmatprep.subr.bf16.mxu0 %v9553_v62 }
 0x402   :  { %7588 = vmatprep.subr.bf16.mxu1 %v9556_v0 }
 0x404   :  { %7245 = vmatpush1.bf16.msra.mxu0 %v9551_v1 }
 0x405   :  { %7589 = vmatpush1.bf16.msra.mxu1 %v9554_v2  ;;  %7246 = vmatprep.subr.bf16.mxu0 %v9559_v5 }
 0x406   :  { %7590 = vmatprep.subr.bf16.mxu1 %v9562_v7 }
 0x408   :  { %7247 = vmatpush1.bf16.msra.mxu0 %v9557_v8 }
 0x409   :  { %7591 = vmatpush1.bf16.msra.mxu1 %v9560_v9  ;;  %7248 = vmatprep.subr.bf16.mxu0 %v9565_v10 }
 0x40a   :  { %7592 = vmatprep.subr.bf16.mxu1 %v9568_v11 }
 0x40c   :  { %7249 = vmatpush1.bf16.msra.mxu0 %v9563_v12 }
 0x40d   :  { %7593 = vmatpush1.bf16.msra.mxu1 %v9566_v13  ;;  %7250 = vmatprep.subr.bf16.mxu0 %v9571_v28 }
 0x40e   :  { %7594 = vmatprep.subr.bf16.mxu1 %v9574_v14 }
 0x410   :  { %7251 = vmatpush1.bf16.msra.mxu0 %v9569_v16 }
 0x411   :  { %7595 = vmatpush1.bf16.msra.mxu1 %v9572_v17  ;;  %7252 = vmatprep.subr.bf16.mxu0 %v9577_v18 }
 0x412   :  { %7596 = vmatprep.subr.bf16.mxu1 %v9580_v15 }
 0x414   :  { %7253 = vmatpush1.bf16.msra.mxu0 %v9575_v4 }
 0x415   :  { %7597 = vmatpush1.bf16.msra.mxu1 %v9578_v19 }
 0x417   :  { %7255 = vmatmul.mubr.bf16.vlgmr.msra.gmra.mrb[16].mxu0 %v11319_v26 }
 0x418   :  { %7599 = vmatmul.mubr.bf16.vlgmr.msra.gmra.mrb[16].mxu1 %v11319_v26 }
 0x4ea   :  { %v7256_v63 = vpop.f32.mrb[16].mxu0 }
 0x4eb   :  { %v8711_v57 = vadd.f32 %v9585_v20, %v7256_v63  ;;  %v7600_v21 = vpop.f32.mrb[16].mxu1  ;;  %v7258_v53 = vpop.f32.mrb[17].mxu0 }
 0x4ec   :  { %v8712_v23 = vadd.f32 %v9586_v22, %v7258_v53  ;;  %v7602_v24 = vpop.f32.mrb[17].mxu1  ;;  %v7260_v29 = vpop.f32.mrb[18].mxu0  ;;  %v8715_v32 = vadd.f32 %v9588_v6, %v7600_v21 }
 0x4ed   :  { %v8713_v26 = vadd.f32 %v9587_v56, %v7260_v29  ;;  %v7604_v25 = vpop.f32.mrb[18].mxu1  ;;  %v7262_v31 = vpop.f32.mrb[19].mxu0  ;;  %v8716_v36 = vadd.f32 %v9590_v35, %v7602_v24 }
 0x4ee   :  { %v7609_v33 = vadd.f32 %v8712_v23, %v8711_v57  ;;  %v8714_v34 = vadd.f32 %v9589_v27, %v7262_v31  ;;  %v7606_v30 = vpop.f32.mrb[19].mxu1  ;;  %v8717_v38 = vadd.f32 %v9591_v37, %v7604_v25 }
 0x4ef   :  { %v8718_v44 = vadd.f32 %v9592_v43, %v7606_v30 }
 0x4f0   :  { %v7614_v39 = vadd.f32 %v8714_v34, %v8713_v26  ;;  %v7610_v40 = vadd.f32 %v8715_v32, %v7609_v33 }
 0x4f2   :  { %v7611_v41 = vadd.f32 %v8716_v36, %v7610_v40  ;;  %v7615_v42 = vadd.f32 %v8717_v38, %v7614_v39 }
 0x4f4   :  { %7612 = vadd.xlane.f32.xlu0 %v7611_v41  ;;  %v7616_v3 = vadd.f32 %v8718_v44, %v7615_v42 }
 0x4f8   :  { %7617 = vadd.xlane.f32.xlu0 %v7616_v3 }
 0x581   :  { %v7613_v45 = vpop.xlane.xlu0 %7612 }
 0x582   :  { %v7620_v46 = vmul.f32 0.001953125, %v7613_v45 }
 0x584   :  { %v7622_v58 = vsub.f32 %v8711_v57, %v7620_v46  ;;  %v7623_v47 = vsub.f32 %v8712_v23, %v7620_v46  ;;  %v7624_v52 = vsub.f32 %v8715_v32, %v7620_v46  ;;  %v7625_v48 = vsub.f32 %v8716_v36, %v7620_v46 }
 0x585   :  { %v7618_v49 = vpop.xlane.xlu0 %7617 }
 0x586   :  { %v7621_v50 = vmul.f32 0.001953125, %v7618_v49  ;;  %v7630_v51 = vmul.f32 %v7622_v58, %v7622_v58  ;;  %v7631_v55 = vmul.f32 %v7623_v47, %v7623_v47  ;;  %v7632_v59 = vmul.f32 %v7624_v52, %v7624_v52 }
 0x587   :  { %v7633_v0 = vmul.f32 %v7625_v48, %v7625_v48 }
 0x588   :  { %v7626_v54 = vsub.f32 %v8713_v26, %v7621_v50  ;;  %v7627_v60 = vsub.f32 %v8714_v34, %v7621_v50  ;;  %v7638_v61 = vadd.f32 %v7631_v55, %v7630_v51  ;;  %v7628_v62 = vsub.f32 %v8717_v38, %v7621_v50 }
 0x589   :  { %v7629_v2 = vsub.f32 %v8718_v44, %v7621_v50 }
 0x58a   :  { %v7639_v1 = vadd.f32 %v7638_v61, %v7632_v59  ;;  %v7634_v5 = vmul.f32 %v7626_v54, %v7626_v54  ;;  %v7635_v7 = vmul.f32 %v7627_v60, %v7627_v60  ;;  %v7636_v9 = vmul.f32 %v7628_v62, %v7628_v62 }
 0x58b   :  { %v7637_v11 = vmul.f32 %v7629_v2, %v7629_v2 }
 0x58c   :  { %v7640_v8 = vadd.f32 %v7639_v1, %v7633_v0  ;;  %v7643_v10 = vadd.f32 %v7635_v7, %v7634_v5 }
 0x58e   :  { %7641 = vadd.xlane.f32.xlu1 %v7640_v8  ;;  %v7644_v12 = vadd.f32 %v7643_v10, %v7636_v9 }
 0x590   :  { %v7645_v13 = vadd.f32 %v7644_v12, %v7637_v11 }
 0x592   :  { %7646 = vadd.xlane.f32.xlu1 %v7645_v13 }
 0x61b   :  { %v7642_v28 = vpop.xlane.xlu1 %7641 }
 0x61c   :  { %v7648_v14 = vmul.f32 0.001953125, %v7642_v28 }
 0x61e   :  { %v7650_v16 = vadd.f32 1e-05, %v7648_v14 }
 0x61f   :  { %v7647_v17 = vpop.xlane.xlu1 %7646 }
 0x620   :  { %9581 = vrsqrt.f32 %v7650_v16  ;;  %v7649_v18 = vmul.f32 0.001953125, %v7647_v17 }
 0x622   :  { %v7651_v15 = vadd.f32 1e-05, %v7649_v18 }
 0x624   :  { %9583 = vrsqrt.f32 %v7651_v15 }
 0x62a   :  { %v9582_v4 = vpop.eup %9581 }
 0x62b   :  { %v7654_v19 = vmul.f32 %v9582_v4, %v7622_v58  ;;  %v7655_v63 = vmul.f32 %v9582_v4, %v7623_v47  ;;  %v7656_v20 = vmul.f32 %v9582_v4, %v7624_v52  ;;  %v7657_v57 = vmul.f32 %v9582_v4, %v7625_v48 }
 0x62d   :  { %7662 = vst [vmem:[#allocation5] sm:$0xff] %v7654_v19  ;;  %7663 = vst [vmem:[#allocation5 + $0x8] sm:$0xff] %v7655_v63 }
 0x62e   :  { %7664 = vst [vmem:[#allocation5 + $0x10] sm:$0xff] %v7656_v20  ;;  %7665 = vst [vmem:[#allocation5 + $0x18] sm:$0xff] %v7657_v57  ;;  %v9584_v21 = vpop.eup %9583 }
 0x62f   :  { %v7658_v53 = vmul.f32 %v9584_v21, %v7626_v54  ;;  %v7659_v22 = vmul.f32 %v9584_v21, %v7627_v60  ;;  %v7660_v23 = vmul.f32 %v9584_v21, %v7628_v62  ;;  %v7661_v24 = vmul.f32 %v9584_v21, %v7629_v2 }
 0x631   :  { %7666 = vst [vmem:[#allocation5 + $0x20] sm:$0xff] %v7658_v53  ;;  %7667 = vst [vmem:[#allocation5 + $0x28] sm:$0xff] %v7659_v22 }
 0x632   :  { %7668 = vst [vmem:[#allocation5 + $0x30] sm:$0xff] %v7660_v23  ;;  %7669 = vst [vmem:[#allocation5 + $0x38] sm:$0xff] %v7661_v24 }
 0x633   :  { %9626 = shalt.err (!%p9623_p12)
}
 0x634   :  { %s9627_s21 = scalar_lea.hbm %s11382_s3, 1024 }
 0x635   :  { %p9628_p13 = scmp.ne.s32.totalorder %s11382_s3, %s9627_s21  ;;  %p9631_p0 = scmp.lt.u32.totalorder %s9627_s21, %s11382_s3 }
 0x637   :  { %p9633_p1 = pnand %p9631_p0, %p9628_p13 }
 0x639   :  { %9636 = shalt.err (!%p9633_p1)
}
 0x63a   :  { %s9645_s26 = smov 512   ;;  %s9646_s27 = smov 32  }
 0x63b   :  { %7681 = dma.vmem_to_hbm [thread:$0]  %s7676_s17, 1024, %s11382_s3, [#allocation4], %s9645_s26, %s9645_s26, %s9646_s27  }
 0x63c   :  { %9639 = dma.done.wait [#allocation4], 1024  }
 0x63d   :  { %9640 = vsyncadd [#allocation4], 4294966272 }
 0x63e   :  { %7685 = vsyncpa [#allocation3], 1 }
 0x63f   :  { %7686 = vsyncpa [#allocation4], 1 }

</bundles_post_ra>
